<compile_context>
chip_gen: v5e
topology: v5e:2x2
jax: 0.10.0
libtpu: 0.0.40
codegen_flags: <defaults>
</compile_context>

<pallas_src>
import numpy as np

import jax
import jax.numpy as jnp
from jax import lax
from jax.experimental import pallas as pl
from jax.experimental.pallas import tpu as pltpu


# ---------------------------------------------------------------------------
# Host-side constant builders (trace-time numpy; shapes are static).
# ---------------------------------------------------------------------------
def _stride2_conv_tap_selectors(h_in, w_in):
  """Selection matrices S[t], t = kh*3+kw, each (Ho*Wo, Hin*Win), such that

       (S[t] @ x_flat)[oh*Wo + ow, :] == x[2*oh + kh - 1, 2*ow + kw - 1, :]
                                         (zero row if the tap hits padding)

  so a 3x3 / stride-2 / pad-1 conv becomes   sum_t (S[t] @ x_flat) @ W[t].
  """
  h_out, w_out = h_in // 2, w_in // 2
  s = np.zeros((9, h_out * w_out, h_in * w_in), np.float32)
  for kh in range(3):
    for kw in range(3):
      t = kh * 3 + kw
      for oh in range(h_out):
        ih = 2 * oh + kh - 1
        if ih < 0 or ih >= h_in:
          continue
        for ow in range(w_out):
          iw = 2 * ow + kw - 1
          if iw < 0 or iw >= w_in:
            continue
          s[t, oh * w_out + ow, ih * w_in + iw] = 1.0
  return s


def _bilinear_upsample_matrix(size_in, size_out):
  """(size_out, size_in) bilinear interpolation matrix, align_corners=False
  (the default of nn.Upsample(mode='bilinear'))."""
  scale = size_in / size_out
  m = np.zeros((size_out, size_in), np.float32)
  for d in range(size_out):
    src = (d + 0.5) * scale - 0.5
    src = max(src, 0.0)
    i0 = min(int(np.floor(src)), size_in - 1)
    frac = src - i0
    i1 = min(i0 + 1, size_in - 1)
    m[d, i0] += 1.0 - frac
    m[d, i1] += frac
  return m


# ---------------------------------------------------------------------------
# The fused kernel: one batch element per grid step, everything in VMEM.
# ---------------------------------------------------------------------------
def _fused_block_kernel(x_ref, s1_ref, w1_ref, b1_ref, s2_ref, w2_ref, b2_ref,
                        s3_ref, w3_ref, b3_ref, up_ref,
                        wg_ref, bg_ref, wt_ref, bt_ref, wp_ref, bp_ref,
                        ww_ref, bw_ref, o_ref):
  neg_slope = 0.2
  xf = x_ref[0]                                       # (HW, C) f32

  def conv3x3_s2(v, s_ref, w_ref, b_ref):
    # 3x3 / stride-2 / pad-1 conv as 9 (gather-matmul, weight-matmul) pairs;
    # the gather is an MXU matmul, so there is no strided slice / relayout.
    n_out = s_ref.shape[1]
    c_out = w_ref.shape[2]
    acc = jnp.zeros((n_out, c_out), jnp.float32)
    for t in range(9):                                # static unroll
      gathered = jnp.dot(s_ref[t], v, preferred_element_type=jnp.float32)
      acc = acc + jnp.dot(gathered, w_ref[t],
                          preferred_element_type=jnp.float32)
    return acc + b_ref[...]

  def lrelu(v):
    return jnp.where(v >= 0, v, neg_slope * v)

  # ---- GEunit attention branch (stays entirely in VMEM) ----
  y = lrelu(conv3x3_s2(xf, s1_ref, w1_ref, b1_ref))   # (HW/4,  C)
  y = lrelu(conv3x3_s2(y, s2_ref, w2_ref, b2_ref))    # (HW/16, C)
  y = conv3x3_s2(y, s3_ref, w3_ref, b3_ref)           # (HW/64, C)
  up = jnp.dot(up_ref[...], y, preferred_element_type=jnp.float32)  # (HW, C)
  att = 1.0 / (1.0 + jnp.exp(-up))                    # sigmoid
  xa = att * xf                                       # attention_map * x

  # ---- non-local block on the attended features ----
  g = jnp.dot(xa, wg_ref[...], preferred_element_type=jnp.float32) + bg_ref[...]
  th = jnp.dot(xa, wt_ref[...], preferred_element_type=jnp.float32) + bt_ref[...]
  ph = jnp.dot(xa, wp_ref[...], preferred_element_type=jnp.float32) + bp_ref[...]

  # f[q, k] = <theta_q, phi_k>  (contract the channel dim of both operands).
  f = lax.dot_general(th, ph, (((1,), (1,)), ((), ())),
                      preferred_element_type=jnp.float32)            # (HW, HW)
  # PyTorch: F.softmax(f, dim=1) on (B, HWq, HWk) -> normalize over q (axis 0).
  m = jnp.max(f, axis=0, keepdims=True)
  e = jnp.exp(f - m)
  fdc = e / jnp.sum(e, axis=0, keepdims=True)
  y_att = jnp.dot(fdc, g, preferred_element_type=jnp.float32)        # (HW, Ci)
  wy = jnp.dot(y_att, ww_ref[...],
               preferred_element_type=jnp.float32) + bw_ref[...]     # (HW, C)
  o_ref[0] = (wy + xa).astype(o_ref.dtype)


# ---------------------------------------------------------------------------
# Wrapper (NCHW in / NCHW out, matching the PyTorch module).
# ---------------------------------------------------------------------------
def attentive_nonlocal_block_forward(x_nchw, params):
  n, c, h, w = x_nchw.shape
  assert h % 8 == 0 and w % 8 == 0, "GEunit needs spatial dims divisible by 8"
  hw = h * w

  # Channels-last, spatial-flattened layout: (N, H*W, C).
  x = jnp.transpose(x_nchw, (0, 2, 3, 1)).reshape(n, hw, c)

  # Trace-time constants: conv-tap selectors and combined upsample matrix.
  s1 = jnp.asarray(_stride2_conv_tap_selectors(h, w))
  s2 = jnp.asarray(_stride2_conv_tap_selectors(h // 2, w // 2))
  s3 = jnp.asarray(_stride2_conv_tap_selectors(h // 4, w // 4))
  uh = _bilinear_upsample_matrix(h // 8, h)
  uw = _bilinear_upsample_matrix(w // 8, w)
  up = jnp.asarray(
      np.einsum("Ii,Jj->IJij", uh, uw).reshape(hw, (h // 8) * (w // 8)))

  (w1, b1), (w2, b2), (w3, b3) = params["d1"], params["d2"], params["d3"]
  (wg, bg), (wt, bt), (wp, bp) = params["g"], params["theta"], params["phi"]
  (ww, bw) = params["W"]

  args = (x, s1, w1, b1, s2, w2, b2, s3, w3, b3, up,
          wg, bg, wt, bt, wp, bp, ww, bw)

  batch_spec = pl.BlockSpec((1, hw, c), lambda i: (i, 0, 0))

  def full_spec(a):
    nd = a.ndim
    return pl.BlockSpec(a.shape, lambda i, _nd=nd: (0,) * _nd)

  in_specs = [batch_spec] + [full_spec(a) for a in args[1:]]

  z = pl.pallas_call(
      _fused_block_kernel,
      out_shape=jax.ShapeDtypeStruct((n, hw, c), jnp.float32),
      grid=(n,),
      in_specs=in_specs,
      out_specs=batch_spec,
      compiler_params=pltpu.CompilerParams(
          dimension_semantics=("parallel",)),  # batch across v7x's 2 TCs
  )(*args)

  return jnp.transpose(z.reshape(n, h, w, c), (0, 3, 1, 2))


# ---------------------------------------------------------------------------
# Parameter construction (deterministic, synthetic).
# ---------------------------------------------------------------------------
def init_params(key, in_channels, inter_channels):
  c, ci = in_channels, inter_channels
  ks = jax.random.split(key, 14)

  def wmat(k, shape, fan_in):
    return jax.random.normal(k, shape, jnp.float32) / np.sqrt(fan_in)

  def bias(k, n_out):
    return 0.05 * jax.random.normal(k, (1, n_out), jnp.float32)

  return {
      # 3x3 conv weights stored tap-major: (9, Cin, Cout), tap = kh*3 + kw.
      "d1": (wmat(ks[0], (9, c, c), 9 * c), bias(ks[1], c)),
      "d2": (wmat(ks[2], (9, c, c), 9 * c), bias(ks[3], c)),
      "d3": (wmat(ks[4], (9, c, c), 9 * c), bias(ks[5], c)),
      # 1x1 convs as (Cin, Cout) matrices.
      "g": (wmat(ks[6], (c, ci), c), bias(ks[7], ci)),
      "theta": (wmat(ks[8], (c, ci), c), bias(ks[9], ci)),
      "phi": (wmat(ks[10], (c, ci), c), bias(ks[11], ci)),
      # NOTE: the PyTorch module zero-inits W (so z == x at construction);
      # random weights are used here so the test exercises the full path.
      "W": (wmat(ks[12], (ci, c), ci), bias(ks[13], c)),
  }


# ---------------------------------------------------------------------------
# Pure-JAX reference (independent implementation, for a correctness check).
# ---------------------------------------------------------------------------
def _ref_forward(x_nchw, params):
  n, c, h, w = x_nchw.shape
  x = jnp.transpose(x_nchw, (0, 2, 3, 1))            # NHWC

  def conv_s2(v, w9, b):
    whwio = w9.reshape(3, 3, w9.shape[1], w9.shape[2])
    y = lax.conv_general_dilated(
        v, whwio, window_strides=(2, 2), padding=((1, 1), (1, 1)),
        dimension_numbers=("NHWC", "HWIO", "NHWC"))
    return y + b.reshape(1, 1, 1, -1)

  lrelu = lambda v: jnp.where(v >= 0, v, 0.2 * v)

  y = lrelu(conv_s2(x, *params["d1"]))
  y = lrelu(conv_s2(y, *params["d2"]))
  y = conv_s2(y, *params["d3"])

  uh = jnp.asarray(_bilinear_upsample_matrix(h // 8, h))
  uw = jnp.asarray(_bilinear_upsample_matrix(w // 8, w))
  y = jnp.einsum("Ii,nijc->nIjc", uh, y)
  y = jnp.einsum("Jj,nIjc->nIJc", uw, y)
  xa = jax.nn.sigmoid(y) * x                          # GEunit output

  xf = xa.reshape(n, h * w, c)
  (wg, bg), (wt, bt), (wp, bp) = params["g"], params["theta"], params["phi"]
  (ww, bw) = params["W"]
  g = xf @ wg + bg
  th = xf @ wt + bt
  ph = xf @ wp + bp
  f = jnp.einsum("bqd,bkd->bqk", th, ph)
  fdc = jax.nn.softmax(f, axis=1)                     # dim=1, as in the module
  y_att = jnp.einsum("bqk,bkd->bqd", fdc, g)
  z = y_att @ ww + bw + xf
  return jnp.transpose(z.reshape(n, h, w, c), (0, 3, 1, 2))


if __name__ == "__main__":
  key = jax.random.PRNGKey(0)
  pkey, xkey = jax.random.split(key)

  batch, in_channels, inter_channels, height, width = 2, 8, 4, 16, 16
  params = init_params(pkey, in_channels, inter_channels)
  x = jax.random.normal(xkey, (batch, in_channels, height, width), jnp.float32)

  fwd = jax.jit(attentive_nonlocal_block_forward)
  out = jax.block_until_ready(fwd(x, params))

  ref = _ref_forward(x, params)
  assert out.shape == ref.shape and out.dtype == ref.dtype
  assert jnp.allclose(out, ref, rtol=1e-3, atol=1e-3), "mismatch vs reference"
  print("KERNEL_OK")
</pallas_src>

<mosaic_0001>
module attributes {stable_mosaic.version = 11 : i64} {
  func.func @_fused_block_kernel(%arg0: i32, %arg1: memref<1x256x8xf32, #tpu.memory_space<vmem>>, %arg2: memref<9x64x256xf32, #tpu.memory_space<vmem>>, %arg3: memref<9x8x8xf32, #tpu.memory_space<vmem>>, %arg4: memref<1x8xf32, #tpu.memory_space<vmem>>, %arg5: memref<9x16x64xf32, #tpu.memory_space<vmem>>, %arg6: memref<9x8x8xf32, #tpu.memory_space<vmem>>, %arg7: memref<1x8xf32, #tpu.memory_space<vmem>>, %arg8: memref<9x4x16xf32, #tpu.memory_space<vmem>>, %arg9: memref<9x8x8xf32, #tpu.memory_space<vmem>>, %arg10: memref<1x8xf32, #tpu.memory_space<vmem>>, %arg11: memref<256x4xf32, #tpu.memory_space<vmem>>, %arg12: memref<8x4xf32, #tpu.memory_space<vmem>>, %arg13: memref<1x4xf32, #tpu.memory_space<vmem>>, %arg14: memref<8x4xf32, #tpu.memory_space<vmem>>, %arg15: memref<1x4xf32, #tpu.memory_space<vmem>>, %arg16: memref<8x4xf32, #tpu.memory_space<vmem>>, %arg17: memref<1x4xf32, #tpu.memory_space<vmem>>, %arg18: memref<4x8xf32, #tpu.memory_space<vmem>>, %arg19: memref<1x8xf32, #tpu.memory_space<vmem>>, %arg20: memref<1x256x8xf32, #tpu.memory_space<vmem>>) attributes {dimension_semantics = [#tpu.dimension_semantics<parallel>], iteration_bounds = array<i64: 2>, scalar_prefetch = 0 : i64, scratch_operands = 0 : i64, tpu.core_type = #tpu.core_type<tc>, window_params = [{transform_indices = @transform_0, window_bounds = array<i64: 1, 256, 8>}, {pipeline_mode = #tpu.pipeline_mode<synchronous>, transform_indices = @transform_1, window_bounds = array<i64: 9, 64, 256>}, {pipeline_mode = #tpu.pipeline_mode<synchronous>, transform_indices = @transform_2, window_bounds = array<i64: 9, 8, 8>}, {pipeline_mode = #tpu.pipeline_mode<synchronous>, transform_indices = @transform_3, window_bounds = array<i64: 1, 8>}, {pipeline_mode = #tpu.pipeline_mode<synchronous>, transform_indices = @transform_4, window_bounds = array<i64: 9, 16, 64>}, {pipeline_mode = #tpu.pipeline_mode<synchronous>, transform_indices = @transform_5, window_bounds = array<i64: 9, 8, 8>}, {pipeline_mode = #tpu.pipeline_mode<synchronous>, transform_indices = @transform_6, window_bounds = array<i64: 1, 8>}, {pipeline_mode = #tpu.pipeline_mode<synchronous>, transform_indices = @transform_7, window_bounds = array<i64: 9, 4, 16>}, {pipeline_mode = #tpu.pipeline_mode<synchronous>, transform_indices = @transform_8, window_bounds = array<i64: 9, 8, 8>}, {pipeline_mode = #tpu.pipeline_mode<synchronous>, transform_indices = @transform_9, window_bounds = array<i64: 1, 8>}, {pipeline_mode = #tpu.pipeline_mode<synchronous>, transform_indices = @transform_10, window_bounds = array<i64: 256, 4>}, {pipeline_mode = #tpu.pipeline_mode<synchronous>, transform_indices = @transform_11, window_bounds = array<i64: 8, 4>}, {pipeline_mode = #tpu.pipeline_mode<synchronous>, transform_indices = @transform_12, window_bounds = array<i64: 1, 4>}, {pipeline_mode = #tpu.pipeline_mode<synchronous>, transform_indices = @transform_13, window_bounds = array<i64: 8, 4>}, {pipeline_mode = #tpu.pipeline_mode<synchronous>, transform_indices = @transform_14, window_bounds = array<i64: 1, 4>}, {pipeline_mode = #tpu.pipeline_mode<synchronous>, transform_indices = @transform_15, window_bounds = array<i64: 8, 4>}, {pipeline_mode = #tpu.pipeline_mode<synchronous>, transform_indices = @transform_16, window_bounds = array<i64: 1, 4>}, {pipeline_mode = #tpu.pipeline_mode<synchronous>, transform_indices = @transform_17, window_bounds = array<i64: 4, 8>}, {pipeline_mode = #tpu.pipeline_mode<synchronous>, transform_indices = @transform_18, window_bounds = array<i64: 1, 8>}, {transform_indices = @transform_19, window_bounds = array<i64: 1, 256, 8>}]} {
    %c0 = arith.constant 0 : index
    %c0_0 = arith.constant 0 : index
    %c0_1 = arith.constant 0 : index
    %0 = vector.load %arg1[%c0, %c0_0, %c0_1] : memref<1x256x8xf32, #tpu.memory_space<vmem>>, vector<1x256x8xf32>
    %1 = vector.shape_cast %0 : vector<1x256x8xf32> to vector<256x8xf32>
    %cst = arith.constant 0.000000e+00 : f32
    %2 = vector.broadcast %cst : f32 to vector<64x8xf32>
    %c0_2 = arith.constant 0 : index
    %c0_3 = arith.constant 0 : index
    %c0_4 = arith.constant 0 : index
    %3 = vector.load %arg2[%c0_2, %c0_3, %c0_4] : memref<9x64x256xf32, #tpu.memory_space<vmem>>, vector<1x64x256xf32>
    %4 = vector.shape_cast %3 : vector<1x64x256xf32> to vector<64x256xf32>
    %cst_5 = arith.constant dense<0.000000e+00> : vector<64x8xf32>
    %5 = tpu.matmul %4, %1, %cst_5 {dimension_numbers = #tpu.dot_dimension_numbers<[1], [0], [0], [1], [0, 0, 1, 1], [], []>} : vector<64x256xf32>, vector<256x8xf32>, vector<64x8xf32> -> vector<64x8xf32>
    %c0_6 = arith.constant 0 : index
    %c0_7 = arith.constant 0 : index
    %c0_8 = arith.constant 0 : index
    %6 = vector.load %arg3[%c0_6, %c0_7, %c0_8] : memref<9x8x8xf32, #tpu.memory_space<vmem>>, vector<1x8x8xf32>
    %7 = vector.shape_cast %6 : vector<1x8x8xf32> to vector<8x8xf32>
    %cst_9 = arith.constant dense<0.000000e+00> : vector<64x8xf32>
    %8 = tpu.matmul %5, %7, %cst_9 {dimension_numbers = #tpu.dot_dimension_numbers<[1], [0], [0], [1], [0, 0, 1, 1], [], []>} : vector<64x8xf32>, vector<8x8xf32>, vector<64x8xf32> -> vector<64x8xf32>
    %9 = arith.addf %2, %8 : vector<64x8xf32>
    %c1 = arith.constant 1 : index
    %c0_10 = arith.constant 0 : index
    %c0_11 = arith.constant 0 : index
    %10 = vector.load %arg2[%c1, %c0_10, %c0_11] : memref<9x64x256xf32, #tpu.memory_space<vmem>>, vector<1x64x256xf32>
    %11 = vector.shape_cast %10 : vector<1x64x256xf32> to vector<64x256xf32>
    %cst_12 = arith.constant dense<0.000000e+00> : vector<64x8xf32>
    %12 = tpu.matmul %11, %1, %cst_12 {dimension_numbers = #tpu.dot_dimension_numbers<[1], [0], [0], [1], [0, 0, 1, 1], [], []>} : vector<64x256xf32>, vector<256x8xf32>, vector<64x8xf32> -> vector<64x8xf32>
    %c1_13 = arith.constant 1 : index
    %c0_14 = arith.constant 0 : index
    %c0_15 = arith.constant 0 : index
    %13 = vector.load %arg3[%c1_13, %c0_14, %c0_15] : memref<9x8x8xf32, #tpu.memory_space<vmem>>, vector<1x8x8xf32>
    %14 = vector.shape_cast %13 : vector<1x8x8xf32> to vector<8x8xf32>
    %cst_16 = arith.constant dense<0.000000e+00> : vector<64x8xf32>
    %15 = tpu.matmul %12, %14, %cst_16 {dimension_numbers = #tpu.dot_dimension_numbers<[1], [0], [0], [1], [0, 0, 1, 1], [], []>} : vector<64x8xf32>, vector<8x8xf32>, vector<64x8xf32> -> vector<64x8xf32>
    %16 = arith.addf %9, %15 : vector<64x8xf32>
    %c2 = arith.constant 2 : index
    %c0_17 = arith.constant 0 : index
    %c0_18 = arith.constant 0 : index
    %17 = vector.load %arg2[%c2, %c0_17, %c0_18] : memref<9x64x256xf32, #tpu.memory_space<vmem>>, vector<1x64x256xf32>
    %18 = vector.shape_cast %17 : vector<1x64x256xf32> to vector<64x256xf32>
    %cst_19 = arith.constant dense<0.000000e+00> : vector<64x8xf32>
    %19 = tpu.matmul %18, %1, %cst_19 {dimension_numbers = #tpu.dot_dimension_numbers<[1], [0], [0], [1], [0, 0, 1, 1], [], []>} : vector<64x256xf32>, vector<256x8xf32>, vector<64x8xf32> -> vector<64x8xf32>
    %c2_20 = arith.constant 2 : index
    %c0_21 = arith.constant 0 : index
    %c0_22 = arith.constant 0 : index
    %20 = vector.load %arg3[%c2_20, %c0_21, %c0_22] : memref<9x8x8xf32, #tpu.memory_space<vmem>>, vector<1x8x8xf32>
    %21 = vector.shape_cast %20 : vector<1x8x8xf32> to vector<8x8xf32>
    %cst_23 = arith.constant dense<0.000000e+00> : vector<64x8xf32>
    %22 = tpu.matmul %19, %21, %cst_23 {dimension_numbers = #tpu.dot_dimension_numbers<[1], [0], [0], [1], [0, 0, 1, 1], [], []>} : vector<64x8xf32>, vector<8x8xf32>, vector<64x8xf32> -> vector<64x8xf32>
    %23 = arith.addf %16, %22 : vector<64x8xf32>
    %c3 = arith.constant 3 : index
    %c0_24 = arith.constant 0 : index
    %c0_25 = arith.constant 0 : index
    %24 = vector.load %arg2[%c3, %c0_24, %c0_25] : memref<9x64x256xf32, #tpu.memory_space<vmem>>, vector<1x64x256xf32>
    %25 = vector.shape_cast %24 : vector<1x64x256xf32> to vector<64x256xf32>
    %cst_26 = arith.constant dense<0.000000e+00> : vector<64x8xf32>
    %26 = tpu.matmul %25, %1, %cst_26 {dimension_numbers = #tpu.dot_dimension_numbers<[1], [0], [0], [1], [0, 0, 1, 1], [], []>} : vector<64x256xf32>, vector<256x8xf32>, vector<64x8xf32> -> vector<64x8xf32>
    %c3_27 = arith.constant 3 : index
    %c0_28 = arith.constant 0 : index
    %c0_29 = arith.constant 0 : index
    %27 = vector.load %arg3[%c3_27, %c0_28, %c0_29] : memref<9x8x8xf32, #tpu.memory_space<vmem>>, vector<1x8x8xf32>
    %28 = vector.shape_cast %27 : vector<1x8x8xf32> to vector<8x8xf32>
    %cst_30 = arith.constant dense<0.000000e+00> : vector<64x8xf32>
    %29 = tpu.matmul %26, %28, %cst_30 {dimension_numbers = #tpu.dot_dimension_numbers<[1], [0], [0], [1], [0, 0, 1, 1], [], []>} : vector<64x8xf32>, vector<8x8xf32>, vector<64x8xf32> -> vector<64x8xf32>
    %30 = arith.addf %23, %29 : vector<64x8xf32>
    %c4 = arith.constant 4 : index
    %c0_31 = arith.constant 0 : index
    %c0_32 = arith.constant 0 : index
    %31 = vector.load %arg2[%c4, %c0_31, %c0_32] : memref<9x64x256xf32, #tpu.memory_space<vmem>>, vector<1x64x256xf32>
    %32 = vector.shape_cast %31 : vector<1x64x256xf32> to vector<64x256xf32>
    %cst_33 = arith.constant dense<0.000000e+00> : vector<64x8xf32>
    %33 = tpu.matmul %32, %1, %cst_33 {dimension_numbers = #tpu.dot_dimension_numbers<[1], [0], [0], [1], [0, 0, 1, 1], [], []>} : vector<64x256xf32>, vector<256x8xf32>, vector<64x8xf32> -> vector<64x8xf32>
    %c4_34 = arith.constant 4 : index
    %c0_35 = arith.constant 0 : index
    %c0_36 = arith.constant 0 : index
    %34 = vector.load %arg3[%c4_34, %c0_35, %c0_36] : memref<9x8x8xf32, #tpu.memory_space<vmem>>, vector<1x8x8xf32>
    %35 = vector.shape_cast %34 : vector<1x8x8xf32> to vector<8x8xf32>
    %cst_37 = arith.constant dense<0.000000e+00> : vector<64x8xf32>
    %36 = tpu.matmul %33, %35, %cst_37 {dimension_numbers = #tpu.dot_dimension_numbers<[1], [0], [0], [1], [0, 0, 1, 1], [], []>} : vector<64x8xf32>, vector<8x8xf32>, vector<64x8xf32> -> vector<64x8xf32>
    %37 = arith.addf %30, %36 : vector<64x8xf32>
    %c5 = arith.constant 5 : index
    %c0_38 = arith.constant 0 : index
    %c0_39 = arith.constant 0 : index
    %38 = vector.load %arg2[%c5, %c0_38, %c0_39] : memref<9x64x256xf32, #tpu.memory_space<vmem>>, vector<1x64x256xf32>
    %39 = vector.shape_cast %38 : vector<1x64x256xf32> to vector<64x256xf32>
    %cst_40 = arith.constant dense<0.000000e+00> : vector<64x8xf32>
    %40 = tpu.matmul %39, %1, %cst_40 {dimension_numbers = #tpu.dot_dimension_numbers<[1], [0], [0], [1], [0, 0, 1, 1], [], []>} : vector<64x256xf32>, vector<256x8xf32>, vector<64x8xf32> -> vector<64x8xf32>
    %c5_41 = arith.constant 5 : index
    %c0_42 = arith.constant 0 : index
    %c0_43 = arith.constant 0 : index
    %41 = vector.load %arg3[%c5_41, %c0_42, %c0_43] : memref<9x8x8xf32, #tpu.memory_space<vmem>>, vector<1x8x8xf32>
    %42 = vector.shape_cast %41 : vector<1x8x8xf32> to vector<8x8xf32>
    %cst_44 = arith.constant dense<0.000000e+00> : vector<64x8xf32>
    %43 = tpu.matmul %40, %42, %cst_44 {dimension_numbers = #tpu.dot_dimension_numbers<[1], [0], [0], [1], [0, 0, 1, 1], [], []>} : vector<64x8xf32>, vector<8x8xf32>, vector<64x8xf32> -> vector<64x8xf32>
    %44 = arith.addf %37, %43 : vector<64x8xf32>
    %c6 = arith.constant 6 : index
    %c0_45 = arith.constant 0 : index
    %c0_46 = arith.constant 0 : index
    %45 = vector.load %arg2[%c6, %c0_45, %c0_46] : memref<9x64x256xf32, #tpu.memory_space<vmem>>, vector<1x64x256xf32>
    %46 = vector.shape_cast %45 : vector<1x64x256xf32> to vector<64x256xf32>
    %cst_47 = arith.constant dense<0.000000e+00> : vector<64x8xf32>
    %47 = tpu.matmul %46, %1, %cst_47 {dimension_numbers = #tpu.dot_dimension_numbers<[1], [0], [0], [1], [0, 0, 1, 1], [], []>} : vector<64x256xf32>, vector<256x8xf32>, vector<64x8xf32> -> vector<64x8xf32>
    %c6_48 = arith.constant 6 : index
    %c0_49 = arith.constant 0 : index
    %c0_50 = arith.constant 0 : index
    %48 = vector.load %arg3[%c6_48, %c0_49, %c0_50] : memref<9x8x8xf32, #tpu.memory_space<vmem>>, vector<1x8x8xf32>
    %49 = vector.shape_cast %48 : vector<1x8x8xf32> to vector<8x8xf32>
    %cst_51 = arith.constant dense<0.000000e+00> : vector<64x8xf32>
    %50 = tpu.matmul %47, %49, %cst_51 {dimension_numbers = #tpu.dot_dimension_numbers<[1], [0], [0], [1], [0, 0, 1, 1], [], []>} : vector<64x8xf32>, vector<8x8xf32>, vector<64x8xf32> -> vector<64x8xf32>
    %51 = arith.addf %44, %50 : vector<64x8xf32>
    %c7 = arith.constant 7 : index
    %c0_52 = arith.constant 0 : index
    %c0_53 = arith.constant 0 : index
    %52 = vector.load %arg2[%c7, %c0_52, %c0_53] : memref<9x64x256xf32, #tpu.memory_space<vmem>>, vector<1x64x256xf32>
    %53 = vector.shape_cast %52 : vector<1x64x256xf32> to vector<64x256xf32>
    %cst_54 = arith.constant dense<0.000000e+00> : vector<64x8xf32>
    %54 = tpu.matmul %53, %1, %cst_54 {dimension_numbers = #tpu.dot_dimension_numbers<[1], [0], [0], [1], [0, 0, 1, 1], [], []>} : vector<64x256xf32>, vector<256x8xf32>, vector<64x8xf32> -> vector<64x8xf32>
    %c7_55 = arith.constant 7 : index
    %c0_56 = arith.constant 0 : index
    %c0_57 = arith.constant 0 : index
    %55 = vector.load %arg3[%c7_55, %c0_56, %c0_57] : memref<9x8x8xf32, #tpu.memory_space<vmem>>, vector<1x8x8xf32>
    %56 = vector.shape_cast %55 : vector<1x8x8xf32> to vector<8x8xf32>
    %cst_58 = arith.constant dense<0.000000e+00> : vector<64x8xf32>
    %57 = tpu.matmul %54, %56, %cst_58 {dimension_numbers = #tpu.dot_dimension_numbers<[1], [0], [0], [1], [0, 0, 1, 1], [], []>} : vector<64x8xf32>, vector<8x8xf32>, vector<64x8xf32> -> vector<64x8xf32>
    %58 = arith.addf %51, %57 : vector<64x8xf32>
    %c8 = arith.constant 8 : index
    %c0_59 = arith.constant 0 : index
    %c0_60 = arith.constant 0 : index
    %59 = vector.load %arg2[%c8, %c0_59, %c0_60] : memref<9x64x256xf32, #tpu.memory_space<vmem>>, vector<1x64x256xf32>
    %60 = vector.shape_cast %59 : vector<1x64x256xf32> to vector<64x256xf32>
    %cst_61 = arith.constant dense<0.000000e+00> : vector<64x8xf32>
    %61 = tpu.matmul %60, %1, %cst_61 {dimension_numbers = #tpu.dot_dimension_numbers<[1], [0], [0], [1], [0, 0, 1, 1], [], []>} : vector<64x256xf32>, vector<256x8xf32>, vector<64x8xf32> -> vector<64x8xf32>
    %c8_62 = arith.constant 8 : index
    %c0_63 = arith.constant 0 : index
    %c0_64 = arith.constant 0 : index
    %62 = vector.load %arg3[%c8_62, %c0_63, %c0_64] : memref<9x8x8xf32, #tpu.memory_space<vmem>>, vector<1x8x8xf32>
    %63 = vector.shape_cast %62 : vector<1x8x8xf32> to vector<8x8xf32>
    %cst_65 = arith.constant dense<0.000000e+00> : vector<64x8xf32>
    %64 = tpu.matmul %61, %63, %cst_65 {dimension_numbers = #tpu.dot_dimension_numbers<[1], [0], [0], [1], [0, 0, 1, 1], [], []>} : vector<64x8xf32>, vector<8x8xf32>, vector<64x8xf32> -> vector<64x8xf32>
    %65 = arith.addf %58, %64 : vector<64x8xf32>
    %c0_66 = arith.constant 0 : index
    %c0_67 = arith.constant 0 : index
    %66 = vector.load %arg4[%c0_66, %c0_67] : memref<1x8xf32, #tpu.memory_space<vmem>>, vector<1x8xf32>
    %67 = vector.broadcast %66 : vector<1x8xf32> to vector<64x8xf32>
    %68 = arith.addf %65, %67 : vector<64x8xf32>
    %cst_68 = arith.constant 0.000000e+00 : f32
    %69 = vector.broadcast %cst_68 : f32 to vector<64x8xf32>
    %70 = arith.cmpf oge, %68, %69 : vector<64x8xf32>
    %cst_69 = arith.constant 2.000000e-01 : f32
    %71 = vector.broadcast %cst_69 : f32 to vector<64x8xf32>
    %72 = arith.mulf %71, %68 : vector<64x8xf32>
    %73 = arith.select %70, %68, %72 : vector<64x8xi1>, vector<64x8xf32>
    %cst_70 = arith.constant 0.000000e+00 : f32
    %74 = vector.broadcast %cst_70 : f32 to vector<16x8xf32>
    %c0_71 = arith.constant 0 : index
    %c0_72 = arith.constant 0 : index
    %c0_73 = arith.constant 0 : index
    %75 = vector.load %arg5[%c0_71, %c0_72, %c0_73] : memref<9x16x64xf32, #tpu.memory_space<vmem>>, vector<1x16x64xf32>
    %76 = vector.shape_cast %75 : vector<1x16x64xf32> to vector<16x64xf32>
    %cst_74 = arith.constant dense<0.000000e+00> : vector<16x8xf32>
    %77 = tpu.matmul %76, %73, %cst_74 {dimension_numbers = #tpu.dot_dimension_numbers<[1], [0], [0], [1], [0, 0, 1, 1], [], []>} : vector<16x64xf32>, vector<64x8xf32>, vector<16x8xf32> -> vector<16x8xf32>
    %c0_75 = arith.constant 0 : index
    %c0_76 = arith.constant 0 : index
    %c0_77 = arith.constant 0 : index
    %78 = vector.load %arg6[%c0_75, %c0_76, %c0_77] : memref<9x8x8xf32, #tpu.memory_space<vmem>>, vector<1x8x8xf32>
    %79 = vector.shape_cast %78 : vector<1x8x8xf32> to vector<8x8xf32>
    %cst_78 = arith.constant dense<0.000000e+00> : vector<16x8xf32>
    %80 = tpu.matmul %77, %79, %cst_78 {dimension_numbers = #tpu.dot_dimension_numbers<[1], [0], [0], [1], [0, 0, 1, 1], [], []>} : vector<16x8xf32>, vector<8x8xf32>, vector<16x8xf32> -> vector<16x8xf32>
    %81 = arith.addf %74, %80 : vector<16x8xf32>
    %c1_79 = arith.constant 1 : index
    %c0_80 = arith.constant 0 : index
    %c0_81 = arith.constant 0 : index
    %82 = vector.load %arg5[%c1_79, %c0_80, %c0_81] : memref<9x16x64xf32, #tpu.memory_space<vmem>>, vector<1x16x64xf32>
    %83 = vector.shape_cast %82 : vector<1x16x64xf32> to vector<16x64xf32>
    %cst_82 = arith.constant dense<0.000000e+00> : vector<16x8xf32>
    %84 = tpu.matmul %83, %73, %cst_82 {dimension_numbers = #tpu.dot_dimension_numbers<[1], [0], [0], [1], [0, 0, 1, 1], [], []>} : vector<16x64xf32>, vector<64x8xf32>, vector<16x8xf32> -> vector<16x8xf32>
    %c1_83 = arith.constant 1 : index
    %c0_84 = arith.constant 0 : index
    %c0_85 = arith.constant 0 : index
    %85 = vector.load %arg6[%c1_83, %c0_84, %c0_85] : memref<9x8x8xf32, #tpu.memory_space<vmem>>, vector<1x8x8xf32>
    %86 = vector.shape_cast %85 : vector<1x8x8xf32> to vector<8x8xf32>
    %cst_86 = arith.constant dense<0.000000e+00> : vector<16x8xf32>
    %87 = tpu.matmul %84, %86, %cst_86 {dimension_numbers = #tpu.dot_dimension_numbers<[1], [0], [0], [1], [0, 0, 1, 1], [], []>} : vector<16x8xf32>, vector<8x8xf32>, vector<16x8xf32> -> vector<16x8xf32>
    %88 = arith.addf %81, %87 : vector<16x8xf32>
    %c2_87 = arith.constant 2 : index
    %c0_88 = arith.constant 0 : index
    %c0_89 = arith.constant 0 : index
    %89 = vector.load %arg5[%c2_87, %c0_88, %c0_89] : memref<9x16x64xf32, #tpu.memory_space<vmem>>, vector<1x16x64xf32>
    %90 = vector.shape_cast %89 : vector<1x16x64xf32> to vector<16x64xf32>
    %cst_90 = arith.constant dense<0.000000e+00> : vector<16x8xf32>
    %91 = tpu.matmul %90, %73, %cst_90 {dimension_numbers = #tpu.dot_dimension_numbers<[1], [0], [0], [1], [0, 0, 1, 1], [], []>} : vector<16x64xf32>, vector<64x8xf32>, vector<16x8xf32> -> vector<16x8xf32>
    %c2_91 = arith.constant 2 : index
    %c0_92 = arith.constant 0 : index
    %c0_93 = arith.constant 0 : index
    %92 = vector.load %arg6[%c2_91, %c0_92, %c0_93] : memref<9x8x8xf32, #tpu.memory_space<vmem>>, vector<1x8x8xf32>
    %93 = vector.shape_cast %92 : vector<1x8x8xf32> to vector<8x8xf32>
    %cst_94 = arith.constant dense<0.000000e+00> : vector<16x8xf32>
    %94 = tpu.matmul %91, %93, %cst_94 {dimension_numbers = #tpu.dot_dimension_numbers<[1], [0], [0], [1], [0, 0, 1, 1], [], []>} : vector<16x8xf32>, vector<8x8xf32>, vector<16x8xf32> -> vector<16x8xf32>
    %95 = arith.addf %88, %94 : vector<16x8xf32>
    %c3_95 = arith.constant 3 : index
    %c0_96 = arith.constant 0 : index
    %c0_97 = arith.constant 0 : index
    %96 = vector.load %arg5[%c3_95, %c0_96, %c0_97] : memref<9x16x64xf32, #tpu.memory_space<vmem>>, vector<1x16x64xf32>
    %97 = vector.shape_cast %96 : vector<1x16x64xf32> to vector<16x64xf32>
    %cst_98 = arith.constant dense<0.000000e+00> : vector<16x8xf32>
    %98 = tpu.matmul %97, %73, %cst_98 {dimension_numbers = #tpu.dot_dimension_numbers<[1], [0], [0], [1], [0, 0, 1, 1], [], []>} : vector<16x64xf32>, vector<64x8xf32>, vector<16x8xf32> -> vector<16x8xf32>
    %c3_99 = arith.constant 3 : index
    %c0_100 = arith.constant 0 : index
    %c0_101 = arith.constant 0 : index
    %99 = vector.load %arg6[%c3_99, %c0_100, %c0_101] : memref<9x8x8xf32, #tpu.memory_space<vmem>>, vector<1x8x8xf32>
    %100 = vector.shape_cast %99 : vector<1x8x8xf32> to vector<8x8xf32>
    %cst_102 = arith.constant dense<0.000000e+00> : vector<16x8xf32>
    %101 = tpu.matmul %98, %100, %cst_102 {dimension_numbers = #tpu.dot_dimension_numbers<[1], [0], [0], [1], [0, 0, 1, 1], [], []>} : vector<16x8xf32>, vector<8x8xf32>, vector<16x8xf32> -> vector<16x8xf32>
    %102 = arith.addf %95, %101 : vector<16x8xf32>
    %c4_103 = arith.constant 4 : index
    %c0_104 = arith.constant 0 : index
    %c0_105 = arith.constant 0 : index
    %103 = vector.load %arg5[%c4_103, %c0_104, %c0_105] : memref<9x16x64xf32, #tpu.memory_space<vmem>>, vector<1x16x64xf32>
    %104 = vector.shape_cast %103 : vector<1x16x64xf32> to vector<16x64xf32>
    %cst_106 = arith.constant dense<0.000000e+00> : vector<16x8xf32>
    %105 = tpu.matmul %104, %73, %cst_106 {dimension_numbers = #tpu.dot_dimension_numbers<[1], [0], [0], [1], [0, 0, 1, 1], [], []>} : vector<16x64xf32>, vector<64x8xf32>, vector<16x8xf32> -> vector<16x8xf32>
    %c4_107 = arith.constant 4 : index
    %c0_108 = arith.constant 0 : index
    %c0_109 = arith.constant 0 : index
    %106 = vector.load %arg6[%c4_107, %c0_108, %c0_109] : memref<9x8x8xf32, #tpu.memory_space<vmem>>, vector<1x8x8xf32>
    %107 = vector.shape_cast %106 : vector<1x8x8xf32> to vector<8x8xf32>
    %cst_110 = arith.constant dense<0.000000e+00> : vector<16x8xf32>
    %108 = tpu.matmul %105, %107, %cst_110 {dimension_numbers = #tpu.dot_dimension_numbers<[1], [0], [0], [1], [0, 0, 1, 1], [], []>} : vector<16x8xf32>, vector<8x8xf32>, vector<16x8xf32> -> vector<16x8xf32>
    %109 = arith.addf %102, %108 : vector<16x8xf32>
    %c5_111 = arith.constant 5 : index
    %c0_112 = arith.constant 0 : index
    %c0_113 = arith.constant 0 : index
    %110 = vector.load %arg5[%c5_111, %c0_112, %c0_113] : memref<9x16x64xf32, #tpu.memory_space<vmem>>, vector<1x16x64xf32>
    %111 = vector.shape_cast %110 : vector<1x16x64xf32> to vector<16x64xf32>
    %cst_114 = arith.constant dense<0.000000e+00> : vector<16x8xf32>
    %112 = tpu.matmul %111, %73, %cst_114 {dimension_numbers = #tpu.dot_dimension_numbers<[1], [0], [0], [1], [0, 0, 1, 1], [], []>} : vector<16x64xf32>, vector<64x8xf32>, vector<16x8xf32> -> vector<16x8xf32>
    %c5_115 = arith.constant 5 : index
    %c0_116 = arith.constant 0 : index
    %c0_117 = arith.constant 0 : index
    %113 = vector.load %arg6[%c5_115, %c0_116, %c0_117] : memref<9x8x8xf32, #tpu.memory_space<vmem>>, vector<1x8x8xf32>
    %114 = vector.shape_cast %113 : vector<1x8x8xf32> to vector<8x8xf32>
    %cst_118 = arith.constant dense<0.000000e+00> : vector<16x8xf32>
    %115 = tpu.matmul %112, %114, %cst_118 {dimension_numbers = #tpu.dot_dimension_numbers<[1], [0], [0], [1], [0, 0, 1, 1], [], []>} : vector<16x8xf32>, vector<8x8xf32>, vector<16x8xf32> -> vector<16x8xf32>
    %116 = arith.addf %109, %115 : vector<16x8xf32>
    %c6_119 = arith.constant 6 : index
    %c0_120 = arith.constant 0 : index
    %c0_121 = arith.constant 0 : index
    %117 = vector.load %arg5[%c6_119, %c0_120, %c0_121] : memref<9x16x64xf32, #tpu.memory_space<vmem>>, vector<1x16x64xf32>
    %118 = vector.shape_cast %117 : vector<1x16x64xf32> to vector<16x64xf32>
    %cst_122 = arith.constant dense<0.000000e+00> : vector<16x8xf32>
    %119 = tpu.matmul %118, %73, %cst_122 {dimension_numbers = #tpu.dot_dimension_numbers<[1], [0], [0], [1], [0, 0, 1, 1], [], []>} : vector<16x64xf32>, vector<64x8xf32>, vector<16x8xf32> -> vector<16x8xf32>
    %c6_123 = arith.constant 6 : index
    %c0_124 = arith.constant 0 : index
    %c0_125 = arith.constant 0 : index
    %120 = vector.load %arg6[%c6_123, %c0_124, %c0_125] : memref<9x8x8xf32, #tpu.memory_space<vmem>>, vector<1x8x8xf32>
    %121 = vector.shape_cast %120 : vector<1x8x8xf32> to vector<8x8xf32>
    %cst_126 = arith.constant dense<0.000000e+00> : vector<16x8xf32>
    %122 = tpu.matmul %119, %121, %cst_126 {dimension_numbers = #tpu.dot_dimension_numbers<[1], [0], [0], [1], [0, 0, 1, 1], [], []>} : vector<16x8xf32>, vector<8x8xf32>, vector<16x8xf32> -> vector<16x8xf32>
    %123 = arith.addf %116, %122 : vector<16x8xf32>
    %c7_127 = arith.constant 7 : index
    %c0_128 = arith.constant 0 : index
    %c0_129 = arith.constant 0 : index
    %124 = vector.load %arg5[%c7_127, %c0_128, %c0_129] : memref<9x16x64xf32, #tpu.memory_space<vmem>>, vector<1x16x64xf32>
    %125 = vector.shape_cast %124 : vector<1x16x64xf32> to vector<16x64xf32>
    %cst_130 = arith.constant dense<0.000000e+00> : vector<16x8xf32>
    %126 = tpu.matmul %125, %73, %cst_130 {dimension_numbers = #tpu.dot_dimension_numbers<[1], [0], [0], [1], [0, 0, 1, 1], [], []>} : vector<16x64xf32>, vector<64x8xf32>, vector<16x8xf32> -> vector<16x8xf32>
    %c7_131 = arith.constant 7 : index
    %c0_132 = arith.constant 0 : index
    %c0_133 = arith.constant 0 : index
    %127 = vector.load %arg6[%c7_131, %c0_132, %c0_133] : memref<9x8x8xf32, #tpu.memory_space<vmem>>, vector<1x8x8xf32>
    %128 = vector.shape_cast %127 : vector<1x8x8xf32> to vector<8x8xf32>
    %cst_134 = arith.constant dense<0.000000e+00> : vector<16x8xf32>
    %129 = tpu.matmul %126, %128, %cst_134 {dimension_numbers = #tpu.dot_dimension_numbers<[1], [0], [0], [1], [0, 0, 1, 1], [], []>} : vector<16x8xf32>, vector<8x8xf32>, vector<16x8xf32> -> vector<16x8xf32>
    %130 = arith.addf %123, %129 : vector<16x8xf32>
    %c8_135 = arith.constant 8 : index
    %c0_136 = arith.constant 0 : index
    %c0_137 = arith.constant 0 : index
    %131 = vector.load %arg5[%c8_135, %c0_136, %c0_137] : memref<9x16x64xf32, #tpu.memory_space<vmem>>, vector<1x16x64xf32>
    %132 = vector.shape_cast %131 : vector<1x16x64xf32> to vector<16x64xf32>
    %cst_138 = arith.constant dense<0.000000e+00> : vector<16x8xf32>
    %133 = tpu.matmul %132, %73, %cst_138 {dimension_numbers = #tpu.dot_dimension_numbers<[1], [0], [0], [1], [0, 0, 1, 1], [], []>} : vector<16x64xf32>, vector<64x8xf32>, vector<16x8xf32> -> vector<16x8xf32>
    %c8_139 = arith.constant 8 : index
    %c0_140 = arith.constant 0 : index
    %c0_141 = arith.constant 0 : index
    %134 = vector.load %arg6[%c8_139, %c0_140, %c0_141] : memref<9x8x8xf32, #tpu.memory_space<vmem>>, vector<1x8x8xf32>
    %135 = vector.shape_cast %134 : vector<1x8x8xf32> to vector<8x8xf32>
    %cst_142 = arith.constant dense<0.000000e+00> : vector<16x8xf32>
    %136 = tpu.matmul %133, %135, %cst_142 {dimension_numbers = #tpu.dot_dimension_numbers<[1], [0], [0], [1], [0, 0, 1, 1], [], []>} : vector<16x8xf32>, vector<8x8xf32>, vector<16x8xf32> -> vector<16x8xf32>
    %137 = arith.addf %130, %136 : vector<16x8xf32>
    %c0_143 = arith.constant 0 : index
    %c0_144 = arith.constant 0 : index
    %138 = vector.load %arg7[%c0_143, %c0_144] : memref<1x8xf32, #tpu.memory_space<vmem>>, vector<1x8xf32>
    %139 = vector.broadcast %138 : vector<1x8xf32> to vector<16x8xf32>
    %140 = arith.addf %137, %139 : vector<16x8xf32>
    %cst_145 = arith.constant 0.000000e+00 : f32
    %141 = vector.broadcast %cst_145 : f32 to vector<16x8xf32>
    %142 = arith.cmpf oge, %140, %141 : vector<16x8xf32>
    %cst_146 = arith.constant 2.000000e-01 : f32
    %143 = vector.broadcast %cst_146 : f32 to vector<16x8xf32>
    %144 = arith.mulf %143, %140 : vector<16x8xf32>
    %145 = arith.select %142, %140, %144 : vector<16x8xi1>, vector<16x8xf32>
    %cst_147 = arith.constant 0.000000e+00 : f32
    %146 = vector.broadcast %cst_147 : f32 to vector<4x8xf32>
    %c0_148 = arith.constant 0 : index
    %c0_149 = arith.constant 0 : index
    %c0_150 = arith.constant 0 : index
    %147 = vector.load %arg8[%c0_148, %c0_149, %c0_150] : memref<9x4x16xf32, #tpu.memory_space<vmem>>, vector<1x4x16xf32>
    %148 = vector.shape_cast %147 : vector<1x4x16xf32> to vector<4x16xf32>
    %cst_151 = arith.constant dense<0.000000e+00> : vector<4x8xf32>
    %149 = tpu.matmul %148, %145, %cst_151 {dimension_numbers = #tpu.dot_dimension_numbers<[1], [0], [0], [1], [0, 0, 1, 1], [], []>} : vector<4x16xf32>, vector<16x8xf32>, vector<4x8xf32> -> vector<4x8xf32>
    %c0_152 = arith.constant 0 : index
    %c0_153 = arith.constant 0 : index
    %c0_154 = arith.constant 0 : index
    %150 = vector.load %arg9[%c0_152, %c0_153, %c0_154] : memref<9x8x8xf32, #tpu.memory_space<vmem>>, vector<1x8x8xf32>
    %151 = vector.shape_cast %150 : vector<1x8x8xf32> to vector<8x8xf32>
    %cst_155 = arith.constant dense<0.000000e+00> : vector<4x8xf32>
    %152 = tpu.matmul %149, %151, %cst_155 {dimension_numbers = #tpu.dot_dimension_numbers<[1], [0], [0], [1], [0, 0, 1, 1], [], []>} : vector<4x8xf32>, vector<8x8xf32>, vector<4x8xf32> -> vector<4x8xf32>
    %153 = arith.addf %146, %152 : vector<4x8xf32>
    %c1_156 = arith.constant 1 : index
    %c0_157 = arith.constant 0 : index
    %c0_158 = arith.constant 0 : index
    %154 = vector.load %arg8[%c1_156, %c0_157, %c0_158] : memref<9x4x16xf32, #tpu.memory_space<vmem>>, vector<1x4x16xf32>
    %155 = vector.shape_cast %154 : vector<1x4x16xf32> to vector<4x16xf32>
    %cst_159 = arith.constant dense<0.000000e+00> : vector<4x8xf32>
    %156 = tpu.matmul %155, %145, %cst_159 {dimension_numbers = #tpu.dot_dimension_numbers<[1], [0], [0], [1], [0, 0, 1, 1], [], []>} : vector<4x16xf32>, vector<16x8xf32>, vector<4x8xf32> -> vector<4x8xf32>
    %c1_160 = arith.constant 1 : index
    %c0_161 = arith.constant 0 : index
    %c0_162 = arith.constant 0 : index
    %157 = vector.load %arg9[%c1_160, %c0_161, %c0_162] : memref<9x8x8xf32, #tpu.memory_space<vmem>>, vector<1x8x8xf32>
    %158 = vector.shape_cast %157 : vector<1x8x8xf32> to vector<8x8xf32>
    %cst_163 = arith.constant dense<0.000000e+00> : vector<4x8xf32>
    %159 = tpu.matmul %156, %158, %cst_163 {dimension_numbers = #tpu.dot_dimension_numbers<[1], [0], [0], [1], [0, 0, 1, 1], [], []>} : vector<4x8xf32>, vector<8x8xf32>, vector<4x8xf32> -> vector<4x8xf32>
    %160 = arith.addf %153, %159 : vector<4x8xf32>
    %c2_164 = arith.constant 2 : index
    %c0_165 = arith.constant 0 : index
    %c0_166 = arith.constant 0 : index
    %161 = vector.load %arg8[%c2_164, %c0_165, %c0_166] : memref<9x4x16xf32, #tpu.memory_space<vmem>>, vector<1x4x16xf32>
    %162 = vector.shape_cast %161 : vector<1x4x16xf32> to vector<4x16xf32>
    %cst_167 = arith.constant dense<0.000000e+00> : vector<4x8xf32>
    %163 = tpu.matmul %162, %145, %cst_167 {dimension_numbers = #tpu.dot_dimension_numbers<[1], [0], [0], [1], [0, 0, 1, 1], [], []>} : vector<4x16xf32>, vector<16x8xf32>, vector<4x8xf32> -> vector<4x8xf32>
    %c2_168 = arith.constant 2 : index
    %c0_169 = arith.constant 0 : index
    %c0_170 = arith.constant 0 : index
    %164 = vector.load %arg9[%c2_168, %c0_169, %c0_170] : memref<9x8x8xf32, #tpu.memory_space<vmem>>, vector<1x8x8xf32>
    %165 = vector.shape_cast %164 : vector<1x8x8xf32> to vector<8x8xf32>
    %cst_171 = arith.constant dense<0.000000e+00> : vector<4x8xf32>
    %166 = tpu.matmul %163, %165, %cst_171 {dimension_numbers = #tpu.dot_dimension_numbers<[1], [0], [0], [1], [0, 0, 1, 1], [], []>} : vector<4x8xf32>, vector<8x8xf32>, vector<4x8xf32> -> vector<4x8xf32>
    %167 = arith.addf %160, %166 : vector<4x8xf32>
    %c3_172 = arith.constant 3 : index
    %c0_173 = arith.constant 0 : index
    %c0_174 = arith.constant 0 : index
    %168 = vector.load %arg8[%c3_172, %c0_173, %c0_174] : memref<9x4x16xf32, #tpu.memory_space<vmem>>, vector<1x4x16xf32>
    %169 = vector.shape_cast %168 : vector<1x4x16xf32> to vector<4x16xf32>
    %cst_175 = arith.constant dense<0.000000e+00> : vector<4x8xf32>
    %170 = tpu.matmul %169, %145, %cst_175 {dimension_numbers = #tpu.dot_dimension_numbers<[1], [0], [0], [1], [0, 0, 1, 1], [], []>} : vector<4x16xf32>, vector<16x8xf32>, vector<4x8xf32> -> vector<4x8xf32>
    %c3_176 = arith.constant 3 : index
    %c0_177 = arith.constant 0 : index
    %c0_178 = arith.constant 0 : index
    %171 = vector.load %arg9[%c3_176, %c0_177, %c0_178] : memref<9x8x8xf32, #tpu.memory_space<vmem>>, vector<1x8x8xf32>
    %172 = vector.shape_cast %171 : vector<1x8x8xf32> to vector<8x8xf32>
    %cst_179 = arith.constant dense<0.000000e+00> : vector<4x8xf32>
    %173 = tpu.matmul %170, %172, %cst_179 {dimension_numbers = #tpu.dot_dimension_numbers<[1], [0], [0], [1], [0, 0, 1, 1], [], []>} : vector<4x8xf32>, vector<8x8xf32>, vector<4x8xf32> -> vector<4x8xf32>
    %174 = arith.addf %167, %173 : vector<4x8xf32>
    %c4_180 = arith.constant 4 : index
    %c0_181 = arith.constant 0 : index
    %c0_182 = arith.constant 0 : index
    %175 = vector.load %arg8[%c4_180, %c0_181, %c0_182] : memref<9x4x16xf32, #tpu.memory_space<vmem>>, vector<1x4x16xf32>
    %176 = vector.shape_cast %175 : vector<1x4x16xf32> to vector<4x16xf32>
    %cst_183 = arith.constant dense<0.000000e+00> : vector<4x8xf32>
    %177 = tpu.matmul %176, %145, %cst_183 {dimension_numbers = #tpu.dot_dimension_numbers<[1], [0], [0], [1], [0, 0, 1, 1], [], []>} : vector<4x16xf32>, vector<16x8xf32>, vector<4x8xf32> -> vector<4x8xf32>
    %c4_184 = arith.constant 4 : index
    %c0_185 = arith.constant 0 : index
    %c0_186 = arith.constant 0 : index
    %178 = vector.load %arg9[%c4_184, %c0_185, %c0_186] : memref<9x8x8xf32, #tpu.memory_space<vmem>>, vector<1x8x8xf32>
    %179 = vector.shape_cast %178 : vector<1x8x8xf32> to vector<8x8xf32>
    %cst_187 = arith.constant dense<0.000000e+00> : vector<4x8xf32>
    %180 = tpu.matmul %177, %179, %cst_187 {dimension_numbers = #tpu.dot_dimension_numbers<[1], [0], [0], [1], [0, 0, 1, 1], [], []>} : vector<4x8xf32>, vector<8x8xf32>, vector<4x8xf32> -> vector<4x8xf32>
    %181 = arith.addf %174, %180 : vector<4x8xf32>
    %c5_188 = arith.constant 5 : index
    %c0_189 = arith.constant 0 : index
    %c0_190 = arith.constant 0 : index
    %182 = vector.load %arg8[%c5_188, %c0_189, %c0_190] : memref<9x4x16xf32, #tpu.memory_space<vmem>>, vector<1x4x16xf32>
    %183 = vector.shape_cast %182 : vector<1x4x16xf32> to vector<4x16xf32>
    %cst_191 = arith.constant dense<0.000000e+00> : vector<4x8xf32>
    %184 = tpu.matmul %183, %145, %cst_191 {dimension_numbers = #tpu.dot_dimension_numbers<[1], [0], [0], [1], [0, 0, 1, 1], [], []>} : vector<4x16xf32>, vector<16x8xf32>, vector<4x8xf32> -> vector<4x8xf32>
    %c5_192 = arith.constant 5 : index
    %c0_193 = arith.constant 0 : index
    %c0_194 = arith.constant 0 : index
    %185 = vector.load %arg9[%c5_192, %c0_193, %c0_194] : memref<9x8x8xf32, #tpu.memory_space<vmem>>, vector<1x8x8xf32>
    %186 = vector.shape_cast %185 : vector<1x8x8xf32> to vector<8x8xf32>
    %cst_195 = arith.constant dense<0.000000e+00> : vector<4x8xf32>
    %187 = tpu.matmul %184, %186, %cst_195 {dimension_numbers = #tpu.dot_dimension_numbers<[1], [0], [0], [1], [0, 0, 1, 1], [], []>} : vector<4x8xf32>, vector<8x8xf32>, vector<4x8xf32> -> vector<4x8xf32>
    %188 = arith.addf %181, %187 : vector<4x8xf32>
    %c6_196 = arith.constant 6 : index
    %c0_197 = arith.constant 0 : index
    %c0_198 = arith.constant 0 : index
    %189 = vector.load %arg8[%c6_196, %c0_197, %c0_198] : memref<9x4x16xf32, #tpu.memory_space<vmem>>, vector<1x4x16xf32>
    %190 = vector.shape_cast %189 : vector<1x4x16xf32> to vector<4x16xf32>
    %cst_199 = arith.constant dense<0.000000e+00> : vector<4x8xf32>
    %191 = tpu.matmul %190, %145, %cst_199 {dimension_numbers = #tpu.dot_dimension_numbers<[1], [0], [0], [1], [0, 0, 1, 1], [], []>} : vector<4x16xf32>, vector<16x8xf32>, vector<4x8xf32> -> vector<4x8xf32>
    %c6_200 = arith.constant 6 : index
    %c0_201 = arith.constant 0 : index
    %c0_202 = arith.constant 0 : index
    %192 = vector.load %arg9[%c6_200, %c0_201, %c0_202] : memref<9x8x8xf32, #tpu.memory_space<vmem>>, vector<1x8x8xf32>
    %193 = vector.shape_cast %192 : vector<1x8x8xf32> to vector<8x8xf32>
    %cst_203 = arith.constant dense<0.000000e+00> : vector<4x8xf32>
    %194 = tpu.matmul %191, %193, %cst_203 {dimension_numbers = #tpu.dot_dimension_numbers<[1], [0], [0], [1], [0, 0, 1, 1], [], []>} : vector<4x8xf32>, vector<8x8xf32>, vector<4x8xf32> -> vector<4x8xf32>
    %195 = arith.addf %188, %194 : vector<4x8xf32>
    %c7_204 = arith.constant 7 : index
    %c0_205 = arith.constant 0 : index
    %c0_206 = arith.constant 0 : index
    %196 = vector.load %arg8[%c7_204, %c0_205, %c0_206] : memref<9x4x16xf32, #tpu.memory_space<vmem>>, vector<1x4x16xf32>
    %197 = vector.shape_cast %196 : vector<1x4x16xf32> to vector<4x16xf32>
    %cst_207 = arith.constant dense<0.000000e+00> : vector<4x8xf32>
    %198 = tpu.matmul %197, %145, %cst_207 {dimension_numbers = #tpu.dot_dimension_numbers<[1], [0], [0], [1], [0, 0, 1, 1], [], []>} : vector<4x16xf32>, vector<16x8xf32>, vector<4x8xf32> -> vector<4x8xf32>
    %c7_208 = arith.constant 7 : index
    %c0_209 = arith.constant 0 : index
    %c0_210 = arith.constant 0 : index
    %199 = vector.load %arg9[%c7_208, %c0_209, %c0_210] : memref<9x8x8xf32, #tpu.memory_space<vmem>>, vector<1x8x8xf32>
    %200 = vector.shape_cast %199 : vector<1x8x8xf32> to vector<8x8xf32>
    %cst_211 = arith.constant dense<0.000000e+00> : vector<4x8xf32>
    %201 = tpu.matmul %198, %200, %cst_211 {dimension_numbers = #tpu.dot_dimension_numbers<[1], [0], [0], [1], [0, 0, 1, 1], [], []>} : vector<4x8xf32>, vector<8x8xf32>, vector<4x8xf32> -> vector<4x8xf32>
    %202 = arith.addf %195, %201 : vector<4x8xf32>
    %c8_212 = arith.constant 8 : index
    %c0_213 = arith.constant 0 : index
    %c0_214 = arith.constant 0 : index
    %203 = vector.load %arg8[%c8_212, %c0_213, %c0_214] : memref<9x4x16xf32, #tpu.memory_space<vmem>>, vector<1x4x16xf32>
    %204 = vector.shape_cast %203 : vector<1x4x16xf32> to vector<4x16xf32>
    %cst_215 = arith.constant dense<0.000000e+00> : vector<4x8xf32>
    %205 = tpu.matmul %204, %145, %cst_215 {dimension_numbers = #tpu.dot_dimension_numbers<[1], [0], [0], [1], [0, 0, 1, 1], [], []>} : vector<4x16xf32>, vector<16x8xf32>, vector<4x8xf32> -> vector<4x8xf32>
    %c8_216 = arith.constant 8 : index
    %c0_217 = arith.constant 0 : index
    %c0_218 = arith.constant 0 : index
    %206 = vector.load %arg9[%c8_216, %c0_217, %c0_218] : memref<9x8x8xf32, #tpu.memory_space<vmem>>, vector<1x8x8xf32>
    %207 = vector.shape_cast %206 : vector<1x8x8xf32> to vector<8x8xf32>
    %cst_219 = arith.constant dense<0.000000e+00> : vector<4x8xf32>
    %208 = tpu.matmul %205, %207, %cst_219 {dimension_numbers = #tpu.dot_dimension_numbers<[1], [0], [0], [1], [0, 0, 1, 1], [], []>} : vector<4x8xf32>, vector<8x8xf32>, vector<4x8xf32> -> vector<4x8xf32>
    %209 = arith.addf %202, %208 : vector<4x8xf32>
    %c0_220 = arith.constant 0 : index
    %c0_221 = arith.constant 0 : index
    %210 = vector.load %arg10[%c0_220, %c0_221] : memref<1x8xf32, #tpu.memory_space<vmem>>, vector<1x8xf32>
    %211 = vector.broadcast %210 : vector<1x8xf32> to vector<4x8xf32>
    %212 = arith.addf %209, %211 : vector<4x8xf32>
    %c0_222 = arith.constant 0 : index
    %c0_223 = arith.constant 0 : index
    %213 = vector.load %arg11[%c0_222, %c0_223] : memref<256x4xf32, #tpu.memory_space<vmem>>, vector<256x4xf32>
    %cst_224 = arith.constant dense<0.000000e+00> : vector<256x8xf32>
    %214 = tpu.matmul %213, %212, %cst_224 {dimension_numbers = #tpu.dot_dimension_numbers<[1], [0], [0], [1], [0, 0, 1, 1], [], []>} : vector<256x4xf32>, vector<4x8xf32>, vector<256x8xf32> -> vector<256x8xf32>
    %cst_225 = arith.constant 0.000000e+00 : f32
    %215 = vector.broadcast %cst_225 : f32 to vector<256x8xf32>
    %216 = arith.subf %215, %214 : vector<256x8xf32>
    %217 = math.exp %216 : vector<256x8xf32>
    %cst_226 = arith.constant 1.000000e+00 : f32
    %218 = vector.broadcast %cst_226 : f32 to vector<256x8xf32>
    %219 = arith.addf %218, %217 : vector<256x8xf32>
    %cst_227 = arith.constant 1.000000e+00 : f32
    %220 = vector.broadcast %cst_227 : f32 to vector<256x8xf32>
    %221 = arith.divf %220, %219 : vector<256x8xf32>
    %222 = arith.mulf %221, %1 : vector<256x8xf32>
    %c0_228 = arith.constant 0 : index
    %c0_229 = arith.constant 0 : index
    %223 = vector.load %arg12[%c0_228, %c0_229] : memref<8x4xf32, #tpu.memory_space<vmem>>, vector<8x4xf32>
    %cst_230 = arith.constant dense<0.000000e+00> : vector<256x4xf32>
    %224 = tpu.matmul %222, %223, %cst_230 {dimension_numbers = #tpu.dot_dimension_numbers<[1], [0], [0], [1], [0, 0, 1, 1], [], []>} : vector<256x8xf32>, vector<8x4xf32>, vector<256x4xf32> -> vector<256x4xf32>
    %c0_231 = arith.constant 0 : index
    %c0_232 = arith.constant 0 : index
    %225 = vector.load %arg13[%c0_231, %c0_232] : memref<1x4xf32, #tpu.memory_space<vmem>>, vector<1x4xf32>
    %226 = vector.broadcast %225 : vector<1x4xf32> to vector<256x4xf32>
    %227 = arith.addf %224, %226 : vector<256x4xf32>
    %c0_233 = arith.constant 0 : index
    %c0_234 = arith.constant 0 : index
    %228 = vector.load %arg14[%c0_233, %c0_234] : memref<8x4xf32, #tpu.memory_space<vmem>>, vector<8x4xf32>
    %cst_235 = arith.constant dense<0.000000e+00> : vector<256x4xf32>
    %229 = tpu.matmul %222, %228, %cst_235 {dimension_numbers = #tpu.dot_dimension_numbers<[1], [0], [0], [1], [0, 0, 1, 1], [], []>} : vector<256x8xf32>, vector<8x4xf32>, vector<256x4xf32> -> vector<256x4xf32>
    %c0_236 = arith.constant 0 : index
    %c0_237 = arith.constant 0 : index
    %230 = vector.load %arg15[%c0_236, %c0_237] : memref<1x4xf32, #tpu.memory_space<vmem>>, vector<1x4xf32>
    %231 = vector.broadcast %230 : vector<1x4xf32> to vector<256x4xf32>
    %232 = arith.addf %229, %231 : vector<256x4xf32>
    %c0_238 = arith.constant 0 : index
    %c0_239 = arith.constant 0 : index
    %233 = vector.load %arg16[%c0_238, %c0_239] : memref<8x4xf32, #tpu.memory_space<vmem>>, vector<8x4xf32>
    %cst_240 = arith.constant dense<0.000000e+00> : vector<256x4xf32>
    %234 = tpu.matmul %222, %233, %cst_240 {dimension_numbers = #tpu.dot_dimension_numbers<[1], [0], [0], [1], [0, 0, 1, 1], [], []>} : vector<256x8xf32>, vector<8x4xf32>, vector<256x4xf32> -> vector<256x4xf32>
    %c0_241 = arith.constant 0 : index
    %c0_242 = arith.constant 0 : index
    %235 = vector.load %arg17[%c0_241, %c0_242] : memref<1x4xf32, #tpu.memory_space<vmem>>, vector<1x4xf32>
    %236 = vector.broadcast %235 : vector<1x4xf32> to vector<256x4xf32>
    %237 = arith.addf %234, %236 : vector<256x4xf32>
    %cst_243 = arith.constant dense<0.000000e+00> : vector<256x256xf32>
    %238 = tpu.matmul %232, %237, %cst_243 {dimension_numbers = #tpu.dot_dimension_numbers<[1], [1], [0], [0], [0, 0, 1, 0], [], []>} : vector<256x4xf32>, vector<256x4xf32>, vector<256x256xf32> -> vector<256x256xf32>
    %cst_244 = arith.constant dense<0xFF800000> : vector<256xf32>
    %239 = vector.multi_reduction <maximumf>, %238, %cst_244 [0] : vector<256x256xf32> to vector<256xf32>
    %240 = vector.shape_cast %239 : vector<256xf32> to vector<1x256xf32>
    %241 = vector.broadcast %240 : vector<1x256xf32> to vector<256x256xf32>
    %242 = arith.subf %238, %241 : vector<256x256xf32>
    %243 = math.exp %242 : vector<256x256xf32>
    %cst_245 = arith.constant dense<0.000000e+00> : vector<256xf32>
    %244 = vector.multi_reduction <add>, %243, %cst_245 [0] : vector<256x256xf32> to vector<256xf32>
    %245 = vector.shape_cast %244 : vector<256xf32> to vector<1x256xf32>
    %246 = vector.broadcast %245 : vector<1x256xf32> to vector<256x256xf32>
    %247 = arith.divf %243, %246 : vector<256x256xf32>
    %cst_246 = arith.constant dense<0.000000e+00> : vector<256x4xf32>
    %248 = tpu.matmul %247, %227, %cst_246 {dimension_numbers = #tpu.dot_dimension_numbers<[1], [0], [0], [1], [0, 0, 1, 1], [], []>} : vector<256x256xf32>, vector<256x4xf32>, vector<256x4xf32> -> vector<256x4xf32>
    %c0_247 = arith.constant 0 : index
    %c0_248 = arith.constant 0 : index
    %249 = vector.load %arg18[%c0_247, %c0_248] : memref<4x8xf32, #tpu.memory_space<vmem>>, vector<4x8xf32>
    %cst_249 = arith.constant dense<0.000000e+00> : vector<256x8xf32>
    %250 = tpu.matmul %248, %249, %cst_249 {dimension_numbers = #tpu.dot_dimension_numbers<[1], [0], [0], [1], [0, 0, 1, 1], [], []>} : vector<256x4xf32>, vector<4x8xf32>, vector<256x8xf32> -> vector<256x8xf32>
    %c0_250 = arith.constant 0 : index
    %c0_251 = arith.constant 0 : index
    %251 = vector.load %arg19[%c0_250, %c0_251] : memref<1x8xf32, #tpu.memory_space<vmem>>, vector<1x8xf32>
    %252 = vector.broadcast %251 : vector<1x8xf32> to vector<256x8xf32>
    %253 = arith.addf %250, %252 : vector<256x8xf32>
    %254 = arith.addf %253, %222 : vector<256x8xf32>
    %c0_252 = arith.constant 0 : index
    %c0_253 = arith.constant 0 : index
    %c0_254 = arith.constant 0 : index
    %255 = vector.load %arg20[%c0_252, %c0_253, %c0_254] : memref<1x256x8xf32, #tpu.memory_space<vmem>>, vector<1x256x8xf32>
    %256 = vector.shape_cast %255 : vector<1x256x8xf32> to vector<256x8xf32>
    %257 = vector.shape_cast %254 : vector<256x8xf32> to vector<1x256x8xf32>
    tpu.vector_store %arg20[%c0_252, %c0_253, %c0_254], %257 {strides = array<i32>} : memref<1x256x8xf32, #tpu.memory_space<vmem>>, vector<1x256x8xf32>,
    return
  }
  func.func @transform_0(%arg0: i32) -> (i32, i32, i32) {
    %c0_i32 = arith.constant 0 : i32
    %c0_i32_0 = arith.constant 0 : i32
    %c0_i32_1 = arith.constant 0 : i32
    return %arg0, %c0_i32, %c0_i32_0 : i32, i32, i32
  }
  func.func @transform_1(%arg0: i32) -> (i32, i32, i32) {
    %c0_i32 = arith.constant 0 : i32
    %c0_i32_0 = arith.constant 0 : i32
    %c0_i32_1 = arith.constant 0 : i32
    %c0_i32_2 = arith.constant 0 : i32
    return %c0_i32, %c0_i32_0, %c0_i32_1 : i32, i32, i32
  }
  func.func @transform_2(%arg0: i32) -> (i32, i32, i32) {
    %c0_i32 = arith.constant 0 : i32
    %c0_i32_0 = arith.constant 0 : i32
    %c0_i32_1 = arith.constant 0 : i32
    %c0_i32_2 = arith.constant 0 : i32
    return %c0_i32, %c0_i32_0, %c0_i32_1 : i32, i32, i32
  }
  func.func @transform_3(%arg0: i32) -> (i32, i32) {
    %c0_i32 = arith.constant 0 : i32
    %c0_i32_0 = arith.constant 0 : i32
    %c0_i32_1 = arith.constant 0 : i32
    return %c0_i32, %c0_i32_0 : i32, i32
  }
  func.func @transform_4(%arg0: i32) -> (i32, i32, i32) {
    %c0_i32 = arith.constant 0 : i32
    %c0_i32_0 = arith.constant 0 : i32
    %c0_i32_1 = arith.constant 0 : i32
    %c0_i32_2 = arith.constant 0 : i32
    return %c0_i32, %c0_i32_0, %c0_i32_1 : i32, i32, i32
  }
  func.func @transform_5(%arg0: i32) -> (i32, i32, i32) {
    %c0_i32 = arith.constant 0 : i32
    %c0_i32_0 = arith.constant 0 : i32
    %c0_i32_1 = arith.constant 0 : i32
    %c0_i32_2 = arith.constant 0 : i32
    return %c0_i32, %c0_i32_0, %c0_i32_1 : i32, i32, i32
  }
  func.func @transform_6(%arg0: i32) -> (i32, i32) {
    %c0_i32 = arith.constant 0 : i32
    %c0_i32_0 = arith.constant 0 : i32
    %c0_i32_1 = arith.constant 0 : i32
    return %c0_i32, %c0_i32_0 : i32, i32
  }
  func.func @transform_7(%arg0: i32) -> (i32, i32, i32) {
    %c0_i32 = arith.constant 0 : i32
    %c0_i32_0 = arith.constant 0 : i32
    %c0_i32_1 = arith.constant 0 : i32
    %c0_i32_2 = arith.constant 0 : i32
    return %c0_i32, %c0_i32_0, %c0_i32_1 : i32, i32, i32
  }
  func.func @transform_8(%arg0: i32) -> (i32, i32, i32) {
    %c0_i32 = arith.constant 0 : i32
    %c0_i32_0 = arith.constant 0 : i32
    %c0_i32_1 = arith.constant 0 : i32
    %c0_i32_2 = arith.constant 0 : i32
    return %c0_i32, %c0_i32_0, %c0_i32_1 : i32, i32, i32
  }
  func.func @transform_9(%arg0: i32) -> (i32, i32) {
    %c0_i32 = arith.constant 0 : i32
    %c0_i32_0 = arith.constant 0 : i32
    %c0_i32_1 = arith.constant 0 : i32
    return %c0_i32, %c0_i32_0 : i32, i32
  }
  func.func @transform_10(%arg0: i32) -> (i32, i32) {
    %c0_i32 = arith.constant 0 : i32
    %c0_i32_0 = arith.constant 0 : i32
    %c0_i32_1 = arith.constant 0 : i32
    return %c0_i32, %c0_i32_0 : i32, i32
  }
  func.func @transform_11(%arg0: i32) -> (i32, i32) {
    %c0_i32 = arith.constant 0 : i32
    %c0_i32_0 = arith.constant 0 : i32
    %c0_i32_1 = arith.constant 0 : i32
    return %c0_i32, %c0_i32_0 : i32, i32
  }
  func.func @transform_12(%arg0: i32) -> (i32, i32) {
    %c0_i32 = arith.constant 0 : i32
    %c0_i32_0 = arith.constant 0 : i32
    %c0_i32_1 = arith.constant 0 : i32
    return %c0_i32, %c0_i32_0 : i32, i32
  }
  func.func @transform_13(%arg0: i32) -> (i32, i32) {
    %c0_i32 = arith.constant 0 : i32
    %c0_i32_0 = arith.constant 0 : i32
    %c0_i32_1 = arith.constant 0 : i32
    return %c0_i32, %c0_i32_0 : i32, i32
  }
  func.func @transform_14(%arg0: i32) -> (i32, i32) {
    %c0_i32 = arith.constant 0 : i32
    %c0_i32_0 = arith.constant 0 : i32
    %c0_i32_1 = arith.constant 0 : i32
    return %c0_i32, %c0_i32_0 : i32, i32
  }
  func.func @transform_15(%arg0: i32) -> (i32, i32) {
    %c0_i32 = arith.constant 0 : i32
    %c0_i32_0 = arith.constant 0 : i32
    %c0_i32_1 = arith.constant 0 : i32
    return %c0_i32, %c0_i32_0 : i32, i32
  }
  func.func @transform_16(%arg0: i32) -> (i32, i32) {
    %c0_i32 = arith.constant 0 : i32
    %c0_i32_0 = arith.constant 0 : i32
    %c0_i32_1 = arith.constant 0 : i32
    return %c0_i32, %c0_i32_0 : i32, i32
  }
  func.func @transform_17(%arg0: i32) -> (i32, i32) {
    %c0_i32 = arith.constant 0 : i32
    %c0_i32_0 = arith.constant 0 : i32
    %c0_i32_1 = arith.constant 0 : i32
    return %c0_i32, %c0_i32_0 : i32, i32
  }
  func.func @transform_18(%arg0: i32) -> (i32, i32) {
    %c0_i32 = arith.constant 0 : i32
    %c0_i32_0 = arith.constant 0 : i32
    %c0_i32_1 = arith.constant 0 : i32
    return %c0_i32, %c0_i32_0 : i32, i32
  }
  func.func @transform_19(%arg0: i32) -> (i32, i32, i32) {
    %c0_i32 = arith.constant 0 : i32
    %c0_i32_0 = arith.constant 0 : i32
    %c0_i32_1 = arith.constant 0 : i32
    return %arg0, %c0_i32, %c0_i32_0 : i32, i32, i32
  }
}

</mosaic_0001>

<bundles_post_ra>
// kernel: attentive_nonlocal_block_forward.1
= control target key start
LH: loop header
LB: loop body
LE: loop exit
PB: predicated region body
PF: predicated region fallthrough
CT: control target
= control target key end

     0   :  { %s10422_s0 = inlined_call_operand.vmem [shape: f32[2,256,8], index: 0, kind: input, shape index: {}]   ;;  %s10423_s1 = inlined_call_operand.hbm [shape: f32[9,64,256], index: 1, kind: input, shape index: {}]   ;;  %s10424_s2 = inlined_call_operand.vmem [shape: f32[9,8,8], index: 2, kind: input, shape index: {}]   ;;  %s10425_s3 = inlined_call_operand.vmem [shape: f32[1,8], index: 3, kind: input, shape index: {}]   ;;  %s10426_s4 = inlined_call_operand.vmem [shape: f32[9,16,64], index: 4, kind: input, shape index: {}]   ;;  %s10427_s5 = inlined_call_operand.vmem [shape: f32[9,8,8], index: 5, kind: input, shape index: {}]   ;;  %s10428_s6 = inlined_call_operand.vmem [shape: f32[1,8], index: 6, kind: input, shape index: {}]   ;;  %s10429_s7 = inlined_call_operand.vmem [shape: f32[9,4,16], index: 7, kind: input, shape index: {}]   ;;  %s10430_s8 = inlined_call_operand.vmem [shape: f32[9,8,8], index: 8, kind: input, shape index: {}]   ;;  %s10431_s9 = inlined_call_operand.vmem [shape: f32[1,8], index: 9, kind: input, shape index: {}]   ;;  %s10432_s10 = inlined_call_operand.vmem [shape: f32[256,4], index: 10, kind: input, shape index: {}]   ;;  %s10433_s11 = inlined_call_operand.vmem [shape: f32[8,4], index: 11, kind: input, shape index: {}]   ;;  %s10434_s12 = inlined_call_operand.vmem [shape: f32[1,4], index: 12, kind: input, shape index: {}]   ;;  %s10435_s13 = inlined_call_operand.vmem [shape: f32[8,4], index: 13, kind: input, shape index: {}]   ;;  %s10436_s14 = inlined_call_operand.vmem [shape: f32[1,4], index: 14, kind: input, shape index: {}]   ;;  %s10437_s15 = inlined_call_operand.vmem [shape: f32[8,4], index: 15, kind: input, shape index: {}]   ;;  %s10438_s16 = inlined_call_operand.vmem [shape: f32[1,4], index: 16, kind: input, shape index: {}]   ;;  %s10439_s17 = inlined_call_operand.vmem [shape: f32[4,8], index: 17, kind: input, shape index: {}]   ;;  %s10440_s18 = inlined_call_operand.vmem [shape: f32[1,8], index: 18, kind: input, shape index: {}]   ;;  %s10441_s19 = inlined_call_operand.vmem [shape: f32[2,256,8], index: 19, kind: output, shape index: {}]  }
   0x1   :  { %10490 = sst [smem:[#allocation52_spill]] %s10422_s0 }
   0x2   :  { %10491 = sst [smem:[#allocation53_spill]] %s10423_s1 }
   0x3   :  { %10492 = sst [smem:[#allocation54_spill]] %s10424_s2 }
   0x4   :  { %10493 = sst [smem:[#allocation55_spill]] %s10425_s3 }
   0x5   :  { %24 = vsyncpa [#allocation3], 0  ;;  %s7011_s0 = smov 0  }
   0x6 LB: > { %s10494_s21 = sld [smem:[#allocation53_spill]]  ;;  %s6050_s22 = sadd.s32 4294967295, %s6906_s0   ;;  %s6906_s0 = sphi %s7011_s0, %s30_s0  }
   0x7   : > { %p6052_p0 = scmp.ge.s32.totalorder %s6906_s0, 1  ;;  %p465_p1 = scmp.lt.s32.totalorder %s6906_s0, 3 }
   0x8   : > { %p6522_p2 = scmp.eq.s32.totalorder %s6050_s22, 0  ;;  %s6908_s2 = smov [#allocation2]  }
   0x9   : > { %p466_p3 = pnand %p6052_p0, %p465_p1  ;;  %s478_s23 = sshll.u32 %s6908_s2, 4  ;;  %s479_s23 = int_to_ptr.vmem [resolvable:$true] %s478_s23 }
   0xa   : > { %s6909_s24 = smov 256   ;;  %s6910_s25 = smov 16  }
   0xb   : > { %p6518_p4 = pneg %p466_p3  ;;  %553 = sbr.rel (%p466_p3) target bundleno = 3578 (0xdfa), region = 96 }
   0xc   : > { %s476_s1 = sshll.u32 %s10494_s21, 4  ;;  %s477_s1 = int_to_ptr.hbm [resolvable:$true] %s476_s1 }
   0xd   : > { %p6519_p5 = pnand %p6522_p2, %p6518_p4 }
   0xf   : > { %6521 = dma.hbm_to_vmem [thread:$0]  (!%p6519_p5), %s477_s1, 18432, %s479_s23, [#allocation3], %s6909_s24, %s6909_s24, %s6910_s25  }
  0x10   : > { %6901 = dma.done.wait (%p6522_p2), [#allocation3], 18432  }
  0x11   : > { %6903 = vsyncadd (%p6522_p2), [#allocation3], 4294948864  ;;  %p610_p6 = scmp.lt.s32.totalorder %s6050_s22, 1  ;;  %s10495_s28 = sld [smem:[#allocation52_spill]]  ;;  %v652_v32 = vld [vmem:[#allocation2] sm:$0xff]  ;;  %v653_v33 = vld [vmem:[#allocation2 + $0x8] sm:$0xff] }
  0x12   : > { %v654_v34 = vld [vmem:[#allocation2 + $0x10] sm:$0xff]  ;;  %v655_v35 = vld [vmem:[#allocation2 + $0x18] sm:$0xff]  ;;  %v656_v36 = vld [vmem:[#allocation2 + $0x20] sm:$0xff]  ;;  %s10496_s21 = sld [smem:[#allocation54_spill]]  ;;  %vm852_vm0 = vcmask 64512   ;;  %vm2239_vm9 = vcmask 523264  }
  0x13   : > { %s10657_s22 = smov (!%p610_p6, %s6050_s22), 1  ;;  %v657_v37 = vld [vmem:[#allocation2 + $0x28] sm:$0xff]  ;;  %v658_v38 = vld [vmem:[#allocation2 + $0x30] sm:$0xff]  ;;  %v659_v39 = vld [vmem:[#allocation2 + $0x38] sm:$0xff]  ;;  %s10519_s30 = sld [smem:[#allocation55_spill]]  ;;  %vm2830_vm12 = vcmask 130048  }
  0x14   : > { %s6495_s3 = sshll.u32 %s10657_s22, 8  ;;  %v752_v40 = vld [vmem:[#allocation2 + $0x80] sm:$0xff]  ;;  %v661_v42 = vld [vmem:[#allocation2 + $0x48] sm:$0xff]  ;;  %v754_v43 = vld [vmem:[#allocation2 + $0x90] sm:$0xff]  ;;  %vm3419_vm13 = vcmask 1043456   ;;  %vm3322_vm14 = vcmask 31744  }
  0x15   : > { %v660_v41 = vld [vmem:[#allocation2 + $0x40] sm:$0xff]  ;;  %v662_v44 = vld [vmem:[#allocation2 + $0x50] sm:$0xff]  ;;  %v663_v45 = vld [vmem:[#allocation2 + $0x58] sm:$0xff]  ;;  %s10275_s25 = scalar_lea.vmem %s10441_s19, %s6495_s3 }
  0x16   : > { %v756_v46 = vld [vmem:[#allocation2 + $0xa0] sm:$0xff]  ;;  %v665_v48 = vld [vmem:[#allocation2 + $0x68] sm:$0xff]  ;;  %v758_v49 = vld [vmem:[#allocation2 + $0xb0] sm:$0xff] }
  0x17   : > { %s7030_s29 = scalar_lea.vmem %s10495_s28, %s6495_s3  ;;  %v664_v47 = vld [vmem:[#allocation2 + $0x60] sm:$0xff]  ;;  %v666_v50 = vld [vmem:[#allocation2 + $0x70] sm:$0xff]  ;;  %v667_v51 = vld [vmem:[#allocation2 + $0x78] sm:$0xff] }
  0x18   : > { %v7033_v0 = vld [vmem:[%s7030_s29 + $0x78] sm:$0xff]  ;;  %v7039_v2 = vld [vmem:[%s7030_s29 + $0x70] sm:$0xff]  ;;  %v7047_v4 = vld [vmem:[%s7030_s29 + $0x68] sm:$0xff] }
  0x19   : > { %v7036_v1 = vld [vmem:[%s7030_s29 + $0xf8] sm:$0xff]  ;;  %668 = vmatpush.msra.mxu0 %v7033_v0  ;;  %v7044_v3 = vld [vmem:[%s7030_s29 + $0xf0] sm:$0xff]  ;;  %v7050_v5 = vld [vmem:[%s7030_s29 + $0xe8] sm:$0xff]  ;;  %768 = vmatpush.msra.mxu2 %v7033_v0 }
  0x1a   : > { %709 = vmatpush.msra.mxu1 %v7036_v1  ;;  %6497 = vmatpush.msra.mxu3 %v7036_v1  ;;  %v7057_v6 = vld [vmem:[%s7030_s29 + $0x60] sm:$0xff]  ;;  %v7067_v8 = vld [vmem:[%s7030_s29 + $0x58] sm:$0xff]  ;;  %v7077_v10 = vld [vmem:[%s7030_s29 + $0x50] sm:$0xff] }
  0x1b   : > { %669 = vmatpush.msra.mxu0 %v7039_v2  ;;  %v7060_v7 = vld [vmem:[%s7030_s29 + $0xe0] sm:$0xff]  ;;  %769 = vmatpush.msra.mxu2 %v7039_v2  ;;  %v7070_v9 = vld [vmem:[%s7030_s29 + $0xd8] sm:$0xff]  ;;  %v7080_v11 = vld [vmem:[%s7030_s29 + $0xd0] sm:$0xff] }
  0x1c   : > { %710 = vmatpush.msra.mxu1 %v7044_v3  ;;  %6498 = vmatpush.msra.mxu3 %v7044_v3  ;;  %v7087_v12 = vld [vmem:[%s7030_s29 + $0x48] sm:$0xff]  ;;  %v7097_v14 = vld [vmem:[%s7030_s29 + $0x40] sm:$0xff]  ;;  %v7103_v16 = vld [vmem:[%s7030_s29 + $0x38] sm:$0xff] }
  0x1d   : > { %670 = vmatpush.msra.mxu0 %v7047_v4  ;;  %770 = vmatpush.msra.mxu2 %v7047_v4  ;;  %v7090_v13 = vld [vmem:[%s7030_s29 + $0xc8] sm:$0xff]  ;;  %v7100_v15 = vld [vmem:[%s7030_s29 + $0xc0] sm:$0xff]  ;;  %v7110_v17 = vld [vmem:[%s7030_s29 + $0xb8] sm:$0xff] }
  0x1e   : > { %711 = vmatpush.msra.mxu1 %v7050_v5  ;;  %6499 = vmatpush.msra.mxu3 %v7050_v5  ;;  %v7117_v18 = vld [vmem:[%s7030_s29 + $0x30] sm:$0xff]  ;;  %v7127_v20 = vld [vmem:[%s7030_s29 + $0x28] sm:$0xff]  ;;  %v7137_v22 = vld [vmem:[%s7030_s29 + $0x20] sm:$0xff] }
  0x1f   : > { %671 = vmatpush.msra.mxu0 %v7057_v6  ;;  %771 = vmatpush.msra.mxu2 %v7057_v6  ;;  %v7120_v19 = vld [vmem:[%s7030_s29 + $0xb0] sm:$0xff]  ;;  %v7130_v21 = vld [vmem:[%s7030_s29 + $0xa8] sm:$0xff]  ;;  %v7140_v23 = vld [vmem:[%s7030_s29 + $0xa0] sm:$0xff] }
  0x20   : > { %712 = vmatpush.msra.mxu1 %v7060_v7  ;;  %6500 = vmatpush.msra.mxu3 %v7060_v7  ;;  %v7147_v24 = vld [vmem:[%s7030_s29 + $0x18] sm:$0xff]  ;;  %v7157_v26 = vld [vmem:[%s7030_s29 + $0x10] sm:$0xff]  ;;  %v7167_v28 = vld [vmem:[%s7030_s29 + $0x8] sm:$0xff] }
  0x21   : > { %672 = vmatpush.msra.mxu0 %v7067_v8  ;;  %772 = vmatpush.msra.mxu2 %v7067_v8  ;;  %v7150_v25 = vld [vmem:[%s7030_s29 + $0x98] sm:$0xff]  ;;  %v7160_v27 = vld [vmem:[%s7030_s29 + $0x90] sm:$0xff]  ;;  %v7170_v29 = vld [vmem:[%s7030_s29 + $0x88] sm:$0xff] }
  0x22   : > { %713 = vmatpush.msra.mxu1 %v7070_v9  ;;  %6501 = vmatpush.msra.mxu3 %v7070_v9  ;;  %v7177_v30 = vld [vmem:[%s7030_s29] sm:$0xff]  ;;  %v753_v53 = vld [vmem:[#allocation2 + $0x88] sm:$0xff]  ;;  %v762_v54 = vld [vmem:[#allocation2 + $0xd0] sm:$0xff] }
  0x23   : > { %673 = vmatpush.msra.mxu0 %v7077_v10  ;;  %773 = vmatpush.msra.mxu2 %v7077_v10  ;;  %v7180_v31 = vld [vmem:[%s7030_s29 + $0x80] sm:$0xff]  ;;  %v755_v55 = vld [vmem:[#allocation2 + $0x98] sm:$0xff]  ;;  %v757_v57 = vld [vmem:[#allocation2 + $0xa8] sm:$0xff] }
  0x24   : > { %714 = vmatpush.msra.mxu1 %v7080_v11  ;;  %6502 = vmatpush.msra.mxu3 %v7080_v11  ;;  %v760_v52 = vld [vmem:[#allocation2 + $0xc0] sm:$0xff]  ;;  %v766_v58 = vld [vmem:[#allocation2 + $0xf0] sm:$0xff]  ;;  %v759_v59 = vld [vmem:[#allocation2 + $0xb8] sm:$0xff] }
  0x25   : > { %674 = vmatpush.msra.mxu0 %v7087_v12  ;;  %774 = vmatpush.msra.mxu2 %v7087_v12  ;;  %v764_v56 = vld [vmem:[#allocation2 + $0xe0] sm:$0xff]  ;;  %v761_v60 = vld [vmem:[#allocation2 + $0xc8] sm:$0xff]  ;;  %v763_v62 = vld [vmem:[#allocation2 + $0xd8] sm:$0xff] }
  0x26   : > { %715 = vmatpush.msra.mxu1 %v7090_v13  ;;  %6503 = vmatpush.msra.mxu3 %v7090_v13  ;;  %v750_v61 = vld [vmem:[%s10496_s21] sm:$0xff]  ;;  %v765_v63 = vld [vmem:[#allocation2 + $0xe8] sm:$0xff] }
  0x27   : > { %675 = vmatpush.msra.mxu0 %v7097_v14  ;;  %775 = vmatpush.msra.mxu2 %v7097_v14 }
  0x28   : > { %716 = vmatpush.msra.mxu1 %v7100_v15  ;;  %6504 = vmatpush.msra.mxu3 %v7100_v15 }
  0x29   : > { %676 = vmatpush.msra.mxu0 %v7103_v16  ;;  %776 = vmatpush.msra.mxu2 %v7103_v16 }
  0x2a   : > { %717 = vmatpush.msra.mxu1 %v7110_v17  ;;  %6505 = vmatpush.msra.mxu3 %v7110_v17 }
  0x2b   : > { %677 = vmatpush.msra.mxu0 %v7117_v18  ;;  %777 = vmatpush.msra.mxu2 %v7117_v18 }
  0x2c   : > { %718 = vmatpush.msra.mxu1 %v7120_v19  ;;  %6506 = vmatpush.msra.mxu3 %v7120_v19 }
  0x2d   : > { %678 = vmatpush.msra.mxu0 %v7127_v20  ;;  %778 = vmatpush.msra.mxu2 %v7127_v20 }
  0x2e   : > { %719 = vmatpush.msra.mxu1 %v7130_v21  ;;  %6507 = vmatpush.msra.mxu3 %v7130_v21 }
  0x2f   : > { %679 = vmatpush.msra.mxu0 %v7137_v22  ;;  %779 = vmatpush.msra.mxu2 %v7137_v22 }
  0x30   : > { %720 = vmatpush.msra.mxu1 %v7140_v23  ;;  %6508 = vmatpush.msra.mxu3 %v7140_v23 }
  0x31   : > { %680 = vmatpush.msra.mxu0 %v7147_v24  ;;  %780 = vmatpush.msra.mxu2 %v7147_v24 }
  0x32   : > { %721 = vmatpush.msra.mxu1 %v7150_v25  ;;  %6509 = vmatpush.msra.mxu3 %v7150_v25 }
  0x33   : > { %681 = vmatpush.msra.mxu0 %v7157_v26  ;;  %781 = vmatpush.msra.mxu2 %v7157_v26 }
  0x34   : > { %722 = vmatpush.msra.mxu1 %v7160_v27  ;;  %6510 = vmatpush.msra.mxu3 %v7160_v27 }
  0x35   : > { %682 = vmatpush.msra.mxu0 %v7167_v28  ;;  %782 = vmatpush.msra.mxu2 %v7167_v28 }
  0x36   : > { %723 = vmatpush.msra.mxu1 %v7170_v29  ;;  %6511 = vmatpush.msra.mxu3 %v7170_v29 }
  0x37   : > { %683 = vmatpush.msra.mxu0 %v7177_v30  ;;  %783 = vmatpush.msra.mxu2 %v7177_v30 }
  0x38   : > { %724 = vmatpush.msra.mxu1 %v7180_v31  ;;  %684 = vmatmul.f32.vlgmr.msra.gmra.mxu0 %v652_v32  ;;  %v767_v32 = vld [vmem:[#allocation2 + $0xf8] sm:$0xff] }
  0x39   : > { %725 = vmatmul.f32.vlgmr.msra.gmra.mxu1 %v653_v33  ;;  %809 = vmatpush.msrb.mxu0 %v7036_v1 }
  0x3a   : > { %1000 = vmatpush.msrb.mxu2 %v7033_v0  ;;  %6512 = vmatpush.msra.mxu3 %v7180_v31 }
  0x3b   : > { %810 = vmatpush.msrb.mxu0 %v7044_v3  ;;  %784 = vmatmul.f32.vlgmr.msra.gmra.mxu2 %v752_v40 }
  0x3c   : > { %1001 = vmatpush.msrb.mxu2 %v7039_v2  ;;  %957 = vmatpush.msrb.mxu1 %v750_v61 }
  0x3d   : > { %811 = vmatpush.msrb.mxu0 %v7050_v5 }
  0x3e   : > { %1002 = vmatpush.msrb.mxu2 %v7047_v4  ;;  %1041 = vmatpush.msra.mxu1 %v7036_v1 }
  0x3f   : > { %812 = vmatpush.msrb.mxu0 %v7060_v7 }
  0x40   : > { %687 = vmatmul.f32.gmra.mxu0 %v654_v34  ;;  %1003 = vmatpush.msrb.mxu2 %v7057_v6 }
  0x41   : > { %728 = vmatmul.f32.gmra.mxu1 %v655_v35  ;;  %813 = vmatpush.msrb.mxu0 %v7070_v9 }
  0x42   : > { %1004 = vmatpush.msrb.mxu2 %v7067_v8  ;;  %1042 = vmatpush.msra.mxu1 %v7044_v3 }
  0x43   : > { %814 = vmatpush.msrb.mxu0 %v7080_v11  ;;  %787 = vmatmul.f32.gmra.mxu2 %v754_v43 }
  0x44   : > { %1005 = vmatpush.msrb.mxu2 %v7077_v10  ;;  %1043 = vmatpush.msra.mxu1 %v7050_v5 }
  0x45   : > { %815 = vmatpush.msrb.mxu0 %v7090_v13 }
  0x46   : > { %1006 = vmatpush.msrb.mxu2 %v7087_v12  ;;  %1044 = vmatpush.msra.mxu1 %v7060_v7 }
  0x47   : > { %816 = vmatpush.msrb.mxu0 %v7100_v15 }
  0x48   : > { %690 = vmatmul.f32.gmra.mxu0 %v656_v36  ;;  %1007 = vmatpush.msrb.mxu2 %v7097_v14 }
  0x49   : > { %731 = vmatmul.f32.gmra.mxu1 %v657_v37  ;;  %817 = vmatpush.msrb.mxu0 %v7110_v17 }
  0x4a   : > { %1008 = vmatpush.msrb.mxu2 %v7103_v16  ;;  %1045 = vmatpush.msra.mxu1 %v7070_v9 }
  0x4b   : > { %818 = vmatpush.msrb.mxu0 %v7120_v19  ;;  %790 = vmatmul.f32.gmra.mxu2 %v756_v46  ;;  %v986_v46 = vld [vmem:[#allocation2 + $0x110] sm:$0xff] }
  0x4c   : > { %1009 = vmatpush.msrb.mxu2 %v7117_v18  ;;  %1046 = vmatpush.msra.mxu1 %v7080_v11 }
  0x4d   : > { %819 = vmatpush.msrb.mxu0 %v7130_v21 }
  0x4e   : > { %1010 = vmatpush.msrb.mxu2 %v7127_v20  ;;  %1047 = vmatpush.msra.mxu1 %v7090_v13 }
  0x4f   : > { %820 = vmatpush.msrb.mxu0 %v7140_v23 }
  0x50   : > { %693 = vmatmul.f32.gmra.mxu0 %v658_v38  ;;  %1011 = vmatpush.msrb.mxu2 %v7137_v22 }
  0x51   : > { %734 = vmatmul.f32.gmra.mxu1 %v659_v39  ;;  %821 = vmatpush.msrb.mxu0 %v7150_v25 }
  0x52   : > { %1012 = vmatpush.msrb.mxu2 %v7147_v24  ;;  %1048 = vmatpush.msra.mxu1 %v7100_v15 }
  0x53   : > { %822 = vmatpush.msrb.mxu0 %v7160_v27  ;;  %793 = vmatmul.f32.gmra.mxu2 %v758_v49 }
  0x54   : > { %1013 = vmatpush.msrb.mxu2 %v7157_v26  ;;  %1049 = vmatpush.msra.mxu1 %v7110_v17 }
  0x55   : > { %823 = vmatpush.msrb.mxu0 %v7170_v29 }
  0x56   : > { %1014 = vmatpush.msrb.mxu2 %v7167_v28  ;;  %1050 = vmatpush.msra.mxu1 %v7120_v19 }
  0x57   : > { %824 = vmatpush.msrb.mxu0 %v7180_v31 }
  0x58   : > { %696 = vmatmul.f32.gmra.mxu0 %v660_v41  ;;  %1015 = vmatpush.msrb.mxu2 %v7177_v30 }
  0x59   : > { %737 = vmatmul.f32.gmra.mxu1 %v661_v42  ;;  %v984_v42 = vld [vmem:[#allocation2 + $0x100] sm:$0xff] }
  0x5a   : > { %1215 = vmatpush.msra.mxu2 %v7036_v1  ;;  %1051 = vmatpush.msra.mxu1 %v7130_v21 }
  0x5b   : > { %796 = vmatmul.f32.gmra.mxu2 %v760_v52 }
  0x5c   : > { %1216 = vmatpush.msra.mxu2 %v7044_v3  ;;  %1052 = vmatpush.msra.mxu1 %v7140_v23 }
  0x5e   : > { %1217 = vmatpush.msra.mxu2 %v7050_v5  ;;  %1053 = vmatpush.msra.mxu1 %v7150_v25 }
  0x60   : > { %699 = vmatmul.f32.gmra.mxu0 %v662_v44  ;;  %1218 = vmatpush.msra.mxu2 %v7060_v7 }
  0x61   : > { %740 = vmatmul.f32.gmra.mxu1 %v663_v45 }
  0x62   : > { %1219 = vmatpush.msra.mxu2 %v7070_v9  ;;  %1054 = vmatpush.msra.mxu1 %v7160_v27 }
  0x63   : > { %799 = vmatmul.f32.gmra.mxu2 %v762_v54 }
  0x64   : > { %1220 = vmatpush.msra.mxu2 %v7080_v11  ;;  %1055 = vmatpush.msra.mxu1 %v7170_v29 }
  0x66   : > { %1221 = vmatpush.msra.mxu2 %v7090_v13  ;;  %1056 = vmatpush.msra.mxu1 %v7180_v31 }
  0x68   : > { %702 = vmatmul.f32.gmra.mxu0 %v664_v47  ;;  %1222 = vmatpush.msra.mxu2 %v7100_v15 }
  0x69   : > { %743 = vmatmul.f32.gmra.mxu1 %v665_v48 }
  0x6a   : > { %1223 = vmatpush.msra.mxu2 %v7110_v17 }
  0x6b   : > { %802 = vmatmul.f32.gmra.mxu2 %v764_v56 }
  0x6c   : > { %1224 = vmatpush.msra.mxu2 %v7120_v19 }
  0x6e   : > { %1225 = vmatpush.msra.mxu2 %v7130_v21 }
  0x70   : > { %705 = vmatmul.f32.gmra.mxu0 %v666_v50  ;;  %1226 = vmatpush.msra.mxu2 %v7140_v23  ;;  %v6061_v50 = vld [vmem:[%s10496_s21 + $0x8] sm:$0xff] }
  0x71   : > { %746 = vmatmul.f32.gmra.mxu1 %v667_v51  ;;  %892 = vmatpush.msra.mxu0 %v6061_v50  ;;  %v988_v51 = vld [vmem:[#allocation2 + $0x120] sm:$0xff]  ;;  %v991_v50 = vld [vmem:[#allocation2 + $0x138] sm:$0xff] }
  0x72   : > { %1227 = vmatpush.msra.mxu2 %v7150_v25 }
  0x73   : > { %805 = vmatmul.f32.gmra.mxu2 %v766_v58 }
  0x74   : > { %1228 = vmatpush.msra.mxu2 %v7160_v27 }
  0x76   : > { %1229 = vmatpush.msra.mxu2 %v7170_v29 }
  0x78   : > { %825 = vmatmul.f32.vlgmr.msrb.gmra.mxu0 %v753_v53  ;;  %1230 = vmatpush.msra.mxu2 %v7180_v31 }
  0x7b   : > { %1016 = vmatmul.f32.vlgmr.msrb.gmra.mxu2 %v984_v42  ;;  %v998_v42 = vld [vmem:[#allocation2 + $0x170] sm:$0xff] }
  0x80   : > { %828 = vmatmul.f32.gmra.mxu0 %v755_v55  ;;  %v990_v55 = vld [vmem:[#allocation2 + $0x130] sm:$0xff] }
  0x83   : > { %1019 = vmatmul.f32.gmra.mxu2 %v986_v46 }
  0x88   : > { %831 = vmatmul.f32.gmra.mxu0 %v757_v57 }
  0x8b   : > { %1022 = vmatmul.f32.gmra.mxu2 %v988_v51 }
  0x90   : > { %834 = vmatmul.f32.gmra.mxu0 %v759_v59 }
  0x93   : > { %1025 = vmatmul.f32.gmra.mxu2 %v990_v55  ;;  %v993_v55 = vld [vmem:[#allocation2 + $0x148] sm:$0xff] }
  0x98   : > { %837 = vmatmul.f32.gmra.mxu0 %v761_v60  ;;  %v992_v60 = vld [vmem:[#allocation2 + $0x140] sm:$0xff] }
  0x9b   : > { %1028 = vmatmul.f32.gmra.mxu2 %v992_v60  ;;  %v995_v60 = vld [vmem:[#allocation2 + $0x158] sm:$0xff] }
  0xa0   : > { %840 = vmatmul.f32.gmra.mxu0 %v763_v62 }
  0xa8   : > { %843 = vmatmul.f32.gmra.mxu0 %v765_v63 }
  0xb0   : > { %846 = vmatmul.f32.gmra.mxu0 %v767_v32 }
  0xb5   : > { %v685_v33 = vpop.f32.mrf.mxu0 }
  0xb6   : > { %v726_v34 = vpop.f32.mrf.mxu1 }
  0xb7   : > { %v727_v35 = vadd.f32 %v726_v34, %v685_v33  ;;  %v994_v33 = vld [vmem:[#allocation2 + $0x150] sm:$0xff] }
  0xb8   : > { %1031 = vmatmul.f32.gmra.mxu2 %v994_v33  ;;  %v997_v33 = vld [vmem:[#allocation2 + $0x168] sm:$0xff] }
  0xb9   : > { %6070 = vmatmul.msk.f32.vlgmr.msrb.gmra.mxu1 %vm852_vm0, %v727_v35  ;;  %v985_v35 = vld [vmem:[#allocation2 + $0x108] sm:$0xff] }
  0xba   : > { %1174 = vmatpush.msrb.mxu1 %v7033_v0 }
  0xbc   : > { %1175 = vmatpush.msrb.mxu1 %v7039_v2 }
  0xbd   : > { %v688_v36 = vpop.f32.mrf.mxu0 }
  0xbe   : > { %v729_v37 = vpop.f32.mrf.mxu1  ;;  %1176 = vmatpush.msrb.mxu1 %v7047_v4  ;;  %v785_v56 = vpop.f32.mrf.mxu2 }
  0xbf   : > { %v730_v38 = vadd.f32 %v729_v37, %v688_v36  ;;  %v996_v37 = vld [vmem:[#allocation2 + $0x160] sm:$0xff] }
  0xc0   : > { %1177 = vmatpush.msrb.mxu1 %v7057_v6  ;;  %1034 = vmatmul.f32.gmra.mxu2 %v996_v37 }
  0xc1   : > { %6071 = vmatmul.msk.f32.gmra.mxu1 %vm852_vm0, %v730_v38 }
  0xc2   : > { %1178 = vmatpush.msrb.mxu1 %v7067_v8 }
  0xc4   : > { %1179 = vmatpush.msrb.mxu1 %v7077_v10 }
  0xc5   : > { %v691_v39 = vpop.f32.mrf.mxu0 }
  0xc6   : > { %v732_v40 = vpop.f32.mrf.mxu1  ;;  %1180 = vmatpush.msrb.mxu1 %v7087_v12  ;;  %v788_v32 = vpop.f32.mrf.mxu2 }
  0xc7   : > { %v733_v41 = vadd.f32 %v732_v40, %v691_v39  ;;  %v987_v40 = vld [vmem:[#allocation2 + $0x118] sm:$0xff] }
  0xc8   : > { %1181 = vmatpush.msrb.mxu1 %v7097_v14  ;;  %1037 = vmatmul.f32.gmra.mxu2 %v998_v42  ;;  %v1160_v42 = vld [vmem:[#allocation2 + $0x190] sm:$0xff] }
  0xc9   : > { %6072 = vmatmul.msk.f32.gmra.mxu1 %vm852_vm0, %v733_v41 }
  0xca   : > { %1182 = vmatpush.msrb.mxu1 %v7103_v16 }
  0xcc   : > { %1183 = vmatpush.msrb.mxu1 %v7117_v18 }
  0xcd   : > { %v694_v43 = vpop.f32.mrf.mxu0 }
  0xce   : > { %v735_v44 = vpop.f32.mrf.mxu1  ;;  %1184 = vmatpush.msrb.mxu1 %v7127_v20  ;;  %v791_v38 = vpop.f32.mrf.mxu2 }
  0xcf   : > { %v736_v45 = vadd.f32 %v735_v44, %v694_v43 }
  0xd0   : > { %1185 = vmatpush.msrb.mxu1 %v7137_v22 }
  0xd1   : > { %6073 = vmatmul.msk.f32.gmra.mxu1 %vm852_vm0, %v736_v45  ;;  %v989_v45 = vld [vmem:[#allocation2 + $0x128] sm:$0xff] }
  0xd2   : > { %1186 = vmatpush.msrb.mxu1 %v7147_v24 }
  0xd4   : > { %1187 = vmatpush.msrb.mxu1 %v7157_v26 }
  0xd5   : > { %v697_v47 = vpop.f32.mrf.mxu0 }
  0xd6   : > { %v738_v48 = vpop.f32.mrf.mxu1  ;;  %1188 = vmatpush.msrb.mxu1 %v7167_v28  ;;  %v794_v43 = vpop.f32.mrf.mxu2 }
  0xd7   : > { %v739_v49 = vadd.f32 %v738_v48, %v697_v47  ;;  %v999_v47 = vld [vmem:[#allocation2 + $0x178] sm:$0xff]  ;;  %v1159_v48 = vld [vmem:[#allocation2 + $0x188] sm:$0xff] }
  0xd8   : > { %1189 = vmatpush.msrb.mxu1 %v7177_v30  ;;  %1078 = vmatmul.f32.vlgmr.msra.gmra.mxu3 %v999_v47 }
  0xd9   : > { %6074 = vmatmul.msk.f32.gmra.mxu1 %vm852_vm0, %v739_v49  ;;  %1231 = vmatmul.f32.vlgmr.msra.gmra.mxu2 %v1159_v48  ;;  %v1164_v48 = vld [vmem:[#allocation2 + $0x1b0] sm:$0xff] }
  0xdd   : > { %v700_v52 = vpop.f32.mrf.mxu0 }
  0xde   : > { %v741_v53 = vpop.f32.mrf.mxu1  ;;  %v797_v51 = vpop.f32.mrf.mxu2 }
  0xdf   : > { %v742_v54 = vadd.f32 %v741_v53, %v700_v52  ;;  %v1161_v53 = vld [vmem:[#allocation2 + $0x198] sm:$0xff] }
  0xe1   : > { %6075 = vmatmul.msk.f32.gmra.mxu1 %vm852_vm0, %v742_v54  ;;  %1234 = vmatmul.f32.gmra.mxu2 %v1161_v53  ;;  %v1168_v53 = vld [vmem:[#allocation2 + $0x1d0] sm:$0xff] }
  0xe5   : > { %v703_v57 = vpop.f32.mrf.mxu0 }
  0xe6   : > { %v744_v58 = vpop.f32.mrf.mxu1 }
  0xe7   : > { %v745_v59 = vadd.f32 %v744_v58, %v703_v57  ;;  %v800_v57 = vpop.f32.mrf.mxu2  ;;  %v1163_v58 = vld [vmem:[#allocation2 + $0x1a8] sm:$0xff] }
  0xe9   : > { %6076 = vmatmul.msk.f32.gmra.mxu1 %vm852_vm0, %v745_v59  ;;  %1237 = vmatmul.f32.gmra.mxu2 %v1163_v58 }
  0xed   : > { %v706_v61 = vpop.f32.mrf.mxu0 }
  0xee   : > { %v747_v62 = vpop.f32.mrf.mxu1 }
  0xef   : > { %v748_v63 = vadd.f32 %v747_v62, %v706_v61  ;;  %v1165_v62 = vld [vmem:[#allocation2 + $0x1b8] sm:$0xff] }
  0xf1   : > { %6077 = vmatmul.msk.f32.gmra.mxu1 %vm852_vm0, %v748_v63  ;;  %v803_v63 = vpop.f32.mrf.mxu2  ;;  %1240 = vmatmul.f32.gmra.mxu2 %v1165_v62 }
  0xf5   : > { %v826_v34 = vpop.f32.mrf.mxu0 }
  0xf6   : > { %v827_v36 = vadd.f32 %v826_v34, %v785_v56 }
  0xf8   : > { %6062 = vmatmul.msk.f32.vlgmr.msra.gmra.mxu0 %vm852_vm0, %v827_v36 }
  0xf9   : > { %1057 = vmatmul.f32.vlgmr.msra.gmra.mxu1 %v985_v35  ;;  %v1167_v35 = vld [vmem:[#allocation2 + $0x1c8] sm:$0xff]  ;;  %v806_v36 = vpop.f32.mrf.mxu2 }
  0xfa   : > { %1389 = vmatpush.msra.mxu1 %v7036_v1  ;;  %1243 = vmatmul.f32.gmra.mxu2 %v1167_v35 }
  0xfc   : > { %1390 = vmatpush.msra.mxu1 %v7044_v3 }
  0xfd   : > { %v829_v39 = vpop.f32.mrf.mxu0 }
  0xfe   : > { %1391 = vmatpush.msra.mxu1 %v7050_v5  ;;  %v830_v41 = vadd.f32 %v829_v39, %v788_v32 }
 0x100   : > { %1392 = vmatpush.msra.mxu1 %v7060_v7  ;;  %6063 = vmatmul.msk.f32.gmra.mxu0 %vm852_vm0, %v830_v41 }
 0x101   : > { %1060 = vmatmul.f32.gmra.mxu1 %v987_v40  ;;  %v1169_v40 = vld [vmem:[#allocation2 + $0x1d8] sm:$0xff] }
 0x102   : > { %1393 = vmatpush.msra.mxu1 %v7070_v9  ;;  %1246 = vmatmul.f32.gmra.mxu2 %v1169_v40 }
 0x104   : > { %1394 = vmatpush.msra.mxu1 %v7080_v11 }
 0x105   : > { %v832_v44 = vpop.f32.mrf.mxu0 }
 0x106   : > { %1395 = vmatpush.msra.mxu1 %v7090_v13  ;;  %v833_v46 = vadd.f32 %v832_v44, %v791_v38  ;;  %v1158_v38 = vld [vmem:[#allocation2 + $0x180] sm:$0xff] }
 0x108   : > { %1396 = vmatpush.msra.mxu1 %v7100_v15  ;;  %6064 = vmatmul.msk.f32.gmra.mxu0 %vm852_vm0, %v833_v46  ;;  %v1173_v46 = vld [vmem:[#allocation2 + $0x1f8] sm:$0xff] }
 0x109   : > { %1063 = vmatmul.f32.gmra.mxu1 %v989_v45  ;;  %v1162_v45 = vld [vmem:[#allocation2 + $0x1a0] sm:$0xff] }
 0x10a   : > { %1397 = vmatpush.msra.mxu1 %v7110_v17 }
 0x10c   : > { %1398 = vmatpush.msra.mxu1 %v7120_v19 }
 0x10d   : > { %v835_v49 = vpop.f32.mrf.mxu0 }
 0x10e   : > { %v836_v52 = vadd.f32 %v835_v49, %v794_v43  ;;  %1399 = vmatpush.msra.mxu1 %v7130_v21  ;;  %v1171_v43 = vld [vmem:[#allocation2 + $0x1e8] sm:$0xff] }
 0x10f   : > { %1249 = vmatmul.f32.gmra.mxu2 %v1171_v43  ;;  %v6087_v43 = vld [vmem:[%s10496_s21 + $0x18] sm:$0xff] }
 0x110   : > { %6065 = vmatmul.msk.f32.gmra.mxu0 %vm852_vm0, %v836_v52  ;;  %1400 = vmatpush.msra.mxu1 %v7140_v23 }
 0x111   : > { %1066 = vmatmul.f32.gmra.mxu1 %v991_v50  ;;  %v1166_v50 = vld [vmem:[#allocation2 + $0x1c0] sm:$0xff]  ;;  %1297 = vmatpush.msrb.mxu3 %v6087_v43 }
 0x112   : > { %1401 = vmatpush.msra.mxu1 %v7150_v25 }
 0x113   : > { %1522 = vmatpush.msra.mxu3 %v7033_v0 }
 0x114   : > { %1402 = vmatpush.msra.mxu1 %v7160_v27 }
 0x115   : > { %v838_v54 = vpop.f32.mrf.mxu0  ;;  %1523 = vmatpush.msra.mxu3 %v7039_v2 }
 0x116   : > { %v839_v56 = vadd.f32 %v838_v54, %v797_v51  ;;  %1403 = vmatpush.msra.mxu1 %v7170_v29  ;;  %v1017_v51 = vpop.f32.mrf.mxu2  ;;  %v6078_v54 = vld [vmem:[%s10496_s21 + $0x10] sm:$0xff] }
 0x117   : > { %1252 = vmatmul.f32.gmra.mxu2 %v1173_v46  ;;  %1123 = vmatpush.msrb.mxu0 %v6078_v54  ;;  %v1337_v54 = vld [vmem:[#allocation2 + $0x228] sm:$0xff] }
 0x118   : > { %6066 = vmatmul.msk.f32.gmra.mxu0 %vm852_vm0, %v839_v56  ;;  %1404 = vmatpush.msra.mxu1 %v7180_v31 }
 0x119   : > { %1069 = vmatmul.f32.gmra.mxu1 %v993_v55  ;;  %1348 = vmatpush.msra.mxu0 %v7033_v0 }
 0x11a   : > { %1524 = vmatpush.msra.mxu3 %v7047_v4 }
 0x11b   : > { %1349 = vmatpush.msra.mxu0 %v7039_v2 }
 0x11c   : > { %1525 = vmatpush.msra.mxu3 %v7057_v6 }
 0x11d   : > { %v841_v59 = vpop.f32.mrf.mxu0  ;;  %1350 = vmatpush.msra.mxu0 %v7047_v4 }
 0x11e   : > { %v842_v61 = vadd.f32 %v841_v59, %v800_v57  ;;  %v1020_v55 = vpop.f32.mrf.mxu2  ;;  %v1170_v57 = vld [vmem:[#allocation2 + $0x1e0] sm:$0xff]  ;;  %1526 = vmatpush.msra.mxu3 %v7067_v8 }
 0x11f   : > { %1351 = vmatpush.msra.mxu0 %v7057_v6 }
 0x120   : > { %6067 = vmatmul.msk.f32.gmra.mxu0 %vm852_vm0, %v842_v61  ;;  %1527 = vmatpush.msra.mxu3 %v7077_v10 }
 0x121   : > { %1072 = vmatmul.f32.gmra.mxu1 %v995_v60  ;;  %1352 = vmatpush.msra.mxu0 %v7067_v8  ;;  %v1172_v60 = vld [vmem:[#allocation2 + $0x1f0] sm:$0xff] }
 0x122   : > { %1528 = vmatpush.msra.mxu3 %v7087_v12 }
 0x123   : > { %1353 = vmatpush.msra.mxu0 %v7077_v10 }
 0x124   : > { %1529 = vmatpush.msra.mxu3 %v7097_v14 }
 0x125   : > { %v844_v32 = vpop.f32.mrf.mxu0  ;;  %1354 = vmatpush.msra.mxu0 %v7087_v12 }
 0x126   : > { %v845_v34 = vadd.f32 %v844_v32, %v803_v63  ;;  %v1023_v58 = vpop.f32.mrf.mxu2  ;;  %1530 = vmatpush.msra.mxu3 %v7103_v16 }
 0x127   : > { %1355 = vmatpush.msra.mxu0 %v7097_v14 }
 0x128   : > { %6068 = vmatmul.msk.f32.gmra.mxu0 %vm852_vm0, %v845_v34  ;;  %1531 = vmatpush.msra.mxu3 %v7117_v18 }
 0x129   : > { %1075 = vmatmul.f32.gmra.mxu1 %v997_v33  ;;  %1356 = vmatpush.msra.mxu0 %v7103_v16 }
 0x12a   : > { %1532 = vmatpush.msra.mxu3 %v7127_v20 }
 0x12b   : > { %1357 = vmatpush.msra.mxu0 %v7117_v18 }
 0x12c   : > { %1533 = vmatpush.msra.mxu3 %v7137_v22 }
 0x12d   : > { %v847_v37 = vpop.f32.mrf.mxu0  ;;  %1358 = vmatpush.msra.mxu0 %v7127_v20  ;;  %v1339_v20 = vld [vmem:[#allocation2 + $0x238] sm:$0xff] }
 0x12e   : > { %v848_v39 = vadd.f32 %v847_v37, %v806_v36  ;;  %v1026_v61 = vpop.f32.mrf.mxu2  ;;  %1534 = vmatpush.msra.mxu3 %v7147_v24 }
 0x12f   : > { %1359 = vmatpush.msra.mxu0 %v7137_v22 }
 0x130   : > { %6069 = vmatmul.msk.f32.gmra.mxu0 %vm852_vm0, %v848_v39  ;;  %1535 = vmatpush.msra.mxu3 %v7157_v26 }
 0x131   : > { %1190 = vmatmul.f32.vlgmr.msrb.gmra.mxu1 %v1158_v38  ;;  %1360 = vmatpush.msra.mxu0 %v7147_v24 }
 0x132   : > { %1536 = vmatpush.msra.mxu3 %v7167_v28 }
 0x133   : > { %1361 = vmatpush.msra.mxu0 %v7157_v26  ;;  %v1332_v26 = vld [vmem:[#allocation2 + $0x200] sm:$0xff] }
 0x134   : > { %1537 = vmatpush.msra.mxu3 %v7177_v30 }
 0x135   : > { %1362 = vmatpush.msra.mxu0 %v7167_v28 }
 0x136   : > { %v7310_v41 = vpop.f32.mrf.mxu1  ;;  %v1029_v32 = vpop.f32.mrf.mxu2 }
 0x137   : > { %10497 = vst [vmem:[#allocation5_spill] sm:$0xff] %v7310_v41  ;;  %1363 = vmatpush.msra.mxu0 %v7177_v30 }
 0x139   : > { %1193 = vmatmul.f32.gmra.mxu1 %v1160_v42 }
 0x13e   : > { %v7312_v44 = vpop.f32.mrf.mxu1  ;;  %v1032_v36 = vpop.f32.mrf.mxu2 }
 0x13f   : > { %10498 = vst [vmem:[#allocation6_spill] sm:$0xff] %v7312_v44  ;;  %v1691_v44 = vld [vmem:[#allocation2 + $0x358] sm:$0xff] }
 0x141   : > { %1196 = vmatmul.f32.gmra.mxu1 %v1162_v45 }
 0x146   : > { %v7314_v47 = vpop.f32.mrf.mxu1  ;;  %v1035_v39 = vpop.f32.mrf.mxu2 }
 0x149   : > { %1199 = vmatmul.f32.gmra.mxu1 %v1164_v48 }
 0x14e   : > { %v7316_v49 = vpop.f32.mrf.mxu1  ;;  %v1038_v45 = vpop.f32.mrf.mxu2 }
 0x151   : > { %1202 = vmatmul.f32.gmra.mxu1 %v1166_v50  ;;  %v1333_v50 = vld [vmem:[#allocation2 + $0x208] sm:$0xff] }
 0x156   : > { %v7318_v52 = vpop.f32.mrf.mxu1 }
 0x159   : > { %1205 = vmatmul.f32.gmra.mxu1 %v1168_v53 }
 0x15b   : > { %v1079_v12 = vpop.f32.mrf.mxu3 }
 0x15c   : > { %v1232_v2 = vpop.f32.mrf.mxu2  ;;  %v1080_v14 = vadd.f32 %v1079_v12, %v1038_v45  ;;  %v1346_v45 = vld [vmem:[#allocation2 + $0x270] sm:$0xff]  ;;  %v1513_v12 = vld [vmem:[#allocation2 + $0x2b8] sm:$0xff] }
 0x15e   : > { %v7326_v56 = vpop.f32.mrf.mxu1 }
 0x161   : > { %1208 = vmatmul.f32.gmra.mxu1 %v1170_v57  ;;  %v1341_v57 = vld [vmem:[#allocation2 + $0x248] sm:$0xff] }
 0x164   : > { %v1235_v53 = vpop.f32.mrf.mxu2 }
 0x166   : > { %v7332_v59 = vpop.f32.mrf.mxu1 }
 0x169   : > { %1211 = vmatmul.f32.gmra.mxu1 %v1172_v60  ;;  %v1343_v60 = vld [vmem:[#allocation2 + $0x258] sm:$0xff] }
 0x16c   : > { %v1238_v22 = vpop.f32.mrf.mxu2 }
 0x16e   : > { %v7338_v62 = vpop.f32.mrf.mxu1 }
 0x171   : > { %1405 = vmatmul.f32.vlgmr.msra.gmra.mxu1 %v1333_v50  ;;  %v1507_v50 = vld [vmem:[#allocation2 + $0x288] sm:$0xff] }
 0x175   : > { %v7381_v8 = vpop.f32.mrf.mxu0 }
 0x176   : > { %v1058_v63 = vpop.f32.mrf.mxu1  ;;  %10499 = vst [vmem:[#allocation7_spill] sm:$0xff] %v7381_v8  ;;  %v1685_v8 = vld [vmem:[#allocation2 + $0x328] sm:$0xff] }
 0x177   : > { %v1059_v33 = vadd.f32 %v1058_v63, %v1017_v51  ;;  %v1335_v51 = vld [vmem:[#allocation2 + $0x218] sm:$0xff]  ;;  %v1345_v63 = vld [vmem:[#allocation2 + $0x268] sm:$0xff] }
 0x179   : > { %6079 = vmatmul.msk.f32.vlgmr.msrb.gmra.mxu0 %vm852_vm0, %v1059_v33  ;;  %1408 = vmatmul.f32.gmra.mxu1 %v1335_v51  ;;  %v1347_v33 = vld [vmem:[#allocation2 + $0x278] sm:$0xff]  ;;  %v1510_v51 = vld [vmem:[#allocation2 + $0x2a0] sm:$0xff] }
 0x17a   : > { %1563 = vmatpush.msrb.mxu0 %v7036_v1 }
 0x17c   : > { %1564 = vmatpush.msrb.mxu0 %v7044_v3 }
 0x17e   : > { %v1061_v34 = vpop.f32.mrf.mxu1  ;;  %1565 = vmatpush.msrb.mxu0 %v7050_v5 }
 0x17f   : > { %v1062_v35 = vadd.f32 %v1061_v34, %v1020_v55  ;;  %v7389_v55 = vpop.f32.mrf.mxu0  ;;  %v1340_v34 = vld [vmem:[#allocation2 + $0x240] sm:$0xff] }
 0x180   : > { %1566 = vmatpush.msrb.mxu0 %v7060_v7 }
 0x181   : > { %6080 = vmatmul.msk.f32.gmra.mxu0 %vm852_vm0, %v1062_v35  ;;  %1411 = vmatmul.f32.gmra.mxu1 %v1337_v54 }
 0x182   : > { %1567 = vmatpush.msrb.mxu0 %v7070_v9 }
 0x184   : > { %1568 = vmatpush.msrb.mxu0 %v7080_v11 }
 0x186   : > { %v1064_v37 = vpop.f32.mrf.mxu1  ;;  %1569 = vmatpush.msrb.mxu0 %v7090_v13 }
 0x187   : > { %v1065_v38 = vadd.f32 %v1064_v37, %v1023_v58  ;;  %v7399_v30 = vpop.f32.mrf.mxu0  ;;  %v1241_v58 = vpop.f32.mrf.mxu2 }
 0x188   : > { %1570 = vmatpush.msrb.mxu0 %v7100_v15 }
 0x189   : > { %6081 = vmatmul.msk.f32.gmra.mxu0 %vm852_vm0, %v1065_v38  ;;  %1414 = vmatmul.f32.gmra.mxu1 %v1339_v20  ;;  %v1516_v20 = vld [vmem:[#allocation2 + $0x2d0] sm:$0xff] }
 0x18a   : > { %1571 = vmatpush.msrb.mxu0 %v7110_v17 }
 0x18c   : > { %1572 = vmatpush.msrb.mxu0 %v7120_v19 }
 0x18e   : > { %v1067_v40 = vpop.f32.mrf.mxu1  ;;  %1573 = vmatpush.msrb.mxu0 %v7130_v21 }
 0x18f   : > { %v1068_v42 = vadd.f32 %v1067_v40, %v1026_v61  ;;  %v1244_v61 = vpop.f32.mrf.mxu2  ;;  %v1344_v40 = vld [vmem:[#allocation2 + $0x260] sm:$0xff] }
 0x190   : > { %1574 = vmatpush.msrb.mxu0 %v7140_v23 }
 0x191   : > { %6082 = vmatmul.msk.f32.gmra.mxu0 %vm852_vm0, %v1068_v42  ;;  %1417 = vmatmul.f32.gmra.mxu1 %v1341_v57  ;;  %v1517_v57 = vld [vmem:[#allocation2 + $0x2d8] sm:$0xff] }
 0x192   : > { %1575 = vmatpush.msrb.mxu0 %v7150_v25 }
 0x194   : > { %1576 = vmatpush.msrb.mxu0 %v7160_v27 }
 0x196   : > { %v1070_v46 = vpop.f32.mrf.mxu1  ;;  %1577 = vmatpush.msrb.mxu0 %v7170_v29 }
 0x197   : > { %v1071_v48 = vadd.f32 %v1070_v46, %v1029_v32  ;;  %v1506_v46 = vld [vmem:[#allocation2 + $0x280] sm:$0xff] }
 0x198   : > { %1578 = vmatpush.msrb.mxu0 %v7180_v31 }
 0x199   : > { %6083 = vmatmul.msk.f32.gmra.mxu0 %vm852_vm0, %v1071_v48  ;;  %1420 = vmatmul.f32.gmra.mxu1 %v1343_v60  ;;  %v7464_v60 = vld [vmem:[%s7030_s29 + $0x50] sm:$0xff] }
 0x19e   : > { %v1073_v0 = vpop.f32.mrf.mxu1 }
 0x19f   : > { %v1074_v4 = vadd.f32 %v1073_v0, %v1032_v36  ;;  %v1342_v36 = vld [vmem:[#allocation2 + $0x250] sm:$0xff] }
 0x1a0   : > { %v1508_v0 = vld [vmem:[#allocation2 + $0x290] sm:$0xff] }
 0x1a1   : > { %6084 = vmatmul.msk.f32.gmra.mxu0 %vm852_vm0, %v1074_v4  ;;  %1423 = vmatmul.f32.gmra.mxu1 %v1345_v63  ;;  %v1509_v4 = vld [vmem:[#allocation2 + $0x298] sm:$0xff]  ;;  %v7470_v63 = vld [vmem:[%s7030_s29 + $0x48] sm:$0xff] }
 0x1a6   : > { %v1076_v6 = vpop.f32.mrf.mxu1 }
 0x1a7   : > { %v1077_v10 = vadd.f32 %v1076_v6, %v1035_v39 }
 0x1a9   : > { %6085 = vmatmul.msk.f32.gmra.mxu0 %vm852_vm0, %v1077_v10  ;;  %1426 = vmatmul.f32.gmra.mxu1 %v1347_v33  ;;  %v1511_v10 = vld [vmem:[#allocation2 + $0x2a8] sm:$0xff]  ;;  %v1521_v33 = vld [vmem:[#allocation2 + $0x2f8] sm:$0xff] }
 0x1ae   : > { %v1191_v16 = vpop.f32.mrf.mxu1 }
 0x1af   : > { %v1233_v18 = vadd.f32 %v1232_v2, %v1191_v16 }
 0x1b1   : > { %6086 = vmatmul.msk.f32.gmra.mxu0 %vm852_vm0, %v1080_v14  ;;  %6088 = vmatmul.msk.f32.vlgmr.msrb.gmra.mxu3 %vm852_vm0, %v1233_v18  ;;  %v1514_v14 = vld [vmem:[#allocation2 + $0x2c0] sm:$0xff]  ;;  %v1515_v18 = vld [vmem:[#allocation2 + $0x2c8] sm:$0xff] }
 0x1b2   : > { %1737 = vmatpush.msrb.mxu3 %v7036_v1 }
 0x1b4   : > { %1738 = vmatpush.msrb.mxu3 %v7044_v3  ;;  %v1334_v3 = vld [vmem:[#allocation2 + $0x210] sm:$0xff] }
 0x1b6   : > { %v1194_v24 = vpop.f32.mrf.mxu1  ;;  %1739 = vmatpush.msrb.mxu3 %v7050_v5 }
 0x1b7   : > { %v1236_v28 = vadd.f32 %v1235_v53, %v1194_v24  ;;  %v1512_v53 = vld [vmem:[#allocation2 + $0x2b0] sm:$0xff]  ;;  %v7442_v24 = vld [vmem:[%s7030_s29 + $0x78] sm:$0xff] }
 0x1b8   : > { %1740 = vmatpush.msrb.mxu3 %v7060_v7  ;;  %v7407_v7 = vpop.f32.mrf.mxu0 }
 0x1b9   : > { %6089 = vmatmul.msk.f32.gmra.mxu3 %vm852_vm0, %v1236_v28  ;;  %1364 = vmatmul.f32.vlgmr.msra.gmra.mxu0 %v1332_v26  ;;  %v7446_v26 = vld [vmem:[%s7030_s29 + $0x70] sm:$0xff] }
 0x1ba   : > { %1741 = vmatpush.msrb.mxu3 %v7070_v9 }
 0x1bc   : > { %1742 = vmatpush.msrb.mxu3 %v7080_v11  ;;  %v1336_v11 = vld [vmem:[#allocation2 + $0x220] sm:$0xff] }
 0x1be   : > { %v1197_v1 = vpop.f32.mrf.mxu1  ;;  %1743 = vmatpush.msrb.mxu3 %v7090_v13 }
 0x1bf   : > { %v1239_v5 = vadd.f32 %v1238_v22, %v1197_v1  ;;  %v6096_v22 = vld [vmem:[%s10496_s21 + $0x20] sm:$0xff]  ;;  %v7452_v1 = vld [vmem:[%s7030_s29 + $0x68] sm:$0xff] }
 0x1c0   : > { %1744 = vmatpush.msrb.mxu3 %v7100_v15  ;;  %v7415_v32 = vpop.f32.mrf.mxu0  ;;  %1471 = vmatpush.msrb.mxu2 %v6096_v22  ;;  %v7544_v22 = vld [vmem:[%s7030_s29 + $0xc8] sm:$0xff] }
 0x1c1   : > { %6090 = vmatmul.msk.f32.gmra.mxu3 %vm852_vm0, %v1239_v5  ;;  %1367 = vmatmul.f32.gmra.mxu0 %v1334_v3  ;;  %v7456_v3 = vld [vmem:[%s7030_s29 + $0x60] sm:$0xff]  ;;  %v7460_v5 = vld [vmem:[%s7030_s29 + $0x58] sm:$0xff] }
 0x1c2   : > { %1745 = vmatpush.msrb.mxu3 %v7110_v17  ;;  %v1338_v17 = vld [vmem:[#allocation2 + $0x230] sm:$0xff]  ;;  %1696 = vmatpush.msra.mxu2 %v7442_v24 }
 0x1c4   : > { %1746 = vmatpush.msrb.mxu3 %v7120_v19  ;;  %1697 = vmatpush.msra.mxu2 %v7446_v26 }
 0x1c6   : > { %v1200_v9 = vpop.f32.mrf.mxu1  ;;  %1747 = vmatpush.msrb.mxu3 %v7130_v21  ;;  %v1247_v21 = vpop.f32.mrf.mxu2  ;;  %1698 = vmatpush.msra.mxu2 %v7452_v1 }
 0x1c7   : > { %v1242_v13 = vadd.f32 %v1241_v58, %v1200_v9  ;;  %v1518_v58 = vld [vmem:[#allocation2 + $0x2e0] sm:$0xff] }
 0x1c8   : > { %1748 = vmatpush.msrb.mxu3 %v7140_v23  ;;  %1699 = vmatpush.msra.mxu2 %v7456_v3 }
 0x1c9   : > { %6091 = vmatmul.msk.f32.gmra.mxu3 %vm852_vm0, %v1242_v13  ;;  %1370 = vmatmul.f32.gmra.mxu0 %v1336_v11  ;;  %v1519_v11 = vld [vmem:[#allocation2 + $0x2e8] sm:$0xff] }
 0x1ca   : > { %1749 = vmatpush.msrb.mxu3 %v7150_v25  ;;  %1700 = vmatpush.msra.mxu2 %v7460_v5 }
 0x1cc   : > { %1750 = vmatpush.msrb.mxu3 %v7160_v27  ;;  %v7420_v27 = vpop.f32.mrf.mxu0  ;;  %1701 = vmatpush.msra.mxu2 %v7464_v60 }
 0x1ce   : > { %v1203_v15 = vpop.f32.mrf.mxu1  ;;  %1751 = vmatpush.msrb.mxu3 %v7170_v29  ;;  %v1250_v29 = vpop.f32.mrf.mxu2  ;;  %1702 = vmatpush.msra.mxu2 %v7470_v63 }
 0x1cf   : > { %v1245_v19 = vadd.f32 %v1244_v61, %v1203_v15  ;;  %v1520_v61 = vld [vmem:[#allocation2 + $0x2f0] sm:$0xff]  ;;  %v7474_v15 = vld [vmem:[%s7030_s29 + $0x40] sm:$0xff] }
 0x1d0   : > { %1752 = vmatpush.msrb.mxu3 %v7180_v31  ;;  %1703 = vmatpush.msra.mxu2 %v7474_v15 }
 0x1d1   : > { %6092 = vmatmul.msk.f32.gmra.mxu3 %vm852_vm0, %v1245_v19  ;;  %1373 = vmatmul.f32.gmra.mxu0 %v1338_v17  ;;  %v7478_v17 = vld [vmem:[%s7030_s29 + $0x38] sm:$0xff]  ;;  %v7482_v19 = vld [vmem:[%s7030_s29 + $0x30] sm:$0xff] }
 0x1d2   : > { %1704 = vmatpush.msra.mxu2 %v7478_v17 }
 0x1d4   : > { %v7423_v31 = vpop.f32.mrf.mxu0  ;;  %1705 = vmatpush.msra.mxu2 %v7482_v19 }
 0x1d6   : > { %v1206_v23 = vpop.f32.mrf.mxu1  ;;  %v1253_v38 = vpop.f32.mrf.mxu2 }
 0x1d7   : > { %v1248_v25 = vadd.f32 %v1247_v21, %v1206_v23  ;;  %v7488_v23 = vld [vmem:[%s7030_s29 + $0x28] sm:$0xff] }
 0x1d8   : > { %1706 = vmatpush.msra.mxu2 %v7488_v23 }
 0x1d9   : > { %6093 = vmatmul.msk.f32.gmra.mxu3 %vm852_vm0, %v1248_v25  ;;  %1376 = vmatmul.f32.gmra.mxu0 %v1340_v34  ;;  %v7492_v25 = vld [vmem:[%s7030_s29 + $0x20] sm:$0xff] }
 0x1da   : > { %1707 = vmatpush.msra.mxu2 %v7492_v25 }
 0x1dc   : > { %v7426_v43 = vpop.f32.mrf.mxu0 }
 0x1de   : > { %v1209_v35 = vpop.f32.mrf.mxu1 }
 0x1df   : > { %v1251_v37 = vadd.f32 %v1250_v29, %v1209_v35  ;;  %v7496_v29 = vld [vmem:[%s7030_s29 + $0x18] sm:$0xff] }
 0x1e0   : > { %1708 = vmatpush.msra.mxu2 %v7496_v29 }
 0x1e1   : > { %6094 = vmatmul.msk.f32.gmra.mxu3 %vm852_vm0, %v1251_v37  ;;  %1379 = vmatmul.f32.gmra.mxu0 %v1342_v36  ;;  %v7502_v36 = vld [vmem:[%s7030_s29 + $0x10] sm:$0xff] }
 0x1e2   : > { %1709 = vmatpush.msra.mxu2 %v7502_v36 }
 0x1e6   : > { %v1212_v39 = vpop.f32.mrf.mxu1 }
 0x1e7   : > { %v1254_v42 = vadd.f32 %v1253_v38, %v1212_v39  ;;  %v7506_v38 = vld [vmem:[%s7030_s29 + $0x8] sm:$0xff] }
 0x1e8   : > { %1710 = vmatpush.msra.mxu2 %v7506_v38 }
 0x1e9   : > { %6095 = vmatmul.msk.f32.gmra.mxu3 %vm852_vm0, %v1254_v42  ;;  %1382 = vmatmul.f32.gmra.mxu0 %v1344_v40  ;;  %v7510_v40 = vld [vmem:[%s7030_s29] sm:$0xff] }
 0x1ea   : > { %1711 = vmatpush.msra.mxu2 %v7510_v40 }
 0x1ee   : > { %v1406_v13 = vpop.f32.mrf.mxu1 }
 0x1f1   : > { %1385 = vmatmul.f32.gmra.mxu0 %v1346_v45  ;;  %1538 = vmatmul.f32.vlgmr.msra.gmra.mxu3 %v1506_v46  ;;  %v7515_v45 = vld [vmem:[%s7030_s29 + $0xf8] sm:$0xff] }
 0x1f6   : > { %v7428_v48 = vpop.f32.mrf.mxu0  ;;  %v1409_v34 = vpop.f32.mrf.mxu1 }
 0x1f7   : > { %10500 = vst [vmem:[#allocation8_spill] sm:$0xff] %v7428_v48  ;;  %v7589_v48 = vld [vmem:[%s7030_s29 + $0x80] sm:$0xff] }
 0x1f9   : > { %1579 = vmatmul.f32.vlgmr.msrb.gmra.mxu0 %v1507_v50  ;;  %1541 = vmatmul.f32.gmra.mxu3 %v1508_v0  ;;  %v7521_v50 = vld [vmem:[%s7030_s29 + $0xf0] sm:$0xff] }
 0x1fe   : > { %v7430_v2 = vpop.f32.mrf.mxu0  ;;  %v1412_v42 = vpop.f32.mrf.mxu1 }
 0x1ff   : > { %10501 = vst [vmem:[#allocation9_spill] sm:$0xff] %v7430_v2  ;;  %v1683_v2 = vld [vmem:[#allocation2 + $0x318] sm:$0xff] }
 0x201   : > { %1582 = vmatmul.f32.gmra.mxu0 %v1509_v4  ;;  %1544 = vmatmul.f32.gmra.mxu3 %v1510_v51  ;;  %v7525_v4 = vld [vmem:[%s7030_s29 + $0xe8] sm:$0xff] }
 0x206   : > { %v7432_v6 = vpop.f32.mrf.mxu0 }
 0x207   : > { %10502 = vst [vmem:[#allocation10_spill] sm:$0xff] %v7432_v6  ;;  %v1689_v6 = vld [vmem:[#allocation2 + $0x348] sm:$0xff] }
 0x209   : > { %1585 = vmatmul.f32.gmra.mxu0 %v1511_v10  ;;  %1547 = vmatmul.f32.gmra.mxu3 %v1512_v53  ;;  %v7529_v10 = vld [vmem:[%s7030_s29 + $0xe0] sm:$0xff]  ;;  %v7534_v53 = vld [vmem:[%s7030_s29 + $0xd8] sm:$0xff] }
 0x20e   : > { %v7434_v54 = vpop.f32.mrf.mxu0 }
 0x211   : > { %1588 = vmatmul.f32.gmra.mxu0 %v1513_v12  ;;  %1550 = vmatmul.f32.gmra.mxu3 %v1514_v14  ;;  %v1415_v14 = vpop.f32.mrf.mxu1 }
 0x216   : > { %v7436_v16 = vpop.f32.mrf.mxu0 }
 0x219   : > { %1591 = vmatmul.f32.gmra.mxu0 %v1515_v18  ;;  %1553 = vmatmul.f32.gmra.mxu3 %v1516_v20  ;;  %v7540_v18 = vld [vmem:[%s7030_s29 + $0xd0] sm:$0xff] }
 0x21e   : > { %v7449_v28 = vpop.f32.mrf.mxu0 }
 0x221   : > { %1594 = vmatmul.f32.gmra.mxu0 %v1517_v57  ;;  %1556 = vmatmul.f32.gmra.mxu3 %v1518_v58  ;;  %v7548_v58 = vld [vmem:[%s7030_s29 + $0xc0] sm:$0xff] }
 0x226   : > { %v7467_v9 = vpop.f32.mrf.mxu0 }
 0x229   : > { %1597 = vmatmul.f32.gmra.mxu0 %v1519_v11  ;;  %1559 = vmatmul.f32.gmra.mxu3 %v1520_v61  ;;  %v7553_v11 = vld [vmem:[%s7030_s29 + $0xb8] sm:$0xff] }
 0x22e   : > { %v7485_v21 = vpop.f32.mrf.mxu0 }
 0x231   : > { %1600 = vmatmul.f32.gmra.mxu0 %v1521_v33 }
 0x234   : > { %v7499_v35 = vpop.f32.mrf.mxu3 }
 0x235   : > { %10503 = vst [vmem:[#allocation11_spill] sm:$0xff] %v7499_v35  ;;  %v7582_v35 = vld [vmem:[%s7030_s29 + $0x88] sm:$0xff] }
 0x236   : > { %v1365_v37 = vpop.f32.mrf.mxu0 }
 0x237   : > { %v1407_v39 = vadd.f32 %v1406_v13, %v1365_v37  ;;  %v7559_v13 = vld [vmem:[%s7030_s29 + $0xb0] sm:$0xff]  ;;  %v7563_v37 = vld [vmem:[%s7030_s29 + $0xa8] sm:$0xff] }
 0x239   : > { %6097 = vmatmul.msk.f32.vlgmr.msrb.gmra.mxu2 %vm852_vm0, %v1407_v39 }
 0x23a   : > { %1911 = vmatpush.msrb.mxu2 %v7515_v45 }
 0x23c   : > { %v7518_v46 = vpop.f32.mrf.mxu3  ;;  %1912 = vmatpush.msrb.mxu2 %v7521_v50 }
 0x23d   : > { %10504 = vst [vmem:[#allocation12_spill] sm:$0xff] %v7518_v46  ;;  %v1681_v46 = vld [vmem:[#allocation2 + $0x308] sm:$0xff] }
 0x23e   : > { %v1368_v0 = vpop.f32.mrf.mxu0  ;;  %1913 = vmatpush.msrb.mxu2 %v7525_v4  ;;  %1753 = vmatmul.f32.vlgmr.msrb.gmra.mxu3 %v1681_v46 }
 0x23f   : > { %v1410_v51 = vadd.f32 %v1409_v34, %v1368_v0  ;;  %v1418_v34 = vpop.f32.mrf.mxu1  ;;  %v7572_v0 = vld [vmem:[%s7030_s29 + $0x98] sm:$0xff] }
 0x240   : > { %1914 = vmatpush.msrb.mxu2 %v7529_v10 }
 0x241   : > { %6098 = vmatmul.msk.f32.gmra.mxu2 %vm852_vm0, %v1410_v51 }
 0x242   : > { %1915 = vmatpush.msrb.mxu2 %v7534_v53 }
 0x244   : > { %v7537_v12 = vpop.f32.mrf.mxu3  ;;  %1916 = vmatpush.msrb.mxu2 %v7540_v18 }
 0x245   : > { %10505 = vst [vmem:[#allocation13_spill] sm:$0xff] %v7537_v12 }
 0x246   : > { %v1371_v20 = vpop.f32.mrf.mxu0  ;;  %1917 = vmatpush.msrb.mxu2 %v7544_v22  ;;  %1756 = vmatmul.f32.gmra.mxu3 %v1683_v2 }
 0x247   : > { %v1413_v57 = vadd.f32 %v1412_v42, %v1371_v20  ;;  %v7567_v42 = vld [vmem:[%s7030_s29 + $0xa0] sm:$0xff]  ;;  %v7578_v20 = vld [vmem:[%s7030_s29 + $0x90] sm:$0xff] }
 0x248   : > { %1918 = vmatpush.msrb.mxu2 %v7548_v58 }
 0x249   : > { %6099 = vmatmul.msk.f32.gmra.mxu2 %vm852_vm0, %v1413_v57 }
 0x24a   : > { %1919 = vmatpush.msrb.mxu2 %v7553_v11 }
 0x24c   : > { %v7556_v61 = vpop.f32.mrf.mxu3  ;;  %1920 = vmatpush.msrb.mxu2 %v7559_v13 }
 0x24d   : > { %10506 = vst [vmem:[#allocation14_spill] sm:$0xff] %v7556_v61  ;;  %v1687_v61 = vld [vmem:[#allocation2 + $0x338] sm:$0xff] }
 0x24e   : > { %v1374_v33 = vpop.f32.mrf.mxu0  ;;  %1921 = vmatpush.msrb.mxu2 %v7563_v37  ;;  %1759 = vmatmul.f32.gmra.mxu3 %v1685_v8 }
 0x24f   : > { %v1416_v39 = vadd.f32 %v1415_v14, %v1374_v33  ;;  %v6105_v33 = vld [vmem:[%s10496_s21 + $0x28] sm:$0xff] }
 0x250   : > { %1922 = vmatpush.msrb.mxu2 %v7567_v42  ;;  %1645 = vmatpush.msrb.mxu1 %v6105_v33 }
 0x251   : > { %6100 = vmatmul.msk.f32.gmra.mxu2 %vm852_vm0, %v1416_v39  ;;  %v1421_v39 = vpop.f32.mrf.mxu1 }
 0x252   : > { %1923 = vmatpush.msrb.mxu2 %v7572_v0  ;;  %1870 = vmatpush.msra.mxu1 %v7442_v24 }
 0x254   : > { %v7575_v51 = vpop.f32.mrf.mxu3  ;;  %1924 = vmatpush.msrb.mxu2 %v7578_v20  ;;  %1871 = vmatpush.msra.mxu1 %v7446_v26 }
 0x256   : > { %v1377_v57 = vpop.f32.mrf.mxu0  ;;  %1925 = vmatpush.msrb.mxu2 %v7582_v35  ;;  %1872 = vmatpush.msra.mxu1 %v7452_v1 }
 0x257   : > { %v1419_v14 = vadd.f32 %v1418_v34, %v1377_v57  ;;  %1762 = vmatmul.f32.gmra.mxu3 %v1687_v61 }
 0x258   : > { %1926 = vmatpush.msrb.mxu2 %v7589_v48  ;;  %1873 = vmatpush.msra.mxu1 %v7456_v3 }
 0x259   : > { %6101 = vmatmul.msk.f32.gmra.mxu2 %vm852_vm0, %v1419_v14  ;;  %v1424_v33 = vpop.f32.mrf.mxu1 }
 0x25a   : > { %1874 = vmatpush.msra.mxu1 %v7460_v5 }
 0x25c   : > { %v7594_v12 = vpop.f32.mrf.mxu3  ;;  %1875 = vmatpush.msra.mxu1 %v7464_v60 }
 0x25e   : > { %v1380_v34 = vpop.f32.mrf.mxu0  ;;  %1876 = vmatpush.msra.mxu1 %v7470_v63 }
 0x25f   : > { %v1422_v57 = vadd.f32 %v1421_v39, %v1380_v34  ;;  %1765 = vmatmul.f32.gmra.mxu3 %v1689_v6 }
 0x260   : > { %1877 = vmatpush.msra.mxu1 %v7474_v15 }
 0x261   : > { %6102 = vmatmul.msk.f32.gmra.mxu2 %vm852_vm0, %v1422_v57  ;;  %v1427_v39 = vpop.f32.mrf.mxu1 }
 0x262   : > { %1878 = vmatpush.msra.mxu1 %v7478_v17 }
 0x264   : > { %v7601_v46 = vpop.f32.mrf.mxu3  ;;  %1879 = vmatpush.msra.mxu1 %v7482_v19 }
 0x266   : > { %v1383_v14 = vpop.f32.mrf.mxu0  ;;  %1880 = vmatpush.msra.mxu1 %v7488_v23 }
 0x267   : > { %v1425_v41 = vadd.f32 %v1424_v33, %v1383_v14  ;;  %v1680_v33 = vld [vmem:[#allocation2 + $0x300] sm:$0xff]  ;;  %1768 = vmatmul.f32.gmra.mxu3 %v1691_v44 }
 0x268   : > { %1881 = vmatpush.msra.mxu1 %v7492_v25 }
 0x269   : > { %6103 = vmatmul.msk.f32.gmra.mxu2 %vm852_vm0, %v1425_v41 }
 0x26a   : > { %1882 = vmatpush.msra.mxu1 %v7496_v29 }
 0x26c   : > { %v7608_v2 = vpop.f32.mrf.mxu3  ;;  %1883 = vmatpush.msra.mxu1 %v7502_v36 }
 0x26e   : > { %v1386_v34 = vpop.f32.mrf.mxu0  ;;  %1884 = vmatpush.msra.mxu1 %v7506_v38 }
 0x26f   : > { %v1428_v57 = vadd.f32 %v1427_v39, %v1386_v34  ;;  %v1682_v34 = vld [vmem:[#allocation2 + $0x310] sm:$0xff] }
 0x270   : > { %1885 = vmatpush.msra.mxu1 %v7510_v40 }
 0x271   : > { %6104 = vmatmul.msk.f32.gmra.mxu2 %vm852_vm0, %v1428_v57 }
 0x274   : > { %v1539_v41 = vpop.f32.mrf.mxu3 }
 0x276   : > { %v1580_v8 = vpop.f32.mrf.mxu0 }
 0x277   : > { %v1581_v14 = vadd.f32 %v1580_v8, %v1539_v41  ;;  %v1684_v41 = vld [vmem:[#allocation2 + $0x320] sm:$0xff]  ;;  %v1693_v8 = vld [vmem:[#allocation2 + $0x368] sm:$0xff] }
 0x278   : > { %1771 = vmatmul.f32.gmra.mxu3 %v1693_v8  ;;  %v1856_v8 = vld [vmem:[#allocation2 + $0x390] sm:$0xff] }
 0x279   : > { %6106 = vmatmul.msk.f32.vlgmr.msrb.gmra.mxu1 %vm852_vm0, %v1581_v14  ;;  %1712 = vmatmul.f32.vlgmr.msra.gmra.mxu2 %v1680_v33  ;;  %v1690_v33 = vld [vmem:[#allocation2 + $0x350] sm:$0xff] }
 0x27a   : > { %2085 = vmatpush.msrb.mxu1 %v7515_v45 }
 0x27c   : > { %v1542_v61 = vpop.f32.mrf.mxu3  ;;  %2086 = vmatpush.msrb.mxu1 %v7521_v50 }
 0x27e   : > { %v1583_v39 = vpop.f32.mrf.mxu0  ;;  %2087 = vmatpush.msrb.mxu1 %v7525_v4 }
 0x27f   : > { %v1584_v57 = vadd.f32 %v1583_v39, %v1542_v61 }
 0x280   : > { %2088 = vmatpush.msrb.mxu1 %v7529_v10  ;;  %v1686_v10 = vld [vmem:[#allocation2 + $0x330] sm:$0xff] }
 0x281   : > { %6107 = vmatmul.msk.f32.gmra.mxu1 %vm852_vm0, %v1584_v57  ;;  %1715 = vmatmul.f32.gmra.mxu2 %v1682_v34 }
 0x282   : > { %2089 = vmatpush.msrb.mxu1 %v7534_v53 }
 0x284   : > { %v1545_v6 = vpop.f32.mrf.mxu3  ;;  %2090 = vmatpush.msrb.mxu1 %v7540_v18  ;;  %v1695_v18 = vld [vmem:[#allocation2 + $0x378] sm:$0xff] }
 0x285   : > { %1774 = vmatmul.f32.gmra.mxu3 %v1695_v18  ;;  %v1861_v18 = vld [vmem:[#allocation2 + $0x3b8] sm:$0xff] }
 0x286   : > { %v1586_v45 = vpop.f32.mrf.mxu0  ;;  %2091 = vmatpush.msrb.mxu1 %v7544_v22 }
 0x287   : > { %v1587_v50 = vadd.f32 %v1586_v45, %v1545_v6  ;;  %v1855_v6 = vld [vmem:[#allocation2 + $0x388] sm:$0xff]  ;;  %v1854_v45 = vld [vmem:[#allocation2 + $0x380] sm:$0xff] }
 0x288   : > { %2092 = vmatpush.msrb.mxu1 %v7548_v58 }
 0x289   : > { %6108 = vmatmul.msk.f32.gmra.mxu1 %vm852_vm0, %v1587_v50  ;;  %1718 = vmatmul.f32.gmra.mxu2 %v1684_v41  ;;  %v1857_v50 = vld [vmem:[#allocation2 + $0x398] sm:$0xff] }
 0x28a   : > { %2093 = vmatpush.msrb.mxu1 %v7553_v11  ;;  %v1688_v11 = vld [vmem:[#allocation2 + $0x340] sm:$0xff] }
 0x28c   : > { %v1548_v44 = vpop.f32.mrf.mxu3  ;;  %2094 = vmatpush.msrb.mxu1 %v7559_v13 }
 0x28e   : > { %v1589_v4 = vpop.f32.mrf.mxu0  ;;  %2095 = vmatpush.msrb.mxu1 %v7563_v37 }
 0x28f   : > { %v1590_v53 = vadd.f32 %v1589_v4, %v1548_v44  ;;  %v1859_v4 = vld [vmem:[#allocation2 + $0x3a8] sm:$0xff] }
 0x290   : > { %2096 = vmatpush.msrb.mxu1 %v7567_v42 }
 0x291   : > { %6109 = vmatmul.msk.f32.gmra.mxu1 %vm852_vm0, %v1590_v53  ;;  %1721 = vmatmul.f32.gmra.mxu2 %v1686_v10  ;;  %v1858_v10 = vld [vmem:[#allocation2 + $0x3a0] sm:$0xff] }
 0x292   : > { %2097 = vmatpush.msrb.mxu1 %v7572_v0 }
 0x294   : > { %v1551_v22 = vpop.f32.mrf.mxu3  ;;  %2098 = vmatpush.msrb.mxu1 %v7578_v20  ;;  %v1692_v20 = vld [vmem:[#allocation2 + $0x360] sm:$0xff] }
 0x296   : > { %v1592_v58 = vpop.f32.mrf.mxu0  ;;  %2099 = vmatpush.msrb.mxu1 %v7582_v35 }
 0x297   : > { %v1593_v13 = vadd.f32 %v1592_v58, %v1551_v22  ;;  %v1860_v22 = vld [vmem:[#allocation2 + $0x3b0] sm:$0xff] }
 0x298   : > { %2100 = vmatpush.msrb.mxu1 %v7589_v48  ;;  %v1694_v48 = vld [vmem:[#allocation2 + $0x370] sm:$0xff] }
 0x299   : > { %6110 = vmatmul.msk.f32.gmra.mxu1 %vm852_vm0, %v1593_v13  ;;  %1724 = vmatmul.f32.gmra.mxu2 %v1688_v11  ;;  %v1863_v11 = vld [vmem:[#allocation2 + $0x3c8] sm:$0xff]  ;;  %v1862_v13 = vld [vmem:[#allocation2 + $0x3c0] sm:$0xff] }
 0x29c   : > { %v1554_v37 = vpop.f32.mrf.mxu3 }
 0x29e   : > { %v1595_v42 = vpop.f32.mrf.mxu0 }
 0x29f   : > { %v1596_v14 = vadd.f32 %v1595_v42, %v1554_v37  ;;  %v6114_v42 = vld [vmem:[%s10496_s21 + $0x30] sm:$0xff] }
 0x2a0   : > { %1819 = vmatpush.msra.mxu0 %v6114_v42  ;;  %v2031_v42 = vld [vmem:[#allocation2 + $0x418] sm:$0xff] }
 0x2a1   : > { %6111 = vmatmul.msk.f32.gmra.mxu1 %vm852_vm0, %v1596_v14  ;;  %1727 = vmatmul.f32.gmra.mxu2 %v1690_v33  ;;  %v1865_v33 = vld [vmem:[#allocation2 + $0x3d8] sm:$0xff]  ;;  %v1864_v14 = vld [vmem:[#allocation2 + $0x3d0] sm:$0xff] }
 0x2a2   : > { %2044 = vmatpush.msrb.mxu0 %v7442_v24 }
 0x2a4   : > { %v1557_v0 = vpop.f32.mrf.mxu3  ;;  %2045 = vmatpush.msrb.mxu0 %v7446_v26  ;;  %v1869_v26 = vld [vmem:[#allocation2 + $0x3f8] sm:$0xff] }
 0x2a6   : > { %v1598_v61 = vpop.f32.mrf.mxu0  ;;  %2046 = vmatpush.msrb.mxu0 %v7452_v1 }
 0x2a7   : > { %v1599_v39 = vadd.f32 %v1598_v61, %v1557_v0  ;;  %v1867_v61 = vld [vmem:[#allocation2 + $0x3e8] sm:$0xff] }
 0x2a8   : > { %2047 = vmatpush.msrb.mxu0 %v7456_v3 }
 0x2a9   : > { %6112 = vmatmul.msk.f32.gmra.mxu1 %vm852_vm0, %v1599_v39  ;;  %1730 = vmatmul.f32.gmra.mxu2 %v1692_v20  ;;  %v1866_v20 = vld [vmem:[#allocation2 + $0x3e0] sm:$0xff] }
 0x2aa   : > { %2048 = vmatpush.msrb.mxu0 %v7460_v5 }
 0x2ac   : > { %v1560_v35 = vpop.f32.mrf.mxu3  ;;  %2049 = vmatpush.msrb.mxu0 %v7464_v60 }
 0x2ae   : > { %v1601_v34 = vpop.f32.mrf.mxu0  ;;  %2050 = vmatpush.msrb.mxu0 %v7470_v63 }
 0x2af   : > { %v1602_v57 = vadd.f32 %v1601_v34, %v1560_v35  ;;  %v1868_v35 = vld [vmem:[#allocation2 + $0x3f0] sm:$0xff] }
 0x2b0   : > { %2051 = vmatpush.msrb.mxu0 %v7474_v15 }
 0x2b1   : > { %6113 = vmatmul.msk.f32.gmra.mxu1 %vm852_vm0, %v1602_v57  ;;  %1733 = vmatmul.f32.gmra.mxu2 %v1694_v48 }
 0x2b2   : > { %2052 = vmatpush.msrb.mxu0 %v7478_v17 }
 0x2b4   : > { %2053 = vmatpush.msrb.mxu0 %v7482_v19 }
 0x2b6   : > { %2054 = vmatpush.msrb.mxu0 %v7488_v23 }
 0x2b8   : > { %2055 = vmatpush.msrb.mxu0 %v7492_v25 }
 0x2b9   : > { %1927 = vmatmul.f32.vlgmr.msrb.gmra.mxu2 %v1855_v6  ;;  %1886 = vmatmul.f32.vlgmr.msra.gmra.mxu1 %v1854_v45 }
 0x2ba   : > { %2056 = vmatpush.msrb.mxu0 %v7496_v29 }
 0x2bc   : > { %v7642_v41 = vpop.f32.mrf.mxu2  ;;  %2057 = vmatpush.msrb.mxu0 %v7502_v36 }
 0x2be   : > { %2058 = vmatpush.msrb.mxu0 %v7506_v38 }
 0x2c0   : > { %2059 = vmatpush.msrb.mxu0 %v7510_v40 }
 0x2c1   : > { %1930 = vmatmul.f32.gmra.mxu2 %v1857_v50  ;;  %1889 = vmatmul.f32.gmra.mxu1 %v1856_v8  ;;  %v1754_v24 = vpop.f32.mrf.mxu3  ;;  %v6123_v8 = vld [vmem:[%s10496_s21 + $0x38] sm:$0xff] }
 0x2c2   : > { %1993 = vmatpush.msra.mxu3 %v6123_v8  ;;  %v2032_v8 = vld [vmem:[#allocation2 + $0x420] sm:$0xff] }
 0x2c4   : > { %v7644_v44 = vpop.f32.mrf.mxu2 }
 0x2c9   : > { %1933 = vmatmul.f32.gmra.mxu2 %v1859_v4  ;;  %1892 = vmatmul.f32.gmra.mxu1 %v1858_v10  ;;  %v1757_v5 = vpop.f32.mrf.mxu3 }
 0x2cc   : > { %v7646_v53 = vpop.f32.mrf.mxu2 }
 0x2d1   : > { %1936 = vmatmul.f32.gmra.mxu2 %v1861_v18  ;;  %1895 = vmatmul.f32.gmra.mxu1 %v1860_v22  ;;  %v1760_v17 = vpop.f32.mrf.mxu3  ;;  %v2029_v18 = vld [vmem:[#allocation2 + $0x408] sm:$0xff] }
 0x2d4   : > { %v7648_v58 = vpop.f32.mrf.mxu2 }
 0x2d9   : > { %1939 = vmatmul.f32.gmra.mxu2 %v1863_v11  ;;  %1898 = vmatmul.f32.gmra.mxu1 %v1862_v13 }
 0x2da   : > { %v1763_v25 = vpop.f32.mrf.mxu3 }
 0x2dc   : > { %v7650_v37 = vpop.f32.mrf.mxu2 }
 0x2e1   : > { %1942 = vmatmul.f32.gmra.mxu2 %v1865_v33  ;;  %1901 = vmatmul.f32.gmra.mxu1 %v1864_v14 }
 0x2e2   : > { %v1766_v57 = vpop.f32.mrf.mxu3 }
 0x2e4   : > { %v7657_v0 = vpop.f32.mrf.mxu2 }
 0x2e9   : > { %1945 = vmatmul.f32.gmra.mxu2 %v1867_v61  ;;  %1904 = vmatmul.f32.gmra.mxu1 %v1866_v20 }
 0x2ea   : > { %v1769_v10 = vpop.f32.mrf.mxu3 }
 0x2ec   : > { %v7663_v39 = vpop.f32.mrf.mxu2 }
 0x2f1   : > { %1948 = vmatmul.f32.gmra.mxu2 %v1869_v26  ;;  %1907 = vmatmul.f32.gmra.mxu1 %v1868_v35 }
 0x2f4   : > { %v7669_v1 = vpop.f32.mrf.mxu2 }
 0x2f6   : > { %v7672_v3 = vpop.f32.mrf.mxu1 }
 0x2f9   : > { %2101 = vmatmul.f32.vlgmr.msrb.gmra.mxu1 %v2029_v18 }
 0x2fb   : > { %v1772_v33 = vpop.f32.mrf.mxu3 }
 0x2fc   : > { %v1713_v60 = vpop.f32.mrf.mxu2 }
 0x2fd   : > { %v1755_v63 = vadd.f32 %v1754_v24, %v1713_v60  ;;  %v2033_v24 = vld [vmem:[#allocation2 + $0x428] sm:$0xff] }
 0x2fe   : > { %v7678_v15 = vpop.f32.mrf.mxu1 }
 0x2ff   : > { %6115 = vmatmul.msk.f32.vlgmr.msra.gmra.mxu0 %vm852_vm0, %v1755_v63  ;;  %v2035_v63 = vld [vmem:[#allocation2 + $0x438] sm:$0xff] }
 0x301   : > { %2104 = vmatmul.f32.gmra.mxu1 %v2031_v42  ;;  %v2034_v42 = vld [vmem:[#allocation2 + $0x430] sm:$0xff] }
 0x304   : > { %v1716_v19 = vpop.f32.mrf.mxu2 }
 0x305   : > { %v1758_v23 = vadd.f32 %v1757_v5, %v1716_v19  ;;  %v2028_v19 = vld [vmem:[#allocation2 + $0x400] sm:$0xff] }
 0x306   : > { %v7682_v34 = vpop.f32.mrf.mxu1 }
 0x307   : > { %6116 = vmatmul.msk.f32.gmra.mxu0 %vm852_vm0, %v1758_v23 }
 0x308   : > { %v1775_v26 = vpop.f32.mrf.mxu3 }
 0x309   : > { %2107 = vmatmul.f32.gmra.mxu1 %v2033_v24 }
 0x30c   : > { %v1719_v29 = vpop.f32.mrf.mxu2 }
 0x30d   : > { %v1761_v36 = vadd.f32 %v1760_v17, %v1719_v29  ;;  %v2037_v29 = vld [vmem:[#allocation2 + $0x448] sm:$0xff] }
 0x30e   : > { %v7685_v48 = vpop.f32.mrf.mxu1 }
 0x30f   : > { %6117 = vmatmul.msk.f32.gmra.mxu0 %vm852_vm0, %v1761_v36 }
 0x311   : > { %2110 = vmatmul.f32.gmra.mxu1 %v2035_v63  ;;  %v2038_v63 = vld [vmem:[#allocation2 + $0x450] sm:$0xff] }
 0x314   : > { %v1722_v38 = vpop.f32.mrf.mxu2 }
 0x315   : > { %v1764_v6 = vadd.f32 %v1763_v25, %v1722_v38  ;;  %v2030_v38 = vld [vmem:[#allocation2 + $0x410] sm:$0xff] }
 0x316   : > { %v7688_v40 = vpop.f32.mrf.mxu1 }
 0x317   : > { %6118 = vmatmul.msk.f32.gmra.mxu0 %vm852_vm0, %v1764_v6 }
 0x319   : > { %2113 = vmatmul.f32.gmra.mxu1 %v2037_v29 }
 0x31c   : > { %v1725_v45 = vpop.f32.mrf.mxu2 }
 0x31d   : > { %v1767_v50 = vadd.f32 %v1766_v57, %v1725_v45  ;;  %v2039_v45 = vld [vmem:[#allocation2 + $0x458] sm:$0xff] }
 0x31e   : > { %v7694_v4 = vpop.f32.mrf.mxu1 }
 0x31f   : > { %6119 = vmatmul.msk.f32.gmra.mxu0 %vm852_vm0, %v1767_v50 }
 0x321   : > { %2116 = vmatmul.f32.gmra.mxu1 %v2039_v45 }
 0x324   : > { %v1728_v22 = vpop.f32.mrf.mxu2 }
 0x325   : > { %v1770_v11 = vadd.f32 %v1769_v10, %v1728_v22  ;;  %v2041_v22 = vld [vmem:[#allocation2 + $0x468] sm:$0xff] }
 0x326   : > { %v7697_v13 = vpop.f32.mrf.mxu1 }
 0x327   : > { %6120 = vmatmul.msk.f32.gmra.mxu0 %vm852_vm0, %v1770_v11 }
 0x329   : > { %2119 = vmatmul.f32.gmra.mxu1 %v2041_v22  ;;  %v6132_v22 = vld [vmem:[%s10496_s21 + $0x40] sm:$0xff] }
 0x32a   : > { %2167 = vmatpush.msra.mxu2 %v6132_v22 }
 0x32c   : > { %v1731_v14 = vpop.f32.mrf.mxu2 }
 0x32d   : > { %v1773_v61 = vadd.f32 %v1772_v33, %v1731_v14 }
 0x32e   : > { %v7700_v20 = vpop.f32.mrf.mxu1 }
 0x32f   : > { %6121 = vmatmul.msk.f32.gmra.mxu0 %vm852_vm0, %v1773_v61  ;;  %v2043_v61 = vld [vmem:[#allocation2 + $0x478] sm:$0xff] }
 0x331   : > { %2122 = vmatmul.f32.gmra.mxu1 %v2043_v61 }
 0x334   : > { %v1734_v35 = vpop.f32.mrf.mxu2 }
 0x335   : > { %v1776_v5 = vadd.f32 %v1775_v26, %v1734_v35  ;;  %v2036_v26 = vld [vmem:[#allocation2 + $0x440] sm:$0xff] }
 0x336   : > { %v1887_v60 = vpop.f32.mrf.mxu1 }
 0x337   : > { %6122 = vmatmul.msk.f32.gmra.mxu0 %vm852_vm0, %v1776_v5 }
 0x33c   : > { %v1928_v17 = vpop.f32.mrf.mxu2 }
 0x33d   : > { %v1929_v23 = vadd.f32 %v1928_v17, %v1887_v60 }
 0x33e   : > { %v1890_v25 = vpop.f32.mrf.mxu1 }
 0x33f   : > { %6124 = vmatmul.msk.f32.vlgmr.msra.gmra.mxu3 %vm852_vm0, %v1929_v23  ;;  %2060 = vmatmul.f32.vlgmr.msrb.gmra.mxu0 %v2028_v19 }
 0x344   : > { %v1931_v36 = vpop.f32.mrf.mxu2 }
 0x345   : > { %v1932_v57 = vadd.f32 %v1931_v36, %v1890_v25  ;;  %v2040_v25 = vld [vmem:[#allocation2 + $0x460] sm:$0xff] }
 0x346   : > { %v1893_v6 = vpop.f32.mrf.mxu1 }
 0x347   : > { %6125 = vmatmul.msk.f32.gmra.mxu3 %vm852_vm0, %v1932_v57  ;;  %2063 = vmatmul.f32.gmra.mxu0 %v2030_v38  ;;  %v2042_v57 = vld [vmem:[#allocation2 + $0x470] sm:$0xff] }
 0x34c   : > { %v1934_v50 = vpop.f32.mrf.mxu2 }
 0x34d   : > { %v1935_v10 = vadd.f32 %v1934_v50, %v1893_v6 }
 0x34e   : > { %v1896_v18 = vpop.f32.mrf.mxu1 }
 0x34f   : > { %6126 = vmatmul.msk.f32.gmra.mxu3 %vm852_vm0, %v1935_v10  ;;  %2066 = vmatmul.f32.gmra.mxu0 %v2032_v8 }
 0x354   : > { %v1937_v11 = vpop.f32.mrf.mxu2 }
 0x355   : > { %v1938_v33 = vadd.f32 %v1937_v11, %v1896_v18 }
 0x356   : > { %v1899_v14 = vpop.f32.mrf.mxu1 }
 0x357   : > { %6127 = vmatmul.msk.f32.gmra.mxu3 %vm852_vm0, %v1938_v33  ;;  %2069 = vmatmul.f32.gmra.mxu0 %v2034_v42 }
 0x35c   : > { %v1940_v24 = vpop.f32.mrf.mxu2 }
 0x35d   : > { %v1941_v35 = vadd.f32 %v1940_v24, %v1899_v14 }
 0x35e   : > { %v1902_v5 = vpop.f32.mrf.mxu1 }
 0x35f   : > { %6128 = vmatmul.msk.f32.gmra.mxu3 %vm852_vm0, %v1941_v35  ;;  %2072 = vmatmul.f32.gmra.mxu0 %v2036_v26 }
 0x364   : > { %v1943_v60 = vpop.f32.mrf.mxu2 }
 0x365   : > { %v1944_v17 = vadd.f32 %v1943_v60, %v1902_v5 }
 0x366   : > { %v1905_v19 = vpop.f32.mrf.mxu1 }
 0x367   : > { %6129 = vmatmul.msk.f32.gmra.mxu3 %vm852_vm0, %v1944_v17  ;;  %2075 = vmatmul.f32.gmra.mxu0 %v2038_v63 }
 0x36c   : > { %v1946_v23 = vpop.f32.mrf.mxu2 }
 0x36d   : > { %v1947_v29 = vadd.f32 %v1946_v23, %v1905_v19 }
 0x36e   : > { %v1908_v36 = vpop.f32.mrf.mxu1 }
 0x36f   : > { %6130 = vmatmul.msk.f32.gmra.mxu3 %vm852_vm0, %v1947_v29  ;;  %2078 = vmatmul.f32.gmra.mxu0 %v2040_v25 }
 0x374   : > { %v1949_v38 = vpop.f32.mrf.mxu2 }
 0x375   : > { %v1950_v6 = vadd.f32 %v1949_v38, %v1908_v36 }
 0x376   : > { %v2102_v33 = vpop.f32.mrf.mxu1 }
 0x377   : > { %6131 = vmatmul.msk.f32.gmra.mxu3 %vm852_vm0, %v1950_v6  ;;  %2081 = vmatmul.f32.gmra.mxu0 %v2042_v57 }
 0x37c   : > { %v7712_v45 = vpop.f32.mrf.mxu0 }
 0x37e   : > { %v2105_v61 = vpop.f32.mrf.mxu1 }
 0x384   : > { %v7714_v50 = vpop.f32.mrf.mxu0 }
 0x386   : > { %v2108_v35 = vpop.f32.mrf.mxu1 }
 0x38c   : > { %v7716_v8 = vpop.f32.mrf.mxu0 }
 0x38e   : > { %v2111_v63 = vpop.f32.mrf.mxu1 }
 0x394   : > { %v7718_v10 = vpop.f32.mrf.mxu0 }
 0x396   : > { %v2114_v25 = vpop.f32.mrf.mxu1 }
 0x39c   : > { %v7720_v18 = vpop.f32.mrf.mxu0 }
 0x39e   : > { %v2117_v57 = vpop.f32.mrf.mxu1 }
 0x3a4   : > { %v7725_v11 = vpop.f32.mrf.mxu0 }
 0x3ac   : > { %v7727_v42 = vpop.f32.mrf.mxu0 }
 0x3b4   : > { %v7729_v14 = vpop.f32.mrf.mxu0 }
 0x3bc   : > { %v2061_v24 = vpop.f32.mrf.mxu0 }
 0x3bd   : > { %v2103_v26 = vadd.f32 %v2102_v33, %v2061_v24  ;;  %v2120_v33 = vpop.f32.mrf.mxu1 }
 0x3bf   : > { %6133 = vmatmul.msk.f32.vlgmr.msra.gmra.mxu2 %vm852_vm0, %v2103_v26 }
 0x3c4   : > { %v2064_v5 = vpop.f32.mrf.mxu0 }
 0x3c5   : > { %v2106_v60 = vadd.f32 %v2105_v61, %v2064_v5  ;;  %v2123_v26 = vpop.f32.mrf.mxu1 }
 0x3c7   : > { %6134 = vmatmul.msk.f32.gmra.mxu2 %vm852_vm0, %v2106_v60  ;;  %v7739_v60 = vpop.f32.mrf.mxu3 }
 0x3cc   : > { %v2067_v17 = vpop.f32.mrf.mxu0 }
 0x3cd   : > { %v2109_v19 = vadd.f32 %v2108_v35, %v2067_v17 }
 0x3cf   : > { %6135 = vmatmul.msk.f32.gmra.mxu2 %vm852_vm0, %v2109_v19 }
 0x3d4   : > { %v2070_v23 = vpop.f32.mrf.mxu0 }
 0x3d5   : > { %v2112_v29 = vadd.f32 %v2111_v63, %v2070_v23  ;;  %v7741_v63 = vpop.f32.mrf.mxu3 }
 0x3d7   : > { %6136 = vmatmul.msk.f32.gmra.mxu2 %vm852_vm0, %v2112_v29 }
 0x3dc   : > { %v2073_v36 = vpop.f32.mrf.mxu0 }
 0x3dd   : > { %v2115_v38 = vadd.f32 %v2114_v25, %v2073_v36  ;;  %v7745_v19 = vpop.f32.mrf.mxu3 }
 0x3df   : > { %6137 = vmatmul.msk.f32.gmra.mxu2 %vm852_vm0, %v2115_v38 }
 0x3e4   : > { %v2076_v6 = vpop.f32.mrf.mxu0 }
 0x3e5   : > { %v2118_v22 = vadd.f32 %v2117_v57, %v2076_v6  ;;  %v7749_v25 = vpop.f32.mrf.mxu3 }
 0x3e7   : > { %6138 = vmatmul.msk.f32.gmra.mxu2 %vm852_vm0, %v2118_v22  ;;  %v978_v22 = vadd.f32 %v7332_v59, %v7423_v31  ;;  %v969_v59 = vadd.f32 %v7316_v49, %v7407_v7  ;;  %v10509_v7 = vld [vmem:[#allocation6_spill] sm:$0xff] }
 0x3ec   : > { %v2079_v61 = vpop.f32.mrf.mxu0 }
 0x3ed   : > { %v2121_v24 = vadd.f32 %v2120_v33, %v2079_v61  ;;  %v2007_v36 = vpop.f32.mrf.mxu3  ;;  %v975_v61 = vadd.f32 %v7326_v56, %v7420_v27 }
 0x3ef   : > { %6139 = vmatmul.msk.f32.gmra.mxu2 %vm852_vm0, %v2121_v24  ;;  %v1155_v24 = vadd.f32 %v7467_v9, %v978_v22 }
 0x3f4   : > { %v2082_v35 = vpop.f32.mrf.mxu0 }
 0x3f5   : > { %v2124_v5 = vadd.f32 %v2123_v26, %v2082_v35  ;;  %v2010_v57 = vpop.f32.mrf.mxu3  ;;  %v972_v35 = vadd.f32 %v7318_v52, %v7415_v32  ;;  %v966_v52 = vadd.f32 %v7314_v47, %v7399_v30 }
 0x3f7   : > { %6140 = vmatmul.msk.f32.gmra.mxu2 %vm852_vm0, %v2124_v5  ;;  %v981_v5 = vadd.f32 %v7338_v62, %v7426_v43  ;;  %v1153_v31 = vadd.f32 %v7436_v16, %v972_v35  ;;  %v1152_v62 = vadd.f32 %v7434_v54, %v969_v59  ;;  %v963_v16 = vadd.f32 %v10509_v7, %v7389_v55  ;;  %v10516_v59 = vld [vmem:[#allocation8_spill] sm:$0xff] }
 0x3f9   : > { %v1156_v56 = vadd.f32 %v7485_v21, %v981_v5  ;;  %v1327_v32 = vadd.f32 %v7575_v51, %v1153_v31  ;;  %v10510_v21 = vld [vmem:[#allocation10_spill] sm:$0xff]  ;;  %v10517_v31 = vld [vmem:[#allocation12_spill] sm:$0xff] }
 0x3fb   : > { %v1330_v43 = vadd.f32 %v7608_v2, %v1156_v56  ;;  %v1501_v47 = vadd.f32 %v7650_v37, %v1327_v32  ;;  %v10512_v2 = vld [vmem:[#allocation7_spill] sm:$0xff] }
 0x3fc   : > { %v10518_v32 = vld [vmem:[#allocation11_spill] sm:$0xff] }
 0x3fd   : > { %v2013_v26 = vpop.f32.mrf.mxu3  ;;  %v1504_v30 = vadd.f32 %v7669_v1, %v1330_v43  ;;  %v1675_v35 = vadd.f32 %v7688_v40, %v1501_v47 }
 0x3ff   : > { %v1678_v5 = vadd.f32 %v7700_v20, %v1504_v30 }
 0x442   : > { %v7743_v17 = vpop.f32.mrf.mxu2 }
 0x443   : > { %10507 = vst [vmem:[#allocation15_spill] sm:$0xff] %v7743_v17  ;;  %v1154_v17 = vadd.f32 %v7449_v28, %v975_v61  ;;  %v10515_v61 = vld [vmem:[#allocation13_spill] sm:$0xff] }
 0x445   : > { %v1328_v27 = vadd.f32 %v7594_v12, %v1154_v17  ;;  %v1151_v12 = vadd.f32 %v10510_v21, %v966_v52  ;;  %v1849_v52 = vadd.f32 %v7720_v18, %v1675_v35 }
 0x447   : > { %v1502_v28 = vadd.f32 %v7657_v0, %v1328_v27  ;;  %v10513_v0 = vld [vmem:[#allocation5_spill] sm:$0xff]  ;;  %v1325_v55 = vadd.f32 %v10515_v61, %v1151_v12 }
 0x449   : > { %v1676_v54 = vadd.f32 %v7694_v4, %v1502_v28  ;;  %v1499_v56 = vadd.f32 %v7646_v53, %v1325_v55  ;;  %v2023_v28 = vadd.f32 %v2007_v36, %v1849_v52  ;;  %v6535_v53 = vld [vmem:[%s10519_s30] ss:$0 sm:$0xff]  ;;  %v6160_v52 = vld [vmem:[%s10426_s4 + $0x38] sm:$0xff] }
 0x44a   : > { %v7747_v23 = vpop.f32.mrf.mxu2 }
 0x44b   : > { %10508 = vst [vmem:[#allocation16_spill] sm:$0xff] %v7747_v23  ;;  %v1329_v23 = vadd.f32 %v7601_v46, %v1155_v24  ;;  %v10511_v46 = vld [vmem:[#allocation14_spill] sm:$0xff]  ;;  %v1850_v37 = vadd.f32 %v7725_v11, %v1676_v54 }
 0x44d   : > { %v1503_v9 = vadd.f32 %v7663_v39, %v1329_v23  ;;  %v1326_v39 = vadd.f32 %v10511_v46, %v1152_v62  ;;  %v960_v23 = vadd.f32 %v10513_v0, %v10512_v2  ;;  %v2024_v62 = vadd.f32 %v2010_v57, %v1850_v37  ;;  %v2237_v37 = vld [vmem:[%s10426_s4] sm:$0xff] }
 0x44f   : > { %v1677_v49 = vadd.f32 %v7697_v13, %v1503_v9  ;;  %v10514_v13 = vld [vmem:[#allocation9_spill] sm:$0xff]  ;;  %v1500_v24 = vadd.f32 %v7648_v58, %v1326_v39  ;;  %v1149_v4 = vadd.f32 %v10516_v59, %v960_v23  ;;  %v2016_v9 = vpop.f32.mrf.mxu3  ;;  %v1852_v58 = vadd.f32 %v7729_v14, %v1678_v5 }
 0x450   : > { %v1150_v22 = vadd.f32 %v10514_v13, %v963_v16  ;;  %v6152_v59 = vld [vmem:[%s10426_s4 + $0x20] sm:$0xff] }
 0x451   : > { %v1851_v51 = vadd.f32 %v7727_v42, %v1677_v49  ;;  %v1674_v27 = vadd.f32 %v7685_v48, %v1500_v24  ;;  %v1323_v20 = vadd.f32 %v10518_v32, %v1149_v4  ;;  %v2026_v49 = vadd.f32 %v2016_v9, %v1852_v58  ;;  %v2238_v4 = vld [vmem:[%s10426_s4 + $0x8] sm:$0xff]  ;;  %v6144_v9 = vld [vmem:[%s10426_s4 + $0x18] sm:$0xff] }
 0x452   : > { %v7751_v29 = vpop.f32.mrf.mxu2  ;;  %v1324_v42 = vadd.f32 %v10517_v31, %v1150_v22  ;;  %v6153_v31 = vld [vmem:[%s10426_s4 + $0x28] sm:$0xff]  ;;  %v6174_v32 = vld [vmem:[%s10426_s4 + $0x58] sm:$0xff] }
 0x453   : > { %v2025_v1 = vadd.f32 %v2013_v26, %v1851_v51  ;;  %v1673_v26 = vadd.f32 %v7682_v34, %v1499_v56  ;;  %v1848_v43 = vadd.f32 %v7718_v10, %v1674_v27  ;;  %v1497_v18 = vadd.f32 %v7642_v41, %v1323_v20  ;;  %v6143_v56 = vld [vmem:[%s10426_s4 + $0x10] sm:$0xff]  ;;  %v6166_v27 = vld [vmem:[%s10426_s4 + $0x40] sm:$0xff]  ;;  %v6167_v58 = vld [vmem:[%s10426_s4 + $0x48] sm:$0xff] }
 0x454   : > { %v1498_v11 = vadd.f32 %v7644_v44, %v1324_v42  ;;  %v6159_v42 = vld [vmem:[%s10426_s4 + $0x30] sm:$0xff]  ;;  %v6181_v20 = vld [vmem:[%s10426_s4 + $0x68] sm:$0xff] }
 0x455   : > { %v1847_v57 = vadd.f32 %v7716_v8, %v1673_v26  ;;  %v2022_v44 = vadd.f32 %v7749_v25, %v1848_v43  ;;  %v1671_v10 = vadd.f32 %v7672_v3, %v1497_v18  ;;  %v6194_v26 = vld [vmem:[%s10426_s4 + $0x80] sm:$0xff]  ;;  %v6188_v43 = vld [vmem:[%s10426_s4 + $0x78] sm:$0xff] }
 0x456   : > { %v1672_v14 = vadd.f32 %v7678_v15, %v1498_v11  ;;  %v6187_v11 = vld [vmem:[%s10426_s4 + $0x70] sm:$0xff] }
 0x457   : > { %v2021_v12 = vadd.f32 %v7745_v19, %v1847_v57  ;;  %v1845_v15 = vadd.f32 %v7712_v45, %v1671_v10  ;;  %v10521_v45 = vld [vmem:[#allocation15_spill] sm:$0xff] }
 0x458   : > { %v1846_v36 = vadd.f32 %v7714_v50, %v1672_v14  ;;  %v10520_v50 = vld [vmem:[#allocation16_spill] sm:$0xff]  ;;  %v6156_v14 = vld [vmem:[%s10427_s5 + $0x10] sm:$0xff] }
 0x459   : > { %v2195_v39 = vadd.f32 %v7751_v29, %v2021_v12  ;;  %v2019_v3 = vadd.f32 %v7739_v60, %v1845_v15  ;;  %2417 = vmatpush.msra.mxu1 %v6156_v14  ;;  %v6177_v12 = vld [vmem:[%s10427_s5 + $0x28] sm:$0xff] }
 0x45a   : > { %v7753_v38 = vpop.f32.mrf.mxu2  ;;  %v2020_v8 = vadd.f32 %v7741_v63, %v1846_v36 }
 0x45b   : > { %v2193_v63 = vadd.f32 %v10521_v45, %v2019_v3  ;;  %v2207_v29 = vadd.f32 %v6535_v53, %v2195_v39  ;;  %v6191_v39 = vld [vmem:[%s10427_s5 + $0x38] sm:$0xff] }
 0x45c   : > { %v2194_v47 = vadd.f32 %v10520_v50, %v2020_v8 }
 0x45d   : > { %v2205_v23 = vadd.f32 %v6535_v53, %v2193_v63  ;;  %v2223_v13 = vmul.f32 0.2, %v2207_v29  ;;  %vm2215_vm6 = vcmp.ge.f32.partialorder %v2207_v29, 0.0 }
 0x45e   : > { %v2206_v60 = vadd.f32 %v6535_v53, %v2194_v47 }
 0x45f   : > { %v2221_v24 = vmul.f32 0.2, %v2205_v23  ;;  %v7846_v35 = vsel %vm2215_vm6, %v2207_v29, %v2223_v13  ;;  %vm2213_vm8 = vcmp.ge.f32.partialorder %v2205_v23, 0.0 }
 0x460   : > { %v2222_v61 = vmul.f32 0.2, %v2206_v60  ;;  %vm2214_vm7 = vcmp.ge.f32.partialorder %v2206_v60, 0.0 }
 0x462   : > { %v2181_v6 = vpop.f32.mrf.mxu2  ;;  %v7851_v5 = vsel %vm2214_vm7, %v2206_v60, %v2222_v61 }
 0x463   : > { %v2197_v16 = vadd.f32 %v2181_v6, %v2023_v28  ;;  %v6195_v28 = vld [vmem:[%s10426_s4 + $0x88] sm:$0xff] }
 0x465   : > { %v2209_v25 = vadd.f32 %v6535_v53, %v2197_v16 }
 0x467   : > { %v2225_v54 = vmul.f32 0.2, %v2209_v25  ;;  %vm2217_vm4 = vcmp.ge.f32.partialorder %v2209_v25, 0.0 }
 0x469   : > { %v7836_v22 = vsel %vm2217_vm4, %v2209_v25, %v2225_v54 }
 0x46a   : > { %v2184_v33 = vpop.f32.mrf.mxu2 }
 0x46b   : > { %v2198_v48 = vadd.f32 %v2184_v33, %v2024_v62  ;;  %v2196_v33 = vadd.f32 %v7753_v38, %v2022_v44  ;;  %v6173_v62 = vld [vmem:[%s10426_s4 + $0x50] sm:$0xff]  ;;  %v6163_v44 = vld [vmem:[%s10427_s5 + $0x18] sm:$0xff] }
 0x46d   : > { %v2210_v46 = vadd.f32 %v6535_v53, %v2198_v48  ;;  %v2208_v19 = vadd.f32 %v6535_v53, %v2196_v33 }
 0x46f   : > { %v2226_v30 = vmul.f32 0.2, %v2210_v46  ;;  %vm2218_vm3 = vcmp.ge.f32.partialorder %v2210_v46, 0.0  ;;  %v2224_v2 = vmul.f32 0.2, %v2208_v19  ;;  %vm2216_vm5 = vcmp.ge.f32.partialorder %v2208_v19, 0.0 }
 0x471   : > { %v7831_v0 = vsel %vm2218_vm3, %v2210_v46, %v2226_v30  ;;  %v7841_v55 = vsel %vm2216_vm5, %v2208_v19, %v2224_v2  ;;  %v6184_v46 = vld [vmem:[%s10427_s5 + $0x30] sm:$0xff] }
 0x472   : > { %v2187_v17 = vpop.f32.mrf.mxu2 }
 0x473   : > { %v2199_v40 = vadd.f32 %v2187_v17, %v2025_v1  ;;  %v7859_v1 = vsel %vm2213_vm8, %v2205_v23, %v2221_v24 }
 0x475   : > { %v2211_v34 = vadd.f32 %v6535_v53, %v2199_v40  ;;  %v6180_v40 = vld [vmem:[%s10426_s4 + $0x60] sm:$0xff] }
 0x477   : > { %v2227_v6 = vmul.f32 0.2, %v2211_v34  ;;  %vm2219_vm2 = vcmp.ge.f32.partialorder %v2211_v34, 0.0 }
 0x479   : > { %v7826_v51 = vsel %vm2219_vm2, %v2211_v34, %v2227_v6  ;;  %v6198_v6 = vld [vmem:[%s10427_s5 + $0x40] sm:$0xff] }
 0x47a   : > { %v2190_v7 = vpop.f32.mrf.mxu2 }
 0x47b   : > { %v2200_v21 = vadd.f32 %v2190_v7, %v2026_v49  ;;  %v6147_v49 = vld [vmem:[%s10427_s5 + $0x8] sm:$0xff] }
 0x47d   : > { %v2212_v41 = vadd.f32 %v6535_v53, %v2200_v21  ;;  %v2269_v53 = vld [vmem:[%s10427_s5] sm:$0xff] }
 0x47e   : > { %v6170_v21 = vld [vmem:[%s10427_s5 + $0x20] sm:$0xff] }
 0x47f   : > { %vm2220_vm1 = vcmp.ge.f32.partialorder %v2212_v41, 0.0  ;;  %v2228_v17 = vmul.f32 0.2, %v2212_v41  ;;  %2547 = vmatpush.msrb.mxu1 %v6170_v21  ;;  %v6209_v21 = vld [vmem:[%s10430_s8 + $0x10] sm:$0xff] }
 0x481   : > { %v7821_v38 = vsel %vm2220_vm1, %v2212_v41, %v2228_v17 }
 0x482   : > { %2254 = vmatpush.msrb.mxu3 %v7821_v38  ;;  %2379 = vmatpush.msra.mxu0 %v7821_v38 }
 0x483   : > { %2444 = vmatpush.msrb.mxu2 %v7821_v38 }
 0x484   : > { %2255 = vmatpush.msrb.mxu3 %v7826_v51  ;;  %2380 = vmatpush.msra.mxu0 %v7826_v51 }
 0x485   : > { %2445 = vmatpush.msrb.mxu2 %v7826_v51 }
 0x486   : > { %2256 = vmatpush.msrb.mxu3 %v7831_v0  ;;  %2381 = vmatpush.msra.mxu0 %v7831_v0 }
 0x487   : > { %2446 = vmatpush.msrb.mxu2 %v7831_v0 }
 0x488   : > { %2257 = vmatpush.msrb.mxu3 %v7836_v22  ;;  %2382 = vmatpush.msra.mxu0 %v7836_v22 }
 0x489   : > { %2447 = vmatpush.msrb.mxu2 %v7836_v22 }
 0x48a   : > { %2258 = vmatpush.msrb.mxu3 %v7841_v55  ;;  %2383 = vmatpush.msra.mxu0 %v7841_v55 }
 0x48b   : > { %2448 = vmatpush.msrb.mxu2 %v7841_v55 }
 0x48c   : > { %2259 = vmatpush.msrb.mxu3 %v7846_v35  ;;  %2384 = vmatpush.msra.mxu0 %v7846_v35 }
 0x48d   : > { %2449 = vmatpush.msrb.mxu2 %v7846_v35 }
 0x48e   : > { %2260 = vmatpush.msrb.mxu3 %v7851_v5  ;;  %2385 = vmatpush.msra.mxu0 %v7851_v5 }
 0x48f   : > { %2450 = vmatpush.msrb.mxu2 %v7851_v5 }
 0x490   : > { %2261 = vmatpush.msrb.mxu3 %v7859_v1  ;;  %2386 = vmatpush.msra.mxu0 %v7859_v1 }
 0x491   : > { %2451 = vmatpush.msrb.mxu2 %v7859_v1  ;;  %6141 = vmatmul.msk.f32.vlgmr.msrb.gmra.mxu3 %vm2239_vm9, %v2237_v37 }
 0x492   : > { %2287 = vmatpush.msra.mxu3 %v7821_v38  ;;  %2509 = vmatpush.msrb.mxu0 %v7821_v38 }
 0x493   : > { %2574 = vmatpush.msra.mxu2 %v7821_v38  ;;  %6154 = vmatmul.msk.f32.vlgmr.msra.gmra.mxu0 %vm2239_vm9, %v6152_v59 }
 0x494   : > { %2288 = vmatpush.msra.mxu3 %v7826_v51  ;;  %2510 = vmatpush.msrb.mxu0 %v7826_v51 }
 0x495   : > { %2575 = vmatpush.msra.mxu2 %v7826_v51 }
 0x496   : > { %2289 = vmatpush.msra.mxu3 %v7831_v0  ;;  %2511 = vmatpush.msrb.mxu0 %v7831_v0 }
 0x497   : > { %2576 = vmatpush.msra.mxu2 %v7831_v0 }
 0x498   : > { %2290 = vmatpush.msra.mxu3 %v7836_v22  ;;  %2512 = vmatpush.msrb.mxu0 %v7836_v22 }
 0x499   : > { %2577 = vmatpush.msra.mxu2 %v7836_v22  ;;  %6142 = vmatmul.msk.f32.gmra.mxu3 %vm2239_vm9, %v2238_v4 }
 0x49a   : > { %2291 = vmatpush.msra.mxu3 %v7841_v55  ;;  %2513 = vmatpush.msrb.mxu0 %v7841_v55 }
 0x49b   : > { %2578 = vmatpush.msra.mxu2 %v7841_v55  ;;  %6155 = vmatmul.msk.f32.gmra.mxu0 %vm2239_vm9, %v6153_v31 }
 0x49c   : > { %2292 = vmatpush.msra.mxu3 %v7846_v35  ;;  %2514 = vmatpush.msrb.mxu0 %v7846_v35 }
 0x49d   : > { %2579 = vmatpush.msra.mxu2 %v7846_v35 }
 0x49e   : > { %2293 = vmatpush.msra.mxu3 %v7851_v5  ;;  %2515 = vmatpush.msrb.mxu0 %v7851_v5 }
 0x49f   : > { %2580 = vmatpush.msra.mxu2 %v7851_v5 }
 0x4a0   : > { %2294 = vmatpush.msra.mxu3 %v7859_v1  ;;  %2516 = vmatpush.msrb.mxu0 %v7859_v1 }
 0x4a1   : > { %2581 = vmatpush.msra.mxu2 %v7859_v1  ;;  %6145 = vmatmul.msk.f32.vlgmr.msra.gmra.mxu3 %vm2239_vm9, %v6143_v56 }
 0x4a2   : > { %2639 = vmatpush.msra.mxu0 %v7821_v38  ;;  %6161 = vmatmul.msk.f32.vlgmr.msrb.gmra.mxu2 %vm2239_vm9, %v6159_v42 }
 0x4a3   : > { %2704 = vmatpush.msrb.mxu2 %v7821_v38  ;;  %6168 = vmatmul.msk.f32.vlgmr.msrb.gmra.mxu0 %vm2239_vm9, %v6166_v27 }
 0x4a4   : > { %2640 = vmatpush.msra.mxu0 %v7826_v51  ;;  %2325 = vmatpush.msrb.mxu3 %v6147_v49 }
 0x4a5   : > { %2705 = vmatpush.msrb.mxu2 %v7826_v51 }
 0x4a6   : > { %2641 = vmatpush.msra.mxu0 %v7831_v0  ;;  %2354 = vmatpush.msra.mxu3 %v2269_v53 }
 0x4a7   : > { %2706 = vmatpush.msrb.mxu2 %v7831_v0 }
 0x4a8   : > { %2642 = vmatpush.msra.mxu0 %v7836_v22 }
 0x4a9   : > { %2707 = vmatpush.msrb.mxu2 %v7836_v22  ;;  %6146 = vmatmul.msk.f32.gmra.mxu3 %vm2239_vm9, %v6144_v9 }
 0x4aa   : > { %2643 = vmatpush.msra.mxu0 %v7841_v55  ;;  %6162 = vmatmul.msk.f32.gmra.mxu2 %vm2239_vm9, %v6160_v52 }
 0x4ab   : > { %2708 = vmatpush.msrb.mxu2 %v7841_v55  ;;  %6169 = vmatmul.msk.f32.gmra.mxu0 %vm2239_vm9, %v6167_v58 }
 0x4ac   : > { %2644 = vmatpush.msra.mxu0 %v7846_v35 }
 0x4ad   : > { %2709 = vmatpush.msrb.mxu2 %v7846_v35 }
 0x4ae   : > { %2645 = vmatpush.msra.mxu0 %v7851_v5 }
 0x4af   : > { %2710 = vmatpush.msrb.mxu2 %v7851_v5 }
 0x4b0   : > { %2646 = vmatpush.msra.mxu0 %v7859_v1 }
 0x4b1   : > { %2711 = vmatpush.msrb.mxu2 %v7859_v1 }
 0x4b2   : > { %2769 = vmatpush.msrb.mxu0 %v7821_v38  ;;  %6175 = vmatmul.msk.f32.vlgmr.msra.gmra.mxu2 %vm2239_vm9, %v6173_v62 }
 0x4b3   : > { %6182 = vmatmul.msk.f32.vlgmr.msra.gmra.mxu0 %vm2239_vm9, %v6180_v40  ;;  %v6536_v40 = vld [vmem:[%s10428_s6] ss:$0 sm:$0xff] }
 0x4b4   : > { %2770 = vmatpush.msrb.mxu0 %v7826_v51 }
 0x4b6   : > { %2771 = vmatpush.msrb.mxu0 %v7831_v0 }
 0x4b8   : > { %2772 = vmatpush.msrb.mxu0 %v7836_v22 }
 0x4ba   : > { %2773 = vmatpush.msrb.mxu0 %v7841_v55  ;;  %6176 = vmatmul.msk.f32.gmra.mxu2 %vm2239_vm9, %v6174_v32 }
 0x4bb   : > { %6183 = vmatmul.msk.f32.gmra.mxu0 %vm2239_vm9, %v6181_v20 }
 0x4bc   : > { %2774 = vmatpush.msrb.mxu0 %v7846_v35 }
 0x4be   : > { %2775 = vmatpush.msrb.mxu0 %v7851_v5 }
 0x4c0   : > { %2776 = vmatpush.msrb.mxu0 %v7859_v1 }
 0x4c2   : > { %6189 = vmatmul.msk.f32.vlgmr.msrb.gmra.mxu2 %vm2239_vm9, %v6187_v11 }
 0x4c3   : > { %6196 = vmatmul.msk.f32.vlgmr.msrb.gmra.mxu0 %vm2239_vm9, %v6194_v26 }
 0x4ca   : > { %6190 = vmatmul.msk.f32.gmra.mxu2 %vm2239_vm9, %v6188_v43 }
 0x4cb   : > { %6197 = vmatmul.msk.f32.gmra.mxu0 %vm2239_vm9, %v6195_v28 }
 0x510   : > { %v2388_v18 = vpop.f32.mrf.mxu0 }
 0x511   : > { %6157 = vmatmul.msk.f32.vlgmr.msra.gmra.mxu1 %vm852_vm0, %v2388_v18  ;;  %v2829_v18 = vld [vmem:[%s10429_s7] sm:$0xf] }
 0x512   : > { %2677 = vmatpush.msra.mxu1 %v6184_v46 }
 0x514   : > { %v2263_v48 = vpop.f32.mrf.mxu3 }
 0x518   : > { %v2391_v7 = vpop.f32.mrf.mxu0 }
 0x519   : > { %6158 = vmatmul.msk.f32.gmra.mxu1 %vm852_vm0, %v2391_v7  ;;  %v6204_v7 = vld [vmem:[%s10430_s8 + $0x8] sm:$0xff] }
 0x51c   : > { %v2266_v57 = vpop.f32.mrf.mxu3 }
 0x520   : > { %v2518_v34 = vpop.f32.mrf.mxu0 }
 0x521   : > { %6171 = vmatmul.msk.f32.vlgmr.msrb.gmra.mxu1 %vm852_vm0, %v2518_v34  ;;  %v2854_v34 = vld [vmem:[%s10430_s8] sm:$0xff] }
 0x522   : > { %2807 = vmatpush.msrb.mxu1 %v6198_v6  ;;  %v6217_v6 = vld [vmem:[%s10430_s8 + $0x20] sm:$0xff] }
 0x524   : > { %v2296_v16 = vpop.f32.mrf.mxu3 }
 0x525   : > { %6148 = vmatmul.msk.f32.vlgmr.msrb.gmra.mxu3 %vm852_vm0, %v2296_v16  ;;  %v2453_v41 = vpop.f32.mrf.mxu2  ;;  %v6215_v16 = vld [vmem:[%s10429_s7 + $0x10] sm:$0xf] }
 0x526   : > { %2482 = vmatpush.msrb.mxu3 %v6163_v44  ;;  %v6207_v44 = vld [vmem:[%s10429_s7 + $0x8] sm:$0xf] }
 0x528   : > { %v2521_v36 = vpop.f32.mrf.mxu0 }
 0x529   : > { %6172 = vmatmul.msk.f32.gmra.mxu1 %vm852_vm0, %v2521_v36 }
 0x52c   : > { %v2299_v10 = vpop.f32.mrf.mxu3 }
 0x52d   : > { %6149 = vmatmul.msk.f32.gmra.mxu3 %vm852_vm0, %v2299_v10  ;;  %v2456_v8 = vpop.f32.mrf.mxu2  ;;  %v6223_v10 = vld [vmem:[%s10429_s7 + $0x18] sm:$0xf] }
 0x530   : > { %v2648_v33 = vpop.f32.mrf.mxu0 }
 0x531   : > { %6185 = vmatmul.msk.f32.vlgmr.msra.gmra.mxu1 %vm852_vm0, %v2648_v33  ;;  %v6231_v33 = vld [vmem:[%s10429_s7 + $0x20] sm:$0xf] }
 0x532   : > { %2973 = vmatpush.msra.mxu1 %v6209_v21  ;;  %v3314_v21 = vld [vmem:[%s10432_s10 + $0xc0] sm:$0xff] }
 0x535   : > { %6150 = vmatmul.msk.f32.vlgmr.msra.gmra.mxu3 %vm852_vm0, %v2263_v48  ;;  %v2583_v17 = vpop.f32.mrf.mxu2 }
 0x536   : > { %2612 = vmatpush.msra.mxu3 %v6177_v12 }
 0x538   : > { %v2651_v15 = vpop.f32.mrf.mxu0 }
 0x539   : > { %6186 = vmatmul.msk.f32.gmra.mxu1 %vm852_vm0, %v2651_v15  ;;  %v6219_v15 = vld [vmem:[%s10429_s7 + $0x14] sm:$0xf] }
 0x53d   : > { %6151 = vmatmul.msk.f32.gmra.mxu3 %vm852_vm0, %v2266_v57  ;;  %v2586_v50 = vpop.f32.mrf.mxu2  ;;  %v6202_v57 = vld [vmem:[%s10429_s7 + $0x4] sm:$0xf] }
 0x540   : > { %v2778_v25 = vpop.f32.mrf.mxu0 }
 0x541   : > { %6199 = vmatmul.msk.f32.vlgmr.msrb.gmra.mxu1 %vm852_vm0, %v2778_v25 }
 0x542   : > { %3075 = vmatpush.msrb.mxu1 %v6217_v6 }
 0x545   : > { %6164 = vmatmul.msk.f32.vlgmr.msrb.gmra.mxu3 %vm852_vm0, %v2453_v41  ;;  %v2713_v47 = vpop.f32.mrf.mxu2  ;;  %v6211_v41 = vld [vmem:[%s10429_s7 + $0xc] sm:$0xf] }
 0x546   : > { %2742 = vmatpush.msrb.mxu3 %v6191_v39  ;;  %v6213_v39 = vld [vmem:[%s10430_s8 + $0x18] sm:$0xff] }
 0x548   : > { %v2781_v3 = vpop.f32.mrf.mxu0 }
 0x549   : > { %6200 = vmatmul.msk.f32.gmra.mxu1 %vm852_vm0, %v2781_v3  ;;  %v6225_v3 = vld [vmem:[%s10430_s8 + $0x30] sm:$0xff] }
 0x54d   : > { %6165 = vmatmul.msk.f32.gmra.mxu3 %vm852_vm0, %v2456_v8  ;;  %v2716_v19 = vpop.f32.mrf.mxu2  ;;  %v6227_v8 = vld [vmem:[%s10429_s7 + $0x1c] sm:$0xf] }
 0x555   : > { %6178 = vmatmul.msk.f32.vlgmr.msra.gmra.mxu3 %vm852_vm0, %v2583_v17  ;;  %v6221_v17 = vld [vmem:[%s10430_s8 + $0x28] sm:$0xff] }
 0x55d   : > { %6179 = vmatmul.msk.f32.gmra.mxu3 %vm852_vm0, %v2586_v50 }
 0x565   : > { %6192 = vmatmul.msk.f32.vlgmr.msrb.gmra.mxu3 %vm852_vm0, %v2713_v47  ;;  %v6233_v47 = vld [vmem:[%s10430_s8 + $0x40] sm:$0xff] }
 0x56d   : > { %6193 = vmatmul.msk.f32.gmra.mxu3 %vm852_vm0, %v2716_v19 }
 0x58e   : > { %v2419_v38 = vpop.f32.mrf.mxu1 }
 0x596   : > { %v2422_v63 = vpop.f32.mrf.mxu1 }
 0x59e   : > { %v2549_v54 = vpop.f32.mrf.mxu1 }
 0x5a6   : > { %v2552_v2 = vpop.f32.mrf.mxu1 }
 0x5a8   : > { %v2327_v30 = vpop.f32.mrf.mxu3 }
 0x5ae   : > { %v2679_v23 = vpop.f32.mrf.mxu1 }
 0x5b0   : > { %v2330_v45 = vpop.f32.mrf.mxu3 }
 0x5b6   : > { %v2682_v61 = vpop.f32.mrf.mxu1 }
 0x5b8   : > { %v2356_v29 = vpop.f32.mrf.mxu3 }
 0x5b9   : > { %v2357_v22 = vadd.f32 %v2356_v29, %v2327_v30 }
 0x5bb   : > { %v2425_v55 = vadd.f32 %v2419_v38, %v2357_v22  ;;  %v6229_v38 = vld [vmem:[%s10430_s8 + $0x38] sm:$0xff] }
 0x5be   : > { %v2809_v31 = vpop.f32.mrf.mxu1 }
 0x5c0   : > { %v2359_v51 = vpop.f32.mrf.mxu3 }
 0x5c1   : > { %v2360_v24 = vadd.f32 %v2359_v51, %v2330_v45 }
 0x5c3   : > { %v2426_v37 = vadd.f32 %v2422_v63, %v2360_v24 }
 0x5c6   : > { %v2812_v20 = vpop.f32.mrf.mxu1 }
 0x5c8   : > { %v2484_v60 = vpop.f32.mrf.mxu3 }
 0x5c9   : > { %v2490_v35 = vadd.f32 %v2484_v60, %v2425_v55 }
 0x5cb   : > { %v2555_v1 = vadd.f32 %v2549_v54, %v2490_v35 }
 0x5d0   : > { %v2487_v0 = vpop.f32.mrf.mxu3 }
 0x5d1   : > { %v2491_v59 = vadd.f32 %v2487_v0, %v2426_v37 }
 0x5d3   : > { %v2556_v56 = vadd.f32 %v2552_v2, %v2491_v59  ;;  %v6537_v59 = vld [vmem:[%s10431_s9] ss:$0 sm:$0xff] }
 0x5d8   : > { %v2614_v13 = vpop.f32.mrf.mxu3 }
 0x5d9   : > { %v2620_v4 = vadd.f32 %v2614_v13, %v2555_v1 }
 0x5db   : > { %v2685_v27 = vadd.f32 %v2679_v23, %v2620_v4 }
 0x5e0   : > { %v2617_v5 = vpop.f32.mrf.mxu3 }
 0x5e1   : > { %v2621_v9 = vadd.f32 %v2617_v5, %v2556_v56  ;;  %v3299_v56 = vld [vmem:[%s10432_s10 + $0x48] sm:$0xff] }
 0x5e3   : > { %v2686_v58 = vadd.f32 %v2682_v61, %v2621_v9  ;;  %v3300_v9 = vld [vmem:[%s10432_s10 + $0x50] sm:$0xff] }
 0x5e8   : > { %v2744_v42 = vpop.f32.mrf.mxu3 }
 0x5e9   : > { %v2750_v52 = vadd.f32 %v2744_v42, %v2685_v27  ;;  %v3290_v42 = vld [vmem:[%s10432_s10] sm:$0xff]  ;;  %v3291_v27 = vld [vmem:[%s10432_s10 + $0x8] sm:$0xff] }
 0x5eb   : > { %v2815_v62 = vadd.f32 %v2809_v31, %v2750_v52  ;;  %v3292_v52 = vld [vmem:[%s10432_s10 + $0x10] sm:$0xff] }
 0x5ed   : > { %v2821_v26 = vadd.f32 %v6536_v40, %v2815_v62  ;;  %v3293_v62 = vld [vmem:[%s10432_s10 + $0x18] sm:$0xff] }
 0x5ef   : > { %v2825_v49 = vmul.f32 0.2, %v2821_v26  ;;  %vm2823_vm11 = vcmp.ge.f32.partialorder %v2821_v26, 0.0 }
 0x5f0   : > { %v2747_v32 = vpop.f32.mrf.mxu3 }
 0x5f1   : > { %v2751_v11 = vadd.f32 %v2747_v32, %v2686_v58  ;;  %v2827_v14 = vsel %vm2823_vm11, %v2821_v26, %v2825_v49  ;;  %v3301_v58 = vld [vmem:[%s10432_s10 + $0x58] sm:$0xff]  ;;  %v3294_v32 = vld [vmem:[%s10432_s10 + $0x20] sm:$0xff]  ;;  %v3304_v26 = vld [vmem:[%s10432_s10 + $0x70] sm:$0xff] }
 0x5f2   : > { %v3297_v49 = vld [vmem:[%s10432_s10 + $0x38] sm:$0xff] }
 0x5f3   : > { %v2816_v43 = vadd.f32 %v2812_v20, %v2751_v11  ;;  %v3303_v20 = vld [vmem:[%s10432_s10 + $0x68] sm:$0xff] }
 0x5f4   : > { %v3295_v11 = vld [vmem:[%s10432_s10 + $0x28] sm:$0xff] }
 0x5f5   : > { %v2822_v28 = vadd.f32 %v6536_v40, %v2816_v43  ;;  %v3302_v40 = vld [vmem:[%s10432_s10 + $0x60] sm:$0xff]  ;;  %v3296_v43 = vld [vmem:[%s10432_s10 + $0x30] sm:$0xff] }
 0x5f7   : > { %vm2824_vm10 = vcmp.ge.f32.partialorder %v2822_v28, 0.0  ;;  %v2826_v53 = vmul.f32 0.2, %v2822_v28 }
 0x5f9   : > { %v2828_v48 = vsel %vm2824_vm10, %v2822_v28, %v2826_v53  ;;  %v3305_v28 = vld [vmem:[%s10432_s10 + $0x78] sm:$0xff]  ;;  %v3306_v53 = vld [vmem:[%s10432_s10 + $0x80] sm:$0xff] }
 0x5fa   : > { %2848 = vmatpush.msra.mxu2 %v2828_v48  ;;  %2874 = vmatpush.msra.mxu3 %v2828_v48 }
 0x5fb   : > { %2947 = vmatpush.msra.mxu0 %v2828_v48 }
 0x5fc   : > { %2849 = vmatpush.msra.mxu2 %v2827_v14  ;;  %2875 = vmatpush.msra.mxu3 %v2827_v14 }
 0x5fd   : > { %2948 = vmatpush.msra.mxu0 %v2827_v14  ;;  %6201 = vmatmul.msk.f32.vlgmr.msra.gmra.mxu2 %vm2830_vm12, %v2829_v18  ;;  %v3307_v18 = vld [vmem:[%s10432_s10 + $0x88] sm:$0xff] }
 0x5fe   : > { %6203 = vmatmul.msk.f32.vlgmr.msra.gmra.mxu3 %vm2830_vm12, %v6202_v57  ;;  %2900 = vmatpush.msrb.mxu2 %v6204_v7  ;;  %v3309_v57 = vld [vmem:[%s10432_s10 + $0x98] sm:$0xff]  ;;  %v3310_v7 = vld [vmem:[%s10432_s10 + $0xa0] sm:$0xff] }
 0x5ff   : > { %6208 = vmatmul.msk.f32.vlgmr.msra.gmra.mxu0 %vm2830_vm12, %v6207_v44  ;;  %2923 = vmatpush.msrb.mxu3 %v2854_v34  ;;  %v3311_v44 = vld [vmem:[%s10432_s10 + $0xa8] sm:$0xff]  ;;  %v3313_v34 = vld [vmem:[%s10432_s10 + $0xb8] sm:$0xff] }
 0x600   : > { %2998 = vmatpush.msra.mxu2 %v2828_v48  ;;  %3049 = vmatpush.msrb.mxu0 %v2828_v48 }
 0x601   : > { %3024 = vmatpush.msra.mxu3 %v6213_v39 }
 0x602   : > { %2999 = vmatpush.msra.mxu2 %v2827_v14  ;;  %3050 = vmatpush.msrb.mxu0 %v2827_v14 }
 0x604   : > { %3151 = vmatpush.msra.mxu0 %v2828_v48 }
 0x606   : > { %3152 = vmatpush.msra.mxu0 %v2827_v14 }
 0x607   : > { %6216 = vmatmul.msk.f32.vlgmr.msrb.gmra.mxu0 %vm2830_vm12, %v6215_v16  ;;  %v3312_v16 = vld [vmem:[%s10432_s10 + $0xb0] sm:$0xff] }
 0x608   : > { %3253 = vmatpush.msrb.mxu0 %v2828_v48 }
 0x60a   : > { %3254 = vmatpush.msrb.mxu0 %v2827_v14 }
 0x60f   : > { %6224 = vmatmul.msk.f32.vlgmr.msra.gmra.mxu0 %vm2830_vm12, %v6223_v10  ;;  %v3315_v10 = vld [vmem:[%s10432_s10 + $0xc8] sm:$0xff] }
 0x617   : > { %6232 = vmatmul.msk.f32.vlgmr.msrb.gmra.mxu0 %vm2830_vm12, %v6231_v33 }
 0x67c   : > { %v2950_v36 = vpop.f32.mrf.mxu0 }
 0x67d   : > { %6210 = vmatmul.msk.f32.vlgmr.msra.gmra.mxu1 %vm852_vm0, %v2950_v36 }
 0x67e   : > { %3177 = vmatpush.msra.mxu1 %v6225_v3 }
 0x680   : > { %v2851_v12 = vpop.f32.mrf.mxu2 }
 0x681   : > { %v2877_v46 = vpop.f32.mrf.mxu3  ;;  %6206 = vmatmul.msk.f32.vlgmr.msrb.gmra.mxu3 %vm852_vm0, %v2851_v12 }
 0x682   : > { %6205 = vmatmul.msk.f32.vlgmr.msrb.gmra.mxu2 %vm852_vm0, %v2877_v46  ;;  %3126 = vmatpush.msrb.mxu3 %v6221_v17  ;;  %v4390_v46 = vld [vmem:[%s10435_s13] sm:$0xff]  ;;  %v3317_v17 = vld [vmem:[%s10432_s10 + $0xd8] sm:$0xff] }
 0x683   : > { %3100 = vmatpush.msrb.mxu2 %v2828_v48  ;;  %4410 = vmatpush.msra.mxu0 %v4390_v46 }
 0x684   : > { %v3052_v25 = vpop.f32.mrf.mxu0 }
 0x685   : > { %3101 = vmatpush.msrb.mxu2 %v2827_v14  ;;  %6218 = vmatmul.msk.f32.vlgmr.msrb.gmra.mxu1 %vm852_vm0, %v3052_v25 }
 0x686   : > { %3279 = vmatpush.msrb.mxu1 %v6233_v47 }
 0x68a   : > { %6212 = vmatmul.msk.f32.vlgmr.msra.gmra.mxu2 %vm2830_vm12, %v6211_v41  ;;  %v4508_v41 = vld [vmem:[%s10437_s15] sm:$0xff] }
 0x68b   : > { %3202 = vmatpush.msra.mxu2 %v2828_v48  ;;  %v3298_v48 = vld [vmem:[%s10432_s10 + $0x40] sm:$0xff] }
 0x68c   : > { %v3154_v50 = vpop.f32.mrf.mxu0 }
 0x68d   : > { %3203 = vmatpush.msra.mxu2 %v2827_v14  ;;  %6226 = vmatmul.msk.f32.vlgmr.msra.gmra.mxu1 %vm852_vm0, %v3154_v50  ;;  %v3308_v14 = vld [vmem:[%s10432_s10 + $0x90] sm:$0xff] }
 0x68e   : > { %4528 = vmatpush.msra.mxu1 %v4508_v41 }
 0x692   : > { %6220 = vmatmul.msk.f32.vlgmr.msrb.gmra.mxu2 %vm2830_vm12, %v6219_v15  ;;  %v3316_v15 = vld [vmem:[%s10432_s10 + $0xd0] sm:$0xff] }
 0x694   : > { %v3256_v19 = vpop.f32.mrf.mxu0 }
 0x695   : > { %6234 = vmatmul.msk.f32.vlgmr.msrb.gmra.mxu1 %vm852_vm0, %v3256_v19 }
 0x69a   : > { %6228 = vmatmul.msk.f32.vlgmr.msra.gmra.mxu2 %vm2830_vm12, %v6227_v8 }
 0x6fa   : > { %v2975_v54 = vpop.f32.mrf.mxu1 }
 0x702   : > { %v3077_v60 = vpop.f32.mrf.mxu1 }
 0x704   : > { %v2925_v51 = vpop.f32.mrf.mxu3 }
 0x705   : > { %v2902_v30 = vpop.f32.mrf.mxu2 }
 0x706   : > { %v2926_v2 = vadd.f32 %v2925_v51, %v2902_v30 }
 0x708   : > { %v2978_v23 = vadd.f32 %v2975_v54, %v2926_v2  ;;  %v4176_v2 = vld [vmem:[%s10433_s11] sm:$0xff] }
 0x70a   : > { %v3179_v22 = vpop.f32.mrf.mxu1 }
 0x70d   : > { %v3001_v45 = vpop.f32.mrf.mxu2 }
 0x70e   : > { %6214 = vmatmul.msk.f32.vlgmr.msra.gmra.mxu3 %vm852_vm0, %v3001_v45  ;;  %v3318_v45 = vld [vmem:[%s10432_s10 + $0xe0] sm:$0xff] }
 0x70f   : > { %3228 = vmatpush.msra.mxu3 %v6229_v38 }
 0x712   : > { %v3281_v37 = vpop.f32.mrf.mxu1 }
 0x715   : > { %v3103_v63 = vpop.f32.mrf.mxu2 }
 0x716   : > { %6222 = vmatmul.msk.f32.vlgmr.msrb.gmra.mxu3 %vm852_vm0, %v3103_v63 }
 0x71d   : > { %v3205_v29 = vpop.f32.mrf.mxu2 }
 0x71e   : > { %6230 = vmatmul.msk.f32.vlgmr.msra.gmra.mxu3 %vm852_vm0, %v3205_v29 }
 0x791   : > { %v3026_v0 = vpop.f32.mrf.mxu3 }
 0x792   : > { %v3029_v13 = vadd.f32 %v3026_v0, %v2978_v23 }
 0x794   : > { %v3080_v55 = vadd.f32 %v3077_v60, %v3029_v13 }
 0x799   : > { %v3128_v61 = vpop.f32.mrf.mxu3 }
 0x79a   : > { %v3131_v24 = vadd.f32 %v3128_v61, %v3080_v55 }
 0x79c   : > { %v3182_v35 = vadd.f32 %v3179_v22, %v3131_v24 }
 0x7a1   : > { %v3230_v5 = vpop.f32.mrf.mxu3 }
 0x7a2   : > { %v3233_v1 = vadd.f32 %v3230_v5, %v3182_v35  ;;  %v3319_v35 = vld [vmem:[%s10432_s10 + $0xe8] sm:$0xff] }
 0x7a4   : > { %v3284_v4 = vadd.f32 %v3281_v37, %v3233_v1 }
 0x7a6   : > { %v3289_v31 = vadd.f32 %v6537_v59, %v3284_v4 }
 0x7a8   : > { %6235 = vmatpush.msk.msrb.mxu2 %vm3419_vm13, %v3289_v31  ;;  %6513 = vmatpush.msk.msrb.mxu3 %vm3419_vm13, %v3289_v31 }
 0x7a9   : > { %6236 = vmatmul.msk.f32.vlgmr.msrb.gmra.mxu2 %vm3322_vm14, %v3290_v42  ;;  %6245 = vmatmul.msk.f32.vlgmr.msrb.gmra.mxu3 %vm3322_vm14, %v3299_v56 }
 0x7aa   : > { %4292 = vmatpush.msra.mxu3 %v4176_v2 }
 0x7b1   : > { %6237 = vmatmul.msk.f32.gmra.mxu2 %vm3322_vm14, %v3291_v27  ;;  %6246 = vmatmul.msk.f32.gmra.mxu3 %vm3322_vm14, %v3300_v9 }
 0x7b9   : > { %6238 = vmatmul.msk.f32.gmra.mxu2 %vm3322_vm14, %v3292_v52  ;;  %6247 = vmatmul.msk.f32.gmra.mxu3 %vm3322_vm14, %v3301_v58  ;;  %v6834_v52 = vld [vmem:[%s7030_s29] sm:$0xff] }
 0x7c1   : > { %6239 = vmatmul.msk.f32.gmra.mxu2 %vm3322_vm14, %v3293_v62  ;;  %6248 = vmatmul.msk.f32.gmra.mxu3 %vm3322_vm14, %v3302_v40 }
 0x7c9   : > { %6240 = vmatmul.msk.f32.gmra.mxu2 %vm3322_vm14, %v3294_v32  ;;  %6249 = vmatmul.msk.f32.gmra.mxu3 %vm3322_vm14, %v3303_v20 }
 0x7d1   : > { %6241 = vmatmul.msk.f32.gmra.mxu2 %vm3322_vm14, %v3295_v11  ;;  %6250 = vmatmul.msk.f32.gmra.mxu3 %vm3322_vm14, %v3304_v26 }
 0x7d9   : > { %6242 = vmatmul.msk.f32.gmra.mxu2 %vm3322_vm14, %v3296_v43  ;;  %6251 = vmatmul.msk.f32.gmra.mxu3 %vm3322_vm14, %v3305_v28  ;;  %v3320_v43 = vld [vmem:[%s10432_s10 + $0xf0] sm:$0xff] }
 0x7e1   : > { %6243 = vmatmul.msk.f32.gmra.mxu2 %vm3322_vm14, %v3297_v49  ;;  %6252 = vmatmul.msk.f32.gmra.mxu3 %vm3322_vm14, %v3306_v53 }
 0x7e9   : > { %6244 = vmatmul.msk.f32.gmra.mxu2 %vm3322_vm14, %v3298_v48  ;;  %6253 = vmatmul.msk.f32.gmra.mxu3 %vm3322_vm14, %v3307_v18 }
 0x7f1   : > { %6254 = vmatmul.msk.f32.gmra.mxu3 %vm3322_vm14, %v3308_v14 }
 0x7f9   : > { %6255 = vmatmul.msk.f32.gmra.mxu3 %vm3322_vm14, %v3309_v57 }
 0x801   : > { %6256 = vmatmul.msk.f32.gmra.mxu3 %vm3322_vm14, %v3310_v7 }
 0x809   : > { %6257 = vmatmul.msk.f32.gmra.mxu3 %vm3322_vm14, %v3311_v44 }
 0x811   : > { %6258 = vmatmul.msk.f32.gmra.mxu3 %vm3322_vm14, %v3312_v16 }
 0x819   : > { %6259 = vmatmul.msk.f32.gmra.mxu3 %vm3322_vm14, %v3313_v34  ;;  %v6835_v34 = vld [vmem:[%s7030_s29 + $0x8] sm:$0xff] }
 0x821   : > { %6260 = vmatmul.msk.f32.gmra.mxu3 %vm3322_vm14, %v3314_v21 }
 0x829   : > { %6261 = vmatmul.msk.f32.gmra.mxu3 %vm3322_vm14, %v3315_v10 }
 0x82c   : > { %v3440_v36 = vpop.f32.mrf.mxu2  ;;  %v8211_v12 = vpop.f32.mrf.mxu3 }
 0x82d   : > { %v3536_v33 = vsub.f32 0.0, %v3440_v36 }
 0x82f   : > { %v3568_v8 = vmul.f32 1.442695, %v3536_v33 }
 0x831   : > { %6542 = vpow2.f32 %v3568_v8  ;;  %6262 = vmatmul.msk.f32.gmra.mxu3 %vm3322_vm14, %v3316_v15  ;;  %v3321_v8 = vld [vmem:[%s10432_s10 + $0xf8] sm:$0xff] }
 0x834   : > { %v3443_v39 = vpop.f32.mrf.mxu2  ;;  %v8223_v25 = vpop.f32.mrf.mxu3 }
 0x835   : > { %v3537_v6 = vsub.f32 0.0, %v3443_v39 }
 0x837   : > { %v6543_v3 = vpop.eup %6542  ;;  %v3570_v50 = vmul.f32 1.442695, %v3537_v6 }
 0x838   : > { %v3632_v47 = vadd.f32 1.0, %v6543_v3 }
 0x839   : > { %6544 = vpow2.f32 %v3570_v50  ;;  %6263 = vmatmul.msk.f32.gmra.mxu3 %vm3322_vm14, %v3317_v17 }
 0x83a   : > { %6546 = vrcp.f32 %v3632_v47  ;;  %v3675_v23 = vand.u32 2147483648, %v3632_v47  ;;  %v3673_v55 = vand.u32 2147483647, %v3632_v47  ;;  %vm3669_vm1 = vweird.f32 %v3632_v47 }
 0x83c   : > { %v3446_v19 = vpop.f32.mrf.mxu2  ;;  %v8229_v30 = vpop.f32.mrf.mxu3  ;;  %v3676_v4 = vor.u32 1.1754944e-38, %v3675_v23  ;;  %vm3674_vm3 = vcmp.eq.f32.partialorder %v3673_v55, 8.507059e+37  ;;  %v3545_v55 = vsub.f32 0.0, %v8211_v12 }
 0x83d   : > { %v3538_v38 = vsub.f32 0.0, %v3446_v19 }
 0x83f   : > { %v6545_v63 = vpop.eup %6544  ;;  %v3572_v29 = vmul.f32 1.442695, %v3538_v38 }
 0x840   : > { %v6547_v54 = vpop.eup %6546  ;;  %v3633_v51 = vadd.f32 1.0, %v6545_v63 }
 0x841   : > { %v3665_v60 = vmul.f32 %v6547_v54, %v3632_v47  ;;  %6548 = vpow2.f32 %v3572_v29  ;;  %6264 = vmatmul.msk.f32.gmra.mxu3 %vm3322_vm14, %v3318_v45  ;;  %vm3670_vm15 = vweird.f32 %v6547_v54  ;;  %v6836_v29 = vld [vmem:[%s7030_s29 + $0x10] sm:$0xff] }
 0x842   : > { %6550 = vrcp.f32 %v3633_v51  ;;  %vm3671_vm2 = vmor %vm3669_vm1, %vm3670_vm15  ;;  %v3690_v32 = vand.u32 2147483648, %v3633_v51  ;;  %v3688_v26 = vand.u32 2147483647, %v3633_v51  ;;  %vm3684_vm5 = vweird.f32 %v3633_v51 }
 0x843   : > { %v3666_v0 = vsub.f32 1.0, %v3665_v60 }
 0x844   : > { %v3449_v13 = vpop.f32.mrf.mxu2  ;;  %v8238_v22 = vpop.f32.mrf.mxu3  ;;  %v3691_v14 = vor.u32 1.1754944e-38, %v3690_v32  ;;  %vm3689_vm7 = vcmp.eq.f32.partialorder %v3688_v26, 8.507059e+37 }
 0x845   : > { %v3667_v61 = vmul.f32 %v6547_v54, %v3666_v0  ;;  %v3539_v24 = vsub.f32 0.0, %v3449_v13 }
 0x847   : > { %v6549_v5 = vpop.eup %6548  ;;  %v3668_v37 = vadd.f32 %v6547_v54, %v3667_v61  ;;  %v3574_v1 = vmul.f32 1.442695, %v3539_v24 }
 0x848   : > { %v6551_v59 = vpop.eup %6550  ;;  %v3634_v31 = vadd.f32 1.0, %v6549_v5 }
 0x849   : > { %v3672_v42 = vsel %vm3671_vm2, %v6547_v54, %v3668_v37  ;;  %v3680_v56 = vmul.f32 %v6551_v59, %v3633_v51  ;;  %6552 = vpow2.f32 %v3574_v1  ;;  %6265 = vmatmul.msk.f32.gmra.mxu3 %vm3322_vm14, %v3319_v35  ;;  %vm3685_vm4 = vweird.f32 %v6551_v59 }
 0x84a   : > { %6554 = vrcp.f32 %v3634_v31  ;;  %v3677_v27 = vsel %vm3674_vm3, %v3676_v4, %v3672_v42  ;;  %vm3686_vm6 = vmor %vm3684_vm5, %vm3685_vm4  ;;  %v3705_v33 = vand.u32 2147483648, %v3634_v31  ;;  %v3703_v15 = vand.u32 2147483647, %v3634_v31 }
 0x84b   : > { %v3681_v9 = vsub.f32 1.0, %v3680_v56  ;;  %v8245_v58 = vmul.f32 %v6834_v52, %v3677_v27  ;;  %vm3699_vm9 = vweird.f32 %v3634_v31  ;;  %v6837_v56 = vld [vmem:[%s7030_s29 + $0x18] sm:$0xff] }
 0x84c   : > { %v3452_v62 = vpop.f32.mrf.mxu2  ;;  %v8247_v40 = vpop.f32.mrf.mxu3  ;;  %v3706_v47 = vor.u32 1.1754944e-38, %v3705_v33  ;;  %vm3704_vm11 = vcmp.eq.f32.partialorder %v3703_v15, 8.507059e+37 }
 0x84d   : > { %10522 = vst [vmem:[#allocation6_spill] sm:$0xff] %v8245_v58  ;;  %v3540_v20 = vsub.f32 0.0, %v3452_v62  ;;  %6300 = vmatmul.msk.f32.vlgmr.msra.gmra.mxu0 %vm852_vm0, %v8245_v58  ;;  %6332 = vmatmul.msk.f32.vlgmr.msra.gmra.mxu1 %vm852_vm0, %v8245_v58  ;;  %v3682_v11 = vmul.f32 %v6551_v59, %v3681_v9  ;;  %v3546_v9 = vsub.f32 0.0, %v8223_v25 }
 0x84f   : > { %v6553_v28 = vpop.eup %6552  ;;  %v3576_v49 = vmul.f32 1.442695, %v3540_v20  ;;  %v3683_v53 = vadd.f32 %v6551_v59, %v3682_v11 }
 0x850   : > { %v6555_v48 = vpop.eup %6554  ;;  %v8256_v18 = vadd.f32 1.0, %v6553_v28 }
 0x851   : > { %v3695_v57 = vmul.f32 %v6555_v48, %v3634_v31  ;;  %6556 = vpow2.f32 %v3576_v49  ;;  %6266 = vmatmul.msk.f32.gmra.mxu3 %vm3322_vm14, %v3320_v43  ;;  %v3687_v7 = vsel %vm3686_vm6, %v6551_v59, %v3683_v53  ;;  %vm3700_vm8 = vweird.f32 %v6555_v48 }
 0x852   : > { %6558 = vrcp.f32 %v8256_v18  ;;  %v3692_v44 = vsel %vm3689_vm7, %v3691_v14, %v3687_v7  ;;  %vm3701_vm10 = vmor %vm3699_vm9, %vm3700_vm8  ;;  %v3720_v2 = vand.u32 2147483648, %v8256_v18  ;;  %v3718_v13 = vand.u32 2147483647, %v8256_v18 }
 0x853   : > { %v3696_v16 = vsub.f32 1.0, %v3695_v57  ;;  %v8261_v21 = vmul.f32 %v6835_v34, %v3692_v44  ;;  %vm3714_vm15 = vweird.f32 %v8256_v18  ;;  %v3586_v31 = vmul.f32 1.442695, %v3545_v55 }
 0x854   : > { %v3455_v10 = vpop.f32.mrf.mxu2  ;;  %v8263_v36 = vpop.f32.mrf.mxu3  ;;  %v3721_v1 = vor.u32 1.1754944e-38, %v3720_v2  ;;  %vm3719_vm2 = vcmp.eq.f32.partialorder %v3718_v13, 8.507059e+37  ;;  %v3588_v53 = vmul.f32 1.442695, %v3546_v9 }
 0x855   : > { %10523 = vst [vmem:[#allocation10_spill] sm:$0xff] %v8261_v21  ;;  %v3541_v46 = vsub.f32 0.0, %v3455_v10  ;;  %6301 = vmatmul.msk.f32.gmra.mxu0 %vm852_vm0, %v8261_v21  ;;  %6333 = vmatmul.msk.f32.gmra.mxu1 %vm852_vm0, %v8261_v21  ;;  %v3697_v41 = vmul.f32 %v6555_v48, %v3696_v16  ;;  %v6838_v16 = vld [vmem:[%s7030_s29 + $0x20] sm:$0xff] }
 0x857   : > { %v6557_v39 = vpop.eup %6556  ;;  %v3578_v6 = vmul.f32 1.442695, %v3541_v46  ;;  %v3698_v17 = vadd.f32 %v6555_v48, %v3697_v41 }
 0x858   : > { %v6559_v3 = vpop.eup %6558  ;;  %v8272_v50 = vadd.f32 1.0, %v6557_v39 }
 0x859   : > { %v3710_v19 = vmul.f32 %v6559_v3, %v8256_v18  ;;  %6560 = vpow2.f32 %v3578_v6  ;;  %6267 = vmatmul.msk.f32.gmra.mxu3 %vm3322_vm14, %v3321_v8  ;;  %v3702_v38 = vsel %vm3701_vm10, %v6555_v48, %v3698_v17  ;;  %vm3715_vm12 = vweird.f32 %v6559_v3 }
 0x85a   : > { %6562 = vrcp.f32 %v8272_v50  ;;  %v3707_v45 = vsel %vm3704_vm11, %v3706_v47, %v3702_v38  ;;  %vm3716_vm1 = vmor %vm3714_vm15, %vm3715_vm12  ;;  %v3735_v32 = vand.u32 2147483648, %v8272_v50  ;;  %v3733_v26 = vand.u32 2147483647, %v8272_v50 }
 0x85b   : > { %v3711_v63 = vsub.f32 1.0, %v3710_v19  ;;  %v8278_v54 = vmul.f32 %v6836_v29, %v3707_v45  ;;  %vm3729_vm4 = vweird.f32 %v8272_v50  ;;  %v3547_v17 = vsub.f32 0.0, %v8229_v30 }
 0x85c   : > { %v3458_v51 = vpop.f32.mrf.mxu2  ;;  %v8280_v60 = vpop.f32.mrf.mxu3  ;;  %v3736_v18 = vor.u32 1.1754944e-38, %v3735_v32  ;;  %vm3734_vm6 = vcmp.eq.f32.partialorder %v3733_v26, 8.507059e+37 }
 0x85d   : > { %10524 = vst [vmem:[#allocation14_spill] sm:$0xff] %v8278_v54  ;;  %v3542_v0 = vsub.f32 0.0, %v3458_v51  ;;  %6302 = vmatmul.msk.f32.gmra.mxu0 %vm852_vm0, %v8278_v54  ;;  %6334 = vmatmul.msk.f32.gmra.mxu1 %vm852_vm0, %v8278_v54  ;;  %v3712_v23 = vmul.f32 %v6559_v3, %v3711_v63  ;;  %v3590_v2 = vmul.f32 1.442695, %v3547_v17 }
 0x85f   : > { %v6561_v61 = vpop.eup %6560  ;;  %v3580_v24 = vmul.f32 1.442695, %v3542_v0  ;;  %v3713_v35 = vadd.f32 %v6559_v3, %v3712_v23  ;;  %v6839_v23 = vld [vmem:[%s7030_s29 + $0x28] sm:$0xff] }
 0x860   : > { %v6563_v5 = vpop.eup %6562  ;;  %v8290_v37 = vadd.f32 1.0, %v6561_v61 }
 0x861   : > { %v3725_v59 = vmul.f32 %v6563_v5, %v8272_v50  ;;  %6564 = vpow2.f32 %v3580_v24  ;;  %6268 = vmatmul.msk.f32.vlgmr.msra.gmra.mxu3 %vm852_vm0, %v8245_v58  ;;  %v3717_v4 = vsel %vm3716_vm1, %v6559_v3, %v3713_v35  ;;  %vm3730_vm3 = vweird.f32 %v6563_v5 }
 0x862   : > { %6566 = vrcp.f32 %v8290_v37  ;;  %v3722_v12 = vsel %vm3719_vm2, %v3721_v1, %v3717_v4  ;;  %vm3731_vm5 = vmor %vm3729_vm4, %vm3730_vm3  ;;  %v3750_v46 = vand.u32 2147483648, %v8290_v37  ;;  %v3748_v39 = vand.u32 2147483647, %v8290_v37 }
 0x863   : > { %v3726_v42 = vsub.f32 1.0, %v3725_v59  ;;  %v8297_v27 = vmul.f32 %v6837_v56, %v3722_v12  ;;  %6568 = vpow2.f32 %v3586_v31  ;;  %vm3744_vm8 = vweird.f32 %v8290_v37 }
 0x864   : > { %v3461_v52 = vpop.f32.mrf.mxu2  ;;  %v8300_v62 = vpop.f32.mrf.mxu3  ;;  %v3751_v45 = vor.u32 1.1754944e-38, %v3750_v46  ;;  %vm3749_vm10 = vcmp.eq.f32.partialorder %v3748_v39, 8.507059e+37  ;;  %v3548_v1 = vsub.f32 0.0, %v8238_v22 }
 0x865   : > { %10525 = vst [vmem:[#allocation7_spill] sm:$0xff] %v8297_v27  ;;  %v3543_v20 = vsub.f32 0.0, %v3461_v52  ;;  %6303 = vmatmul.msk.f32.gmra.mxu0 %vm852_vm0, %v8297_v27  ;;  %6335 = vmatmul.msk.f32.gmra.mxu1 %vm852_vm0, %v8297_v27  ;;  %v3727_v11 = vmul.f32 %v6563_v5, %v3726_v42 }
 0x866   : > { %v3592_v52 = vmul.f32 1.442695, %v3548_v1 }
 0x867   : > { %v6565_v43 = vpop.eup %6564  ;;  %v3582_v28 = vmul.f32 1.442695, %v3543_v20  ;;  %v3728_v25 = vadd.f32 %v6563_v5, %v3727_v11  ;;  %v6840_v20 = vld [vmem:[%s7030_s29 + $0x30] sm:$0xff] }
 0x868   : > { %v6567_v49 = vpop.eup %6566  ;;  %v8309_v48 = vadd.f32 1.0, %v6565_v43 }
 0x869   : > { %v3740_v14 = vmul.f32 %v6567_v49, %v8290_v37  ;;  %6570 = vpow2.f32 %v3582_v28  ;;  %6269 = vmatmul.msk.f32.gmra.mxu3 %vm852_vm0, %v8261_v21  ;;  %v3732_v57 = vsel %vm3731_vm5, %v6563_v5, %v3728_v25  ;;  %v6569_v41 = vpop.eup %6568  ;;  %vm3745_vm7 = vweird.f32 %v6567_v49 }
 0x86a   : > { %6572 = vrcp.f32 %v8309_v48  ;;  %v3737_v7 = vsel %vm3734_vm6, %v3736_v18, %v3732_v57  ;;  %v8328_v19 = vadd.f32 1.0, %v6569_v41  ;;  %vm3746_vm9 = vmor %vm3744_vm8, %vm3745_vm7  ;;  %v3765_v55 = vand.u32 2147483648, %v8309_v48 }
 0x86b   : > { %v3741_v44 = vsub.f32 1.0, %v3740_v14  ;;  %v8316_v34 = vmul.f32 %v6838_v16, %v3737_v7  ;;  %6574 = vpow2.f32 %v3588_v53  ;;  %v3763_v35 = vand.u32 2147483647, %v8309_v48 }
 0x86c   : > { %v3464_v10 = vpop.f32.mrf.mxu2  ;;  %v8318_v33 = vpop.f32.mrf.mxu3  ;;  %vm3759_vm12 = vweird.f32 %v8309_v48  ;;  %v3766_v31 = vor.u32 1.1754944e-38, %v3765_v55  ;;  %vm3804_vm8 = vweird.f32 %v8328_v19  ;;  %v3808_v55 = vand.u32 2147483647, %v8328_v19 }
 0x86d   : > { %10526 = vst [vmem:[#allocation5_spill] sm:$0xff] %v8316_v34  ;;  %v3544_v15 = vsub.f32 0.0, %v3464_v10  ;;  %6304 = vmatmul.msk.f32.gmra.mxu0 %vm852_vm0, %v8316_v34  ;;  %6336 = vmatmul.msk.f32.gmra.mxu1 %vm852_vm0, %v8316_v34  ;;  %v3742_v8 = vmul.f32 %v6567_v49, %v3741_v44  ;;  %vm3764_vm1 = vcmp.eq.f32.partialorder %v3763_v35, 8.507059e+37 }
 0x86f   : > { %v6571_v6 = vpop.eup %6570  ;;  %v3584_v3 = vmul.f32 1.442695, %v3544_v15  ;;  %v3743_v50 = vadd.f32 %v6567_v49, %v3742_v8  ;;  %v6841_v8 = vld [vmem:[%s7030_s29 + $0x38] sm:$0xff] }
 0x870   : > { %v6573_v47 = vpop.eup %6572  ;;  %v8330_v38 = vadd.f32 1.0, %v6571_v6 }
 0x871   : > { %v3755_v63 = vmul.f32 %v6573_v47, %v8309_v48  ;;  %6576 = vpow2.f32 %v3584_v3  ;;  %6270 = vmatmul.msk.f32.gmra.mxu3 %vm852_vm0, %v8278_v54  ;;  %v3747_v29 = vsel %vm3746_vm9, %v6567_v49, %v3743_v50  ;;  %v6575_v30 = vpop.eup %6574  ;;  %vm3760_vm11 = vweird.f32 %v6573_v47 }
 0x872   : > { %6578 = vrcp.f32 %v8330_v38  ;;  %v3752_v51 = vsel %vm3749_vm10, %v3751_v45, %v3747_v29  ;;  %v8348_v5 = vadd.f32 1.0, %v6575_v30  ;;  %vm3761_vm15 = vmor %vm3759_vm12, %vm3760_vm11  ;;  %v3780_v43 = vand.u32 2147483648, %v8330_v38 }
 0x873   : > { %v3756_v0 = vsub.f32 1.0, %v3755_v63  ;;  %v8337_v13 = vmul.f32 %v6839_v23, %v3752_v51  ;;  %6580 = vrcp.f32 %v8328_v19  ;;  %v3778_v53 = vand.u32 2147483647, %v8330_v38 }
 0x874   : > { %v8340_v61 = vpop.f32.mrf.mxu3  ;;  %6582 = vpow2.f32 %v3590_v2  ;;  %v3549_v48 = vsub.f32 0.0, %v8247_v40  ;;  %vm3774_vm3 = vweird.f32 %v8330_v38  ;;  %v3781_v7 = vor.u32 1.1754944e-38, %v3780_v43 }
 0x875   : > { %10527 = vst [vmem:[#allocation9_spill] sm:$0xff] %v8337_v13  ;;  %6305 = vmatmul.msk.f32.gmra.mxu0 %vm852_vm0, %v8337_v13  ;;  %6337 = vmatmul.msk.f32.gmra.mxu1 %vm852_vm0, %v8337_v13  ;;  %v3757_v24 = vmul.f32 %v6573_v47, %v3756_v0  ;;  %vm3779_vm5 = vcmp.eq.f32.partialorder %v3778_v53, 8.507059e+37  ;;  %v3550_v63 = vsub.f32 0.0, %v8263_v36  ;;  %v3810_v0 = vand.u32 2147483648, %v8328_v19 }
 0x876   : > { %v3594_v40 = vmul.f32 1.442695, %v3549_v48  ;;  %v3825_v43 = vand.u32 2147483648, %v8348_v5  ;;  %v6843_v48 = vld [vmem:[%s7030_s29 + $0x48] sm:$0xff] }
 0x877   : > { %v6577_v37 = vpop.eup %6576  ;;  %v3758_v59 = vadd.f32 %v6573_v47, %v3757_v24  ;;  %v3596_v1 = vmul.f32 1.442695, %v3550_v63 }
 0x878   : > { %v6579_v4 = vpop.eup %6578  ;;  %v8352_v12 = vadd.f32 1.0, %v6577_v37 }
 0x879   : > { %v3770_v42 = vmul.f32 %v6579_v4, %v8330_v38  ;;  %6271 = vmatmul.msk.f32.gmra.mxu3 %vm852_vm0, %v8297_v27  ;;  %v3762_v56 = vsel %vm3761_vm15, %v6573_v47, %v3758_v59  ;;  %v8357_v9 = vpop.eup %6580  ;;  %vm3775_vm2 = vweird.f32 %v6579_v4  ;;  %v6842_v59 = vld [vmem:[%s7030_s29 + $0x40] sm:$0xff]  ;;  %vm3809_vm15 = vcmp.eq.f32.partialorder %v3808_v55, 8.507059e+37 }
 0x87a   : > { %6584 = vrcp.f32 %v8352_v12  ;;  %v3767_v22 = vsel %vm3764_vm1, %v3766_v31, %v3762_v56  ;;  %v6583_v28 = vpop.eup %6582  ;;  %v3800_v25 = vmul.f32 %v8357_v9, %v8328_v19  ;;  %vm3776_vm4 = vmor %vm3774_vm3, %vm3775_vm2  ;;  %v3795_v3 = vand.u32 2147483648, %v8352_v12 }
 0x87b   : > { %6586 = vrcp.f32 %v8348_v5  ;;  %v3771_v32 = vsub.f32 1.0, %v3770_v42  ;;  %v8362_v11 = vmul.f32 %v6840_v20, %v3767_v22  ;;  %v8376_v57 = vadd.f32 1.0, %v6583_v28 }
 0x87c   : > { %v8364_v26 = vpop.f32.mrf.mxu3  ;;  %6588 = vpow2.f32 %v3592_v52  ;;  %v3801_v16 = vsub.f32 1.0, %v3800_v25  ;;  %v3793_v38 = vand.u32 2147483647, %v8352_v12  ;;  %vm3789_vm7 = vweird.f32 %v8352_v12 }
 0x87d   : > { %10528 = vst [vmem:[#allocation13_spill] sm:$0xff] %v8362_v11  ;;  %6306 = vmatmul.msk.f32.gmra.mxu0 %vm852_vm0, %v8362_v11  ;;  %6338 = vmatmul.msk.f32.gmra.mxu1 %vm852_vm0, %v8362_v11  ;;  %v3772_v49 = vmul.f32 %v6579_v4, %v3771_v32  ;;  %6590 = vrcp.f32 %v8376_v57  ;;  %vm3805_vm9 = vweird.f32 %v8357_v9  ;;  %v3796_v2 = vor.u32 1.1754944e-38, %v3795_v3 }
 0x87e   : > { %v3802_v45 = vmul.f32 %v8357_v9, %v3801_v16  ;;  %6592 = vpow2.f32 %v3594_v40  ;;  %vm3794_vm11 = vcmp.eq.f32.partialorder %v3793_v38, 8.507059e+37  ;;  %vm8411_vm12 = vmor %vm3804_vm8, %vm3805_vm9  ;;  %v3811_v42 = vor.u32 1.1754944e-38, %v3810_v0  ;;  %v6844_v38 = vld [vmem:[%s7030_s29 + $0x50] sm:$0xff] }
 0x87f   : > { %v3773_v18 = vadd.f32 %v6579_v4, %v3772_v49  ;;  %v3551_v52 = vsub.f32 0.0, %v8280_v60  ;;  %vm3819_vm1 = vweird.f32 %v8348_v5  ;;  %v3823_v25 = vand.u32 2147483647, %v8348_v5 }
 0x880   : > { %v6585_v14 = vpop.eup %6584  ;;  %v3803_v36 = vadd.f32 %v8357_v9, %v3802_v45  ;;  %v3552_v40 = vsub.f32 0.0, %v8300_v62  ;;  %v3838_v3 = vand.u32 2147483647, %v8376_v57 }
 0x881   : > { %v8378_v44 = vpop.eup %6586  ;;  %v3785_v10 = vmul.f32 %v6585_v14, %v8352_v12  ;;  %6272 = vmatmul.msk.f32.gmra.mxu3 %vm852_vm0, %v8316_v34  ;;  %v3777_v46 = vsel %vm3776_vm4, %v6579_v4, %v3773_v18  ;;  %vm3790_vm6 = vweird.f32 %v6585_v14  ;;  %v3598_v53 = vmul.f32 1.442695, %v3551_v52 }
 0x882   : > { %v3782_v41 = vsel %vm3779_vm5, %v3781_v7, %v3777_v46  ;;  %v3815_v6 = vmul.f32 %v8378_v44, %v8348_v5  ;;  %v6589_v50 = vpop.eup %6588  ;;  %vm3791_vm10 = vmor %vm3789_vm7, %vm3790_vm6  ;;  %v3807_v56 = vsel %vm8411_vm12, %v8357_v9, %v3803_v36  ;;  %vm3820_vm2 = vweird.f32 %v8378_v44 }
 0x883   : > { %v3786_v15 = vsub.f32 1.0, %v3785_v10  ;;  %v8384_v39 = vmul.f32 %v6841_v8, %v3782_v41  ;;  %v8402_v51 = vadd.f32 1.0, %v6589_v50  ;;  %v8409_v24 = vpop.eup %6590  ;;  %v3812_v20 = vsel %vm3809_vm15, %v3811_v42, %v3807_v56  ;;  %vm8443_vm3 = vmor %vm3819_vm1, %vm3820_vm2  ;;  %v6845_v42 = vld [vmem:[%s7030_s29 + $0x58] sm:$0xff] }
 0x884   : > { %v8389_v17 = vpop.f32.mrf.mxu3  ;;  %v3816_v30 = vsub.f32 1.0, %v3815_v6  ;;  %v6593_v12 = vpop.eup %6592  ;;  %v3830_v19 = vmul.f32 %v8409_v24, %v8376_v57  ;;  %v8448_v18 = vmul.f32 %v6843_v48, %v3812_v20  ;;  %v3826_v7 = vor.u32 1.1754944e-38, %v3825_v43 }
 0x885   : > { %10529 = vst [vmem:[#allocation8_spill] sm:$0xff] %v8384_v39  ;;  %6307 = vmatmul.msk.f32.gmra.mxu0 %vm852_vm0, %v8384_v39  ;;  %6339 = vmatmul.msk.f32.gmra.mxu1 %vm852_vm0, %v8384_v39  ;;  %v3787_v47 = vmul.f32 %v6585_v14, %v3786_v15  ;;  %6594 = vrcp.f32 %v8402_v51  ;;  %v8434_v32 = vadd.f32 1.0, %v6593_v12  ;;  %vm3824_vm4 = vcmp.eq.f32.partialorder %v3823_v25, 8.507059e+37 }
 0x886   : > { %v3817_v22 = vmul.f32 %v8378_v44, %v3816_v30  ;;  %6596 = vpow2.f32 %v3596_v1  ;;  %v3831_v28 = vsub.f32 1.0, %v3830_v19  ;;  %10535 = vst [vmem:[#allocation11_spill] sm:$0xff] %v8448_v18  ;;  %vm3834_vm5 = vweird.f32 %v8376_v57 }
 0x887   : > { %v3788_v29 = vadd.f32 %v6585_v14, %v3787_v47  ;;  %6598 = vrcp.f32 %v8434_v32  ;;  %vm3835_vm6 = vweird.f32 %v8409_v24  ;;  %v3840_v8 = vand.u32 2147483648, %v8376_v57 }
 0x888   : > { %v3818_v9 = vadd.f32 %v8378_v44, %v3817_v22  ;;  %v3832_v46 = vmul.f32 %v8409_v24, %v3831_v28  ;;  %6600 = vpow2.f32 %v3598_v53  ;;  %vm8475_vm7 = vmor %vm3834_vm5, %vm3835_vm6  ;;  %v3600_v47 = vmul.f32 1.442695, %v3552_v40 }
 0x889   : > { %6273 = vmatmul.msk.f32.gmra.mxu3 %vm852_vm0, %v8337_v13  ;;  %v3792_v23 = vsel %vm3791_vm10, %v6585_v14, %v3788_v29  ;;  %v3841_v29 = vor.u32 1.1754944e-38, %v3840_v8  ;;  %vm3839_vm8 = vcmp.eq.f32.partialorder %v3838_v3, 8.507059e+37  ;;  %vm3849_vm9 = vweird.f32 %v8402_v51 }
 0x88a   : > { %v3797_v35 = vsel %vm3794_vm11, %v3796_v2, %v3792_v23  ;;  %v3822_v5 = vsel %vm8443_vm3, %v8378_v44, %v3818_v9  ;;  %v3833_v44 = vadd.f32 %v8409_v24, %v3832_v46  ;;  %v3553_v23 = vsub.f32 0.0, %v8318_v33 }
 0x88b   : > { %v8416_v4 = vmul.f32 %v6842_v59, %v3797_v35  ;;  %v8441_v49 = vpop.eup %6594  ;;  %v3827_v15 = vsel %vm3824_vm4, %v3826_v7, %v3822_v5  ;;  %v3855_v35 = vand.u32 2147483648, %v8402_v51  ;;  %v3853_v1 = vand.u32 2147483647, %v8402_v51 }
 0x88c   : > { %v8419_v31 = vpop.f32.mrf.mxu3  ;;  %v6597_v16 = vpop.eup %6596  ;;  %v3845_v10 = vmul.f32 %v8441_v49, %v8402_v51  ;;  %v8480_v45 = vmul.f32 %v6844_v38, %v3827_v15  ;;  %v3837_v57 = vsel %vm8475_vm7, %v8409_v24, %v3833_v44  ;;  %vm3850_vm10 = vweird.f32 %v8441_v49 }
 0x88d   : > { %10532 = vst [vmem:[#allocation12_spill] sm:$0xff] %v8416_v4  ;;  %6308 = vmatmul.msk.f32.gmra.mxu0 %vm852_vm0, %v8416_v4  ;;  %6340 = vmatmul.msk.f32.gmra.mxu1 %vm852_vm0, %v8416_v4  ;;  %v8466_v41 = vadd.f32 1.0, %v6597_v16  ;;  %v8473_v50 = vpop.eup %6598  ;;  %v3842_v55 = vsel %vm3839_vm8, %v3841_v29, %v3837_v57  ;;  %vm8507_vm11 = vmor %vm3849_vm9, %vm3850_vm10  ;;  %v3602_v12 = vmul.f32 1.442695, %v3553_v23  ;;  %v3856_v22 = vor.u32 1.1754944e-38, %v3855_v35  ;;  %v6847_v57 = vld [vmem:[%s7030_s29 + $0x68] sm:$0xff] }
 0x88e   : > { %v3846_v6 = vsub.f32 1.0, %v3845_v10  ;;  %10538 = vst [vmem:[#allocation16_spill] sm:$0xff] %v8480_v45  ;;  %v6601_v30 = vpop.eup %6600  ;;  %v3860_v2 = vmul.f32 %v8473_v50, %v8434_v32  ;;  %v8512_v19 = vmul.f32 %v6845_v42, %v3842_v55  ;;  %vm3854_vm12 = vcmp.eq.f32.partialorder %v3853_v1, 8.507059e+37  ;;  %v6846_v10 = vld [vmem:[%s7030_s29 + $0x60] sm:$0xff] }
 0x88f   : > { %6602 = vrcp.f32 %v8466_v41  ;;  %v8498_v36 = vadd.f32 1.0, %v6601_v30  ;;  %v3554_v28 = vsub.f32 0.0, %v8340_v61  ;;  %vm3864_vm15 = vweird.f32 %v8434_v32 }
 0x890   : > { %v3847_v0 = vmul.f32 %v8441_v49, %v3846_v6  ;;  %6604 = vpow2.f32 %v3600_v47  ;;  %v3861_v37 = vsub.f32 1.0, %v3860_v2  ;;  %10541 = vst [vmem:[#allocation15_spill] sm:$0xff] %v8512_v19  ;;  %vm3865_vm1 = vweird.f32 %v8473_v50 }
 0x891   : > { %6274 = vmatmul.msk.f32.gmra.mxu3 %vm852_vm0, %v8362_v11  ;;  %6606 = vrcp.f32 %v8498_v36  ;;  %v3870_v60 = vand.u32 2147483648, %v8434_v32  ;;  %v3868_v48 = vand.u32 2147483647, %v8434_v32  ;;  %vm8539_vm2 = vmor %vm3864_vm15, %vm3865_vm1  ;;  %v3604_v16 = vmul.f32 1.442695, %v3554_v28 }
 0x892   : > { %v3848_v24 = vadd.f32 %v8441_v49, %v3847_v0  ;;  %v3862_v43 = vmul.f32 %v8473_v50, %v3861_v37  ;;  %6608 = vpow2.f32 %v3602_v12  ;;  %v3555_v44 = vsub.f32 0.0, %v8364_v26 }
 0x893   : > { %v3871_v40 = vor.u32 1.1754944e-38, %v3870_v60  ;;  %vm3869_vm3 = vcmp.eq.f32.partialorder %v3868_v48, 8.507059e+37  ;;  %vm3879_vm4 = vweird.f32 %v8466_v41  ;;  %v3885_v47 = vand.u32 2147483648, %v8466_v41 }
 0x894   : > { %v8451_v14 = vpop.f32.mrf.mxu3  ;;  %v3852_v51 = vsel %vm8507_vm11, %v8441_v49, %v3848_v24  ;;  %v3863_v49 = vadd.f32 %v8473_v50, %v3862_v43  ;;  %v3883_v29 = vand.u32 2147483647, %v8466_v41  ;;  %v3606_v2 = vmul.f32 1.442695, %v3555_v44  ;;  %v6848_v43 = vld [vmem:[%s7030_s29 + $0x70] sm:$0xff]  ;;  %v6849_v44 = vld [vmem:[%s7030_s29 + $0x78] sm:$0xff] }
 0x895   : > { %6309 = vmatmul.msk.f32.gmra.mxu0 %vm852_vm0, %v8448_v18  ;;  %6341 = vmatmul.msk.f32.gmra.mxu1 %vm852_vm0, %v8448_v18  ;;  %v8505_v59 = vpop.eup %6602  ;;  %v3857_v25 = vsel %vm3854_vm12, %v3856_v22, %v3852_v51  ;;  %v3886_v55 = vor.u32 1.1754944e-38, %v3885_v47  ;;  %v3556_v1 = vsub.f32 0.0, %v8389_v17  ;;  %vm3894_vm8 = vweird.f32 %v8498_v36 }
 0x896   : > { %v6605_v52 = vpop.eup %6604  ;;  %v3875_v20 = vmul.f32 %v8505_v59, %v8466_v41  ;;  %v8544_v5 = vmul.f32 %v6846_v10, %v3857_v25  ;;  %v3867_v32 = vsel %vm8539_vm2, %v8473_v50, %v3863_v49  ;;  %vm3880_vm5 = vweird.f32 %v8505_v59 }
 0x897   : > { %v8530_v9 = vadd.f32 1.0, %v6605_v52  ;;  %v8537_v7 = vpop.eup %6606  ;;  %v3872_v62 = vsel %vm3869_vm3, %v3871_v40, %v3867_v32  ;;  %vm8571_vm6 = vmor %vm3879_vm4, %vm3880_vm5  ;;  %vm3884_vm7 = vcmp.eq.f32.partialorder %v3883_v29, 8.507059e+37  ;;  %v3900_v42 = vand.u32 2147483648, %v8498_v36 }
 0x898   : > { %v3876_v53 = vsub.f32 1.0, %v3875_v20  ;;  %10544 = vst [vmem:[#allocation17_spill] sm:$0xff] %v8544_v5  ;;  %v6609_v15 = vpop.eup %6608  ;;  %v3890_v8 = vmul.f32 %v8537_v7, %v8498_v36  ;;  %v8576_v0 = vmul.f32 %v6847_v57, %v3872_v62  ;;  %vm3895_vm9 = vweird.f32 %v8537_v7 }
 0x899   : > { %6275 = vmatmul.msk.f32.gmra.mxu3 %vm852_vm0, %v8384_v39  ;;  %6610 = vrcp.f32 %v8530_v9  ;;  %v8562_v3 = vadd.f32 1.0, %v6609_v15  ;;  %v3898_v52 = vand.u32 2147483647, %v8498_v36  ;;  %vm8603_vm10 = vmor %vm3894_vm8, %vm3895_vm9  ;;  %v3608_v51 = vmul.f32 1.442695, %v3556_v1  ;;  %v6852_v1 = vld [vmem:[%s7030_s29 + $0x90] sm:$0xff] }
 0x89a   : > { %v3877_v6 = vmul.f32 %v8505_v59, %v3876_v53  ;;  %6612 = vpow2.f32 %v3604_v16  ;;  %v3891_v38 = vsub.f32 1.0, %v3890_v8  ;;  %10547 = vst [vmem:[#allocation18_spill] sm:$0xff] %v8576_v0  ;;  %v3901_v60 = vor.u32 1.1754944e-38, %v3900_v42  ;;  %v6850_v42 = vld [vmem:[%s7030_s29 + $0x80] sm:$0xff] }
 0x89b   : > { %6614 = vrcp.f32 %v8562_v3  ;;  %vm3899_vm11 = vcmp.eq.f32.partialorder %v3898_v52, 8.507059e+37  ;;  %v3557_v61 = vsub.f32 0.0, %v8419_v31  ;;  %vm3909_vm12 = vweird.f32 %v8530_v9 }
 0x89c   : > { %v8483_v63 = vpop.f32.mrf.mxu3  ;;  %v3878_v50 = vadd.f32 %v8505_v59, %v3877_v6  ;;  %v3892_v24 = vmul.f32 %v8537_v7, %v3891_v38  ;;  %6616 = vpow2.f32 %v3606_v2  ;;  %v3915_v40 = vand.u32 2147483648, %v8530_v9 }
 0x89d   : > { %6310 = vmatmul.msk.f32.gmra.mxu0 %vm852_vm0, %v8480_v45  ;;  %6342 = vmatmul.msk.f32.gmra.mxu1 %vm852_vm0, %v8480_v45  ;;  %v3913_v8 = vand.u32 2147483647, %v8530_v9  ;;  %v3610_v6 = vmul.f32 1.442695, %v3557_v61  ;;  %v3558_v2 = vsub.f32 0.0, %v8451_v14  ;;  %vm3924_vm3 = vweird.f32 %v8562_v3 }
 0x89e   : > { %v3882_v41 = vsel %vm8571_vm6, %v8505_v59, %v3878_v50  ;;  %v3893_v59 = vadd.f32 %v8537_v7, %v3892_v24  ;;  %v3916_v38 = vor.u32 1.1754944e-38, %v3915_v40 }
 0x89f   : > { %v8569_v30 = vpop.eup %6610  ;;  %v3887_v12 = vsel %vm3884_vm7, %v3886_v55, %v3882_v41  ;;  %vm3914_vm2 = vcmp.eq.f32.partialorder %v3913_v8, 8.507059e+37  ;;  %v3928_v41 = vand.u32 2147483647, %v8562_v3 }
 0x8a0   : > { %v6613_v35 = vpop.eup %6612  ;;  %v3905_v37 = vmul.f32 %v8569_v30, %v8530_v9  ;;  %v8608_v28 = vmul.f32 %v6848_v43, %v3887_v12  ;;  %v3897_v36 = vsel %vm8603_vm10, %v8537_v7, %v3893_v59  ;;  %vm3910_vm15 = vweird.f32 %v8569_v30 }
 0x8a1   : > { %6276 = vmatmul.msk.f32.gmra.mxu3 %vm852_vm0, %v8416_v4  ;;  %v8594_v33 = vadd.f32 1.0, %v6613_v35  ;;  %v8601_v20 = vpop.eup %6614  ;;  %v3902_v10 = vsel %vm3899_vm11, %v3901_v60, %v3897_v36  ;;  %vm8635_vm1 = vmor %vm3909_vm12, %vm3910_vm15  ;;  %v3930_v35 = vand.u32 2147483648, %v8562_v3  ;;  %v3612_v12 = vmul.f32 1.442695, %v3558_v2 }
 0x8a2   : > { %v3906_v22 = vsub.f32 1.0, %v3905_v37  ;;  %10550 = vst [vmem:[#allocation19_spill] sm:$0xff] %v8608_v28  ;;  %v6617_v53 = vpop.eup %6616  ;;  %v3920_v49 = vmul.f32 %v8601_v20, %v8562_v3  ;;  %v8640_v62 = vmul.f32 %v6849_v44, %v3902_v10  ;;  %vm3925_vm4 = vweird.f32 %v8601_v20 }
 0x8a3   : > { %6618 = vrcp.f32 %v8594_v33  ;;  %v8626_v16 = vadd.f32 1.0, %v6617_v53  ;;  %vm8669_vm5 = vmor %vm3924_vm3, %vm3925_vm4  ;;  %v3931_v52 = vor.u32 1.1754944e-38, %v3930_v35  ;;  %vm3929_vm6 = vcmp.eq.f32.partialorder %v3928_v41, 8.507059e+37 }
 0x8a4   : > { %v8515_v56 = vpop.f32.mrf.mxu3  ;;  %v3907_v48 = vmul.f32 %v8569_v30, %v3906_v22  ;;  %6620 = vpow2.f32 %v3608_v51  ;;  %v3921_v15 = vsub.f32 1.0, %v3920_v49  ;;  %10553 = vst [vmem:[#allocation20_spill] sm:$0xff] %v8640_v62  ;;  %v3559_v60 = vsub.f32 0.0, %v8483_v63 }
 0x8a5   : > { %6311 = vmatmul.msk.f32.gmra.mxu0 %vm852_vm0, %v8512_v19  ;;  %6343 = vmatmul.msk.f32.gmra.mxu1 %vm852_vm0, %v8512_v19  ;;  %6622 = vrcp.f32 %v8626_v16  ;;  %vm3939_vm7 = vweird.f32 %v8594_v33  ;;  %v3945_v36 = vand.u32 2147483648, %v8594_v33  ;;  %v3943_v61 = vand.u32 2147483647, %v8594_v33 }
 0x8a6   : > { %v3908_v7 = vadd.f32 %v8569_v30, %v3907_v48  ;;  %v3922_v26 = vmul.f32 %v8601_v20, %v3921_v15  ;;  %6624 = vpow2.f32 %v3610_v6  ;;  %v3614_v15 = vmul.f32 1.442695, %v3559_v60 }
 0x8a7   : > { %v3946_v6 = vor.u32 1.1754944e-38, %v3945_v36  ;;  %vm3944_vm10 = vcmp.eq.f32.partialorder %v3943_v61, 8.507059e+37  ;;  %vm3954_vm11 = vweird.f32 %v8626_v16  ;;  %v3960_v2 = vand.u32 2147483648, %v8626_v16 }
 0x8a8   : > { %v3912_v9 = vsel %vm8635_vm1, %v8569_v30, %v3908_v7  ;;  %v3923_v30 = vadd.f32 %v8601_v20, %v3922_v26  ;;  %v6851_v7 = vld [vmem:[%s7030_s29 + $0x88] sm:$0xff]  ;;  %v3958_v35 = vand.u32 2147483647, %v8626_v16 }
 0x8a9   : > { %6277 = vmatmul.msk.f32.gmra.mxu3 %vm852_vm0, %v8448_v18  ;;  %v8633_v32 = vpop.eup %6618  ;;  %v3917_v55 = vsel %vm3914_vm2, %v3916_v38, %v3912_v9 }
 0x8aa   : > { %v6621_v50 = vpop.eup %6620  ;;  %v3935_v29 = vmul.f32 %v8633_v32, %v8594_v33  ;;  %v8674_v22 = vmul.f32 %v6850_v42, %v3917_v55  ;;  %v3927_v51 = vsel %vm8669_vm5, %v8601_v20, %v3923_v30  ;;  %vm3940_vm8 = vweird.f32 %v8633_v32 }
 0x8ab   : > { %v8658_v57 = vadd.f32 1.0, %v6621_v50  ;;  %v8665_v24 = vpop.eup %6622  ;;  %v3932_v49 = vsel %vm3929_vm6, %v3931_v52, %v3927_v51  ;;  %vm8703_vm9 = vmor %vm3939_vm7, %vm3940_vm8  ;;  %v3961_v52 = vor.u32 1.1754944e-38, %v3960_v2  ;;  %vm3959_vm1 = vcmp.eq.f32.partialorder %v3958_v35, 8.507059e+37 }
 0x8ac   : > { %v8547_v46 = vpop.f32.mrf.mxu3  ;;  %v3936_v37 = vsub.f32 1.0, %v3935_v29  ;;  %10556 = vst [vmem:[#allocation21_spill] sm:$0xff] %v8674_v22  ;;  %v6625_v17 = vpop.eup %6624  ;;  %v3950_v3 = vmul.f32 %v8665_v24, %v8626_v16  ;;  %v8708_v8 = vmul.f32 %v6851_v7, %v3932_v49  ;;  %v3560_v29 = vsub.f32 0.0, %v8515_v56  ;;  %v6853_v7 = vld [vmem:[%s7030_s29 + $0x98] sm:$0xff] }
 0x8ad   : > { %6312 = vmatmul.msk.f32.gmra.mxu0 %vm852_vm0, %v8544_v5  ;;  %6344 = vmatmul.msk.f32.gmra.mxu1 %vm852_vm0, %v8544_v5  ;;  %6626 = vrcp.f32 %v8658_v57  ;;  %v8692_v53 = vadd.f32 1.0, %v6625_v17  ;;  %vm3955_vm12 = vweird.f32 %v8665_v24  ;;  %vm3969_vm2 = vweird.f32 %v8658_v57 }
 0x8ae   : > { %v3937_v43 = vmul.f32 %v8633_v32, %v3936_v37  ;;  %6628 = vpow2.f32 %v3612_v12  ;;  %v3951_v48 = vsub.f32 1.0, %v3950_v3  ;;  %10559 = vst [vmem:[#allocation22_spill] sm:$0xff] %v8708_v8  ;;  %vm8737_vm15 = vmor %vm3954_vm11, %vm3955_vm12  ;;  %v3616_v41 = vmul.f32 1.442695, %v3560_v29 }
 0x8af   : > { %6630 = vrcp.f32 %v8692_v53  ;;  %v3975_v36 = vand.u32 2147483648, %v8658_v57  ;;  %vm3984_vm6 = vweird.f32 %v8692_v53  ;;  %v3988_v30 = vand.u32 2147483647, %v8692_v53 }
 0x8b0   : > { %v3938_v20 = vadd.f32 %v8633_v32, %v3937_v43  ;;  %v3952_v50 = vmul.f32 %v8665_v24, %v3951_v48  ;;  %6632 = vpow2.f32 %v3614_v15  ;;  %v3561_v43 = vsub.f32 0.0, %v8547_v46 }
 0x8b1   : > { %6278 = vmatmul.msk.f32.gmra.mxu3 %vm852_vm0, %v8480_v45 }
 0x8b2   : > { %v3942_v38 = vsel %vm8703_vm9, %v8633_v32, %v3938_v20  ;;  %v3953_v32 = vadd.f32 %v8665_v24, %v3952_v50  ;;  %v3973_v20 = vand.u32 2147483647, %v8658_v57  ;;  %v3618_v15 = vmul.f32 1.442695, %v3561_v43 }
 0x8b3   : > { %v8699_v10 = vpop.eup %6626  ;;  %v3947_v26 = vsel %vm3944_vm10, %v3946_v6, %v3942_v38  ;;  %vm3989_vm9 = vcmp.eq.f32.partialorder %v3988_v30, 8.507059e+37 }
 0x8b4   : > { %v8579_v23 = vpop.f32.mrf.mxu3  ;;  %v6629_v44 = vpop.eup %6628  ;;  %v3965_v33 = vmul.f32 %v8699_v10, %v8658_v57  ;;  %v8742_v12 = vmul.f32 %v6852_v1, %v3947_v26  ;;  %v3957_v3 = vsel %vm8737_vm15, %v8665_v24, %v3953_v32  ;;  %vm3970_vm3 = vweird.f32 %v8699_v10 }
 0x8b5   : > { %6313 = vmatmul.msk.f32.gmra.mxu0 %vm852_vm0, %v8576_v0  ;;  %6345 = vmatmul.msk.f32.gmra.mxu1 %vm852_vm0, %v8576_v0  ;;  %v8726_v9 = vadd.f32 1.0, %v6629_v44  ;;  %v8733_v37 = vpop.eup %6630  ;;  %v3962_v49 = vsel %vm3959_vm1, %v3961_v52, %v3957_v3  ;;  %vm8771_vm4 = vmor %vm3969_vm2, %vm3970_vm3  ;;  %vm3974_vm5 = vcmp.eq.f32.partialorder %v3973_v20, 8.507059e+37  ;;  %v3562_v26 = vsub.f32 0.0, %v8579_v23 }
 0x8b6   : > { %v3966_v55 = vsub.f32 1.0, %v3965_v33  ;;  %10562 = vst [vmem:[#allocation23_spill] sm:$0xff] %v8742_v12  ;;  %v6633_v17 = vpop.eup %6632  ;;  %v3980_v16 = vmul.f32 %v8733_v37, %v8692_v53  ;;  %v8776_v6 = vmul.f32 %v6853_v7, %v3962_v49  ;;  %v3976_v33 = vor.u32 1.1754944e-38, %v3975_v36 }
 0x8b7   : > { %6634 = vrcp.f32 %v8726_v9  ;;  %v8760_v60 = vadd.f32 1.0, %v6633_v17  ;;  %vm3985_vm7 = vweird.f32 %v8733_v37  ;;  %v3990_v32 = vand.u32 2147483648, %v8692_v53  ;;  %v6854_v17 = vld [vmem:[%s7030_s29 + $0xa0] sm:$0xff] }
 0x8b8   : > { %v3967_v51 = vmul.f32 %v8699_v10, %v3966_v55  ;;  %6636 = vpow2.f32 %v3616_v41  ;;  %v3981_v48 = vsub.f32 1.0, %v3980_v16  ;;  %10565 = vst [vmem:[#allocation24_spill] sm:$0xff] %v8776_v6  ;;  %vm8805_vm8 = vmor %vm3984_vm6, %vm3985_vm7  ;;  %v3620_v52 = vmul.f32 1.442695, %v3562_v26 }
 0x8b9   : > { %6279 = vmatmul.msk.f32.gmra.mxu3 %vm852_vm0, %v8512_v19  ;;  %6638 = vrcp.f32 %v8760_v60  ;;  %vm3999_vm10 = vweird.f32 %v8726_v9  ;;  %v4005_v40 = vand.u32 2147483648, %v8726_v9  ;;  %v4003_v7 = vand.u32 2147483647, %v8726_v9 }
 0x8ba   : > { %v3968_v24 = vadd.f32 %v8699_v10, %v3967_v51  ;;  %v3982_v29 = vmul.f32 %v8733_v37, %v3981_v48  ;;  %6640 = vpow2.f32 %v3618_v15  ;;  %v3991_v51 = vor.u32 1.1754944e-38, %v3990_v32 }
 0x8bb   : > { %vm4004_vm15 = vcmp.eq.f32.partialorder %v4003_v7, 8.507059e+37  ;;  %vm4014_vm1 = vweird.f32 %v8760_v60 }
 0x8bc   : > { %v8611_v25 = vpop.f32.mrf.mxu3  ;;  %v3972_v50 = vsel %vm8771_vm4, %v8699_v10, %v3968_v24  ;;  %v3983_v10 = vadd.f32 %v8733_v37, %v3982_v29 }
 0x8bd   : > { %6314 = vmatmul.msk.f32.gmra.mxu0 %vm852_vm0, %v8608_v28  ;;  %6346 = vmatmul.msk.f32.gmra.mxu1 %vm852_vm0, %v8608_v28  ;;  %v8767_v61 = vpop.eup %6634  ;;  %v3977_v55 = vsel %vm3974_vm5, %v3976_v33, %v3972_v50  ;;  %v3563_v48 = vsub.f32 0.0, %v8611_v25  ;;  %v6855_v50 = vld [vmem:[%s7030_s29 + $0xa8] sm:$0xff] }
 0x8be   : > { %v6637_v38 = vpop.eup %6636  ;;  %v3995_v57 = vmul.f32 %v8767_v61, %v8726_v9  ;;  %v8810_v16 = vmul.f32 %v6854_v17, %v3977_v55  ;;  %v3987_v49 = vsel %vm8805_vm8, %v8733_v37, %v3983_v10  ;;  %vm4000_vm11 = vweird.f32 %v8767_v61 }
 0x8bf   : > { %v8794_v2 = vadd.f32 1.0, %v6637_v38  ;;  %v8801_v41 = vpop.eup %6638  ;;  %v3992_v20 = vsel %vm3989_vm9, %v3991_v51, %v3987_v49  ;;  %vm8839_vm12 = vmor %vm3999_vm10, %vm4000_vm11  ;;  %v4006_v55 = vor.u32 1.1754944e-38, %v4005_v40  ;;  %v4020_v17 = vand.u32 2147483648, %v8760_v60 }
 0x8c0   : > { %v3996_v35 = vsub.f32 1.0, %v3995_v57  ;;  %10568 = vst [vmem:[#allocation25_spill] sm:$0xff] %v8810_v16  ;;  %v6641_v43 = vpop.eup %6640  ;;  %v4010_v53 = vmul.f32 %v8801_v41, %v8760_v60  ;;  %v3622_v57 = vmul.f32 1.442695, %v3563_v48  ;;  %v8844_v29 = vmul.f32 %v6855_v50, %v3992_v20  ;;  %v6856_v48 = vld [vmem:[%s7030_s29 + $0xb0] sm:$0xff] }
 0x8c1   : > { %6280 = vmatmul.msk.f32.gmra.mxu3 %vm852_vm0, %v8544_v5  ;;  %6642 = vrcp.f32 %v8794_v2  ;;  %v8828_v24 = vadd.f32 1.0, %v6641_v43  ;;  %vm4015_vm2 = vweird.f32 %v8801_v41  ;;  %v4018_v43 = vand.u32 2147483647, %v8760_v60 }
 0x8c2   : > { %v3997_v36 = vmul.f32 %v8767_v61, %v3996_v35  ;;  %6644 = vpow2.f32 %v3620_v52  ;;  %v4011_v15 = vsub.f32 1.0, %v4010_v53  ;;  %10571 = vst [vmem:[#allocation26_spill] sm:$0xff] %v8844_v29  ;;  %vm8873_vm3 = vmor %vm4014_vm1, %vm4015_vm2  ;;  %vm4029_vm5 = vweird.f32 %v8794_v2 }
 0x8c3   : > { %6646 = vrcp.f32 %v8828_v24  ;;  %vm4019_vm4 = vcmp.eq.f32.partialorder %v4018_v43, 8.507059e+37  ;;  %vm4044_vm9 = vweird.f32 %v8828_v24 }
 0x8c4   : > { %v8643_v47 = vpop.f32.mrf.mxu3  ;;  %v3998_v37 = vadd.f32 %v8767_v61, %v3997_v36  ;;  %v4012_v10 = vmul.f32 %v8801_v41, %v4011_v15  ;;  %6648 = vpow2.f32 %v3622_v57  ;;  %v4021_v15 = vor.u32 1.1754944e-38, %v4020_v17 }
 0x8c5   : > { %6315 = vmatmul.msk.f32.gmra.mxu0 %vm852_vm0, %v8640_v62  ;;  %6347 = vmatmul.msk.f32.gmra.mxu1 %vm852_vm0, %v8640_v62  ;;  %v3564_v30 = vsub.f32 0.0, %v8643_v47 }
 0x8c6   : > { %v4002_v35 = vsel %vm8839_vm12, %v8767_v61, %v3998_v37  ;;  %v4013_v61 = vadd.f32 %v8801_v41, %v4012_v10  ;;  %v4033_v10 = vand.u32 2147483647, %v8794_v2 }
 0x8c7   : > { %v8835_v33 = vpop.eup %6642  ;;  %v4007_v52 = vsel %vm4004_vm15, %v4006_v55, %v4002_v35  ;;  %v3624_v36 = vmul.f32 1.442695, %v3564_v30 }
 0x8c8   : > { %v6645_v32 = vpop.eup %6644  ;;  %v4025_v9 = vmul.f32 %v8835_v33, %v8794_v2  ;;  %v8878_v20 = vmul.f32 %v6856_v48, %v4007_v52  ;;  %v4017_v7 = vsel %vm8873_vm3, %v8801_v41, %v4013_v61  ;;  %vm4030_vm6 = vweird.f32 %v8835_v33  ;;  %v6858_v52 = vld [vmem:[%s7030_s29 + $0xc0] sm:$0xff] }
 0x8c9   : > { %6281 = vmatmul.msk.f32.gmra.mxu3 %vm852_vm0, %v8576_v0  ;;  %v8862_v1 = vadd.f32 1.0, %v6645_v32  ;;  %v8869_v53 = vpop.eup %6646  ;;  %v4022_v32 = vsel %vm4019_vm4, %v4021_v15, %v4017_v7  ;;  %vm8909_vm7 = vmor %vm4029_vm5, %vm4030_vm6  ;;  %vm4034_vm8 = vcmp.eq.f32.partialorder %v4033_v10, 8.507059e+37 }
 0x8ca   : > { %v8667_v14 = vpop.f32.mrf.mxu1  ;;  %v4026_v51 = vsub.f32 1.0, %v4025_v9  ;;  %10574 = vst [vmem:[#allocation27_spill] sm:$0xff] %v8878_v20  ;;  %v6649_v37 = vpop.eup %6648  ;;  %v4040_v60 = vmul.f32 %v8869_v53, %v8828_v24  ;;  %v4035_v9 = vand.u32 2147483648, %v8794_v2  ;;  %vm4045_vm10 = vweird.f32 %v8869_v53 }
 0x8cb   : > { %6650 = vrcp.f32 %v8862_v1  ;;  %v8893_v57 = vpop.f32.mrf.mxu0  ;;  %v8898_v55 = vadd.f32 1.0, %v6649_v37  ;;  %vm8945_vm11 = vmor %vm4044_vm9, %vm4045_vm10  ;;  %vm4059_vm15 = vweird.f32 %v8862_v1 }
 0x8cc   : > { %v8677_v59 = vpop.f32.mrf.mxu3  ;;  %v4027_v38 = vmul.f32 %v8835_v33, %v4026_v51  ;;  %6652 = vpow2.f32 %v3624_v36  ;;  %v4041_v35 = vsub.f32 1.0, %v4040_v60  ;;  %v6857_v51 = vld [vmem:[%s7030_s29 + $0xb8] sm:$0xff]  ;;  %v4036_v49 = vor.u32 1.1754944e-38, %v4035_v9 }
 0x8cd   : > { %6316 = vmatmul.msk.f32.gmra.mxu0 %vm852_vm0, %v8674_v22  ;;  %6348 = vmatmul.msk.f32.gmra.mxu1 %vm852_vm0, %v8674_v22  ;;  %v3565_v50 = vsub.f32 0.0, %v8677_v59  ;;  %v8914_v61 = vmul.f32 %v6857_v51, %v4022_v32  ;;  %6654 = vrcp.f32 %v8898_v55  ;;  %v4048_v9 = vand.u32 2147483647, %v8828_v24 }
 0x8ce   : > { %v4028_v41 = vadd.f32 %v8835_v33, %v4027_v38  ;;  %v4042_v15 = vmul.f32 %v8869_v53, %v4041_v35  ;;  %v4050_v38 = vand.u32 2147483648, %v8828_v24  ;;  %vm4074_vm4 = vweird.f32 %v8898_v55 }
 0x8cf   : > { %v3626_v17 = vmul.f32 1.442695, %v3565_v50  ;;  %10577 = vst [vmem:[#allocation28_spill] sm:$0xff] %v8914_v61  ;;  %vm4049_vm12 = vcmp.eq.f32.partialorder %v4048_v9, 8.507059e+37 }
 0x8d0   : > { %v4032_v48 = vsel %vm8909_vm7, %v8835_v33, %v4028_v41  ;;  %v4043_v33 = vadd.f32 %v8869_v53, %v4042_v15 }
 0x8d1   : > { %6282 = vmatmul.msk.f32.gmra.mxu3 %vm852_vm0, %v8608_v28  ;;  %v8905_v30 = vpop.eup %6650  ;;  %6656 = vpow2.f32 %v3626_v17  ;;  %v4037_v7 = vsel %vm4034_vm8, %v4036_v49, %v4032_v48  ;;  %v4051_v49 = vor.u32 1.1754944e-38, %v4050_v38  ;;  %v4065_v38 = vand.u32 2147483648, %v8862_v1 }
 0x8d2   : > { %v8701_v63 = vpop.f32.mrf.mxu1  ;;  %v6653_v36 = vpop.eup %6652  ;;  %v4055_v2 = vmul.f32 %v8905_v30, %v8862_v1  ;;  %v8950_v17 = vmul.f32 %v6858_v52, %v4037_v7  ;;  %vm4060_vm1 = vweird.f32 %v8905_v30 }
 0x8d3   : > { %v8932_v60 = vadd.f32 1.0, %v6653_v36  ;;  %v8935_v32 = vpop.f32.mrf.mxu0  ;;  %vm8979_vm2 = vmor %vm4059_vm15, %vm4060_vm1 }
 0x8d4   : > { %v8711_v31 = vpop.f32.mrf.mxu3  ;;  %v4056_v50 = vsub.f32 1.0, %v4055_v2  ;;  %10580 = vst [vmem:[#allocation29_spill] sm:$0xff] %v8950_v17  ;;  %v4047_v2 = vsel %vm8945_vm11, %v8869_v53, %v4043_v33 }
 0x8d5   : > { %6317 = vmatmul.msk.f32.gmra.mxu0 %vm852_vm0, %v8708_v8  ;;  %6349 = vmatmul.msk.f32.gmra.mxu1 %vm852_vm0, %v8708_v8  ;;  %v3566_v37 = vsub.f32 0.0, %v8711_v31  ;;  %v8941_v31 = vpop.eup %6654  ;;  %6658 = vrcp.f32 %v8932_v60  ;;  %v4052_v7 = vsel %vm4049_vm12, %v4051_v49, %v4047_v2  ;;  %v6859_v49 = vld [vmem:[%s7030_s29 + $0xc8] sm:$0xff]  ;;  %v4066_v2 = vor.u32 1.1754944e-38, %v4065_v38 }
 0x8d6   : > { %v4070_v24 = vmul.f32 %v8941_v31, %v8898_v55  ;;  %v4057_v48 = vmul.f32 %v8905_v30, %v4056_v50  ;;  %v4063_v50 = vand.u32 2147483647, %v8862_v1  ;;  %vm4075_vm5 = vweird.f32 %v8941_v31 }
 0x8d7   : > { %v3628_v10 = vmul.f32 1.442695, %v3566_v37  ;;  %v6657_v36 = vpop.eup %6656  ;;  %vm9014_vm6 = vmor %vm4074_vm4, %vm4075_vm5  ;;  %vm4089_vm8 = vweird.f32 %v8932_v60 }
 0x8d8   : > { %v8968_v37 = vadd.f32 1.0, %v6657_v36  ;;  %v4071_v52 = vsub.f32 1.0, %v4070_v24  ;;  %v4058_v53 = vadd.f32 %v8905_v30, %v4057_v48  ;;  %v8986_v36 = vmul.f32 %v6859_v49, %v4052_v7 }
 0x8d9   : > { %6283 = vmatmul.msk.f32.gmra.mxu3 %vm852_vm0, %v8640_v62  ;;  %6660 = vpow2.f32 %v3628_v10  ;;  %vm4064_vm3 = vcmp.eq.f32.partialorder %v4063_v50, 8.507059e+37 }
 0x8da   : > { %v8735_v56 = vpop.f32.mrf.mxu1  ;;  %10583 = vst [vmem:[#allocation30_spill] sm:$0xff] %v8986_v36  ;;  %6662 = vrcp.f32 %v8968_v37  ;;  %v4072_v7 = vmul.f32 %v8941_v31, %v4071_v52  ;;  %vm4104_vm12 = vweird.f32 %v8968_v37 }
 0x8db   : > { %v8975_v33 = vpop.eup %6658  ;;  %v8983_v41 = vpop.f32.mrf.mxu0 }
 0x8dc   : > { %v8745_v42 = vpop.f32.mrf.mxu3  ;;  %v4085_v48 = vmul.f32 %v8975_v33, %v8932_v60  ;;  %vm4090_vm9 = vweird.f32 %v8975_v33 }
 0x8dd   : > { %6318 = vmatmul.msk.f32.gmra.mxu0 %vm852_vm0, %v8742_v12  ;;  %6350 = vmatmul.msk.f32.gmra.mxu1 %vm852_vm0, %v8742_v12  ;;  %v3567_v15 = vsub.f32 0.0, %v8745_v42  ;;  %vm9047_vm10 = vmor %vm4089_vm8, %vm4090_vm9 }
 0x8df   : > { %v3630_v10 = vmul.f32 1.442695, %v3567_v15  ;;  %v6661_v1 = vpop.eup %6660  ;;  %v4062_v15 = vsel %vm8979_vm2, %v8905_v30, %v4058_v53  ;;  %v4073_v30 = vadd.f32 %v8941_v31, %v4072_v7  ;;  %v4078_v53 = vand.u32 2147483647, %v8898_v55 }
 0x8e0   : > { %v9003_v38 = vadd.f32 1.0, %v6661_v1  ;;  %v4067_v49 = vsel %vm4064_vm3, %v4066_v2, %v4062_v15  ;;  %v9010_v50 = vpop.eup %6662 }
 0x8e1   : > { %6284 = vmatmul.msk.f32.gmra.mxu3 %vm852_vm0, %v8674_v22  ;;  %6664 = vpow2.f32 %v3630_v10  ;;  %v6860_v10 = vld [vmem:[%s7030_s29 + $0xd0] sm:$0xff]  ;;  %vm4079_vm7 = vcmp.eq.f32.partialorder %v4078_v53, 8.507059e+37  ;;  %vm4105_vm15 = vweird.f32 %v9010_v50 }
 0x8e2   : > { %v8769_v46 = vpop.f32.mrf.mxu1  ;;  %v9019_v2 = vmul.f32 %v6860_v10, %v4067_v49  ;;  %6666 = vrcp.f32 %v9003_v38  ;;  %v4077_v49 = vsel %vm9014_vm6, %v8941_v31, %v4073_v30  ;;  %v4093_v31 = vand.u32 2147483647, %v8932_v60  ;;  %vm4106_vm1 = vmor %vm4104_vm12, %vm4105_vm15 }
 0x8e3   : > { %v9026_v7 = vpop.f32.mrf.mxu0  ;;  %vm4119_vm3 = vweird.f32 %v9003_v38  ;;  %v4123_v62 = vand.u32 2147483647, %v9003_v38 }
 0x8e4   : > { %v8779_v44 = vpop.f32.mrf.mxu3  ;;  %10586 = vst [vmem:[#allocation31_spill] sm:$0xff] %v9019_v2  ;;  %vm4094_vm11 = vcmp.eq.f32.partialorder %v4093_v31, 8.507059e+37 }
 0x8e5   : > { %6319 = vmatmul.msk.f32.gmra.mxu0 %vm852_vm0, %v8776_v6  ;;  %6351 = vmatmul.msk.f32.gmra.mxu1 %vm852_vm0, %v8776_v6  ;;  %vm4124_vm6 = vcmp.eq.f32.partialorder %v4123_v62, 8.507059e+37 }
 0x8e7   : > { %v6665_v15 = vpop.eup %6664 }
 0x8e8   : > { %v9038_v10 = vadd.f32 1.0, %v6665_v15  ;;  %v6667_v30 = vpop.eup %6666  ;;  %v6861_v15 = vld [vmem:[%s7030_s29 + $0xd8] sm:$0xff] }
 0x8e9   : > { %6285 = vmatmul.msk.f32.gmra.mxu3 %vm852_vm0, %v8708_v8  ;;  %vm4120_vm4 = vweird.f32 %v6667_v30 }
 0x8ea   : > { %v8803_v23 = vpop.f32.mrf.mxu1  ;;  %6668 = vrcp.f32 %v9038_v10  ;;  %vm4121_vm5 = vmor %vm4119_vm3, %vm4120_vm4 }
 0x8ec   : > { %v8813_v3 = vpop.f32.mrf.mxu3 }
 0x8ed   : > { %6320 = vmatmul.msk.f32.gmra.mxu0 %vm852_vm0, %v8810_v16  ;;  %6352 = vmatmul.msk.f32.gmra.mxu1 %vm852_vm0, %v8810_v16 }
 0x8f1   : > { %6286 = vmatmul.msk.f32.gmra.mxu3 %vm852_vm0, %v8742_v12 }
 0x8f2   : > { %v8837_v25 = vpop.f32.mrf.mxu1 }
 0x8f4   : > { %v8847_v26 = vpop.f32.mrf.mxu3 }
 0x8f5   : > { %6321 = vmatmul.msk.f32.gmra.mxu0 %vm852_vm0, %v8844_v29  ;;  %6353 = vmatmul.msk.f32.gmra.mxu1 %vm852_vm0, %v8844_v29 }
 0x8f9   : > { %6287 = vmatmul.msk.f32.gmra.mxu3 %vm852_vm0, %v8776_v6 }
 0x8fa   : > { %v8871_v47 = vpop.f32.mrf.mxu1 }
 0x8fc   : > { %v8881_v40 = vpop.f32.mrf.mxu3 }
 0x8fd   : > { %6322 = vmatmul.msk.f32.gmra.mxu0 %vm852_vm0, %v8878_v20  ;;  %6354 = vmatmul.msk.f32.gmra.mxu1 %vm852_vm0, %v8878_v20 }
 0x901   : > { %6288 = vmatmul.msk.f32.gmra.mxu3 %vm852_vm0, %v8810_v16  ;;  %v4095_v16 = vand.u32 2147483648, %v8932_v60 }
 0x902   : > { %v8907_v59 = vpop.f32.mrf.mxu1 }
 0x904   : > { %v8917_v43 = vpop.f32.mrf.mxu3 }
 0x905   : > { %6323 = vmatmul.msk.f32.gmra.mxu0 %vm852_vm0, %v8914_v61  ;;  %6355 = vmatmul.msk.f32.gmra.mxu1 %vm852_vm0, %v8914_v61 }
 0x909   : > { %6289 = vmatmul.msk.f32.gmra.mxu3 %vm852_vm0, %v8844_v29  ;;  %v4086_v29 = vsub.f32 1.0, %v4085_v48 }
 0x90a   : > { %v8943_v35 = vpop.f32.mrf.mxu1 }
 0x90c   : > { %v8953_v51 = vpop.f32.mrf.mxu3 }
 0x90d   : > { %6324 = vmatmul.msk.f32.gmra.mxu0 %vm852_vm0, %v8950_v17  ;;  %6356 = vmatmul.msk.f32.gmra.mxu1 %vm852_vm0, %v8950_v17 }
 0x911   : > { %6290 = vmatmul.msk.f32.gmra.mxu3 %vm852_vm0, %v8878_v20  ;;  %v4080_v20 = vand.u32 2147483648, %v8898_v55  ;;  %v4100_v55 = vmul.f32 %v9010_v50, %v8968_v37 }
 0x912   : > { %v8977_v42 = vpop.f32.mrf.mxu1 }
 0x913   : > { %v4081_v48 = vor.u32 1.1754944e-38, %v4080_v20  ;;  %v4087_v20 = vmul.f32 %v8975_v33, %v4086_v29  ;;  %v4101_v6 = vsub.f32 1.0, %v4100_v55  ;;  %v4096_v55 = vor.u32 1.1754944e-38, %v4095_v16 }
 0x914   : > { %v8989_v24 = vpop.f32.mrf.mxu3 }
 0x915   : > { %6325 = vmatmul.msk.f32.gmra.mxu0 %vm852_vm0, %v8986_v36  ;;  %6357 = vmatmul.msk.f32.gmra.mxu1 %vm852_vm0, %v8986_v36  ;;  %v4088_v9 = vadd.f32 %v8975_v33, %v4087_v20  ;;  %v9066_v20 = vpop.f32.mrf.mxu0 }
 0x917   : > { %v4092_v60 = vsel %vm9047_vm10, %v8975_v33, %v4088_v9  ;;  %v4108_v33 = vand.u32 2147483647, %v8968_v37  ;;  %v6669_v9 = vpop.eup %6668 }
 0x918   : > { %v4097_v16 = vsel %vm4094_vm11, %v4096_v55, %v4092_v60  ;;  %v4130_v60 = vmul.f32 %v6669_v9, %v9038_v10  ;;  %vm4135_vm8 = vweird.f32 %v6669_v9 }
 0x919   : > { %6291 = vmatmul.msk.f32.gmra.mxu3 %vm852_vm0, %v8914_v61  ;;  %v4082_v61 = vsel %vm4079_vm7, %v4081_v48, %v4077_v49  ;;  %v4115_v49 = vmul.f32 %v6667_v30, %v9003_v38  ;;  %vm4109_vm2 = vcmp.eq.f32.partialorder %v4108_v33, 8.507059e+37  ;;  %vm4134_vm7 = vweird.f32 %v9038_v10 }
 0x91a   : > { %v9012_v52 = vpop.f32.mrf.mxu1  ;;  %v9052_v12 = vmul.f32 %v6861_v15, %v4082_v61  ;;  %v4102_v61 = vmul.f32 %v9010_v50, %v4101_v6  ;;  %v4110_v15 = vand.u32 2147483648, %v8968_v37  ;;  %v6862_v6 = vld [vmem:[%s7030_s29 + $0xe0] sm:$0xff]  ;;  %vm4136_vm9 = vmor %vm4134_vm7, %vm4135_vm8 }
 0x91b   : > { %v9078_v8 = vmul.f32 %v6862_v6, %v4097_v16  ;;  %v4125_v16 = vand.u32 2147483648, %v9003_v38 }
 0x91c   : > { %v9022_v1 = vpop.f32.mrf.mxu3  ;;  %10589 = vst [vmem:[#allocation32_spill] sm:$0xff] %v9052_v12  ;;  %v4103_v29 = vadd.f32 %v9010_v50, %v4102_v61  ;;  %v4111_v55 = vor.u32 1.1754944e-38, %v4110_v15  ;;  %v4131_v15 = vsub.f32 1.0, %v4130_v60 }
 0x91d   : > { %6326 = vmatmul.msk.f32.gmra.mxu0 %vm852_vm0, %v9019_v2  ;;  %6358 = vmatmul.msk.f32.gmra.mxu1 %vm852_vm0, %v9019_v2  ;;  %10590 = vst [vmem:[#allocation33_spill] sm:$0xff] %v9078_v8  ;;  %v9090_v6 = vpop.f32.mrf.mxu0  ;;  %v4126_v33 = vor.u32 1.1754944e-38, %v4125_v16 }
 0x91e   : > { %v4107_v37 = vsel %vm4106_vm1, %v9010_v50, %v4103_v29  ;;  %v6863_v50 = vld [vmem:[%s7030_s29 + $0xe8] sm:$0xff]  ;;  %v4132_v60 = vmul.f32 %v6669_v9, %v4131_v15 }
 0x91f   : > { %v4112_v61 = vsel %vm4109_vm2, %v4111_v55, %v4107_v37  ;;  %v4140_v37 = vand.u32 2147483648, %v9038_v10 }
 0x920   : > { %v9096_v29 = vmul.f32 %v6863_v50, %v4112_v61  ;;  %v4138_v61 = vand.u32 2147483647, %v9038_v10  ;;  %v9121_v10 = vld [vmem:[%s10438_s16] ss:$0 sm:$0xff] }
 0x921   : > { %6292 = vmatmul.msk.f32.gmra.mxu3 %vm852_vm0, %v8950_v17  ;;  %v4116_v17 = vsub.f32 1.0, %v4115_v49  ;;  %v4141_v15 = vor.u32 1.1754944e-38, %v4140_v37  ;;  %v6865_v37 = vld [vmem:[%s7030_s29 + $0xf8] sm:$0xff] }
 0x922   : > { %v9045_v53 = vpop.f32.mrf.mxu1  ;;  %10591 = vst [vmem:[#allocation34_spill] sm:$0xff] %v9096_v29  ;;  %vm4139_vm10 = vcmp.eq.f32.partialorder %v4138_v61, 8.507059e+37 }
 0x923   : > { %v4117_v49 = vmul.f32 %v6667_v30, %v4116_v17 }
 0x924   : > { %v9055_v48 = vpop.f32.mrf.mxu3 }
 0x925   : > { %6327 = vmatmul.msk.f32.gmra.mxu0 %vm852_vm0, %v9052_v12  ;;  %6359 = vmatmul.msk.f32.gmra.mxu1 %vm852_vm0, %v9052_v12  ;;  %v9109_v50 = vpop.f32.mrf.mxu0 }
 0x929   : > { %6293 = vmatmul.msk.f32.gmra.mxu3 %vm852_vm0, %v8986_v36  ;;  %v4118_v36 = vadd.f32 %v6667_v30, %v4117_v49  ;;  %v4133_v49 = vadd.f32 %v6669_v9, %v4132_v60 }
 0x92a   : > { %v9075_v31 = vpop.f32.mrf.mxu1 }
 0x92b   : > { %v4122_v55 = vsel %vm4121_vm5, %v6667_v30, %v4118_v36  ;;  %v6864_v36 = vld [vmem:[%s7030_s29 + $0xf0] sm:$0xff] }
 0x92c   : > { %v9080_v22 = vpop.f32.mrf.mxu3  ;;  %v4127_v38 = vsel %vm4124_vm6, %v4126_v33, %v4122_v55  ;;  %v4137_v33 = vsel %vm4136_vm9, %v6669_v9, %v4133_v49 }
 0x92d   : > { %6328 = vmatmul.msk.f32.gmra.mxu0 %vm852_vm0, %v9078_v8  ;;  %6360 = vmatmul.msk.f32.gmra.mxu1 %vm852_vm0, %v9078_v8  ;;  %v9112_v62 = vmul.f32 %v6864_v36, %v4127_v38  ;;  %v4142_v55 = vsel %vm4139_vm10, %v4141_v15, %v4137_v33  ;;  %v4567_v33 = vadd.f32 %v9121_v10, %v9075_v31 }
 0x92e   : > { %v9127_v36 = vmul.f32 %v6865_v37, %v4142_v55  ;;  %v4564_v55 = vadd.f32 %v9121_v10, %v9045_v53  ;;  %v4558_v53 = vadd.f32 %v9121_v10, %v8977_v42 }
 0x92f   : > { %10592 = vst [vmem:[#allocation35_spill] sm:$0xff] %v9112_v62 }
 0x930   : > { %10593 = vst [vmem:[#allocation36_spill] sm:$0xff] %v9127_v36 }
 0x931   : > { %6294 = vmatmul.msk.f32.gmra.mxu3 %vm852_vm0, %v9019_v2  ;;  %v9129_v2 = vpop.f32.mrf.mxu0 }
 0x932   : > { %v4569_v28 = vpop.f32.mrf.mxu1 }
 0x933   : > { %v4570_v61 = vadd.f32 %v9121_v10, %v4569_v28  ;;  %v4561_v28 = vadd.f32 %v9121_v10, %v9012_v52 }
 0x934   : > { %v9098_v17 = vpop.f32.mrf.mxu3 }
 0x935   : > { %6329 = vmatmul.msk.f32.gmra.mxu0 %vm852_vm0, %v9096_v29  ;;  %6361 = vmatmul.msk.f32.gmra.mxu1 %vm852_vm0, %v9096_v29 }
 0x939   : > { %6295 = vmatmul.msk.f32.gmra.mxu3 %vm852_vm0, %v9052_v12 }
 0x93a   : > { %v4572_v16 = vpop.f32.mrf.mxu1 }
 0x93b   : > { %v4573_v9 = vadd.f32 %v9121_v10, %v4572_v16 }
 0x93c   : > { %v4327_v30 = vpop.f32.mrf.mxu3 }
 0x93d   : > { %6330 = vmatmul.msk.f32.gmra.mxu0 %vm852_vm0, %v9112_v62  ;;  %6362 = vmatmul.msk.f32.gmra.mxu1 %vm852_vm0, %v9112_v62 }
 0x941   : > { %6296 = vmatmul.msk.f32.gmra.mxu3 %vm852_vm0, %v9078_v8 }
 0x942   : > { %v4575_v60 = vpop.f32.mrf.mxu1 }
 0x943   : > { %v4576_v38 = vadd.f32 %v9121_v10, %v4575_v60 }
 0x944   : > { %v4330_v12 = vpop.f32.mrf.mxu3 }
 0x945   : > { %6331 = vmatmul.msk.f32.gmra.mxu0 %vm852_vm0, %v9127_v36  ;;  %6363 = vmatmul.msk.f32.gmra.mxu1 %vm852_vm0, %v9127_v36 }
 0x946   : > { %6364 = vmatpush.xpose.msk.msra.mxu2 %vm3322_vm14, %v4576_v38  ;;  %v9164_v38 = vld [vmem:[%s10434_s12] ss:$0 sm:$0xff] }
 0x947   : > { %v4331_v42 = vadd.f32 %v9164_v38, %v4330_v12  ;;  %v4322_v12 = vadd.f32 %v9164_v38, %v9080_v22  ;;  %v4313_v22 = vadd.f32 %v9164_v38, %v8989_v24 }
 0x949   : > { %6297 = vmatmul.msk.f32.gmra.mxu3 %vm852_vm0, %v9096_v29 }
 0x94a   : > { %6365 = vmatpush.xpose.msk.msra.mxu2 %vm3322_vm14, %v4573_v9  ;;  %v9140_v49 = vpop.f32.mrf.mxu1 }
 0x94c   : > { %v4333_v15 = vpop.f32.mrf.mxu3 }
 0x94e   : > { %6366 = vmatpush.xpose.msk.msra.mxu2 %vm3322_vm14, %v4570_v61  ;;  %v4555_v61 = vadd.f32 %v9121_v10, %v8943_v35  ;;  %v4325_v35 = vadd.f32 %v9164_v38, %v9098_v17 }
 0x951   : > { %6298 = vmatmul.msk.f32.gmra.mxu3 %vm852_vm0, %v9112_v62 }
 0x952   : > { %6367 = vmatpush.xpose.msk.msra.mxu2 %vm3322_vm14, %v4567_v33  ;;  %v9149_v16 = vpop.f32.mrf.mxu1  ;;  %v4334_v33 = vadd.f32 %v9164_v38, %v4333_v15  ;;  %v4549_v15 = vadd.f32 %v9121_v10, %v8871_v47  ;;  %v4316_v47 = vadd.f32 %v9164_v38, %v9022_v1  ;;  %v4307_v1 = vadd.f32 %v9164_v38, %v8917_v43 }
 0x953   : > { %v4298_v43 = vadd.f32 %v9164_v38, %v8813_v3  ;;  %v4531_v3 = vadd.f32 %v9121_v10, %v8667_v14 }
 0x954   : > { %v4336_v60 = vpop.f32.mrf.mxu3 }
 0x955   : > { %v4337_v52 = vadd.f32 %v9164_v38, %v4336_v60  ;;  %v4328_v60 = vadd.f32 %v9164_v38, %v4327_v30  ;;  %v4319_v30 = vadd.f32 %v9164_v38, %v9055_v48  ;;  %v4310_v48 = vadd.f32 %v9164_v38, %v8953_v51 }
 0x956   : > { %6368 = vmatpush.xpose.msk.msra.mxu2 %vm3322_vm14, %v4564_v55  ;;  %v4301_v51 = vadd.f32 %v9164_v38, %v8847_v26 }
 0x959   : > { %6299 = vmatmul.msk.f32.gmra.mxu3 %vm852_vm0, %v9127_v36 }
 0x95a   : > { %6369 = vmatpush.xpose.msk.msra.mxu2 %vm3322_vm14, %v4561_v28  ;;  %v9159_v31 = vpop.f32.mrf.mxu1  ;;  %v4552_v28 = vadd.f32 %v9121_v10, %v8907_v59 }
 0x95c   : > { %v4339_v37 = vpop.f32.mrf.mxu3 }
 0x95d   : > { %v4340_v9 = vadd.f32 %v9164_v38, %v4339_v37  ;;  %v4546_v37 = vadd.f32 %v9121_v10, %v8837_v25 }
 0x95e   : > { %6370 = vmatpush.xpose.msk.msra.mxu2 %vm3322_vm14, %v4558_v53 }
 0x95f   : > { %5476 = vmatpush.msrb.mxu0 %v4340_v9  ;;  %v4543_v9 = vadd.f32 %v9121_v10, %v8803_v23  ;;  %v4304_v23 = vadd.f32 %v9164_v38, %v8881_v40  ;;  %v4295_v40 = vadd.f32 %v9164_v38, %v8779_v44 }
 0x961   : > { %5477 = vmatpush.msrb.mxu0 %v4337_v52  ;;  %v4540_v52 = vadd.f32 %v9121_v10, %v8769_v46 }
 0x962   : > { %6371 = vmatpush.xpose.msk.msra.mxu2 %vm3322_vm14, %v4555_v61  ;;  %v9175_v55 = vpop.f32.mrf.mxu1  ;;  %v4537_v61 = vadd.f32 %v9121_v10, %v8735_v56  ;;  %v9239_v56 = vld [vmem:[%s10436_s14] ss:$0 sm:$0xff] }
 0x963   : > { %5478 = vmatpush.msrb.mxu0 %v4334_v33  ;;  %v4534_v33 = vadd.f32 %v9121_v10, %v8701_v63  ;;  %v9248_v63 = vadd.f32 %v9239_v56, %v8893_v57  ;;  %v9266_v57 = vadd.f32 %v9239_v56, %v8983_v41  ;;  %v9282_v41 = vadd.f32 %v9239_v56, %v9066_v20 }
 0x964   : > { %v9180_v53 = vpop.f32.mrf.mxu3  ;;  %v9296_v20 = vadd.f32 %v9239_v56, %v9109_v50 }
 0x965   : > { %5479 = vmatpush.msrb.mxu0 %v4331_v42 }
 0x966   : > { %6372 = vmatpush.xpose.msk.msra.mxu2 %vm3322_vm14, %v4552_v28 }
 0x967   : > { %5480 = vmatpush.msrb.mxu0 %v4328_v60  ;;  %v9258_v60 = vadd.f32 %v9239_v56, %v8935_v32  ;;  %v9274_v32 = vadd.f32 %v9239_v56, %v9026_v7  ;;  %v9290_v7 = vadd.f32 %v9239_v56, %v9090_v6  ;;  %v9302_v6 = vadd.f32 %v9239_v56, %v9129_v2 }
 0x969   : > { %5481 = vmatpush.msrb.mxu0 %v4325_v35  ;;  %v4436_v35 = vpop.f32.mrf.mxu0 }
 0x96a   : > { %6373 = vmatpush.xpose.msk.msra.mxu2 %vm3322_vm14, %v4549_v15  ;;  %v9191_v59 = vpop.f32.mrf.mxu1  ;;  %v9307_v36 = vadd.f32 %v9239_v56, %v4436_v35 }
 0x96b   : > { %5482 = vmatpush.msrb.mxu0 %v4322_v12 }
 0x96c   : > { %v9197_v17 = vpop.f32.mrf.mxu3 }
 0x96d   : > { %5483 = vmatpush.msrb.mxu0 %v4319_v30 }
 0x96e   : > { %6374 = vmatpush.xpose.msk.msra.mxu2 %vm3322_vm14, %v4546_v37 }
 0x96f   : > { %5484 = vmatpush.msrb.mxu0 %v4316_v47 }
 0x971   : > { %5485 = vmatpush.msrb.mxu0 %v4313_v22  ;;  %v4439_v37 = vpop.f32.mrf.mxu0 }
 0x972   : > { %6375 = vmatpush.xpose.msk.msra.mxu2 %vm3322_vm14, %v4543_v9  ;;  %v9209_v25 = vpop.f32.mrf.mxu1  ;;  %v9316_v8 = vadd.f32 %v9239_v56, %v4439_v37 }
 0x973   : > { %5486 = vmatpush.msrb.mxu0 %v4310_v48 }
 0x974   : > { %v9215_v24 = vpop.f32.mrf.mxu3 }
 0x975   : > { %5487 = vmatpush.msrb.mxu0 %v4307_v1 }
 0x976   : > { %6376 = vmatpush.xpose.msk.msra.mxu2 %vm3322_vm14, %v4540_v52 }
 0x977   : > { %5488 = vmatpush.msrb.mxu0 %v4304_v23 }
 0x979   : > { %5489 = vmatpush.msrb.mxu0 %v4301_v51  ;;  %v4442_v48 = vpop.f32.mrf.mxu0 }
 0x97a   : > { %6377 = vmatpush.xpose.msk.msra.mxu2 %vm3322_vm14, %v4537_v61  ;;  %v9227_v46 = vpop.f32.mrf.mxu1 }
 0x97b   : > { %5490 = vmatpush.msrb.mxu0 %v4298_v43 }
 0x97c   : > { %v9233_v26 = vpop.f32.mrf.mxu3 }
 0x97d   : > { %5491 = vmatpush.msrb.mxu0 %v4295_v40 }
 0x97e   : > { %6378 = vmatpush.xpose.msk.msra.mxu2 %vm3322_vm14, %v4534_v33 }
 0x981   : > { %v4445_v23 = vpop.f32.mrf.mxu0 }
 0x982   : > { %6379 = vmatpush.xpose.msk.msra.mxu2 %vm3322_vm14, %v4531_v3  ;;  %v9244_v44 = vpop.f32.mrf.mxu1 }
 0x984   : > { %v9250_v42 = vpop.f32.mrf.mxu3 }
 0x985   : > { %6380 = vmatmul.msk.f32.vlgmr.msra.gmra.mxu2 %vm3322_vm14, %v9248_v63 }
 0x989   : > { %v4448_v43 = vpop.f32.mrf.mxu0 }
 0x98a   : > { %v9254_v28 = vpop.f32.mrf.mxu1 }
 0x98c   : > { %v9260_v14 = vpop.f32.mrf.mxu3 }
 0x98d   : > { %6381 = vmatmul.msk.f32.gmra.mxu2 %vm3322_vm14, %v9258_v60 }
 0x991   : > { %v4451_v62 = vpop.f32.mrf.mxu0 }
 0x992   : > { %v4605_v15 = vpop.f32.mrf.mxu1 }
 0x994   : > { %v9268_v12 = vpop.f32.mrf.mxu3 }
 0x995   : > { %6382 = vmatmul.msk.f32.gmra.mxu2 %vm3322_vm14, %v9266_v57 }
 0x99a   : > { %v4608_v30 = vpop.f32.mrf.mxu1 }
 0x99c   : > { %v9276_v47 = vpop.f32.mrf.mxu3 }
 0x99d   : > { %6383 = vmatmul.msk.f32.gmra.mxu2 %vm3322_vm14, %v9274_v32 }
 0x9a2   : > { %v4611_v22 = vpop.f32.mrf.mxu1 }
 0x9a4   : > { %v9284_v9 = vpop.f32.mrf.mxu3 }
 0x9a5   : > { %6384 = vmatmul.msk.f32.gmra.mxu2 %vm3322_vm14, %v9282_v41 }
 0x9aa   : > { %v4614_v1 = vpop.f32.mrf.mxu1 }
 0x9ab   : > { %v4615_v5 = vadd.f32 %v9121_v10, %v4614_v1 }
 0x9ac   : > { %v4369_v52 = vpop.f32.mrf.mxu3 }
 0x9ad   : > { %6385 = vmatmul.msk.f32.gmra.mxu2 %vm3322_vm14, %v9290_v7 }
 0x9b2   : > { %v4617_v51 = vpop.f32.mrf.mxu1 }
 0x9b3   : > { %v4618_v0 = vadd.f32 %v9121_v10, %v4617_v51  ;;  %v4609_v51 = vadd.f32 %v9121_v10, %v4608_v30 }
 0x9b4   : > { %v4372_v61 = vpop.f32.mrf.mxu3 }
 0x9b5   : > { %6386 = vmatmul.msk.f32.gmra.mxu2 %vm3322_vm14, %v9296_v20 }
 0x9ba   : > { %v4620_v40 = vpop.f32.mrf.mxu1 }
 0x9bb   : > { %v4621_v2 = vadd.f32 %v9121_v10, %v4620_v40  ;;  %v9325_v40 = vadd.f32 %v9239_v56, %v4442_v48 }
 0x9bc   : > { %v4375_v33 = vpop.f32.mrf.mxu3 }
 0x9bd   : > { %6387 = vmatmul.msk.f32.gmra.mxu2 %vm3322_vm14, %v9302_v6 }
 0x9c2   : > { %v4623_v3 = vpop.f32.mrf.mxu1 }
 0x9c3   : > { %v4624_v50 = vadd.f32 %v9121_v10, %v4623_v3  ;;  %v4454_v3 = vpop.f32.mrf.mxu0 }
 0x9c4   : > { %v4378_v29 = vpop.f32.mrf.mxu3 }
 0x9c5   : > { %6388 = vmatmul.msk.f32.gmra.mxu2 %vm3322_vm14, %v9307_v36  ;;  %6412 = vmatpush.xpose.msk.msrb.mxu3 %vm3322_vm14, %v4624_v50  ;;  %v4612_v50 = vadd.f32 %v9121_v10, %v4611_v22  ;;  %v4603_v22 = vadd.f32 %v9121_v10, %v9254_v28  ;;  %v4376_v28 = vadd.f32 %v9164_v38, %v4375_v33 }
 0x9c6   : > { %v4367_v33 = vadd.f32 %v9164_v38, %v9284_v9  ;;  %v4358_v9 = vadd.f32 %v9164_v38, %v9260_v14  ;;  %v4352_v14 = vadd.f32 %v9164_v38, %v9233_v26  ;;  %v4582_v26 = vadd.f32 %v9121_v10, %v9149_v16 }
 0x9c9   : > { %6413 = vmatpush.xpose.msk.msrb.mxu3 %vm3322_vm14, %v4621_v2 }
 0x9cb   : > { %v4457_v2 = vpop.f32.mrf.mxu0 }
 0x9cc   : > { %v4381_v35 = vpop.f32.mrf.mxu3 }
 0x9cd   : > { %6389 = vmatmul.msk.f32.gmra.mxu2 %vm3322_vm14, %v9316_v8  ;;  %6414 = vmatpush.xpose.msk.msrb.mxu3 %vm3322_vm14, %v4618_v0  ;;  %v9334_v0 = vadd.f32 %v9239_v56, %v4445_v23  ;;  %v9347_v23 = vadd.f32 %v9239_v56, %v4448_v43  ;;  %v4373_v43 = vadd.f32 %v9164_v38, %v4372_v61 }
 0x9ce   : > { %v4355_v61 = vadd.f32 %v9164_v38, %v9250_v42  ;;  %v4346_v42 = vadd.f32 %v9164_v38, %v9197_v17 }
 0x9d1   : > { %6415 = vmatpush.xpose.msk.msrb.mxu3 %vm3322_vm14, %v4615_v5  ;;  %v4606_v5 = vadd.f32 %v9121_v10, %v4605_v15 }
 0x9d3   : > { %v4460_v15 = vpop.f32.mrf.mxu0 }
 0x9d4   : > { %v4384_v37 = vpop.f32.mrf.mxu3 }
 0x9d5   : > { %6390 = vmatmul.msk.f32.gmra.mxu2 %vm3322_vm14, %v9325_v40  ;;  %6416 = vmatpush.xpose.msk.msrb.mxu3 %vm3322_vm14, %v4612_v50  ;;  %v4385_v30 = vadd.f32 %v9164_v38, %v4384_v37  ;;  %v4382_v50 = vadd.f32 %v9164_v38, %v4381_v35  ;;  %v4597_v35 = vadd.f32 %v9121_v10, %v9227_v46 }
 0x9d6   : > { %v4594_v37 = vadd.f32 %v9121_v10, %v9209_v25  ;;  %v4364_v46 = vadd.f32 %v9164_v38, %v9276_v47  ;;  %v4361_v25 = vadd.f32 %v9164_v38, %v9268_v12  ;;  %v4588_v47 = vadd.f32 %v9121_v10, %v9175_v55 }
 0x9d7   : > { %v4585_v12 = vadd.f32 %v9121_v10, %v9159_v31  ;;  %v4349_v55 = vadd.f32 %v9164_v38, %v9215_v24  ;;  %v4579_v31 = vadd.f32 %v9121_v10, %v9140_v49  ;;  %v9413_v24 = vadd.f32 %v9239_v56, %v4460_v15 }
 0x9d9   : > { %6417 = vmatpush.xpose.msk.msrb.mxu3 %vm3322_vm14, %v4609_v51  ;;  %v4600_v51 = vadd.f32 %v9121_v10, %v9244_v44  ;;  %v4370_v44 = vadd.f32 %v9164_v38, %v4369_v52  ;;  %v9381_v52 = vadd.f32 %v9239_v56, %v4454_v3  ;;  %v9400_v3 = vadd.f32 %v9239_v56, %v4457_v2 }
 0x9dc   : > { %v4387_v48 = vpop.f32.mrf.mxu3 }
 0x9dd   : > { %v4388_v1 = vadd.f32 %v9164_v38, %v4387_v48  ;;  %6391 = vmatmul.msk.f32.gmra.mxu2 %vm3322_vm14, %v9334_v0  ;;  %6418 = vmatpush.xpose.msk.msrb.mxu3 %vm3322_vm14, %v4606_v5  ;;  %v4379_v5 = vadd.f32 %v9164_v38, %v4378_v29  ;;  %v9362_v29 = vadd.f32 %v9239_v56, %v4451_v62  ;;  %v4463_v48 = vpop.f32.mrf.mxu0 }
 0x9de   : > { %v4591_v62 = vadd.f32 %v9121_v10, %v9191_v59 }
 0x9df   : > { %5589 = vmatpush.msrb.mxu1 %v4388_v1  ;;  %v4343_v1 = vadd.f32 %v9164_v38, %v9180_v53  ;;  %v9422_v53 = vadd.f32 %v9239_v56, %v4463_v48 }
 0x9e1   : > { %6419 = vmatpush.xpose.msk.msrb.mxu3 %vm3322_vm14, %v4603_v22  ;;  %5590 = vmatpush.msrb.mxu1 %v4385_v30 }
 0x9e3   : > { %5591 = vmatpush.msrb.mxu1 %v4382_v50 }
 0x9e5   : > { %6392 = vmatmul.msk.f32.gmra.mxu2 %vm3322_vm14, %v9347_v23  ;;  %6420 = vmatpush.xpose.msk.msrb.mxu3 %vm3322_vm14, %v4600_v51  ;;  %v4466_v59 = vpop.f32.mrf.mxu0 }
 0x9e6   : > { %5592 = vmatpush.msrb.mxu1 %v4379_v5  ;;  %v9431_v49 = vadd.f32 %v9239_v56, %v4466_v59 }
 0x9e8   : > { %5593 = vmatpush.msrb.mxu1 %v4376_v28 }
 0x9e9   : > { %6421 = vmatpush.xpose.msk.msrb.mxu3 %vm3322_vm14, %v4597_v35 }
 0x9ea   : > { %5594 = vmatpush.msrb.mxu1 %v4373_v43 }
 0x9ec   : > { %5595 = vmatpush.msrb.mxu1 %v4370_v44 }
 0x9ed   : > { %6393 = vmatmul.msk.f32.gmra.mxu2 %vm3322_vm14, %v9362_v29  ;;  %6422 = vmatpush.xpose.msk.msrb.mxu3 %vm3322_vm14, %v4594_v37  ;;  %v4469_v17 = vpop.f32.mrf.mxu0 }
 0x9ee   : > { %5596 = vmatpush.msrb.mxu1 %v4367_v33  ;;  %v9440_v22 = vadd.f32 %v9239_v56, %v4469_v17 }
 0x9f0   : > { %5597 = vmatpush.msrb.mxu1 %v4364_v46 }
 0x9f1   : > { %6423 = vmatpush.xpose.msk.msrb.mxu3 %vm3322_vm14, %v4591_v62 }
 0x9f2   : > { %5598 = vmatpush.msrb.mxu1 %v4361_v25 }
 0x9f4   : > { %5599 = vmatpush.msrb.mxu1 %v4358_v9 }
 0x9f5   : > { %6394 = vmatmul.msk.f32.gmra.mxu2 %vm3322_vm14, %v9381_v52  ;;  %6424 = vmatpush.xpose.msk.msrb.mxu3 %vm3322_vm14, %v4588_v47  ;;  %v4472_v38 = vpop.f32.mrf.mxu0 }
 0x9f6   : > { %5600 = vmatpush.msrb.mxu1 %v4355_v61  ;;  %v9449_v50 = vadd.f32 %v9239_v56, %v4472_v38 }
 0x9f8   : > { %5601 = vmatpush.msrb.mxu1 %v4352_v14 }
 0x9f9   : > { %6425 = vmatpush.xpose.msk.msrb.mxu3 %vm3322_vm14, %v4585_v12 }
 0x9fa   : > { %5602 = vmatpush.msrb.mxu1 %v4349_v55 }
 0x9fc   : > { %5603 = vmatpush.msrb.mxu1 %v4346_v42 }
 0x9fd   : > { %6395 = vmatmul.msk.f32.gmra.mxu2 %vm3322_vm14, %v9400_v3  ;;  %6426 = vmatpush.xpose.msk.msrb.mxu3 %vm3322_vm14, %v4582_v26 }
 0x9fe   : > { %5604 = vmatpush.msrb.mxu1 %v4343_v1 }
 0xa01   : > { %6427 = vmatpush.xpose.msk.msrb.mxu3 %vm3322_vm14, %v4579_v31 }
 0xa04   : > { %6428 = vmatmul.msk.f32.vlgmr.msrb.gmra.mxu3 %vm3322_vm14, %v9248_v63  ;;  %v4475_v63 = vpop.f32.mrf.mxu0 }
 0xa05   : > { %6396 = vmatmul.msk.f32.gmra.mxu2 %vm3322_vm14, %v9413_v24 }
 0xa08   : > { %v9419_v16 = vpop.f32.mrf.mxu2 }
 0xa0c   : > { %6429 = vmatmul.msk.f32.gmra.mxu3 %vm3322_vm14, %v9258_v60  ;;  %v4478_v60 = vpop.f32.mrf.mxu0 }
 0xa0d   : > { %6397 = vmatmul.msk.f32.gmra.mxu2 %vm3322_vm14, %v9422_v53 }
 0xa10   : > { %v9428_v10 = vpop.f32.mrf.mxu2 }
 0xa14   : > { %6430 = vmatmul.msk.f32.gmra.mxu3 %vm3322_vm14, %v9266_v57  ;;  %v4481_v57 = vpop.f32.mrf.mxu0 }
 0xa15   : > { %6398 = vmatmul.msk.f32.gmra.mxu2 %vm3322_vm14, %v9431_v49  ;;  %v9476_v35 = vadd.f32 %v9239_v56, %v4481_v57 }
 0xa18   : > { %v9437_v2 = vpop.f32.mrf.mxu2 }
 0xa1c   : > { %6431 = vmatmul.msk.f32.gmra.mxu3 %vm3322_vm14, %v9274_v32  ;;  %v9458_v32 = vadd.f32 %v9239_v56, %v4475_v63  ;;  %v4484_v5 = vpop.f32.mrf.mxu0 }
 0xa1d   : > { %6399 = vmatmul.msk.f32.gmra.mxu2 %vm3322_vm14, %v9440_v22  ;;  %v4485_v44 = vadd.f32 %v9239_v56, %v4484_v5 }
 0xa20   : > { %v9446_v30 = vpop.f32.mrf.mxu2 }
 0xa24   : > { %6432 = vmatmul.msk.f32.gmra.mxu3 %vm3322_vm14, %v9282_v41  ;;  %v9467_v41 = vadd.f32 %v9239_v56, %v4478_v60 }
 0xa25   : > { %6400 = vmatmul.msk.f32.gmra.mxu2 %vm3322_vm14, %v9449_v50 }
 0xa28   : > { %v9455_v15 = vpop.f32.mrf.mxu2 }
 0xa2c   : > { %6433 = vmatmul.msk.f32.gmra.mxu3 %vm3322_vm14, %v9290_v7  ;;  %v4487_v7 = vpop.f32.mrf.mxu0 }
 0xa2d   : > { %6401 = vmatmul.msk.f32.gmra.mxu2 %vm3322_vm14, %v9458_v32  ;;  %v4488_v48 = vadd.f32 %v9239_v56, %v4487_v7 }
 0xa30   : > { %v9464_v51 = vpop.f32.mrf.mxu2 }
 0xa34   : > { %6434 = vmatmul.msk.f32.gmra.mxu3 %vm3322_vm14, %v9296_v20  ;;  %v4490_v20 = vpop.f32.mrf.mxu0 }
 0xa35   : > { %6402 = vmatmul.msk.f32.gmra.mxu2 %vm3322_vm14, %v9467_v41  ;;  %v4491_v46 = vadd.f32 %v9239_v56, %v4490_v20 }
 0xa38   : > { %v9473_v28 = vpop.f32.mrf.mxu2 }
 0xa3c   : > { %6435 = vmatmul.msk.f32.gmra.mxu3 %vm3322_vm14, %v9302_v6  ;;  %v4493_v6 = vpop.f32.mrf.mxu0 }
 0xa3d   : > { %6403 = vmatmul.msk.f32.gmra.mxu2 %vm3322_vm14, %v9476_v35  ;;  %v4494_v25 = vadd.f32 %v9239_v56, %v4493_v6  ;;  %v5045_v6 = vmax.f32 %v9428_v10, %v9446_v30 }
 0xa40   : > { %v9482_v43 = vpop.f32.mrf.mxu2 }
 0xa44   : > { %6436 = vmatmul.msk.f32.gmra.mxu3 %vm3322_vm14, %v9307_v36  ;;  %v4496_v62 = vpop.f32.mrf.mxu0 }
 0xa45   : > { %6404 = vmatmul.msk.f32.gmra.mxu2 %vm3322_vm14, %v4485_v44  ;;  %v4497_v9 = vadd.f32 %v9239_v56, %v4496_v62  ;;  %v5047_v62 = vmax.f32 %v5045_v6, %v9464_v51 }
 0xa48   : > { %v9488_v37 = vpop.f32.mrf.mxu2 }
 0xa4c   : > { %6437 = vmatmul.msk.f32.gmra.mxu3 %vm3322_vm14, %v9316_v8  ;;  %v4499_v47 = vpop.f32.mrf.mxu0 }
 0xa4d   : > { %6405 = vmatmul.msk.f32.gmra.mxu2 %vm3322_vm14, %v4488_v48  ;;  %v4500_v61 = vadd.f32 %v9239_v56, %v4499_v47 }
 0xa50   : > { %v9494_v33 = vpop.f32.mrf.mxu2 }
 0xa54   : > { %6438 = vmatmul.msk.f32.gmra.mxu3 %vm3322_vm14, %v9325_v40 }
 0xa55   : > { %6406 = vmatmul.msk.f32.gmra.mxu2 %vm3322_vm14, %v4491_v46 }
 0xa58   : > { %v9500_v36 = vpop.f32.mrf.mxu2 }
 0xa5c   : > { %6439 = vmatmul.msk.f32.gmra.mxu3 %vm3322_vm14, %v9334_v0  ;;  %v4502_v0 = vpop.f32.mrf.mxu0 }
 0xa5d   : > { %6407 = vmatmul.msk.f32.gmra.mxu2 %vm3322_vm14, %v4494_v25  ;;  %v9521_v14 = vadd.f32 %v9239_v56, %v4502_v0 }
 0xa60   : > { %v9506_v8 = vpop.f32.mrf.mxu2 }
 0xa64   : > { %6440 = vmatmul.msk.f32.gmra.mxu3 %vm3322_vm14, %v9347_v23  ;;  %v4505_v23 = vpop.f32.mrf.mxu0 }
 0xa65   : > { %6408 = vmatmul.msk.f32.gmra.mxu2 %vm3322_vm14, %v4497_v9  ;;  %v9530_v55 = vadd.f32 %v9239_v56, %v4505_v23  ;;  %v5049_v23 = vmax.f32 %v5047_v62, %v9482_v43 }
 0xa67   : > { %v5051_v19 = vmax.f32 %v5049_v23, %v9494_v33 }
 0xa68   : > { %v9512_v40 = vpop.f32.mrf.mxu2 }
 0xa6c   : > { %6441 = vmatmul.msk.f32.gmra.mxu3 %vm3322_vm14, %v9362_v29 }
 0xa6d   : > { %6409 = vmatmul.msk.f32.gmra.mxu2 %vm3322_vm14, %v4500_v61 }
 0xa70   : > { %v9518_v59 = vpop.f32.mrf.mxu2 }
 0xa74   : > { %6442 = vmatmul.msk.f32.gmra.mxu3 %vm3322_vm14, %v9381_v52 }
 0xa75   : > { %6410 = vmatmul.msk.f32.gmra.mxu2 %vm3322_vm14, %v9521_v14 }
 0xa78   : > { %v9527_v12 = vpop.f32.mrf.mxu2 }
 0xa7c   : > { %6443 = vmatmul.msk.f32.gmra.mxu3 %vm3322_vm14, %v9400_v3 }
 0xa7d   : > { %6411 = vmatmul.msk.f32.gmra.mxu2 %vm3322_vm14, %v9530_v55 }
 0xa80   : > { %v9536_v29 = vpop.f32.mrf.mxu2 }
 0xa84   : > { %6444 = vmatmul.msk.f32.gmra.mxu3 %vm3322_vm14, %v9413_v24 }
 0xa87   : > { %v9540_v52 = vpop.f32.mrf.mxu3 }
 0xa88   : > { %v9542_v42 = vpop.f32.mrf.mxu2 }
 0xa8c   : > { %6445 = vmatmul.msk.f32.gmra.mxu3 %vm3322_vm14, %v9422_v53 }
 0xa8f   : > { %v9546_v56 = vpop.f32.mrf.mxu3 }
 0xa90   : > { %v9548_v26 = vpop.f32.mrf.mxu2 }
 0xa94   : > { %6446 = vmatmul.msk.f32.gmra.mxu3 %vm3322_vm14, %v9431_v49 }
 0xa97   : > { %v9552_v3 = vpop.f32.mrf.mxu3 }
 0xa98   : > { %v9554_v1 = vpop.f32.mrf.mxu2 }
 0xa9c   : > { %6447 = vmatmul.msk.f32.gmra.mxu3 %vm3322_vm14, %v9440_v22 }
 0xa9f   : > { %v9558_v31 = vpop.f32.mrf.mxu3 }
 0xaa0   : > { %v9560_v17 = vpop.f32.mrf.mxu2 }
 0xaa4   : > { %6448 = vmatmul.msk.f32.gmra.mxu3 %vm3322_vm14, %v9449_v50 }
 0xaa7   : > { %v9564_v24 = vpop.f32.mrf.mxu3 }
 0xaa8   : > { %v9566_v38 = vpop.f32.mrf.mxu2 }
 0xaac   : > { %6449 = vmatmul.msk.f32.gmra.mxu3 %vm3322_vm14, %v9458_v32 }
 0xaaf   : > { %v9570_v53 = vpop.f32.mrf.mxu3 }
 0xab0   : > { %v9572_v49 = vpop.f32.mrf.mxu2 }
 0xab4   : > { %6450 = vmatmul.msk.f32.gmra.mxu3 %vm3322_vm14, %v9467_v41 }
 0xab7   : > { %v9576_v63 = vpop.f32.mrf.mxu3 }
 0xab8   : > { %v9578_v22 = vpop.f32.mrf.mxu2 }
 0xabc   : > { %6451 = vmatmul.msk.f32.gmra.mxu3 %vm3322_vm14, %v9476_v35 }
 0xabf   : > { %v9582_v60 = vpop.f32.mrf.mxu3 }
 0xac0   : > { %v9584_v50 = vpop.f32.mrf.mxu2 }
 0xac4   : > { %6452 = vmatmul.msk.f32.gmra.mxu3 %vm3322_vm14, %v4485_v44 }
 0xac7   : > { %v9587_v57 = vpop.f32.mrf.mxu3 }
 0xac8   : > { %v9589_v32 = vpop.f32.mrf.mxu2 }
 0xacc   : > { %6453 = vmatmul.msk.f32.gmra.mxu3 %vm3322_vm14, %v4488_v48  ;;  %v5044_v48 = vmax.f32 %v9419_v16, %v9437_v2 }
 0xacf   : > { %v9592_v5 = vpop.f32.mrf.mxu3 }
 0xad0   : > { %v9594_v41 = vpop.f32.mrf.mxu2 }
 0xad4   : > { %6454 = vmatmul.msk.f32.gmra.mxu3 %vm3322_vm14, %v4491_v46  ;;  %v5046_v46 = vmax.f32 %v5044_v48, %v9455_v15  ;;  %v5053_v48 = vmax.f32 %v5051_v19, %v9506_v8 }
 0xad6   : > { %v5055_v18 = vmax.f32 %v5053_v48, %v9518_v59 }
 0xad7   : > { %v9597_v7 = vpop.f32.mrf.mxu3 }
 0xad8   : > { %10594 = vst [vmem:[#allocation37_spill] sm:$0xff] %v9597_v7  ;;  %v9599_v35 = vpop.f32.mrf.mxu2  ;;  %v5057_v62 = vmax.f32 %v5055_v18, %v9536_v29 }
 0xadc   : > { %6455 = vmatmul.msk.f32.gmra.mxu3 %vm3322_vm14, %v4494_v25  ;;  %v5048_v25 = vmax.f32 %v5046_v46, %v9473_v28 }
 0xadf   : > { %v9602_v20 = vpop.f32.mrf.mxu3 }
 0xae0   : > { %v9604_v44 = vpop.f32.mrf.mxu2 }
 0xae4   : > { %6456 = vmatmul.msk.f32.gmra.mxu3 %vm3322_vm14, %v4497_v9  ;;  %v5050_v9 = vmax.f32 %v5048_v25, %v9488_v37 }
 0xae6   : > { %v5052_v45 = vmax.f32 %v5050_v9, %v9500_v36 }
 0xae7   : > { %v9613_v47 = vpop.f32.mrf.mxu3 }
 0xae8   : > { %10595 = vst [vmem:[#allocation38_spill] sm:$0xff] %v9613_v47  ;;  %v9615_v0 = vpop.f32.mrf.mxu2  ;;  %v5054_v6 = vmax.f32 %v5052_v45, %v9512_v40 }
 0xaea   : > { %v5056_v46 = vmax.f32 %v5054_v6, %v9527_v12 }
 0xaec   : > { %6457 = vmatmul.msk.f32.gmra.mxu3 %vm3322_vm14, %v4500_v61  ;;  %v5058_v25 = vmax.f32 %v5056_v46, %v9542_v42  ;;  %v5059_v61 = vmax.f32 %v5057_v62, %v9548_v26 }
 0xaee   : > { %v5060_v19 = vmax.f32 %v5058_v25, %v9554_v1  ;;  %v5061_v45 = vmax.f32 %v5059_v61, %v9560_v17 }
 0xaef   : > { %v9630_v39 = vpop.f32.mrf.mxu3 }
 0xaf0   : > { %v9626_v4 = vpop.f32.mrf.mxu2  ;;  %v5062_v23 = vmax.f32 %v5060_v19, %v9566_v38  ;;  %v5063_v9 = vmax.f32 %v5061_v45, %v9572_v49 }
 0xaf2   : > { %v5064_v18 = vmax.f32 %v5062_v23, %v9578_v22  ;;  %v5065_v6 = vmax.f32 %v5063_v9, %v9584_v50 }
 0xaf4   : > { %6458 = vmatmul.msk.f32.gmra.mxu3 %vm3322_vm14, %v9521_v14  ;;  %v5066_v46 = vmax.f32 %v5064_v18, %v9589_v32  ;;  %v5067_v62 = vmax.f32 %v5065_v6, %v9594_v41 }
 0xaf6   : > { %v5068_v14 = vmax.f32 %v5066_v46, %v9599_v35  ;;  %v5069_v25 = vmax.f32 %v5067_v62, %v9604_v44 }
 0xaf7   : > { %v9646_v11 = vpop.f32.mrf.mxu3 }
 0xaf8   : > { %v9640_v48 = vpop.f32.mrf.mxu2  ;;  %v5070_v61 = vmax.f32 %v5068_v14, %v9615_v0  ;;  %v5071_v19 = vmax.f32 %v5069_v25, %v9626_v4 }
 0xafa   : > { %v5072_v23 = vmax.f32 %v5070_v61, %v9640_v48 }
 0xafc   : > { %6459 = vmatmul.msk.f32.gmra.mxu3 %vm3322_vm14, %v9530_v55 }
 0xaff   : > { %v9658_v13 = vpop.f32.mrf.mxu3 }
 0xb00   : > { %v9654_v45 = vpop.f32.mrf.mxu2  ;;  %10596 = vst [vmem:[#allocation39_spill] sm:$0xff] %v9658_v13 }
 0xb01   : > { %v5073_v9 = vmax.f32 %v5071_v19, %v9654_v45 }
 0xb03   : > { %v5074_v18 = vmax.f32 %v5072_v23, %v5073_v9 }
 0xb05   : > { %v5075_v6 = vrot.slane %v5074_v18, 4 }
 0xb07   : > { %v5076_v34 = vmax.f32 %v5074_v18, %v5075_v6  ;;  %v9660_v54 = vpop.f32.mrf.mxu3 }
 0xb09   : > { %v5077_v55 = vrot.slane %v5076_v34, 2 }
 0xb0b   : > { %v5078_v27 = vmax.f32 %v5076_v34, %v5077_v55 }
 0xb0d   : > { %v5079_v46 = vrot.slane %v5078_v27, 1 }
 0xb0f   : > { %v9662_v62 = vmax.f32 %v5078_v27, %v5079_v46  ;;  %v9668_v61 = vpop.f32.mrf.mxu3 }
 0xb11   : > { %v5118_v14 = vsub.f32 %v9419_v16, %v9662_v62  ;;  %v5120_v25 = vsub.f32 %v9428_v10, %v9662_v62  ;;  %v5122_v19 = vsub.f32 %v9437_v2, %v9662_v62  ;;  %v5124_v23 = vsub.f32 %v9446_v30, %v9662_v62 }
 0xb12   : > { %v5126_v27 = vsub.f32 %v9455_v15, %v9662_v62  ;;  %v5128_v16 = vsub.f32 %v9464_v51, %v9662_v62  ;;  %v5130_v2 = vsub.f32 %v9473_v28, %v9662_v62  ;;  %v5132_v30 = vsub.f32 %v9482_v43, %v9662_v62 }
 0xb13   : > { %v5182_v34 = vmul.f32 1.442695, %v5118_v14  ;;  %v5186_v9 = vmul.f32 1.442695, %v5120_v25  ;;  %v5190_v18 = vmul.f32 1.442695, %v5122_v19  ;;  %v5134_v51 = vsub.f32 %v9488_v37, %v9662_v62 }
 0xb14   : > { %v5194_v10 = vmul.f32 1.442695, %v5124_v23  ;;  %v5198_v55 = vmul.f32 1.442695, %v5126_v27  ;;  %v5202_v46 = vmul.f32 1.442695, %v5128_v16  ;;  %v5136_v23 = vsub.f32 %v9494_v33, %v9662_v62 }
 0xb15   : > { %6670 = vpow2.f32 %v5182_v34  ;;  %v5206_v25 = vmul.f32 1.442695, %v5130_v2  ;;  %v5210_v43 = vmul.f32 1.442695, %v5132_v30  ;;  %v5138_v37 = vsub.f32 %v9500_v36, %v9662_v62 }
 0xb16   : > { %6672 = vpow2.f32 %v5186_v9  ;;  %v5140_v33 = vsub.f32 %v9506_v8, %v9662_v62  ;;  %v5218_v2 = vmul.f32 1.442695, %v5136_v23  ;;  %v5158_v21 = vsub.f32 %v9566_v38, %v9662_v62 }
 0xb17   : > { %v9678_v6 = vpop.f32.mrf.mxu3  ;;  %6674 = vpow2.f32 %v5190_v18  ;;  %v5214_v18 = vmul.f32 1.442695, %v5134_v51  ;;  %v5222_v36 = vmul.f32 1.442695, %v5138_v37  ;;  %v5162_v38 = vsub.f32 %v9578_v22, %v9662_v62 }
 0xb18   : > { %6676 = vpow2.f32 %v5194_v10  ;;  %v5226_v8 = vmul.f32 1.442695, %v5140_v33  ;;  %v5166_v58 = vsub.f32 %v9589_v32, %v9662_v62  ;;  %v5170_v32 = vsub.f32 %v9599_v35, %v9662_v62 }
 0xb19   : > { %6678 = vpow2.f32 %v5198_v55  ;;  %v5270_v22 = vmul.f32 1.442695, %v5162_v38 }
 0xb1a   : > { %6680 = vpow2.f32 %v5202_v46  ;;  %v5142_v46 = vsub.f32 %v9512_v40, %v9662_v62  ;;  %v5146_v40 = vsub.f32 %v9527_v12, %v9662_v62  ;;  %v5278_v38 = vmul.f32 1.442695, %v5166_v58 }
 0xb1b   : > { %v9684_v15 = vpop.eup %6670  ;;  %6682 = vpow2.f32 %v5206_v25  ;;  %v5286_v35 = vmul.f32 1.442695, %v5170_v32 }
 0xb1c   : > { %v9686_v14 = vpop.eup %6672  ;;  %6684 = vpow2.f32 %v5210_v43  ;;  %v5230_v37 = vmul.f32 1.442695, %v5142_v46  ;;  %v5238_v12 = vmul.f32 1.442695, %v5146_v40 }
 0xb1d   : > { %v5310_v19 = vadd.f32 %v9686_v14, %v9684_v15  ;;  %v9692_v28 = vpop.eup %6674  ;;  %6686 = vpow2.f32 %v5214_v18 }
 0xb1e   : > { %v9699_v27 = vpop.eup %6676  ;;  %6688 = vpow2.f32 %v5218_v2 }
 0xb1f   : > { %v5311_v34 = vadd.f32 %v9692_v28, %v5310_v19  ;;  %v9697_v9 = vpop.f32.mrf.mxu3  ;;  %v9704_v10 = vpop.eup %6678  ;;  %v5144_v19 = vsub.f32 %v9518_v59, %v9662_v62  ;;  %6690 = vpow2.f32 %v5222_v36  ;;  %v5148_v59 = vsub.f32 %v9536_v29, %v9662_v62 }
 0xb20   : > { %v9709_v30 = vpop.eup %6680  ;;  %6692 = vpow2.f32 %v5226_v8 }
 0xb21   : > { %v5312_v16 = vadd.f32 %v9699_v27, %v5311_v34  ;;  %v9714_v25 = vpop.eup %6682  ;;  %v5234_v33 = vmul.f32 1.442695, %v5144_v19  ;;  %6694 = vpow2.f32 %v5230_v37  ;;  %v5242_v29 = vmul.f32 1.442695, %v5148_v59 }
 0xb22   : > { %10597 = vst [vmem:[#allocation40_spill] sm:$0xff] %v9714_v25  ;;  %v9721_v34 = vpop.eup %6684 }
 0xb23   : > { %v5313_v55 = vadd.f32 %v9704_v10, %v5312_v16  ;;  %10598 = vst [vmem:[#allocation41_spill] sm:$0xff] %v9721_v34  ;;  %v9726_v16 = vpop.eup %6686  ;;  %6696 = vpow2.f32 %v5234_v33 }
 0xb24   : > { %10599 = vst [vmem:[#allocation42_spill] sm:$0xff] %v9726_v16  ;;  %6698 = vpow2.f32 %v5238_v12 }
 0xb25   : > { %v5314_v51 = vadd.f32 %v9709_v30, %v5313_v55  ;;  %v9731_v55 = vpop.eup %6688  ;;  %6700 = vpow2.f32 %v5242_v29 }
 0xb26   : > { %10600 = vst [vmem:[#allocation43_spill] sm:$0xff] %v9731_v55  ;;  %v9736_v36 = vpop.eup %6690 }
 0xb27   : > { %v5315_v23 = vadd.f32 %v9714_v25, %v5314_v51  ;;  %v9719_v43 = vpop.f32.mrf.mxu3  ;;  %v5150_v51 = vsub.f32 %v9542_v42, %v9662_v62  ;;  %10601 = vst [vmem:[#allocation44_spill] sm:$0xff] %v9736_v36  ;;  %v5154_v42 = vsub.f32 %v9554_v1, %v9662_v62 }
 0xb29   : > { %v5316_v18 = vadd.f32 %v9721_v34, %v5315_v23  ;;  %v5152_v23 = vsub.f32 %v9548_v26, %v9662_v62  ;;  %v5246_v40 = vmul.f32 1.442695, %v5150_v51  ;;  %v5156_v26 = vsub.f32 %v9560_v17, %v9662_v62 }
 0xb2a   : > { %v5254_v1 = vmul.f32 1.442695, %v5154_v42  ;;  %v5262_v42 = vmul.f32 1.442695, %v5158_v21 }
 0xb2b   : > { %v5317_v2 = vadd.f32 %v9726_v16, %v5316_v18  ;;  %v9743_v18 = vpop.eup %6692  ;;  %v5250_v59 = vmul.f32 1.442695, %v5152_v23  ;;  %6702 = vpow2.f32 %v5246_v40  ;;  %v5258_v17 = vmul.f32 1.442695, %v5156_v26 }
 0xb2c   : > { %10602 = vst [vmem:[#allocation45_spill] sm:$0xff] %v9743_v18 }
 0xb2d   : > { %v5318_v46 = vadd.f32 %v9731_v55, %v5317_v2  ;;  %v9748_v2 = vpop.eup %6694  ;;  %6704 = vpow2.f32 %v5250_v59 }
 0xb2e   : > { %10603 = vst [vmem:[#allocation46_spill] sm:$0xff] %v9748_v2  ;;  %6706 = vpow2.f32 %v5254_v1 }
 0xb2f   : > { %v5319_v19 = vadd.f32 %v9736_v36, %v5318_v46  ;;  %v9741_v8 = vpop.f32.mrf.mxu3  ;;  %v9753_v46 = vpop.eup %6696  ;;  %6708 = vpow2.f32 %v5258_v17 }
 0xb30   : > { %10604 = vst [vmem:[#allocation47_spill] sm:$0xff] %v9753_v46  ;;  %v9758_v12 = vpop.eup %6698  ;;  %6710 = vpow2.f32 %v5262_v42 }
 0xb31   : > { %v5320_v37 = vadd.f32 %v9743_v18, %v5319_v19  ;;  %10605 = vst [vmem:[#allocation48_spill] sm:$0xff] %v9758_v12  ;;  %v5160_v19 = vsub.f32 %v9572_v49, %v9662_v62  ;;  %v5164_v49 = vsub.f32 %v9584_v50, %v9662_v62 }
 0xb33   : > { %v5321_v33 = vadd.f32 %v9748_v2, %v5320_v37  ;;  %v9765_v37 = vpop.eup %6700  ;;  %v5266_v26 = vmul.f32 1.442695, %v5160_v19  ;;  %v5274_v50 = vmul.f32 1.442695, %v5164_v49 }
 0xb34   : > { %10606 = vst [vmem:[#allocation49_spill] sm:$0xff] %v9765_v37 }
 0xb35   : > { %v5322_v51 = vadd.f32 %v9753_v46, %v5321_v33  ;;  %v9770_v33 = vpop.eup %6702  ;;  %6712 = vpow2.f32 %v5266_v26  ;;  %v5081_v46 = vmax.f32 %v9540_v52, %v9552_v3 }
 0xb36   : > { %10607 = vst [vmem:[#allocation50_spill] sm:$0xff] %v9770_v33  ;;  %6714 = vpow2.f32 %v5270_v22 }
 0xb37   : > { %v5323_v23 = vadd.f32 %v9758_v12, %v5322_v51  ;;  %v9763_v29 = vpop.f32.mrf.mxu3  ;;  %v9775_v51 = vpop.eup %6704  ;;  %6716 = vpow2.f32 %v5274_v50 }
 0xb38   : > { %10608 = vst [vmem:[#allocation51_spill] sm:$0xff] %v9775_v51  ;;  %v9780_v1 = vpop.eup %6706  ;;  %6718 = vpow2.f32 %v5278_v38 }
 0xb39   : > { %v5324_v40 = vadd.f32 %v9765_v37, %v5323_v23  ;;  %v5168_v23 = vsub.f32 %v9594_v41, %v9662_v62  ;;  %v5172_v41 = vsub.f32 %v9604_v44, %v9662_v62 }
 0xb3b   : > { %v5325_v59 = vadd.f32 %v9770_v33, %v5324_v40  ;;  %v9787_v40 = vpop.eup %6708  ;;  %v5282_v49 = vmul.f32 1.442695, %v5168_v23  ;;  %v5290_v44 = vmul.f32 1.442695, %v5172_v41 }
 0xb3d   : > { %v5326_v21 = vadd.f32 %v9775_v51, %v5325_v59  ;;  %v9792_v59 = vpop.eup %6710  ;;  %v5174_v51 = vsub.f32 %v9615_v0, %v9662_v62  ;;  %6720 = vpow2.f32 %v5282_v49  ;;  %v5178_v0 = vsub.f32 %v9640_v48, %v9662_v62 }
 0xb3e   : > { %6722 = vpow2.f32 %v5286_v35 }
 0xb3f   : > { %v5327_v19 = vadd.f32 %v9780_v1, %v5326_v21  ;;  %v9785_v17 = vpop.f32.mrf.mxu3  ;;  %v9797_v21 = vpop.eup %6712  ;;  %v5294_v32 = vmul.f32 1.442695, %v5174_v51  ;;  %6724 = vpow2.f32 %v5290_v44  ;;  %v5302_v33 = vmul.f32 1.442695, %v5178_v0 }
 0xb40   : > { %v9802_v22 = vpop.eup %6714 }
 0xb41   : > { %v5328_v42 = vadd.f32 %v9787_v40, %v5327_v19  ;;  %v5176_v19 = vsub.f32 %v9626_v4, %v9662_v62  ;;  %v5180_v4 = vsub.f32 %v9654_v45, %v9662_v62  ;;  %6726 = vpow2.f32 %v5294_v32 }
 0xb43   : > { %v5329_v26 = vadd.f32 %v9792_v59, %v5328_v42  ;;  %v9809_v42 = vpop.eup %6716  ;;  %v5298_v41 = vmul.f32 1.442695, %v5176_v19  ;;  %v5306_v51 = vmul.f32 1.442695, %v5180_v4 }
 0xb45   : > { %v5330_v58 = vadd.f32 %v9797_v21, %v5329_v26  ;;  %v9814_v26 = vpop.eup %6718  ;;  %6728 = vpow2.f32 %v5298_v41 }
 0xb46   : > { %6730 = vpow2.f32 %v5302_v33 }
 0xb47   : > { %v5331_v23 = vadd.f32 %v9802_v22, %v5330_v58  ;;  %v9807_v50 = vpop.f32.mrf.mxu3  ;;  %v9819_v58 = vpop.eup %6720  ;;  %6732 = vpow2.f32 %v5306_v51 }
 0xb48   : > { %v9822_v48 = vpop.eup %6722 }
 0xb49   : > { %v5332_v38 = vadd.f32 %v9809_v42, %v5331_v23  ;;  %v9827_v12 = vpop.eup %6724 }
 0xb4a   : > { %v9830_v62 = vpop.eup %6726 }
 0xb4b   : > { %v5333_v49 = vadd.f32 %v9814_v26, %v5332_v38  ;;  %v9833_v44 = vpop.eup %6728 }
 0xb4c   : > { %v9836_v32 = vpop.eup %6730 }
 0xb4d   : > { %v5334_v37 = vadd.f32 %v9819_v58, %v5333_v49  ;;  %v9841_v4 = vpop.eup %6732 }
 0xb4f   : > { %v5335_v35 = vadd.f32 %v9822_v48, %v5334_v37  ;;  %v9825_v23 = vpop.f32.mrf.mxu3 }
 0xb51   : > { %v5336_v45 = vadd.f32 %v9827_v12, %v5335_v35 }
 0xb53   : > { %v5337_v19 = vadd.f32 %v9830_v62, %v5336_v45 }
 0xb55   : > { %v5338_v0 = vadd.f32 %v9833_v44, %v5337_v19  ;;  %v5082_v19 = vmax.f32 %v9546_v56, %v9558_v31 }
 0xb57   : > { %v5339_v37 = vadd.f32 %v9836_v32, %v5338_v0  ;;  %v9839_v38 = vpop.f32.mrf.mxu3  ;;  %v5083_v0 = vmax.f32 %v5081_v46, %v9564_v24  ;;  %v5084_v18 = vmax.f32 %v5082_v19, %v9570_v53 }
 0xb59   : > { %v5340_v33 = vadd.f32 %v9841_v4, %v5339_v37  ;;  %v5085_v37 = vmax.f32 %v5083_v0, %v9576_v63 }
 0xb5b   : > { %v5341_v41 = vrot.slane %v5340_v33, 4 }
 0xb5d   : > { %v5342_v49 = vadd.f32 %v5341_v41, %v5340_v33  ;;  %v5086_v33 = vmax.f32 %v5084_v18, %v9582_v60 }
 0xb5f   : > { %v5343_v35 = vrot.slane %v5342_v49, 2  ;;  %v9844_v51 = vpop.f32.mrf.mxu3 }
 0xb61   : > { %v5344_v45 = vadd.f32 %v5343_v35, %v5342_v49  ;;  %v5087_v49 = vmax.f32 %v5085_v37, %v9587_v57  ;;  %v5088_v35 = vmax.f32 %v5086_v33, %v9592_v5 }
 0xb63   : > { %v5345_v2 = vrot.slane %v5344_v45, 1  ;;  %v5089_v55 = vmax.f32 %v5087_v49, %v9597_v7  ;;  %v5090_v16 = vmax.f32 %v5088_v35, %v9602_v20 }
 0xb65   : > { %v5346_v36 = vadd.f32 %v5345_v2, %v5344_v45  ;;  %v5091_v46 = vmax.f32 %v5089_v55, %v9613_v47  ;;  %v5092_v2 = vmax.f32 %v5090_v16, %v9630_v39 }
 0xb67   : > { %6734 = vrcp.f32 %v5346_v36  ;;  %v9854_v41 = vpop.f32.mrf.mxu3  ;;  %v5093_v45 = vmax.f32 %v5091_v46, %v9646_v11  ;;  %v5094_v18 = vmax.f32 %v5092_v2, %v9658_v13  ;;  %v5395_v33 = vand.u32 2147483648, %v5346_v36 }
 0xb68   : > { %v5393_v35 = vand.u32 2147483647, %v5346_v36  ;;  %vm5389_vm12 = vweird.f32 %v5346_v36 }
 0xb69   : > { %v5095_v37 = vmax.f32 %v5093_v45, %v9660_v54  ;;  %v5096_v49 = vmax.f32 %v5094_v18, %v9668_v61  ;;  %v5396_v2 = vor.u32 1.1754944e-38, %v5395_v33 }
 0xb6a   : > { %vm5394_vm1 = vcmp.eq.f32.partialorder %v5393_v35, 8.507059e+37 }
 0xb6b   : > { %v5097_v55 = vmax.f32 %v5095_v37, %v9678_v6  ;;  %v5098_v16 = vmax.f32 %v5096_v49, %v9697_v9 }
 0xb6d   : > { %v6735_v34 = vpop.eup %6734  ;;  %v5099_v46 = vmax.f32 %v5097_v55, %v9719_v43  ;;  %v5100_v45 = vmax.f32 %v5098_v16, %v9741_v8 }
 0xb6e   : > { %v5385_v19 = vmul.f32 %v6735_v34, %v5346_v36  ;;  %vm5390_vm11 = vweird.f32 %v6735_v34 }
 0xb6f   : > { %v9864_v0 = vpop.f32.mrf.mxu3  ;;  %vm5391_vm15 = vmor %vm5389_vm12, %vm5390_vm11  ;;  %v5102_v36 = vmax.f32 %v5100_v45, %v9785_v17 }
 0xb70   : > { %v5386_v25 = vsub.f32 1.0, %v5385_v19  ;;  %v5101_v19 = vmax.f32 %v5099_v46, %v9763_v29 }
 0xb71   : > { %v5104_v49 = vmax.f32 %v5102_v36, %v9825_v23 }
 0xb72   : > { %v5387_v7 = vmul.f32 %v6735_v34, %v5386_v25  ;;  %v5103_v37 = vmax.f32 %v5101_v19, %v9807_v50 }
 0xb74   : > { %v5388_v47 = vadd.f32 %v6735_v34, %v5387_v7 }
 0xb76   : > { %v5392_v13 = vsel %vm5391_vm15, %v6735_v34, %v5388_v47  ;;  %v5105_v47 = vmax.f32 %v5103_v37, %v9839_v38  ;;  %v5106_v34 = vmax.f32 %v5104_v49, %v9844_v51 }
 0xb77   : > { %v9873_v18 = vsel %vm5394_vm1, %v5396_v2, %v5392_v13  ;;  %v9875_v25 = vpop.f32.mrf.mxu3 }
 0xb78   : > { %v5398_v7 = vmul.f32 %v9684_v15, %v9873_v18  ;;  %v5107_v33 = vmax.f32 %v5105_v47, %v9854_v41  ;;  %v5108_v13 = vmax.f32 %v5106_v34, %v9864_v0  ;;  %v5414_v15 = vmul.f32 %v9686_v14, %v9873_v18 }
 0xb79   : > { %v9893_v16 = vmul.f32 %v9780_v1, %v9873_v18  ;;  %v9897_v46 = vmul.f32 %v9787_v40, %v9873_v18  ;;  %v9901_v2 = vmul.f32 %v9792_v59, %v9873_v18  ;;  %v9906_v19 = vmul.f32 %v9797_v21, %v9873_v18 }
 0xb7a   : > { %5492 = vmatmul.f32.vlgmr.msrb.gmra.mxu0 %v5398_v7  ;;  %v5109_v35 = vmax.f32 %v5107_v33, %v9875_v25  ;;  %v9910_v14 = vmul.f32 %v9802_v22, %v9873_v18  ;;  %v9914_v1 = vmul.f32 %v9809_v42, %v9873_v18  ;;  %v9918_v40 = vmul.f32 %v9814_v26, %v9873_v18 }
 0xb7b   : > { %v9922_v59 = vmul.f32 %v9819_v58, %v9873_v18  ;;  %v9926_v21 = vmul.f32 %v9822_v48, %v9873_v18  ;;  %v9930_v22 = vmul.f32 %v9827_v12, %v9873_v18  ;;  %v9934_v42 = vmul.f32 %v9830_v62, %v9873_v18 }
 0xb7c   : > { %v9938_v26 = vmul.f32 %v9833_v44, %v9873_v18  ;;  %v9942_v58 = vmul.f32 %v9836_v32, %v9873_v18  ;;  %v9946_v48 = vmul.f32 %v9841_v4, %v9873_v18  ;;  %v5416_v49 = vmul.f32 %v9692_v28, %v9873_v18 }
 0xb7d   : > { %v5418_v44 = vmul.f32 %v9699_v27, %v9873_v18 }
 0xb7f   : > { %v9887_v55 = vpop.f32.mrf.mxu3 }
 0xb80   : > { %v5110_v45 = vmax.f32 %v5108_v13, %v9887_v55 }
 0xb82   : > { %v5111_v7 = vmax.f32 %v5109_v35, %v5110_v45  ;;  %5495 = vmatmul.f32.gmra.mxu0 %v5414_v15  ;;  %v5420_v15 = vmul.f32 %v9704_v10, %v9873_v18 }
 0xb84   : > { %v5112_v12 = vrot.slane %v5111_v7, 4 }
 0xb86   : > { %v5113_v36 = vmax.f32 %v5111_v7, %v5112_v12 }
 0xb88   : > { %v5114_v37 = vrot.slane %v5113_v36, 2 }
 0xb8a   : > { %v5115_v62 = vmax.f32 %v5113_v36, %v5114_v37  ;;  %5498 = vmatmul.f32.gmra.mxu0 %v5416_v49 }
 0xb8c   : > { %v5116_v47 = vrot.slane %v5115_v62, 1 }
 0xb8e   : > { %v9950_v34 = vmax.f32 %v5115_v62, %v5116_v47 }
 0xb90   : > { %v5119_v32 = vsub.f32 %v9540_v52, %v9950_v34  ;;  %v5121_v4 = vsub.f32 %v9546_v56, %v9950_v34  ;;  %v5123_v33 = vsub.f32 %v9552_v3, %v9950_v34  ;;  %v5125_v28 = vsub.f32 %v9558_v31, %v9950_v34 }
 0xb91   : > { %v5127_v27 = vsub.f32 %v9564_v24, %v9950_v34  ;;  %v5129_v52 = vsub.f32 %v9570_v53, %v9950_v34  ;;  %v5131_v3 = vsub.f32 %v9576_v63, %v9950_v34  ;;  %v5133_v7 = vsub.f32 %v9582_v60, %v9950_v34 }
 0xb92   : > { %5501 = vmatmul.f32.gmra.mxu0 %v5418_v44  ;;  %v5184_v13 = vmul.f32 1.442695, %v5119_v32  ;;  %v5188_v35 = vmul.f32 1.442695, %v5121_v4  ;;  %v5192_v45 = vmul.f32 1.442695, %v5123_v33  ;;  %v5422_v24 = vmul.f32 %v9709_v30, %v9873_v18 }
 0xb93   : > { %v5196_v56 = vmul.f32 1.442695, %v5125_v28  ;;  %v5200_v31 = vmul.f32 1.442695, %v5127_v27  ;;  %v5204_v10 = vmul.f32 1.442695, %v5129_v52  ;;  %v5135_v53 = vsub.f32 %v9587_v57, %v9950_v34 }
 0xb94   : > { %6736 = vpow2.f32 %v5184_v13  ;;  %v5208_v37 = vmul.f32 1.442695, %v5131_v3  ;;  %v5137_v60 = vsub.f32 %v9592_v5, %v9950_v34  ;;  %v5212_v62 = vmul.f32 1.442695, %v5133_v7  ;;  %v10609_v44 = vld [vmem:[#allocation37_spill] sm:$0xff] }
 0xb95   : > { %6738 = vpow2.f32 %v5188_v35  ;;  %v5139_v57 = vsub.f32 %v10609_v44, %v9950_v34  ;;  %v5216_v32 = vmul.f32 1.442695, %v5135_v53  ;;  %v5141_v28 = vsub.f32 %v9602_v20, %v9950_v34  ;;  %v10610_v35 = vld [vmem:[#allocation40_spill] sm:$0xff] }
 0xb96   : > { %6740 = vpow2.f32 %v5192_v45  ;;  %v5220_v5 = vmul.f32 1.442695, %v5137_v60  ;;  %v10611_v45 = vld [vmem:[#allocation38_spill] sm:$0xff]  ;;  %v5145_v20 = vsub.f32 %v9630_v39, %v9950_v34  ;;  %v5147_v53 = vsub.f32 %v9646_v11, %v9950_v34 }
 0xb97   : > { %6742 = vpow2.f32 %v5196_v56  ;;  %v5143_v52 = vsub.f32 %v10611_v45, %v9950_v34  ;;  %v5224_v56 = vmul.f32 1.442695, %v5139_v57  ;;  %v5228_v7 = vmul.f32 1.442695, %v5141_v28  ;;  %v10613_v57 = vld [vmem:[#allocation41_spill] sm:$0xff] }
 0xb98   : > { %6744 = vpow2.f32 %v5200_v31  ;;  %v5236_v39 = vmul.f32 1.442695, %v5145_v20  ;;  %v5151_v11 = vsub.f32 %v9660_v54, %v9950_v34  ;;  %v5240_v28 = vmul.f32 1.442695, %v5147_v53  ;;  %v10614_v53 = vld [vmem:[#allocation42_spill] sm:$0xff] }
 0xb99   : > { %6746 = vpow2.f32 %v5204_v10 }
 0xb9a   : > { %5504 = vmatmul.f32.gmra.mxu0 %v5420_v15  ;;  %v9972_v12 = vpop.eup %6736  ;;  %6748 = vpow2.f32 %v5208_v37  ;;  %v5424_v15 = vmul.f32 %v10610_v35, %v9873_v18  ;;  %v5232_v37 = vmul.f32 1.442695, %v5143_v52  ;;  %v5153_v35 = vsub.f32 %v9668_v61, %v9950_v34 }
 0xb9b   : > { %v9976_v36 = vpop.eup %6738  ;;  %6750 = vpow2.f32 %v5212_v62  ;;  %v10612_v62 = vld [vmem:[#allocation39_spill] sm:$0xff]  ;;  %v5248_v54 = vmul.f32 1.442695, %v5151_v11  ;;  %v5163_v11 = vsub.f32 %v9763_v29, %v9950_v34  ;;  %v5167_v29 = vsub.f32 %v9807_v50, %v9950_v34 }
 0xb9c   : > { %v5347_v63 = vadd.f32 %v9976_v36, %v9972_v12  ;;  %v9982_v49 = vpop.eup %6740  ;;  %6752 = vpow2.f32 %v5216_v32  ;;  %v5426_v32 = vmul.f32 %v10613_v57, %v9873_v18  ;;  %v5252_v61 = vmul.f32 1.442695, %v5153_v35 }
 0xb9d   : > { %v9987_v47 = vpop.eup %6742  ;;  %6754 = vpow2.f32 %v5220_v5  ;;  %v5165_v35 = vsub.f32 %v9785_v17, %v9950_v34  ;;  %v5169_v17 = vsub.f32 %v9825_v23, %v9950_v34  ;;  %v5280_v50 = vmul.f32 1.442695, %v5167_v29 }
 0xb9e   : > { %v5348_v30 = vadd.f32 %v9982_v49, %v5347_v63  ;;  %v9992_v33 = vpop.eup %6744  ;;  %6756 = vpow2.f32 %v5224_v56  ;;  %v5155_v56 = vsub.f32 %v9678_v6, %v9950_v34  ;;  %v5159_v6 = vsub.f32 %v9719_v43, %v9950_v34 }
 0xb9f   : > { %v9999_v27 = vpop.eup %6746  ;;  %6758 = vpow2.f32 %v5228_v7  ;;  %v5157_v7 = vsub.f32 %v9697_v9, %v9950_v34  ;;  %v5161_v9 = vsub.f32 %v9741_v8, %v9950_v34  ;;  %v5284_v23 = vmul.f32 1.442695, %v5169_v17 }
 0xba0   : > { %v5349_v4 = vadd.f32 %v9987_v47, %v5348_v30  ;;  %v10004_v31 = vpop.eup %6748  ;;  %v5149_v30 = vsub.f32 %v10612_v62, %v9950_v34  ;;  %6760 = vpow2.f32 %v5232_v37  ;;  %v5428_v37 = vmul.f32 %v10614_v53, %v9873_v18 }
 0xba1   : > { %6762 = vpow2.f32 %v5236_v39  ;;  %v5256_v62 = vmul.f32 1.442695, %v5155_v56  ;;  %v5264_v43 = vmul.f32 1.442695, %v5159_v6  ;;  %v5268_v8 = vmul.f32 1.442695, %v5161_v9 }
 0xba2   : > { %5507 = vmatmul.f32.gmra.mxu0 %v5422_v24  ;;  %v5350_v13 = vadd.f32 %v9992_v33, %v5349_v4  ;;  %v10009_v24 = vpop.eup %6750  ;;  %6764 = vpow2.f32 %v5240_v28  ;;  %v5171_v6 = vsub.f32 %v9839_v38, %v9950_v34  ;;  %v5173_v9 = vsub.f32 %v9844_v51, %v9950_v34 }
 0xba3   : > { %v10014_v60 = vpop.eup %6752  ;;  %v5175_v38 = vsub.f32 %v9854_v41, %v9950_v34  ;;  %v5177_v51 = vsub.f32 %v9864_v0, %v9950_v34  ;;  %v5179_v29 = vsub.f32 %v9875_v25, %v9950_v34  ;;  %v5181_v17 = vsub.f32 %v9887_v55, %v9950_v34 }
 0xba4   : > { %v5351_v3 = vadd.f32 %v9999_v27, %v5350_v13  ;;  %v10021_v4 = vpop.eup %6754 }
 0xba5   : > { %v10026_v13 = vpop.eup %6756  ;;  %v5296_v41 = vmul.f32 1.442695, %v5175_v38  ;;  %v5300_v0 = vmul.f32 1.442695, %v5177_v51  ;;  %v5304_v25 = vmul.f32 1.442695, %v5179_v29 }
 0xba6   : > { %v5352_v10 = vadd.f32 %v10004_v31, %v5351_v3  ;;  %v10031_v52 = vpop.eup %6758  ;;  %v10618_v38 = vld [vmem:[#allocation46_spill] sm:$0xff] }
 0xba7   : > { %v10036_v20 = vpop.eup %6760 }
 0xba8   : > { %v5353_v63 = vadd.f32 %v10009_v24, %v5352_v10 }
 0xbaa   : > { %5510 = vmatmul.f32.gmra.mxu0 %v5424_v15  ;;  %v5354_v44 = vadd.f32 %v10014_v60, %v5353_v63  ;;  %v5244_v15 = vmul.f32 1.442695, %v5149_v30  ;;  %v10043_v63 = vpop.eup %6762 }
 0xbab   : > { %v10048_v39 = vpop.eup %6764 }
 0xbac   : > { %v5355_v5 = vadd.f32 %v10021_v4, %v5354_v44  ;;  %6766 = vpow2.f32 %v5244_v15  ;;  %v5260_v44 = vmul.f32 1.442695, %v5157_v7 }
 0xbad   : > { %6768 = vpow2.f32 %v5248_v54 }
 0xbae   : > { %v5356_v45 = vadd.f32 %v10026_v13, %v5355_v5  ;;  %6770 = vpow2.f32 %v5252_v61 }
 0xbaf   : > { %6772 = vpow2.f32 %v5256_v62 }
 0xbb0   : > { %v5357_v3 = vadd.f32 %v10031_v52, %v5356_v45  ;;  %6774 = vpow2.f32 %v5260_v44  ;;  %v10615_v45 = vld [vmem:[#allocation43_spill] sm:$0xff] }
 0xbb1   : > { %v5430_v56 = vmul.f32 %v10615_v45, %v9873_v18  ;;  %6776 = vpow2.f32 %v5264_v43 }
 0xbb2   : > { %5513 = vmatmul.f32.gmra.mxu0 %v5426_v32  ;;  %v5358_v10 = vadd.f32 %v10036_v20, %v5357_v3  ;;  %v10053_v32 = vpop.eup %6766  ;;  %v5272_v3 = vmul.f32 1.442695, %v5163_v11  ;;  %6778 = vpow2.f32 %v5268_v8 }
 0xbb3   : > { %v10058_v5 = vpop.eup %6768 }
 0xbb4   : > { %v5359_v30 = vadd.f32 %v10043_v63, %v5358_v10  ;;  %v10065_v54 = vpop.eup %6770  ;;  %v5276_v10 = vmul.f32 1.442695, %v5165_v35  ;;  %6780 = vpow2.f32 %v5272_v3 }
 0xbb5   : > { %v10070_v61 = vpop.eup %6772 }
 0xbb6   : > { %v5360_v57 = vadd.f32 %v10048_v39, %v5359_v30  ;;  %6782 = vpow2.f32 %v5276_v10 }
 0xbb7   : > { %6784 = vpow2.f32 %v5280_v50 }
 0xbb8   : > { %v5361_v28 = vadd.f32 %v10053_v32, %v5360_v57  ;;  %v10616_v57 = vld [vmem:[#allocation44_spill] sm:$0xff]  ;;  %6786 = vpow2.f32 %v5284_v23  ;;  %v5308_v23 = vmul.f32 1.442695, %v5181_v17  ;;  %v10619_v17 = vld [vmem:[#allocation47_spill] sm:$0xff] }
 0xbb9   : > { %v5432_v11 = vmul.f32 %v10616_v57, %v9873_v18 }
 0xbba   : > { %5516 = vmatmul.f32.gmra.mxu0 %v5428_v37  ;;  %v5362_v15 = vadd.f32 %v10058_v5, %v5361_v28  ;;  %v10075_v37 = vpop.eup %6774  ;;  %v5288_v28 = vmul.f32 1.442695, %v5171_v6 }
 0xbbb   : > { %v10080_v30 = vpop.eup %6776 }
 0xbbc   : > { %v5363_v7 = vadd.f32 %v10065_v54, %v5362_v15  ;;  %v10087_v43 = vpop.eup %6778  ;;  %v5292_v15 = vmul.f32 1.442695, %v5173_v9  ;;  %6788 = vpow2.f32 %v5288_v28  ;;  %v5436_v28 = vmul.f32 %v10618_v38, %v9873_v18 }
 0xbbd   : > { %v10092_v8 = vpop.eup %6780 }
 0xbbe   : > { %v5364_v53 = vadd.f32 %v10070_v61, %v5363_v7  ;;  %6790 = vpow2.f32 %v5292_v15 }
 0xbbf   : > { %6792 = vpow2.f32 %v5296_v41 }
 0xbc0   : > { %v5365_v62 = vadd.f32 %v10075_v37, %v5364_v53  ;;  %v10617_v53 = vld [vmem:[#allocation45_spill] sm:$0xff]  ;;  %6794 = vpow2.f32 %v5300_v0  ;;  %v5438_v0 = vmul.f32 %v10619_v17, %v9873_v18 }
 0xbc1   : > { %v5434_v6 = vmul.f32 %v10617_v53, %v9873_v18  ;;  %6796 = vpow2.f32 %v5304_v25 }
 0xbc2   : > { %5519 = vmatmul.f32.gmra.mxu0 %v5430_v56  ;;  %v5366_v44 = vadd.f32 %v10080_v30, %v5365_v62  ;;  %v10097_v56 = vpop.eup %6782  ;;  %6798 = vpow2.f32 %v5308_v23 }
 0xbc3   : > { %v10102_v7 = vpop.eup %6784 }
 0xbc4   : > { %v5367_v35 = vadd.f32 %v10087_v43, %v5366_v44  ;;  %v10109_v50 = vpop.eup %6786 }
 0xbc5   : > { %v6789_v9 = vpop.eup %6788 }
 0xbc6   : > { %v5368_v45 = vadd.f32 %v10092_v8, %v5367_v35  ;;  %v6791_v57 = vpop.eup %6790 }
 0xbc7   : > { %v6793_v34 = vpop.eup %6792 }
 0xbc8   : > { %v5369_v3 = vadd.f32 %v10097_v56, %v5368_v45  ;;  %v6795_v35 = vpop.eup %6794 }
 0xbc9   : > { %v6797_v15 = vpop.eup %6796 }
 0xbca   : > { %5522 = vmatmul.f32.gmra.mxu0 %v5432_v11  ;;  %v5370_v10 = vadd.f32 %v10102_v7, %v5369_v3  ;;  %v6799_v29 = vpop.eup %6798 }
 0xbcc   : > { %v5371_v62 = vadd.f32 %v10109_v50, %v5370_v10 }
 0xbce   : > { %v5372_v44 = vadd.f32 %v6789_v9, %v5371_v62  ;;  %v10620_v62 = vld [vmem:[#allocation48_spill] sm:$0xff] }
 0xbcf   : > { %v5440_v23 = vmul.f32 %v10620_v62, %v9873_v18 }
 0xbd0   : > { %v5373_v55 = vadd.f32 %v6791_v57, %v5372_v44 }
 0xbd2   : > { %5525 = vmatmul.f32.gmra.mxu0 %v5434_v6  ;;  %v5374_v11 = vadd.f32 %v6793_v34, %v5373_v55  ;;  %v10621_v55 = vld [vmem:[#allocation49_spill] sm:$0xff] }
 0xbd4   : > { %v5375_v51 = vadd.f32 %v6795_v35, %v5374_v11  ;;  %v5442_v11 = vmul.f32 %v10621_v55, %v9873_v18 }
 0xbd6   : > { %v5376_v45 = vadd.f32 %v6797_v15, %v5375_v51 }
 0xbd8   : > { %v5377_v41 = vadd.f32 %v6799_v29, %v5376_v45 }
 0xbda   : > { %5528 = vmatmul.f32.gmra.mxu0 %v5436_v28  ;;  %v5378_v3 = vrot.slane %v5377_v41, 4 }
 0xbdc   : > { %v5379_v10 = vadd.f32 %v5378_v3, %v5377_v41  ;;  %v10622_v3 = vld [vmem:[#allocation50_spill] sm:$0xff] }
 0xbde   : > { %v5380_v53 = vrot.slane %v5379_v10, 2 }
 0xbe0   : > { %v5381_v6 = vadd.f32 %v5380_v53, %v5379_v10 }
 0xbe2   : > { %5531 = vmatmul.f32.gmra.mxu0 %v5438_v0  ;;  %v5382_v25 = vrot.slane %v5381_v6, 1  ;;  %v5444_v0 = vmul.f32 %v10622_v3, %v9873_v18 }
 0xbe4   : > { %v5383_v44 = vadd.f32 %v5382_v25, %v5381_v6 }
 0xbe6   : > { %6800 = vrcp.f32 %v5383_v44  ;;  %v5410_v45 = vand.u32 2147483648, %v5383_v44  ;;  %v5408_v41 = vand.u32 2147483647, %v5383_v44  ;;  %vm5404_vm3 = vweird.f32 %v5383_v44 }
 0xbe8   : > { %v5411_v53 = vor.u32 1.1754944e-38, %v5410_v45  ;;  %vm5409_vm5 = vcmp.eq.f32.partialorder %v5408_v41, 8.507059e+37 }
 0xbea   : > { %5534 = vmatmul.f32.gmra.mxu0 %v5440_v23  ;;  %v10623_v23 = vld [vmem:[#allocation51_spill] sm:$0xff] }
 0xbeb   : > { %v5446_v55 = vmul.f32 %v10623_v23, %v9873_v18 }
 0xbec   : > { %v6801_v38 = vpop.eup %6800 }
 0xbed   : > { %v5400_v28 = vmul.f32 %v6801_v38, %v5383_v44  ;;  %vm5405_vm2 = vweird.f32 %v6801_v38 }
 0xbee   : > { %vm5406_vm4 = vmor %vm5404_vm3, %vm5405_vm2 }
 0xbef   : > { %v5401_v51 = vsub.f32 1.0, %v5400_v28 }
 0xbf1   : > { %v5402_v17 = vmul.f32 %v6801_v38, %v5401_v51 }
 0xbf2   : > { %5537 = vmatmul.f32.gmra.mxu0 %v5442_v11 }
 0xbf3   : > { %v5403_v10 = vadd.f32 %v6801_v38, %v5402_v17 }
 0xbf5   : > { %v5407_v6 = vsel %vm5406_vm4, %v6801_v38, %v5403_v10 }
 0xbf6   : > { %v10122_v25 = vsel %vm5409_vm5, %v5411_v53, %v5407_v6 }
 0xbf7   : > { %v5413_v62 = vmul.f32 %v9972_v12, %v10122_v25  ;;  %v10130_v11 = vmul.f32 %v10065_v54, %v10122_v25  ;;  %v10134_v44 = vmul.f32 %v10070_v61, %v10122_v25  ;;  %v10138_v38 = vmul.f32 %v10075_v37, %v10122_v25 }
 0xbf8   : > { %v10142_v12 = vmul.f32 %v10080_v30, %v10122_v25  ;;  %v10146_v18 = vmul.f32 %v10087_v43, %v10122_v25  ;;  %v10150_v54 = vmul.f32 %v10092_v8, %v10122_v25  ;;  %v10154_v61 = vmul.f32 %v10097_v56, %v10122_v25 }
 0xbf9   : > { %5605 = vmatmul.f32.vlgmr.msrb.gmra.mxu1 %v5413_v62  ;;  %v10158_v37 = vmul.f32 %v10102_v7, %v10122_v25  ;;  %v10162_v30 = vmul.f32 %v10109_v50, %v10122_v25  ;;  %v10165_v28 = vmul.f32 %v6789_v9, %v10122_v25  ;;  %v10168_v43 = vmul.f32 %v6791_v57, %v10122_v25 }
 0xbfa   : > { %5540 = vmatmul.f32.gmra.mxu0 %v5444_v0  ;;  %v10171_v8 = vmul.f32 %v6793_v34, %v10122_v25  ;;  %v10174_v56 = vmul.f32 %v6795_v35, %v10122_v25  ;;  %v10177_v51 = vmul.f32 %v6797_v15, %v10122_v25  ;;  %v10180_v7 = vmul.f32 %v6799_v29, %v10122_v25 }
 0xbfb   : > { %v5415_v50 = vmul.f32 %v9976_v36, %v10122_v25  ;;  %v5417_v9 = vmul.f32 %v9982_v49, %v10122_v25  ;;  %v5419_v57 = vmul.f32 %v9987_v47, %v10122_v25  ;;  %v5421_v34 = vmul.f32 %v9992_v33, %v10122_v25  ;;  %v5493_v36 = vpop.f32.mrf.mxu0 }
 0xbfc   : > { %v5427_v49 = vmul.f32 %v10009_v24, %v10122_v25 }
 0xc01   : > { %5608 = vmatmul.f32.gmra.mxu1 %v5415_v50 }
 0xc02   : > { %5543 = vmatmul.f32.gmra.mxu0 %v5446_v55 }
 0xc03   : > { %v5496_v47 = vpop.f32.mrf.mxu0 }
 0xc09   : > { %5611 = vmatmul.f32.gmra.mxu1 %v5417_v9 }
 0xc0a   : > { %5546 = vmatmul.f32.gmra.mxu0 %v9893_v16  ;;  %v5702_v16 = vld [vmem:[%s10439_s17] sm:$0xf] }
 0xc0b   : > { %6460 = vmatpush.msk.msrb.mxu2 %vm3419_vm13, %v5702_v16  ;;  %v5499_v33 = vpop.f32.mrf.mxu0 }
 0xc11   : > { %5614 = vmatmul.f32.gmra.mxu1 %v5419_v57 }
 0xc12   : > { %5549 = vmatmul.f32.gmra.mxu0 %v9897_v46  ;;  %v5423_v46 = vmul.f32 %v9999_v27, %v10122_v25 }
 0xc13   : > { %v5502_v27 = vpop.f32.mrf.mxu0 }
 0xc19   : > { %5617 = vmatmul.f32.gmra.mxu1 %v5421_v34 }
 0xc1a   : > { %5552 = vmatmul.f32.gmra.mxu0 %v9901_v2  ;;  %v5425_v2 = vmul.f32 %v10004_v31, %v10122_v25  ;;  %v5435_v31 = vmul.f32 %v10031_v52, %v10122_v25  ;;  %v5445_v52 = vmul.f32 %v10058_v5, %v10122_v25 }
 0xc21   : > { %5620 = vmatmul.f32.gmra.mxu1 %v5423_v46 }
 0xc22   : > { %5555 = vmatmul.f32.gmra.mxu0 %v9906_v19  ;;  %v5429_v19 = vmul.f32 %v10014_v60, %v10122_v25 }
 0xc29   : > { %5623 = vmatmul.f32.gmra.mxu1 %v5425_v2 }
 0xc2a   : > { %5558 = vmatmul.f32.gmra.mxu0 %v9910_v14  ;;  %v5431_v14 = vmul.f32 %v10021_v4, %v10122_v25 }
 0xc31   : > { %5626 = vmatmul.f32.gmra.mxu1 %v5427_v49 }
 0xc32   : > { %5561 = vmatmul.f32.gmra.mxu0 %v9914_v1  ;;  %v5433_v1 = vmul.f32 %v10026_v13, %v10122_v25 }
 0xc39   : > { %5629 = vmatmul.f32.gmra.mxu1 %v5429_v19 }
 0xc3a   : > { %5564 = vmatmul.f32.gmra.mxu0 %v9918_v40  ;;  %v5505_v40 = vpop.f32.mrf.mxu0 }
 0xc41   : > { %5632 = vmatmul.f32.gmra.mxu1 %v5431_v14 }
 0xc42   : > { %5567 = vmatmul.f32.gmra.mxu0 %v9922_v59  ;;  %v5437_v59 = vmul.f32 %v10036_v20, %v10122_v25  ;;  %v5508_v24 = vpop.f32.mrf.mxu0 }
 0xc49   : > { %5635 = vmatmul.f32.gmra.mxu1 %v5433_v1 }
 0xc4a   : > { %5570 = vmatmul.f32.gmra.mxu0 %v9926_v21  ;;  %v5439_v21 = vmul.f32 %v10043_v63, %v10122_v25  ;;  %v5511_v60 = vpop.f32.mrf.mxu0 }
 0xc51   : > { %5638 = vmatmul.f32.gmra.mxu1 %v5435_v31 }
 0xc52   : > { %5573 = vmatmul.f32.gmra.mxu0 %v9930_v22  ;;  %v5441_v22 = vmul.f32 %v10048_v39, %v10122_v25  ;;  %v5514_v4 = vpop.f32.mrf.mxu0 }
 0xc59   : > { %5641 = vmatmul.f32.gmra.mxu1 %v5437_v59 }
 0xc5a   : > { %5576 = vmatmul.f32.gmra.mxu0 %v9934_v42  ;;  %v5443_v42 = vmul.f32 %v10053_v32, %v10122_v25  ;;  %v5517_v39 = vpop.f32.mrf.mxu0 }
 0xc61   : > { %5644 = vmatmul.f32.gmra.mxu1 %v5439_v21 }
 0xc62   : > { %5579 = vmatmul.f32.gmra.mxu0 %v9938_v26  ;;  %v5520_v5 = vpop.f32.mrf.mxu0 }
 0xc69   : > { %5647 = vmatmul.f32.gmra.mxu1 %v5441_v22 }
 0xc6a   : > { %5582 = vmatmul.f32.gmra.mxu0 %v9942_v58  ;;  %v5523_v45 = vpop.f32.mrf.mxu0 }
 0xc71   : > { %5650 = vmatmul.f32.gmra.mxu1 %v5443_v42 }
 0xc72   : > { %5585 = vmatmul.f32.gmra.mxu0 %v9946_v48  ;;  %v5526_v3 = vpop.f32.mrf.mxu0 }
 0xc76   : > { %v5606_v13 = vpop.f32.mrf.mxu1 }
 0xc77   : > { %v5607_v26 = vadd.f32 %v5606_v13, %v5493_v36 }
 0xc79   : > { %5653 = vmatmul.f32.gmra.mxu1 %v5445_v52  ;;  %6461 = vmatmul.msk.f32.vlgmr.msrb.gmra.mxu2 %vm3322_vm14, %v5607_v26  ;;  %v10626_v26 = vld [vmem:[#allocation14_spill] sm:$0xff] }
 0xc7a   : > { %v5529_v25 = vpop.f32.mrf.mxu0 }
 0xc7e   : > { %v5609_v58 = vpop.f32.mrf.mxu1 }
 0xc7f   : > { %v5610_v20 = vadd.f32 %v5609_v58, %v5496_v47  ;;  %v10267_v47 = vld [vmem:[%s10440_s18] ss:$0 sm:$0xff] }
 0xc81   : > { %5656 = vmatmul.f32.gmra.mxu1 %v10130_v11  ;;  %6462 = vmatmul.msk.f32.gmra.mxu2 %vm3322_vm14, %v5610_v20 }
 0xc82   : > { %v5532_v55 = vpop.f32.mrf.mxu0 }
 0xc86   : > { %v5612_v63 = vpop.f32.mrf.mxu1 }
 0xc87   : > { %v5613_v48 = vadd.f32 %v5612_v63, %v5499_v33  ;;  %v10624_v33 = vld [vmem:[#allocation6_spill] sm:$0xff] }
 0xc89   : > { %5659 = vmatmul.f32.gmra.mxu1 %v10134_v44  ;;  %6463 = vmatmul.msk.f32.gmra.mxu2 %vm3322_vm14, %v5613_v48 }
 0xc8e   : > { %v5615_v32 = vpop.f32.mrf.mxu1 }
 0xc8f   : > { %v5616_v35 = vadd.f32 %v5615_v32, %v5502_v27  ;;  %v10627_v32 = vld [vmem:[#allocation7_spill] sm:$0xff] }
 0xc91   : > { %5662 = vmatmul.f32.gmra.mxu1 %v10138_v38  ;;  %6464 = vmatmul.msk.f32.gmra.mxu2 %vm3322_vm14, %v5616_v35  ;;  %v5535_v38 = vpop.f32.mrf.mxu0 }
 0xc96   : > { %v5618_v15 = vpop.f32.mrf.mxu1 }
 0xc97   : > { %v5619_v29 = vadd.f32 %v5618_v15, %v5505_v40 }
 0xc99   : > { %5665 = vmatmul.f32.gmra.mxu1 %v10142_v12  ;;  %6465 = vmatmul.msk.f32.gmra.mxu2 %vm3322_vm14, %v5619_v29 }
 0xc9e   : > { %v5621_v17 = vpop.f32.mrf.mxu1 }
 0xc9f   : > { %v5622_v41 = vadd.f32 %v5621_v17, %v5508_v24  ;;  %v10625_v24 = vld [vmem:[#allocation10_spill] sm:$0xff] }
 0xca1   : > { %5668 = vmatmul.f32.gmra.mxu1 %v10146_v18  ;;  %6466 = vmatmul.msk.f32.gmra.mxu2 %vm3322_vm14, %v5622_v41  ;;  %v10628_v41 = vld [vmem:[#allocation5_spill] sm:$0xff] }
 0xca6   : > { %v5624_v0 = vpop.f32.mrf.mxu1 }
 0xca7   : > { %v5625_v10 = vadd.f32 %v5624_v0, %v5511_v60 }
 0xca9   : > { %5671 = vmatmul.f32.gmra.mxu1 %v10150_v54  ;;  %6467 = vmatmul.msk.f32.gmra.mxu2 %vm3322_vm14, %v5625_v10  ;;  %v5538_v54 = vpop.f32.mrf.mxu0 }
 0xcae   : > { %v5627_v53 = vpop.f32.mrf.mxu1 }
 0xcaf   : > { %v5628_v6 = vadd.f32 %v5627_v53, %v5514_v4 }
 0xcb1   : > { %5674 = vmatmul.f32.gmra.mxu1 %v10154_v61  ;;  %6468 = vmatmul.msk.f32.gmra.mxu2 %vm3322_vm14, %v5628_v6  ;;  %v5541_v57 = vpop.f32.mrf.mxu0 }
 0xcb6   : > { %v5630_v62 = vpop.f32.mrf.mxu1 }
 0xcb7   : > { %v5631_v23 = vadd.f32 %v5630_v62, %v5517_v39 }
 0xcb9   : > { %5677 = vmatmul.f32.gmra.mxu1 %v10158_v37  ;;  %6469 = vmatmul.msk.f32.gmra.mxu2 %vm3322_vm14, %v5631_v23 }
 0xcbe   : > { %v5633_v11 = vpop.f32.mrf.mxu1 }
 0xcbf   : > { %v5634_v44 = vadd.f32 %v5633_v11, %v5520_v5 }
 0xcc1   : > { %5680 = vmatmul.f32.gmra.mxu1 %v10162_v30  ;;  %6470 = vmatmul.msk.f32.gmra.mxu2 %vm3322_vm14, %v5634_v44 }
 0xcc6   : > { %v5636_v12 = vpop.f32.mrf.mxu1 }
 0xcc7   : > { %v5637_v18 = vadd.f32 %v5636_v12, %v5523_v45  ;;  %v10630_v12 = vld [vmem:[#allocation13_spill] sm:$0xff] }
 0xcc9   : > { %5683 = vmatmul.f32.gmra.mxu1 %v10165_v28  ;;  %6471 = vmatmul.msk.f32.gmra.mxu2 %vm3322_vm14, %v5637_v18  ;;  %v5544_v28 = vpop.f32.mrf.mxu0 }
 0xcce   : > { %v5639_v61 = vpop.f32.mrf.mxu1 }
 0xccf   : > { %v5640_v50 = vadd.f32 %v5639_v61, %v5526_v3 }
 0xcd1   : > { %5686 = vmatmul.f32.gmra.mxu1 %v10168_v43  ;;  %6472 = vmatmul.msk.f32.gmra.mxu2 %vm3322_vm14, %v5640_v50  ;;  %v5547_v43 = vpop.f32.mrf.mxu0 }
 0xcd6   : > { %v5642_v37 = vpop.f32.mrf.mxu1 }
 0xcd7   : > { %v5643_v9 = vadd.f32 %v5642_v37, %v5529_v25  ;;  %v10629_v25 = vld [vmem:[#allocation9_spill] sm:$0xff] }
 0xcd9   : > { %5689 = vmatmul.f32.gmra.mxu1 %v10171_v8  ;;  %6473 = vmatmul.msk.f32.gmra.mxu2 %vm3322_vm14, %v5643_v9  ;;  %v5550_v8 = vpop.f32.mrf.mxu0 }
 0xcde   : > { %v5645_v30 = vpop.f32.mrf.mxu1 }
 0xcdf   : > { %v5646_v34 = vadd.f32 %v5645_v30, %v5532_v55 }
 0xce1   : > { %5692 = vmatmul.f32.gmra.mxu1 %v10174_v56  ;;  %6474 = vmatmul.msk.f32.gmra.mxu2 %vm3322_vm14, %v5646_v34  ;;  %v5553_v1 = vpop.f32.mrf.mxu0 }
 0xce6   : > { %v5648_v16 = vpop.f32.mrf.mxu1 }
 0xce7   : > { %v5649_v46 = vadd.f32 %v5648_v16, %v5535_v38 }
 0xce9   : > { %5695 = vmatmul.f32.gmra.mxu1 %v10177_v51  ;;  %6475 = vmatmul.msk.f32.gmra.mxu2 %vm3322_vm14, %v5649_v46  ;;  %v5556_v22 = vpop.f32.mrf.mxu0 }
 0xcee   : > { %v5651_v36 = vpop.f32.mrf.mxu1 }
 0xcef   : > { %v5652_v2 = vadd.f32 %v5651_v36, %v5538_v54  ;;  %v10632_v36 = vld [vmem:[#allocation12_spill] sm:$0xff] }
 0xcf1   : > { %5698 = vmatmul.f32.gmra.mxu1 %v10180_v7  ;;  %6476 = vmatmul.msk.f32.gmra.mxu2 %vm3322_vm14, %v5652_v2  ;;  %v5559_v20 = vpop.f32.mrf.mxu0 }
 0xcf6   : > { %v5654_v49 = vpop.f32.mrf.mxu1 }
 0xcf7   : > { %v5655_v56 = vadd.f32 %v5654_v49, %v5541_v57  ;;  %v10631_v57 = vld [vmem:[#allocation8_spill] sm:$0xff] }
 0xcf9   : > { %6477 = vmatmul.msk.f32.gmra.mxu2 %vm3322_vm14, %v5655_v56  ;;  %v5562_v45 = vpop.f32.mrf.mxu0 }
 0xcfc   : > { %v5823_v51 = vpop.f32.mrf.mxu2 }
 0xcfd   : > { %v5824_v19 = vadd.f32 %v10267_v47, %v5823_v51 }
 0xcfe   : > { %v5657_v7 = vpop.f32.mrf.mxu1 }
 0xcff   : > { %v5919_v14 = vadd.f32 %v5824_v19, %v10624_v33  ;;  %v5658_v27 = vadd.f32 %v5657_v7, %v5544_v28  ;;  %v10633_v7 = vld [vmem:[#allocation11_spill] sm:$0xff] }
 0xd01   : > { %5951 = vst.msk [vmem:[%s10275_s25] sm:$0xff] %vm852_vm0, %v5919_v14  ;;  %6478 = vmatmul.msk.f32.gmra.mxu2 %vm3322_vm14, %v5658_v27  ;;  %v5565_v55 = vpop.f32.mrf.mxu0 }
 0xd04   : > { %v5826_v40 = vpop.f32.mrf.mxu2 }
 0xd05   : > { %v5827_v31 = vadd.f32 %v10267_v47, %v5826_v40 }
 0xd06   : > { %v5660_v59 = vpop.f32.mrf.mxu1 }
 0xd07   : > { %v5920_v21 = vadd.f32 %v5827_v31, %v10625_v24  ;;  %v5661_v60 = vadd.f32 %v5660_v59, %v5547_v43  ;;  %v10634_v31 = vld [vmem:[#allocation16_spill] sm:$0xff] }
 0xd09   : > { %5952 = vst.msk [vmem:[%s10275_s25 + $0x8] sm:$0xff] %vm852_vm0, %v5920_v21  ;;  %6479 = vmatmul.msk.f32.gmra.mxu2 %vm3322_vm14, %v5661_v60  ;;  %v5568_v61 = vpop.f32.mrf.mxu0 }
 0xd0c   : > { %v5829_v4 = vpop.f32.mrf.mxu2 }
 0xd0d   : > { %v5830_v42 = vadd.f32 %v10267_v47, %v5829_v4 }
 0xd0e   : > { %v5663_v13 = vpop.f32.mrf.mxu1 }
 0xd0f   : > { %v5921_v52 = vadd.f32 %v5830_v42, %v10626_v26  ;;  %v5664_v58 = vadd.f32 %v5663_v13, %v5550_v8  ;;  %v10635_v42 = vld [vmem:[#allocation15_spill] sm:$0xff] }
 0xd11   : > { %5953 = vst.msk [vmem:[%s10275_s25 + $0x10] sm:$0xff] %vm852_vm0, %v5921_v52  ;;  %6480 = vmatmul.msk.f32.gmra.mxu2 %vm3322_vm14, %v5664_v58  ;;  %v5571_v28 = vpop.f32.mrf.mxu0 }
 0xd14   : > { %v5832_v63 = vpop.f32.mrf.mxu2 }
 0xd15   : > { %v5833_v48 = vadd.f32 %v10267_v47, %v5832_v63 }
 0xd16   : > { %v5666_v39 = vpop.f32.mrf.mxu1 }
 0xd17   : > { %v5922_v35 = vadd.f32 %v5833_v48, %v10627_v32  ;;  %v5667_v5 = vadd.f32 %v5666_v39, %v5553_v1  ;;  %v10636_v48 = vld [vmem:[#allocation17_spill] sm:$0xff] }
 0xd19   : > { %5954 = vst.msk [vmem:[%s10275_s25 + $0x18] sm:$0xff] %vm852_vm0, %v5922_v35  ;;  %6481 = vmatmul.msk.f32.gmra.mxu2 %vm3322_vm14, %v5667_v5  ;;  %v5574_v51 = vpop.f32.mrf.mxu0 }
 0xd1c   : > { %v5835_v15 = vpop.f32.mrf.mxu2 }
 0xd1d   : > { %v5836_v29 = vadd.f32 %v10267_v47, %v5835_v15 }
 0xd1e   : > { %v5669_v17 = vpop.f32.mrf.mxu1 }
 0xd1f   : > { %v5923_v3 = vadd.f32 %v5836_v29, %v10628_v41  ;;  %v5670_v0 = vadd.f32 %v5669_v17, %v5556_v22 }
 0xd21   : > { %5955 = vst.msk [vmem:[%s10275_s25 + $0x20] sm:$0xff] %vm852_vm0, %v5923_v3  ;;  %6482 = vmatmul.msk.f32.gmra.mxu2 %vm3322_vm14, %v5670_v0  ;;  %v5577_v21 = vpop.f32.mrf.mxu0 }
 0xd24   : > { %v5838_v10 = vpop.f32.mrf.mxu2 }
 0xd25   : > { %v5839_v53 = vadd.f32 %v10267_v47, %v5838_v10 }
 0xd26   : > { %v5672_v6 = vpop.f32.mrf.mxu1 }
 0xd27   : > { %v5924_v62 = vadd.f32 %v5839_v53, %v10629_v25  ;;  %v5673_v23 = vadd.f32 %v5672_v6, %v5559_v20  ;;  %v10638_v6 = vld [vmem:[#allocation19_spill] sm:$0xff] }
 0xd29   : > { %5956 = vst.msk [vmem:[%s10275_s25 + $0x28] sm:$0xff] %vm852_vm0, %v5924_v62  ;;  %6483 = vmatmul.msk.f32.gmra.mxu2 %vm3322_vm14, %v5673_v23  ;;  %v5580_v52 = vpop.f32.mrf.mxu0 }
 0xd2c   : > { %v5841_v11 = vpop.f32.mrf.mxu2 }
 0xd2d   : > { %v5842_v44 = vadd.f32 %v10267_v47, %v5841_v11  ;;  %v10639_v11 = vld [vmem:[#allocation20_spill] sm:$0xff] }
 0xd2e   : > { %v5675_v38 = vpop.f32.mrf.mxu1 }
 0xd2f   : > { %v5925_v18 = vadd.f32 %v5842_v44, %v10630_v12  ;;  %v5676_v54 = vadd.f32 %v5675_v38, %v5562_v45  ;;  %v10637_v45 = vld [vmem:[#allocation18_spill] sm:$0xff] }
 0xd31   : > { %5957 = vst.msk [vmem:[%s10275_s25 + $0x30] sm:$0xff] %vm852_vm0, %v5925_v18  ;;  %6484 = vmatmul.msk.f32.gmra.mxu2 %vm3322_vm14, %v5676_v54  ;;  %v5583_v35 = vpop.f32.mrf.mxu0  ;;  %v10640_v18 = vld [vmem:[#allocation21_spill] sm:$0xff] }
 0xd34   : > { %v5844_v50 = vpop.f32.mrf.mxu2 }
 0xd35   : > { %v5845_v37 = vadd.f32 %v10267_v47, %v5844_v50 }
 0xd36   : > { %v5678_v9 = vpop.f32.mrf.mxu1 }
 0xd37   : > { %v5926_v30 = vadd.f32 %v5845_v37, %v10631_v57  ;;  %v5679_v34 = vadd.f32 %v5678_v9, %v5565_v55  ;;  %v10641_v37 = vld [vmem:[#allocation22_spill] sm:$0xff] }
 0xd39   : > { %5958 = vst.msk [vmem:[%s10275_s25 + $0x38] sm:$0xff] %vm852_vm0, %v5926_v30  ;;  %6485 = vmatmul.msk.f32.gmra.mxu2 %vm3322_vm14, %v5679_v34  ;;  %v5586_v10 = vpop.f32.mrf.mxu0  ;;  %v10642_v34 = vld [vmem:[#allocation23_spill] sm:$0xff] }
 0xd3c   : > { %v5847_v16 = vpop.f32.mrf.mxu2 }
 0xd3d   : > { %v5848_v46 = vadd.f32 %v10267_v47, %v5847_v16 }
 0xd3e   : > { %v5681_v43 = vpop.f32.mrf.mxu1 }
 0xd3f   : > { %v5927_v2 = vadd.f32 %v5848_v46, %v10632_v36  ;;  %v5682_v8 = vadd.f32 %v5681_v43, %v5568_v61  ;;  %v10643_v43 = vld [vmem:[#allocation24_spill] sm:$0xff] }
 0xd41   : > { %5959 = vst.msk [vmem:[%s10275_s25 + $0x40] sm:$0xff] %vm852_vm0, %v5927_v2  ;;  %6486 = vmatmul.msk.f32.gmra.mxu2 %vm3322_vm14, %v5682_v8 }
 0xd44   : > { %v5850_v49 = vpop.f32.mrf.mxu2 }
 0xd45   : > { %v5851_v56 = vadd.f32 %v10267_v47, %v5850_v49  ;;  %v10644_v49 = vld [vmem:[#allocation25_spill] sm:$0xff] }
 0xd46   : > { %v5684_v19 = vpop.f32.mrf.mxu1 }
 0xd47   : > { %v5928_v33 = vadd.f32 %v5851_v56, %v10633_v7  ;;  %v5685_v14 = vadd.f32 %v5684_v19, %v5571_v28  ;;  %v10645_v7 = vld [vmem:[#allocation26_spill] sm:$0xff] }
 0xd49   : > { %5960 = vst.msk [vmem:[%s10275_s25 + $0x48] sm:$0xff] %vm852_vm0, %v5928_v33  ;;  %6487 = vmatmul.msk.f32.gmra.mxu2 %vm3322_vm14, %v5685_v14 }
 0xd4c   : > { %v5853_v27 = vpop.f32.mrf.mxu2 }
 0xd4d   : > { %v5854_v1 = vadd.f32 %v10267_v47, %v5853_v27 }
 0xd4e   : > { %v5687_v40 = vpop.f32.mrf.mxu1 }
 0xd4f   : > { %v5929_v59 = vadd.f32 %v5854_v1, %v10634_v31  ;;  %v5688_v24 = vadd.f32 %v5687_v40, %v5574_v51  ;;  %v10646_v1 = vld [vmem:[#allocation27_spill] sm:$0xff] }
 0xd51   : > { %5961 = vst.msk [vmem:[%s10275_s25 + $0x50] sm:$0xff] %vm852_vm0, %v5929_v59  ;;  %6488 = vmatmul.msk.f32.gmra.mxu2 %vm3322_vm14, %v5688_v24  ;;  %v10647_v24 = vld [vmem:[#allocation28_spill] sm:$0xff] }
 0xd54   : > { %v5856_v60 = vpop.f32.mrf.mxu2 }
 0xd55   : > { %v5857_v22 = vadd.f32 %v10267_v47, %v5856_v60 }
 0xd56   : > { %v5690_v4 = vpop.f32.mrf.mxu1 }
 0xd57   : > { %v5930_v13 = vadd.f32 %v5857_v22, %v10635_v42  ;;  %v5691_v26 = vadd.f32 %v5690_v4, %v5577_v21  ;;  %v10648_v4 = vld [vmem:[#allocation29_spill] sm:$0xff] }
 0xd59   : > { %5962 = vst.msk [vmem:[%s10275_s25 + $0x58] sm:$0xff] %vm852_vm0, %v5930_v13  ;;  %6489 = vmatmul.msk.f32.gmra.mxu2 %vm3322_vm14, %v5691_v26 }
 0xd5c   : > { %v5859_v58 = vpop.f32.mrf.mxu2 }
 0xd5d   : > { %v5860_v20 = vadd.f32 %v10267_v47, %v5859_v58 }
 0xd5e   : > { %v5693_v63 = vpop.f32.mrf.mxu1 }
 0xd5f   : > { %v5931_v39 = vadd.f32 %v5860_v20, %v10636_v48  ;;  %v5694_v32 = vadd.f32 %v5693_v63, %v5580_v52  ;;  %v10649_v52 = vld [vmem:[#allocation30_spill] sm:$0xff]  ;;  %v10650_v48 = vld [vmem:[#allocation31_spill] sm:$0xff] }
 0xd61   : > { %5963 = vst.msk [vmem:[%s10275_s25 + $0x60] sm:$0xff] %vm852_vm0, %v5931_v39  ;;  %6490 = vmatmul.msk.f32.gmra.mxu2 %vm3322_vm14, %v5694_v32 }
 0xd64   : > { %v5862_v5 = vpop.f32.mrf.mxu2 }
 0xd65   : > { %v5863_v15 = vadd.f32 %v10267_v47, %v5862_v5  ;;  %v10651_v5 = vld [vmem:[#allocation32_spill] sm:$0xff] }
 0xd66   : > { %v5696_v29 = vpop.f32.mrf.mxu1 }
 0xd67   : > { %v5932_v17 = vadd.f32 %v5863_v15, %v10637_v45  ;;  %v5697_v41 = vadd.f32 %v5696_v29, %v5583_v35 }
 0xd69   : > { %5964 = vst.msk [vmem:[%s10275_s25 + $0x68] sm:$0xff] %vm852_vm0, %v5932_v17  ;;  %6491 = vmatmul.msk.f32.gmra.mxu2 %vm3322_vm14, %v5697_v41  ;;  %v10652_v17 = vld [vmem:[#allocation33_spill] sm:$0xff] }
 0xd6c   : > { %v5865_v3 = vpop.f32.mrf.mxu2 }
 0xd6d   : > { %v5866_v0 = vadd.f32 %v10267_v47, %v5865_v3 }
 0xd6e   : > { %v5699_v53 = vpop.f32.mrf.mxu1 }
 0xd6f   : > { %v5933_v25 = vadd.f32 %v5866_v0, %v10638_v6  ;;  %v5700_v62 = vadd.f32 %v5699_v53, %v5586_v10  ;;  %v10653_v10 = vld [vmem:[#allocation34_spill] sm:$0xff] }
 0xd71   : > { %5965 = vst.msk [vmem:[%s10275_s25 + $0x70] sm:$0xff] %vm852_vm0, %v5933_v25  ;;  %6492 = vmatmul.msk.f32.gmra.mxu2 %vm3322_vm14, %v5700_v62  ;;  %v10654_v62 = vld [vmem:[#allocation35_spill] sm:$0xff] }
 0xd74   : > { %v5868_v23 = vpop.f32.mrf.mxu2 }
 0xd75   : > { %v5869_v55 = vadd.f32 %v10267_v47, %v5868_v23 }
 0xd77   : > { %v5934_v44 = vadd.f32 %v5869_v55, %v10639_v11 }
 0xd79   : > { %5966 = vst.msk [vmem:[%s10275_s25 + $0x78] sm:$0xff] %vm852_vm0, %v5934_v44  ;;  %v10655_v44 = vld [vmem:[#allocation36_spill] sm:$0xff] }
 0xd7c   : > { %v5871_v38 = vpop.f32.mrf.mxu2 }
 0xd7d   : > { %v5872_v12 = vadd.f32 %v10267_v47, %v5871_v38 }
 0xd7f   : > { %v5935_v54 = vadd.f32 %v5872_v12, %v10640_v18 }
 0xd81   : > { %5967 = vst.msk [vmem:[%s10275_s25 + $0x80] sm:$0xff] %vm852_vm0, %v5935_v54 }
 0xd84   : > { %v5874_v61 = vpop.f32.mrf.mxu2 }
 0xd85   : > { %v5875_v50 = vadd.f32 %v10267_v47, %v5874_v61 }
 0xd87   : > { %v5936_v9 = vadd.f32 %v5875_v50, %v10641_v37 }
 0xd89   : > { %5968 = vst.msk [vmem:[%s10275_s25 + $0x88] sm:$0xff] %vm852_vm0, %v5936_v9 }
 0xd8c   : > { %v5877_v57 = vpop.f32.mrf.mxu2 }
 0xd8d   : > { %v5878_v30 = vadd.f32 %v10267_v47, %v5877_v57 }
 0xd8f   : > { %v5937_v28 = vadd.f32 %v5878_v30, %v10642_v34 }
 0xd91   : > { %5969 = vst.msk [vmem:[%s10275_s25 + $0x90] sm:$0xff] %vm852_vm0, %v5937_v28 }
 0xd94   : > { %v5880_v16 = vpop.f32.mrf.mxu2 }
 0xd95   : > { %v5881_v46 = vadd.f32 %v10267_v47, %v5880_v16 }
 0xd97   : > { %v5938_v36 = vadd.f32 %v5881_v46, %v10643_v43 }
 0xd99   : > { %5970 = vst.msk [vmem:[%s10275_s25 + $0x98] sm:$0xff] %vm852_vm0, %v5938_v36 }
 0xd9c   : > { %v5883_v2 = vpop.f32.mrf.mxu2 }
 0xd9d   : > { %v5884_v8 = vadd.f32 %v10267_v47, %v5883_v2 }
 0xd9f   : > { %v5939_v56 = vadd.f32 %v5884_v8, %v10644_v49 }
 0xda1   : > { %5971 = vst.msk [vmem:[%s10275_s25 + $0xa0] sm:$0xff] %vm852_vm0, %v5939_v56 }
 0xda4   : > { %v5886_v51 = vpop.f32.mrf.mxu2 }
 0xda5   : > { %v5887_v19 = vadd.f32 %v10267_v47, %v5886_v51 }
 0xda7   : > { %v5940_v33 = vadd.f32 %v5887_v19, %v10645_v7 }
 0xda9   : > { %5972 = vst.msk [vmem:[%s10275_s25 + $0xa8] sm:$0xff] %vm852_vm0, %v5940_v33 }
 0xdac   : > { %v5889_v14 = vpop.f32.mrf.mxu2 }
 0xdad   : > { %v5890_v27 = vadd.f32 %v10267_v47, %v5889_v14 }
 0xdaf   : > { %v5941_v40 = vadd.f32 %v5890_v27, %v10646_v1 }
 0xdb1   : > { %5973 = vst.msk [vmem:[%s10275_s25 + $0xb0] sm:$0xff] %vm852_vm0, %v5941_v40 }
 0xdb4   : > { %v5892_v31 = vpop.f32.mrf.mxu2 }
 0xdb5   : > { %v5893_v59 = vadd.f32 %v10267_v47, %v5892_v31 }
 0xdb7   : > { %v5942_v21 = vadd.f32 %v5893_v59, %v10647_v24 }
 0xdb9   : > { %5974 = vst.msk [vmem:[%s10275_s25 + $0xb8] sm:$0xff] %vm852_vm0, %v5942_v21 }
 0xdbc   : > { %v5895_v60 = vpop.f32.mrf.mxu2 }
 0xdbd   : > { %v5896_v22 = vadd.f32 %v10267_v47, %v5895_v60 }
 0xdbf   : > { %v5943_v42 = vadd.f32 %v5896_v22, %v10648_v4 }
 0xdc1   : > { %5975 = vst.msk [vmem:[%s10275_s25 + $0xc0] sm:$0xff] %vm852_vm0, %v5943_v42 }
 0xdc4   : > { %v5898_v13 = vpop.f32.mrf.mxu2 }
 0xdc5   : > { %v5899_v26 = vadd.f32 %v10267_v47, %v5898_v13 }
 0xdc7   : > { %v5944_v58 = vadd.f32 %v5899_v26, %v10649_v52 }
 0xdc9   : > { %5976 = vst.msk [vmem:[%s10275_s25 + $0xc8] sm:$0xff] %vm852_vm0, %v5944_v58 }
 0xdcc   : > { %v5901_v20 = vpop.f32.mrf.mxu2 }
 0xdcd   : > { %v5902_v63 = vadd.f32 %v10267_v47, %v5901_v20 }
 0xdcf   : > { %v5945_v39 = vadd.f32 %v5902_v63, %v10650_v48 }
 0xdd1   : > { %5977 = vst.msk [vmem:[%s10275_s25 + $0xd0] sm:$0xff] %vm852_vm0, %v5945_v39 }
 0xdd4   : > { %v5904_v32 = vpop.f32.mrf.mxu2 }
 0xdd5   : > { %v5905_v35 = vadd.f32 %v10267_v47, %v5904_v32 }
 0xdd7   : > { %v5946_v15 = vadd.f32 %v5905_v35, %v10651_v5 }
 0xdd9   : > { %5978 = vst.msk [vmem:[%s10275_s25 + $0xd8] sm:$0xff] %vm852_vm0, %v5946_v15 }
 0xddc   : > { %v5907_v29 = vpop.f32.mrf.mxu2 }
 0xddd   : > { %v5908_v45 = vadd.f32 %v10267_v47, %v5907_v29 }
 0xddf   : > { %v5947_v41 = vadd.f32 %v5908_v45, %v10652_v17 }
 0xde1   : > { %5979 = vst.msk [vmem:[%s10275_s25 + $0xe0] sm:$0xff] %vm852_vm0, %v5947_v41 }
 0xde4   : > { %v5910_v3 = vpop.f32.mrf.mxu2 }
 0xde5   : > { %v5911_v0 = vadd.f32 %v10267_v47, %v5910_v3 }
 0xde7   : > { %v5948_v53 = vadd.f32 %v5911_v0, %v10653_v10 }
 0xde9   : > { %5980 = vst.msk [vmem:[%s10275_s25 + $0xe8] sm:$0xff] %vm852_vm0, %v5948_v53 }
 0xdec   : > { %v5913_v6 = vpop.f32.mrf.mxu2 }
 0xded   : > { %v5914_v25 = vadd.f32 %v10267_v47, %v5913_v6 }
 0xdef   : > { %v5949_v23 = vadd.f32 %v5914_v25, %v10654_v62 }
 0xdf1   : > { %5981 = vst.msk [vmem:[%s10275_s25 + $0xf0] sm:$0xff] %vm852_vm0, %v5949_v23 }
 0xdf4   : > { %v5916_v55 = vpop.f32.mrf.mxu2 }
 0xdf5   : > { %v5917_v11 = vadd.f32 %v10267_v47, %v5916_v55 }
 0xdf7   : > { %v5950_v38 = vadd.f32 %v5917_v11, %v10655_v44 }
 0xdf9   : > { %5982 = vst.msk [vmem:[%s10275_s25 + $0xf8] sm:$0xff] %vm852_vm0, %v5950_v38 }
 0xdfa PF: > { %s30_s0 = sadd.s32 1, %s6906_s0  }
 0xdfb   : > { %p27_p7 = scmp.ge.s32.totalorder %s30_s0, 4  }
 0xdfd   :  { %29 = sbr.rel (!%p27_p7) target bundleno = 6 (0x6), region = 179 }
 0xe02   :  { %6004 = vsyncpa [#allocation3], 1 }
 0xe03   :  { %6006 = vsyncpa [#allocation3 + $0x1], 1 }

</bundles_post_ra>
